<compile_context>
chip_gen: v6e
topology: v6e:2x2x1
jax: 0.10.0
libtpu: 0.0.40
codegen_flags: <defaults>
</compile_context>

<pallas_src>
import math
import jax
import jax.numpy as jnp
from jax.experimental import pallas as pl
from jax.experimental.pallas import tpu as pltpu

# ---------------- scaled-down config (structure matches the PyTorch module) ---
D_MODEL = 64                      # CONFORMER_INPUT_DIM (768 -> 64)
N_HEAD = 4                        # CONFORMER_NHEAD   (8 -> 4)
HEAD_DIM = D_MODEL // N_HEAD
D_FF = D_MODEL * 4                # CONFORMER_FF_DIM_FACTOR = 4
CONV_K = 7                        # CONFORMER_CONV_KERNEL_SIZE (31 -> 7), odd
CONV_PAD = (CONV_K - 1) // 2
NUM_BLOCKS = 2                    # CONFORMER_NUM_BLOCKS (4 -> 2)
ATTN_POOL = 32                    # ATTN_POOL_DIM (128 -> 32)
POOLED_DIM = 2 * D_MODEL
OUT_WIDTH = 128                   # lane-dense output slab (first 4 lanes used)
HID_PAD = 128                     # fused head hidden dim, zero-padded to 128
B, T = 2, 16
BT = B * T

TASKS = {'age': {'type': 'regression'},
         'Gender': {'type': 'classification', 'num_classes': 2},
         'height': {'type': 'regression'}}
HEAD_CONFIGS = {'age': 32, 'Gender': 24, 'height': 16}     # (128/96/64 -> 32/24/16)
HID_TOTAL = sum(HEAD_CONFIGS.values())

# static column slices of the fused head output slab
_TASK_SLICES = {}
_col = 0
for _t, _info in TASKS.items():
    _odim = 1 if _info['type'] == 'regression' else _info['num_classes']
    _TASK_SLICES[_t] = (_col, _col + _odim)
    _col += _odim

LN_EPS = 1e-5
BN_EPS = 1e-5
NEG_BIG = -1e9

# ---- row layout of the per-block "vec64" vector slab (all rows are width D) --
_V_LN_G = 0                       # 4 rows: LayerNorm gammas (norm1..norm4)
_V_LN_B = 4                       # 4 rows: LayerNorm betas
_V_FFN_B2 = 8                     # 2 rows: ffn1/ffn2 linear2 bias
_V_B_O = 10                       # attention output-projection bias
_V_CB1A = 11                      # conv pointwise1 bias (activation half)
_V_CB1G = 12                      # conv pointwise1 bias (gate half)
_V_CDWB = 13                      # depthwise conv bias
_V_BN_SCALE = 14                  # BatchNorm1d folded scale (eval mode)
_V_BN_SHIFT = 15                  # BatchNorm1d folded shift
_V_CB2 = 16                       # conv pointwise2 bias
_V_CDW = 17                       # CONV_K rows: depthwise conv taps
N_VEC64 = _V_CDW + CONV_K         # 24

# ---- row layout of the fused head slab "whead" (width OUT_WIDTH) -------------
_HW2_ROW = POOLED_DIM             # rows [0, POOLED_DIM)            : W1 (128 x 128-padded)
_HB1_ROW = POOLED_DIM + HID_PAD   # rows [POOLED_DIM, +HID_PAD)     : W2 (128-padded x 128)
_HB2_ROW = _HB1_ROW + 1
WHEAD_ROWS = _HB2_ROW + 1         # 258


# ------------------------------- kernel helpers --------------------------------
def _ln(h, g, b):
    mu = jnp.mean(h, axis=-1, keepdims=True)
    var = jnp.mean((h - mu) ** 2, axis=-1, keepdims=True)
    return (h - mu) * jax.lax.rsqrt(var + LN_EPS) * g + b


def _swish(h):
    return h * jax.nn.sigmoid(h)


# ------------------------------- fused kernel ----------------------------------
def _fused_kernel(x_ref, abias_ref, pbias_ref, vec64_ref, vec256_ref, bqkv_ref,
                  wff1_ref, wff2_ref, wqkvh_ref, wsq_ref, wpool_ref, whead_ref,
                  out_ref):
    f32 = jnp.float32
    x = x_ref[...]                        # (BT, D)   both samples stacked on sublanes
    ab = abias_ref[...]                   # (B, T)    additive key-padding bias (0 / -1e9)
    pb = pbias_ref[...]                   # (BT, 1)   additive pooling bias

    # per-tap conv validity masks, hoisted out of the block loop.  They encode
    # both the "same" zero padding and the folded per-sample boundary.
    tpos = jax.lax.broadcasted_iota(jnp.int32, (BT, 1), 0) % T
    conv_mask = [jnp.logical_and(tpos + d >= 0, tpos + d < T).astype(f32)
                 for d in range(-CONV_PAD, CONV_PAD + 1)]

    for blk in range(NUM_BLOCKS):
        v64 = vec64_ref[blk]              # (N_VEC64, D)
        v256 = vec256_ref[blk]            # (2, D_FF)
        bq = bqkv_ref[blk]                # (3*N_HEAD, HEAD_DIM), Q rows pre-scaled

        def row(i):
            return v64[i:i + 1, :]        # (1, D) sublane slice (full lane width)

        # ---------------- FFN1 (half-step residual); dropout = identity --------
        h = _ln(x, row(_V_LN_G + 0), row(_V_LN_B + 0))
        h = _swish(jnp.dot(h, wff1_ref[2 * blk + 0],
                           preferred_element_type=f32) + v256[0:1, :])
        h = jnp.dot(h, wff2_ref[2 * blk + 0],
                    preferred_element_type=f32) + row(_V_FFN_B2 + 0)
        x = x + 0.5 * h

        # ---------------- multi-head self-attention (key_padding_mask) ---------
        # per-head weights pre-split in the wrapper; scale folded into Q; the
        # head concat is folded into an accumulation over sublane slices of W_o.
        h = _ln(x, row(_V_LN_G + 1), row(_V_LN_B + 1))
        w_o = wsq_ref[4 * blk + 0]        # (D, D)
        attn = jnp.zeros((BT, D_MODEL), f32)
        for hd in range(N_HEAD):
            base = 3 * (blk * N_HEAD + hd)
            q = jnp.dot(h, wqkvh_ref[base + 0],
                        preferred_element_type=f32) + bq[3 * hd + 0:3 * hd + 1, :]
            k = jnp.dot(h, wqkvh_ref[base + 1],
                        preferred_element_type=f32) + bq[3 * hd + 1:3 * hd + 2, :]
            vv = jnp.dot(h, wqkvh_ref[base + 2],
                         preferred_element_type=f32) + bq[3 * hd + 2:3 * hd + 3, :]
            per_sample = []
            for b in range(B):            # unrolled; 8-aligned sublane slices
                sl = slice(b * T, (b + 1) * T)
                s = jax.lax.dot_general(q[sl, :], k[sl, :],
                                        (((1,), (1,)), ((), ())),
                                        preferred_element_type=f32)       # (T, T)
                s = s + ab[b:b + 1, :]
                s = s - jnp.max(s, axis=-1, keepdims=True)
                p = jnp.exp(s)
                p = p * pl.reciprocal(jnp.sum(p, axis=-1, keepdims=True), approx=True)
                per_sample.append(jnp.dot(p, vv[sl, :], preferred_element_type=f32))
            ho = jnp.concatenate(per_sample, axis=0)                       # (BT, dh)
            attn = attn + jnp.dot(ho, w_o[hd * HEAD_DIM:(hd + 1) * HEAD_DIM, :],
                                  preferred_element_type=f32)
        x = x + attn + row(_V_B_O)

        # ---------------- convolution module ----------------------------------
        # pointwise1 + GLU -> depthwise (roll + mask) -> BN(eval) -> Swish -> pointwise2
        h = _ln(x, row(_V_LN_G + 2), row(_V_LN_B + 2))
        act = jnp.dot(h, wsq_ref[4 * blk + 1], preferred_element_type=f32) + row(_V_CB1A)
        gate = jnp.dot(h, wsq_ref[4 * blk + 2], preferred_element_type=f32) + row(_V_CB1G)
        h = act * jax.nn.sigmoid(gate)                                     # GLU
        acc = jnp.zeros((BT, D_MODEL), f32)
        for kk in range(CONV_K):
            d = kk - CONV_PAD
            if d == 0:
                shifted = h
            else:
                # jnp.roll semantics: shifted[t] = h[(t + d) mod BT]; out-of-sample
                # rows are zeroed by conv_mask (emulates per-sample zero padding).
                shifted = pltpu.roll(h, shift=(-d) % BT, axis=0)
            acc = acc + (shifted * conv_mask[kk]) * row(_V_CDW + kk)
        acc = acc + row(_V_CDWB)
        acc = acc * row(_V_BN_SCALE) + row(_V_BN_SHIFT)    # BatchNorm1d eval (folded)
        acc = _swish(acc)
        h = jnp.dot(acc, wsq_ref[4 * blk + 3], preferred_element_type=f32) + row(_V_CB2)
        x = x + h

        # ---------------- FFN2 (half-step residual) ----------------------------
        h = _ln(x, row(_V_LN_G + 3), row(_V_LN_B + 3))
        h = _swish(jnp.dot(h, wff1_ref[2 * blk + 1],
                           preferred_element_type=f32) + v256[1:2, :])
        h = jnp.dot(h, wff2_ref[2 * blk + 1],
                    preferred_element_type=f32) + row(_V_FFN_B2 + 1)
        x = x + 0.5 * h

    # ---------------- attentive statistics pooling (per sample) ----------------
    wa = wpool_ref[0:D_MODEL, :]                   # (D, A)
    ba = wpool_ref[D_MODEL:D_MODEL + 1, :]         # (1, A)
    wvr = wpool_ref[D_MODEL + 1:D_MODEL + 2, :]    # (1, A) = wv^T; bv dropped (softmax shift-invariant)
    means, stds = [], []
    for b in range(B):
        sl = slice(b * T, (b + 1) * T)
        xs = x[sl, :]                                                       # (T, D)
        hA = jnp.tanh(jnp.dot(xs, wa, preferred_element_type=f32) + ba)     # (T, A)
        logits = jnp.sum(hA * wvr, axis=-1, keepdims=True) + pb[sl, :]      # (T, 1)
        m = jnp.max(logits, axis=0, keepdims=True)
        w = jnp.exp(logits - m)
        w = w * pl.reciprocal(jnp.sum(w, axis=0, keepdims=True), approx=True)
        wm = jnp.sum(xs * w, axis=0, keepdims=True)                         # (1, D)
        ws = jnp.sum(xs * xs * w, axis=0, keepdims=True)
        means.append(wm)
        stds.append(jnp.sqrt(jnp.maximum(ws - wm * wm, 1e-9)))
    WM = jnp.concatenate(means, axis=0)            # (B, D)  weighted means
    WS = jnp.concatenate(stds, axis=0)             # (B, D)  weighted stds

    # ---------------- fused task heads (Linear -> ReLU -> Linear) --------------
    # pooled = [WM | WS]; the lane concat is folded into two sublane slices of W1.
    hw1_top = whead_ref[0:D_MODEL, :]              # (D, HID_PAD)  mean rows of W1
    hw1_bot = whead_ref[D_MODEL:POOLED_DIM, :]     # (D, HID_PAD)  std rows of W1
    hw2 = whead_ref[_HW2_ROW:_HW2_ROW + HID_PAD, :]
    hb1 = whead_ref[_HB1_ROW:_HB1_ROW + 1, :]
    hb2 = whead_ref[_HB2_ROW:_HB2_ROW + 1, :]
    hh = jnp.maximum(jnp.dot(WM, hw1_top, preferred_element_type=f32)
                     + jnp.dot(WS, hw1_bot, preferred_element_type=f32) + hb1, 0.0)
    out_ref[...] = jnp.dot(hh, hw2, preferred_element_type=f32) + hb2       # (B, OUT_WIDTH)


# ------------------------------- wrapper ---------------------------------------
def forward(hidden_states, padding_mask, params):
    """hidden_states: (B, T, D) SSL features; padding_mask: (B, T) bool, True = pad."""
    Bb, Tt, Dd = hidden_states.shape
    assert (Bb, Tt, Dd) == (B, T, D_MODEL)
    x = hidden_states.astype(jnp.float32).reshape(Bb * Tt, Dd)      # (BT, D)
    neg = jnp.where(padding_mask, NEG_BIG, 0.0).astype(jnp.float32)  # (B, T)
    abias = neg                                                      # key-padding bias
    pbias = neg.reshape(Bb * Tt, 1)                                  # pooling bias

    out = pl.pallas_call(
        _fused_kernel,
        out_shape=jax.ShapeDtypeStruct((Bb, OUT_WIDTH), jnp.float32),
    )(x, abias, pbias,
      params['vec64'], params['vec256'], params['bqkv'],
      params['wff1'], params['wff2'], params['wqkvh'], params['wsq'],
      params['wpool'], params['whead'])

    preds = {}
    for task, info in TASKS.items():
        lo, hi = _TASK_SLICES[task]
        sl = out[:, lo:hi]
        preds[task] = sl[:, 0] if info['type'] == 'regression' else sl
    return preds


# ------------------------------- parameters ------------------------------------
def _dense(key, shape, scale=0.02):
    return scale * jax.random.normal(key, shape, dtype=jnp.float32)


def init_params(key):
    """Build packed, lane-dense weight slabs (9 kernel inputs total)."""
    f32 = jnp.float32
    scale_q = 1.0 / math.sqrt(HEAD_DIM)
    bn_scale = jnp.full((D_MODEL,), 1.0 / math.sqrt(1.0 + BN_EPS), f32)
    bn_shift = jnp.zeros((D_MODEL,), f32)

    vec64, vec256, bqkv, wff1, wff2, wqkvh, wsq = [], [], [], [], [], [], []
    for _ in range(NUM_BLOCKS):
        key, *ks = jax.random.split(key, 11)
        ln_g = jnp.ones((4, D_MODEL), f32)
        ln_b = jnp.zeros((4, D_MODEL), f32)
        ffn_w1 = _dense(ks[0], (2, D_MODEL, D_FF))
        ffn_b1 = jnp.zeros((2, D_FF), f32)
        ffn_w2 = _dense(ks[1], (2, D_FF, D_MODEL))
        ffn_b2 = jnp.zeros((2, D_MODEL), f32)
        w_qkv = _dense(ks[2], (D_MODEL, 3 * D_MODEL))
        b_qkv = _dense(ks[3], (3 * D_MODEL,), 0.01)
        w_o = _dense(ks[4], (D_MODEL, D_MODEL))
        b_o = jnp.zeros((D_MODEL,), f32)
        cw1a = _dense(ks[5], (D_MODEL, D_MODEL)); cb1a = jnp.zeros((D_MODEL,), f32)
        cw1g = _dense(ks[6], (D_MODEL, D_MODEL)); cb1g = jnp.zeros((D_MODEL,), f32)
        cdw = _dense(ks[7], (CONV_K, D_MODEL));   cdwb = jnp.zeros((D_MODEL,), f32)
        cw2 = _dense(ks[8], (D_MODEL, D_MODEL));  cb2 = jnp.zeros((D_MODEL,), f32)

        # vector slab (rows match _V_* layout)
        vec64.append(jnp.concatenate(
            [ln_g, ln_b, ffn_b2,
             b_o[None], cb1a[None], cb1g[None], cdwb[None],
             bn_scale[None], bn_shift[None], cb2[None], cdw], axis=0))   # (N_VEC64, D)
        vec256.append(ffn_b1)                                            # (2, D_FF)

        # per-head q/k/v biases & weights; 1/sqrt(dh) folded into Q
        bq_rows, wqkvh_blk = [], []
        for hd in range(N_HEAD):
            cq = slice(hd * HEAD_DIM, (hd + 1) * HEAD_DIM)
            ck = slice(D_MODEL + hd * HEAD_DIM, D_MODEL + (hd + 1) * HEAD_DIM)
            cv = slice(2 * D_MODEL + hd * HEAD_DIM, 2 * D_MODEL + (hd + 1) * HEAD_DIM)
            bq_rows += [b_qkv[cq] * scale_q, b_qkv[ck], b_qkv[cv]]
            wqkvh_blk += [w_qkv[:, cq] * scale_q, w_qkv[:, ck], w_qkv[:, cv]]
        bqkv.append(jnp.stack(bq_rows, axis=0))                          # (3*NH, dh)
        wqkvh.extend(wqkvh_blk)

        wff1 += [ffn_w1[0], ffn_w1[1]]
        wff2 += [ffn_w2[0], ffn_w2[1]]
        wsq += [w_o, cw1a, cw1g, cw2]

    # attentive pooling: [wa ; ba ; wv^T]; bv dropped (softmax is shift-invariant)
    key, k1, k2 = jax.random.split(key, 3)
    wa = _dense(k1, (D_MODEL, ATTN_POOL))
    ba = jnp.zeros((1, ATTN_POOL), f32)
    wv = _dense(k2, (ATTN_POOL, 1))
    wpool = jnp.concatenate([wa, ba, wv.T], axis=0)                      # (D+2, A)

    # fused task heads, zero-padded to lane-dense 128-wide slabs
    hw1 = jnp.zeros((POOLED_DIM, HID_PAD), f32)
    hw2 = jnp.zeros((HID_PAD, OUT_WIDTH), f32)
    hb1 = jnp.zeros((1, HID_PAD), f32)
    hb2 = jnp.zeros((1, OUT_WIDTH), f32)
    row = 0
    for task, info in TASKS.items():
        hdim = HEAD_CONFIGS[task]
        odim = 1 if info['type'] == 'regression' else info['num_classes']
        lo, _ = _TASK_SLICES[task]
        key, ka, kb, kc, kd = jax.random.split(key, 5)
        hw1 = hw1.at[:, row:row + hdim].set(_dense(ka, (POOLED_DIM, hdim)))
        hb1 = hb1.at[:, row:row + hdim].set(_dense(kc, (1, hdim), 0.01))
        hw2 = hw2.at[row:row + hdim, lo:lo + odim].set(_dense(kb, (hdim, odim)))
        hb2 = hb2.at[:, lo:lo + odim].set(_dense(kd, (1, odim), 0.01))
        row += hdim
    whead = jnp.concatenate([hw1, hw2, hb1, hb2], axis=0)                # (WHEAD_ROWS, 128)
    assert whead.shape[0] == WHEAD_ROWS

    return {
        'vec64': jnp.stack(vec64, 0),     # (NB, N_VEC64, D)
        'vec256': jnp.stack(vec256, 0),   # (NB, 2, D_FF)
        'bqkv': jnp.stack(bqkv, 0),       # (NB, 3*NH, dh)
        'wff1': jnp.stack(wff1, 0),       # (NB*2, D, D_FF)
        'wff2': jnp.stack(wff2, 0),       # (NB*2, D_FF, D)
        'wqkvh': jnp.stack(wqkvh, 0),     # (NB*NH*3, D, dh)
        'wsq': jnp.stack(wsq, 0),         # (NB*4, D, D)
        'wpool': wpool,                   # (D+2, A)
        'whead': whead,                   # (WHEAD_ROWS, 128)
    }


# ------------------------------- main -------------------------------------------
if __name__ == "__main__":
    key = jax.random.PRNGKey(0)
    kp, kx = jax.random.split(key)
    params = init_params(kp)

    hidden_states = jax.random.normal(kx, (B, T, D_MODEL), dtype=jnp.float32)
    # sample 1 has its last 4 frames padded (conformer_padding_mask: True = pad)
    padding_mask = jnp.zeros((B, T), dtype=bool).at[1, T - 4:].set(True)

    fwd = jax.jit(forward)
    preds = fwd(hidden_states, padding_mask, params)
    preds = jax.block_until_ready(preds)

    assert preds['age'].shape == (B,)
    assert preds['Gender'].shape == (B, TASKS['Gender']['num_classes'])
    assert preds['height'].shape == (B,)
    assert all(bool(jnp.all(jnp.isfinite(v))) for v in preds.values())
    print("KERNEL_OK")
</pallas_src>

<mosaic_0001>
module attributes {stable_mosaic.version = 11 : i64} {
  func.func @_fused_kernel(%arg0: memref<32x64xf32, #tpu.memory_space<vmem>>, %arg1: memref<2x16xf32, #tpu.memory_space<vmem>>, %arg2: memref<32x1xf32, #tpu.memory_space<vmem>>, %arg3: memref<2x24x64xf32, #tpu.memory_space<vmem>>, %arg4: memref<2x2x256xf32, #tpu.memory_space<vmem>>, %arg5: memref<2x12x16xf32, #tpu.memory_space<vmem>>, %arg6: memref<4x64x256xf32, #tpu.memory_space<vmem>>, %arg7: memref<4x256x64xf32, #tpu.memory_space<vmem>>, %arg8: memref<24x64x16xf32, #tpu.memory_space<vmem>>, %arg9: memref<8x64x64xf32, #tpu.memory_space<vmem>>, %arg10: memref<66x32xf32, #tpu.memory_space<vmem>>, %arg11: memref<258x128xf32, #tpu.memory_space<vmem>>, %arg12: memref<2x128xf32, #tpu.memory_space<vmem>>) attributes {dimension_semantics = [], scalar_prefetch = 0 : i64, scratch_operands = 0 : i64, tpu.core_type = #tpu.core_type<tc>} {
    %c0 = arith.constant 0 : index
    %c0_0 = arith.constant 0 : index
    %0 = vector.load %arg0[%c0, %c0_0] : memref<32x64xf32, #tpu.memory_space<vmem>>, vector<32x64xf32>
    %c0_1 = arith.constant 0 : index
    %c0_2 = arith.constant 0 : index
    %1 = vector.load %arg1[%c0_1, %c0_2] : memref<2x16xf32, #tpu.memory_space<vmem>>, vector<2x16xf32>
    %c0_3 = arith.constant 0 : index
    %c0_4 = arith.constant 0 : index
    %2 = vector.load %arg2[%c0_3, %c0_4] : memref<32x1xf32, #tpu.memory_space<vmem>>, vector<32x1xf32>
    %3 = tpu.iota {dimensions = array<i32: 0>} : vector<32x1xi32>
    %c16_i32 = arith.constant 16 : i32
    %c0_i32 = arith.constant 0 : i32
    %4 = arith.cmpi eq, %c16_i32, %c0_i32 : i32
    %c1_i32 = arith.constant 1 : i32
    %5 = arith.select %4, %c1_i32, %c16_i32 : i32
    %6 = vector.broadcast %5 : i32 to vector<32x1xi32>
    %7 = arith.remsi %3, %6 : vector<32x1xi32>
    %c0_i32_5 = arith.constant 0 : i32
    %8 = vector.broadcast %c0_i32_5 : i32 to vector<32x1xi32>
    %9 = arith.cmpi ne, %7, %8 : vector<32x1xi32>
    %c0_i32_6 = arith.constant 0 : i32
    %10 = vector.broadcast %c0_i32_6 : i32 to vector<32x1xi32>
    %11 = arith.cmpi slt, %7, %10 : vector<32x1xi32>
    %c0_i32_7 = arith.constant 0 : i32
    %12 = arith.cmpi slt, %5, %c0_i32_7 : i32
    %13 = vector.broadcast %12 : i1 to vector<32x1xi1>
    %14 = vector.broadcast %13 : vector<32x1xi1> to vector<32x1xi1>
    %15 = arith.xori %11, %14 : vector<32x1xi1>
    %16 = arith.andi %15, %9 : vector<32x1xi1>
    %17 = vector.broadcast %5 : i32 to vector<32x1xi32>
    %18 = arith.addi %7, %17 : vector<32x1xi32>
    %19 = arith.select %16, %18, %7 : vector<32x1xi1>, vector<32x1xi32>
    %c-3_i32 = arith.constant -3 : i32
    %20 = vector.broadcast %c-3_i32 : i32 to vector<32x1xi32>
    %21 = arith.addi %19, %20 : vector<32x1xi32>
    %c0_i32_8 = arith.constant 0 : i32
    %22 = vector.broadcast %c0_i32_8 : i32 to vector<32x1xi32>
    %23 = arith.cmpi sge, %21, %22 : vector<32x1xi32>
    %c-3_i32_9 = arith.constant -3 : i32
    %24 = vector.broadcast %c-3_i32_9 : i32 to vector<32x1xi32>
    %25 = arith.addi %19, %24 : vector<32x1xi32>
    %c16_i32_10 = arith.constant 16 : i32
    %26 = vector.broadcast %c16_i32_10 : i32 to vector<32x1xi32>
    %27 = arith.cmpi slt, %25, %26 : vector<32x1xi32>
    %28 = arith.andi %23, %27 : vector<32x1xi1>
    %29 = arith.extui %28 : vector<32x1xi1> to vector<32x1xi32>
    %30 = arith.sitofp %29 : vector<32x1xi32> to vector<32x1xf32>
    %c-2_i32 = arith.constant -2 : i32
    %31 = vector.broadcast %c-2_i32 : i32 to vector<32x1xi32>
    %32 = arith.addi %19, %31 : vector<32x1xi32>
    %c0_i32_11 = arith.constant 0 : i32
    %33 = vector.broadcast %c0_i32_11 : i32 to vector<32x1xi32>
    %34 = arith.cmpi sge, %32, %33 : vector<32x1xi32>
    %c-2_i32_12 = arith.constant -2 : i32
    %35 = vector.broadcast %c-2_i32_12 : i32 to vector<32x1xi32>
    %36 = arith.addi %19, %35 : vector<32x1xi32>
    %c16_i32_13 = arith.constant 16 : i32
    %37 = vector.broadcast %c16_i32_13 : i32 to vector<32x1xi32>
    %38 = arith.cmpi slt, %36, %37 : vector<32x1xi32>
    %39 = arith.andi %34, %38 : vector<32x1xi1>
    %40 = arith.extui %39 : vector<32x1xi1> to vector<32x1xi32>
    %41 = arith.sitofp %40 : vector<32x1xi32> to vector<32x1xf32>
    %c-1_i32 = arith.constant -1 : i32
    %42 = vector.broadcast %c-1_i32 : i32 to vector<32x1xi32>
    %43 = arith.addi %19, %42 : vector<32x1xi32>
    %c0_i32_14 = arith.constant 0 : i32
    %44 = vector.broadcast %c0_i32_14 : i32 to vector<32x1xi32>
    %45 = arith.cmpi sge, %43, %44 : vector<32x1xi32>
    %c-1_i32_15 = arith.constant -1 : i32
    %46 = vector.broadcast %c-1_i32_15 : i32 to vector<32x1xi32>
    %47 = arith.addi %19, %46 : vector<32x1xi32>
    %c16_i32_16 = arith.constant 16 : i32
    %48 = vector.broadcast %c16_i32_16 : i32 to vector<32x1xi32>
    %49 = arith.cmpi slt, %47, %48 : vector<32x1xi32>
    %50 = arith.andi %45, %49 : vector<32x1xi1>
    %51 = arith.extui %50 : vector<32x1xi1> to vector<32x1xi32>
    %52 = arith.sitofp %51 : vector<32x1xi32> to vector<32x1xf32>
    %c0_i32_17 = arith.constant 0 : i32
    %53 = vector.broadcast %c0_i32_17 : i32 to vector<32x1xi32>
    %54 = arith.addi %19, %53 : vector<32x1xi32>
    %c0_i32_18 = arith.constant 0 : i32
    %55 = vector.broadcast %c0_i32_18 : i32 to vector<32x1xi32>
    %56 = arith.cmpi sge, %54, %55 : vector<32x1xi32>
    %c0_i32_19 = arith.constant 0 : i32
    %57 = vector.broadcast %c0_i32_19 : i32 to vector<32x1xi32>
    %58 = arith.addi %19, %57 : vector<32x1xi32>
    %c16_i32_20 = arith.constant 16 : i32
    %59 = vector.broadcast %c16_i32_20 : i32 to vector<32x1xi32>
    %60 = arith.cmpi slt, %58, %59 : vector<32x1xi32>
    %61 = arith.andi %56, %60 : vector<32x1xi1>
    %62 = arith.extui %61 : vector<32x1xi1> to vector<32x1xi32>
    %63 = arith.sitofp %62 : vector<32x1xi32> to vector<32x1xf32>
    %c1_i32_21 = arith.constant 1 : i32
    %64 = vector.broadcast %c1_i32_21 : i32 to vector<32x1xi32>
    %65 = arith.addi %19, %64 : vector<32x1xi32>
    %c0_i32_22 = arith.constant 0 : i32
    %66 = vector.broadcast %c0_i32_22 : i32 to vector<32x1xi32>
    %67 = arith.cmpi sge, %65, %66 : vector<32x1xi32>
    %c1_i32_23 = arith.constant 1 : i32
    %68 = vector.broadcast %c1_i32_23 : i32 to vector<32x1xi32>
    %69 = arith.addi %19, %68 : vector<32x1xi32>
    %c16_i32_24 = arith.constant 16 : i32
    %70 = vector.broadcast %c16_i32_24 : i32 to vector<32x1xi32>
    %71 = arith.cmpi slt, %69, %70 : vector<32x1xi32>
    %72 = arith.andi %67, %71 : vector<32x1xi1>
    %73 = arith.extui %72 : vector<32x1xi1> to vector<32x1xi32>
    %74 = arith.sitofp %73 : vector<32x1xi32> to vector<32x1xf32>
    %c2_i32 = arith.constant 2 : i32
    %75 = vector.broadcast %c2_i32 : i32 to vector<32x1xi32>
    %76 = arith.addi %19, %75 : vector<32x1xi32>
    %c0_i32_25 = arith.constant 0 : i32
    %77 = vector.broadcast %c0_i32_25 : i32 to vector<32x1xi32>
    %78 = arith.cmpi sge, %76, %77 : vector<32x1xi32>
    %c2_i32_26 = arith.constant 2 : i32
    %79 = vector.broadcast %c2_i32_26 : i32 to vector<32x1xi32>
    %80 = arith.addi %19, %79 : vector<32x1xi32>
    %c16_i32_27 = arith.constant 16 : i32
    %81 = vector.broadcast %c16_i32_27 : i32 to vector<32x1xi32>
    %82 = arith.cmpi slt, %80, %81 : vector<32x1xi32>
    %83 = arith.andi %78, %82 : vector<32x1xi1>
    %84 = arith.extui %83 : vector<32x1xi1> to vector<32x1xi32>
    %85 = arith.sitofp %84 : vector<32x1xi32> to vector<32x1xf32>
    %c3_i32 = arith.constant 3 : i32
    %86 = vector.broadcast %c3_i32 : i32 to vector<32x1xi32>
    %87 = arith.addi %19, %86 : vector<32x1xi32>
    %c0_i32_28 = arith.constant 0 : i32
    %88 = vector.broadcast %c0_i32_28 : i32 to vector<32x1xi32>
    %89 = arith.cmpi sge, %87, %88 : vector<32x1xi32>
    %c3_i32_29 = arith.constant 3 : i32
    %90 = vector.broadcast %c3_i32_29 : i32 to vector<32x1xi32>
    %91 = arith.addi %19, %90 : vector<32x1xi32>
    %c16_i32_30 = arith.constant 16 : i32
    %92 = vector.broadcast %c16_i32_30 : i32 to vector<32x1xi32>
    %93 = arith.cmpi slt, %91, %92 : vector<32x1xi32>
    %94 = arith.andi %89, %93 : vector<32x1xi1>
    %95 = arith.extui %94 : vector<32x1xi1> to vector<32x1xi32>
    %96 = arith.sitofp %95 : vector<32x1xi32> to vector<32x1xf32>
    %c0_31 = arith.constant 0 : index
    %c0_32 = arith.constant 0 : index
    %c0_33 = arith.constant 0 : index
    %97 = vector.load %arg3[%c0_31, %c0_32, %c0_33] : memref<2x24x64xf32, #tpu.memory_space<vmem>>, vector<1x24x64xf32>
    %98 = vector.shape_cast %97 : vector<1x24x64xf32> to vector<24x64xf32>
    %c0_34 = arith.constant 0 : index
    %c0_35 = arith.constant 0 : index
    %c0_36 = arith.constant 0 : index
    %99 = vector.load %arg4[%c0_34, %c0_35, %c0_36] : memref<2x2x256xf32, #tpu.memory_space<vmem>>, vector<1x2x256xf32>
    %100 = vector.shape_cast %99 : vector<1x2x256xf32> to vector<2x256xf32>
    %c0_37 = arith.constant 0 : index
    %c0_38 = arith.constant 0 : index
    %c0_39 = arith.constant 0 : index
    %101 = vector.load %arg5[%c0_37, %c0_38, %c0_39] : memref<2x12x16xf32, #tpu.memory_space<vmem>>, vector<1x12x16xf32>
    %102 = vector.shape_cast %101 : vector<1x12x16xf32> to vector<12x16xf32>
    %103 = vector.extract_strided_slice %98 {offsets = [0, 0], sizes = [1, 64], strides = [1, 1]} : vector<24x64xf32> to vector<1x64xf32>
    %104 = vector.extract_strided_slice %98 {offsets = [4, 0], sizes = [1, 64], strides = [1, 1]} : vector<24x64xf32> to vector<1x64xf32>
    %cst = arith.constant dense<0.000000e+00> : vector<32xf32>
    %105 = vector.multi_reduction <add>, %0, %cst [1] : vector<32x64xf32> to vector<32xf32>
    %106 = vector.shape_cast %105 : vector<32xf32> to vector<32x1xf32>
    %cst_40 = arith.constant 6.400000e+01 : f32
    %107 = vector.broadcast %cst_40 : f32 to vector<32x1xf32>
    %108 = arith.divf %106, %107 : vector<32x1xf32>
    %109 = vector.broadcast %108 : vector<32x1xf32> to vector<32x64xf32>
    %110 = arith.subf %0, %109 : vector<32x64xf32>
    %111 = arith.mulf %110, %110 : vector<32x64xf32>
    %cst_41 = arith.constant dense<0.000000e+00> : vector<32xf32>
    %112 = vector.multi_reduction <add>, %111, %cst_41 [1] : vector<32x64xf32> to vector<32xf32>
    %113 = vector.shape_cast %112 : vector<32xf32> to vector<32x1xf32>
    %cst_42 = arith.constant 6.400000e+01 : f32
    %114 = vector.broadcast %cst_42 : f32 to vector<32x1xf32>
    %115 = arith.divf %113, %114 : vector<32x1xf32>
    %116 = vector.broadcast %108 : vector<32x1xf32> to vector<32x64xf32>
    %117 = arith.subf %0, %116 : vector<32x64xf32>
    %cst_43 = arith.constant 9.99999974E-6 : f32
    %118 = vector.broadcast %cst_43 : f32 to vector<32x1xf32>
    %119 = arith.addf %115, %118 : vector<32x1xf32>
    %120 = math.rsqrt %119 : vector<32x1xf32>
    %121 = vector.broadcast %120 : vector<32x1xf32> to vector<32x64xf32>
    %122 = arith.mulf %117, %121 : vector<32x64xf32>
    %123 = vector.broadcast %103 : vector<1x64xf32> to vector<32x64xf32>
    %124 = arith.mulf %122, %123 : vector<32x64xf32>
    %125 = vector.broadcast %104 : vector<1x64xf32> to vector<32x64xf32>
    %126 = arith.addf %124, %125 : vector<32x64xf32>
    %c0_44 = arith.constant 0 : index
    %c0_45 = arith.constant 0 : index
    %c0_46 = arith.constant 0 : index
    %127 = vector.load %arg6[%c0_44, %c0_45, %c0_46] : memref<4x64x256xf32, #tpu.memory_space<vmem>>, vector<1x64x256xf32>
    %128 = vector.shape_cast %127 : vector<1x64x256xf32> to vector<64x256xf32>
    %cst_47 = arith.constant dense<0.000000e+00> : vector<32x256xf32>
    %129 = tpu.matmul %126, %128, %cst_47 {dimension_numbers = #tpu.dot_dimension_numbers<[1], [0], [0], [1], [0, 0, 1, 1], [], []>} : vector<32x64xf32>, vector<64x256xf32>, vector<32x256xf32> -> vector<32x256xf32>
    %130 = vector.extract_strided_slice %100 {offsets = [0, 0], sizes = [1, 256], strides = [1, 1]} : vector<2x256xf32> to vector<1x256xf32>
    %131 = vector.broadcast %130 : vector<1x256xf32> to vector<32x256xf32>
    %132 = arith.addf %129, %131 : vector<32x256xf32>
    %133 = arith.negf %132 : vector<32x256xf32>
    %134 = math.exp %133 : vector<32x256xf32>
    %cst_48 = arith.constant 1.000000e+00 : f32
    %135 = vector.broadcast %cst_48 : f32 to vector<32x256xf32>
    %136 = arith.addf %135, %134 : vector<32x256xf32>
    %137 = arith.divf %135, %136 : vector<32x256xf32>
    %138 = arith.mulf %132, %137 : vector<32x256xf32>
    %c0_49 = arith.constant 0 : index
    %c0_50 = arith.constant 0 : index
    %c0_51 = arith.constant 0 : index
    %139 = vector.load %arg7[%c0_49, %c0_50, %c0_51] : memref<4x256x64xf32, #tpu.memory_space<vmem>>, vector<1x256x64xf32>
    %140 = vector.shape_cast %139 : vector<1x256x64xf32> to vector<256x64xf32>
    %cst_52 = arith.constant dense<0.000000e+00> : vector<32x64xf32>
    %141 = tpu.matmul %138, %140, %cst_52 {dimension_numbers = #tpu.dot_dimension_numbers<[1], [0], [0], [1], [0, 0, 1, 1], [], []>} : vector<32x256xf32>, vector<256x64xf32>, vector<32x64xf32> -> vector<32x64xf32>
    %142 = vector.extract_strided_slice %98 {offsets = [8, 0], sizes = [1, 64], strides = [1, 1]} : vector<24x64xf32> to vector<1x64xf32>
    %143 = vector.broadcast %142 : vector<1x64xf32> to vector<32x64xf32>
    %144 = arith.addf %141, %143 : vector<32x64xf32>
    %cst_53 = arith.constant 5.000000e-01 : f32
    %145 = vector.broadcast %cst_53 : f32 to vector<32x64xf32>
    %146 = arith.mulf %145, %144 : vector<32x64xf32>
    %147 = arith.addf %0, %146 : vector<32x64xf32>
    %148 = vector.extract_strided_slice %98 {offsets = [1, 0], sizes = [1, 64], strides = [1, 1]} : vector<24x64xf32> to vector<1x64xf32>
    %149 = vector.extract_strided_slice %98 {offsets = [5, 0], sizes = [1, 64], strides = [1, 1]} : vector<24x64xf32> to vector<1x64xf32>
    %cst_54 = arith.constant dense<0.000000e+00> : vector<32xf32>
    %150 = vector.multi_reduction <add>, %147, %cst_54 [1] : vector<32x64xf32> to vector<32xf32>
    %151 = vector.shape_cast %150 : vector<32xf32> to vector<32x1xf32>
    %cst_55 = arith.constant 6.400000e+01 : f32
    %152 = vector.broadcast %cst_55 : f32 to vector<32x1xf32>
    %153 = arith.divf %151, %152 : vector<32x1xf32>
    %154 = vector.broadcast %153 : vector<32x1xf32> to vector<32x64xf32>
    %155 = arith.subf %147, %154 : vector<32x64xf32>
    %156 = arith.mulf %155, %155 : vector<32x64xf32>
    %cst_56 = arith.constant dense<0.000000e+00> : vector<32xf32>
    %157 = vector.multi_reduction <add>, %156, %cst_56 [1] : vector<32x64xf32> to vector<32xf32>
    %158 = vector.shape_cast %157 : vector<32xf32> to vector<32x1xf32>
    %cst_57 = arith.constant 6.400000e+01 : f32
    %159 = vector.broadcast %cst_57 : f32 to vector<32x1xf32>
    %160 = arith.divf %158, %159 : vector<32x1xf32>
    %161 = vector.broadcast %153 : vector<32x1xf32> to vector<32x64xf32>
    %162 = arith.subf %147, %161 : vector<32x64xf32>
    %cst_58 = arith.constant 9.99999974E-6 : f32
    %163 = vector.broadcast %cst_58 : f32 to vector<32x1xf32>
    %164 = arith.addf %160, %163 : vector<32x1xf32>
    %165 = math.rsqrt %164 : vector<32x1xf32>
    %166 = vector.broadcast %165 : vector<32x1xf32> to vector<32x64xf32>
    %167 = arith.mulf %162, %166 : vector<32x64xf32>
    %168 = vector.broadcast %148 : vector<1x64xf32> to vector<32x64xf32>
    %169 = arith.mulf %167, %168 : vector<32x64xf32>
    %170 = vector.broadcast %149 : vector<1x64xf32> to vector<32x64xf32>
    %171 = arith.addf %169, %170 : vector<32x64xf32>
    %c0_59 = arith.constant 0 : index
    %c0_60 = arith.constant 0 : index
    %c0_61 = arith.constant 0 : index
    %172 = vector.load %arg9[%c0_59, %c0_60, %c0_61] : memref<8x64x64xf32, #tpu.memory_space<vmem>>, vector<1x64x64xf32>
    %173 = vector.shape_cast %172 : vector<1x64x64xf32> to vector<64x64xf32>
    %cst_62 = arith.constant 0.000000e+00 : f32
    %174 = vector.broadcast %cst_62 : f32 to vector<32x64xf32>
    %c0_63 = arith.constant 0 : index
    %c0_64 = arith.constant 0 : index
    %c0_65 = arith.constant 0 : index
    %175 = vector.load %arg8[%c0_63, %c0_64, %c0_65] : memref<24x64x16xf32, #tpu.memory_space<vmem>>, vector<1x64x16xf32>
    %176 = vector.shape_cast %175 : vector<1x64x16xf32> to vector<64x16xf32>
    %cst_66 = arith.constant dense<0.000000e+00> : vector<32x16xf32>
    %177 = tpu.matmul %171, %176, %cst_66 {dimension_numbers = #tpu.dot_dimension_numbers<[1], [0], [0], [1], [0, 0, 1, 1], [], []>} : vector<32x64xf32>, vector<64x16xf32>, vector<32x16xf32> -> vector<32x16xf32>
    %178 = vector.extract_strided_slice %102 {offsets = [0, 0], sizes = [1, 16], strides = [1, 1]} : vector<12x16xf32> to vector<1x16xf32>
    %179 = vector.broadcast %178 : vector<1x16xf32> to vector<32x16xf32>
    %180 = arith.addf %177, %179 : vector<32x16xf32>
    %c1 = arith.constant 1 : index
    %c0_67 = arith.constant 0 : index
    %c0_68 = arith.constant 0 : index
    %181 = vector.load %arg8[%c1, %c0_67, %c0_68] : memref<24x64x16xf32, #tpu.memory_space<vmem>>, vector<1x64x16xf32>
    %182 = vector.shape_cast %181 : vector<1x64x16xf32> to vector<64x16xf32>
    %cst_69 = arith.constant dense<0.000000e+00> : vector<32x16xf32>
    %183 = tpu.matmul %171, %182, %cst_69 {dimension_numbers = #tpu.dot_dimension_numbers<[1], [0], [0], [1], [0, 0, 1, 1], [], []>} : vector<32x64xf32>, vector<64x16xf32>, vector<32x16xf32> -> vector<32x16xf32>
    %184 = vector.extract_strided_slice %102 {offsets = [1, 0], sizes = [1, 16], strides = [1, 1]} : vector<12x16xf32> to vector<1x16xf32>
    %185 = vector.broadcast %184 : vector<1x16xf32> to vector<32x16xf32>
    %186 = arith.addf %183, %185 : vector<32x16xf32>
    %c2 = arith.constant 2 : index
    %c0_70 = arith.constant 0 : index
    %c0_71 = arith.constant 0 : index
    %187 = vector.load %arg8[%c2, %c0_70, %c0_71] : memref<24x64x16xf32, #tpu.memory_space<vmem>>, vector<1x64x16xf32>
    %188 = vector.shape_cast %187 : vector<1x64x16xf32> to vector<64x16xf32>
    %cst_72 = arith.constant dense<0.000000e+00> : vector<32x16xf32>
    %189 = tpu.matmul %171, %188, %cst_72 {dimension_numbers = #tpu.dot_dimension_numbers<[1], [0], [0], [1], [0, 0, 1, 1], [], []>} : vector<32x64xf32>, vector<64x16xf32>, vector<32x16xf32> -> vector<32x16xf32>
    %190 = vector.extract_strided_slice %102 {offsets = [2, 0], sizes = [1, 16], strides = [1, 1]} : vector<12x16xf32> to vector<1x16xf32>
    %191 = vector.broadcast %190 : vector<1x16xf32> to vector<32x16xf32>
    %192 = arith.addf %189, %191 : vector<32x16xf32>
    %193 = vector.extract_strided_slice %180 {offsets = [0, 0], sizes = [16, 16], strides = [1, 1]} : vector<32x16xf32> to vector<16x16xf32>
    %194 = vector.extract_strided_slice %186 {offsets = [0, 0], sizes = [16, 16], strides = [1, 1]} : vector<32x16xf32> to vector<16x16xf32>
    %cst_73 = arith.constant dense<0.000000e+00> : vector<16x16xf32>
    %195 = tpu.matmul %193, %194, %cst_73 {dimension_numbers = #tpu.dot_dimension_numbers<[1], [1], [0], [0], [0, 0, 1, 0], [], []>} : vector<16x16xf32>, vector<16x16xf32>, vector<16x16xf32> -> vector<16x16xf32>
    %196 = vector.extract_strided_slice %1 {offsets = [0, 0], sizes = [1, 16], strides = [1, 1]} : vector<2x16xf32> to vector<1x16xf32>
    %197 = vector.broadcast %196 : vector<1x16xf32> to vector<16x16xf32>
    %198 = arith.addf %195, %197 : vector<16x16xf32>
    %cst_74 = arith.constant dense<0xFF800000> : vector<16xf32>
    %199 = vector.multi_reduction <maximumf>, %198, %cst_74 [1] : vector<16x16xf32> to vector<16xf32>
    %200 = vector.shape_cast %199 : vector<16xf32> to vector<16x1xf32>
    %201 = vector.broadcast %200 : vector<16x1xf32> to vector<16x16xf32>
    %202 = arith.subf %198, %201 : vector<16x16xf32>
    %203 = math.exp %202 : vector<16x16xf32>
    %cst_75 = arith.constant dense<0.000000e+00> : vector<16xf32>
    %204 = vector.multi_reduction <add>, %203, %cst_75 [1] : vector<16x16xf32> to vector<16xf32>
    %205 = vector.shape_cast %204 : vector<16xf32> to vector<16x1xf32>
    %206 = tpu.reciprocal %205 {approx = true} : vector<16x1xf32> -> vector<16x1xf32>
    %207 = vector.broadcast %206 : vector<16x1xf32> to vector<16x16xf32>
    %208 = arith.mulf %203, %207 : vector<16x16xf32>
    %209 = vector.extract_strided_slice %192 {offsets = [0, 0], sizes = [16, 16], strides = [1, 1]} : vector<32x16xf32> to vector<16x16xf32>
    %cst_76 = arith.constant dense<0.000000e+00> : vector<16x16xf32>
    %210 = tpu.matmul %208, %209, %cst_76 {dimension_numbers = #tpu.dot_dimension_numbers<[1], [0], [0], [1], [0, 0, 1, 1], [], []>} : vector<16x16xf32>, vector<16x16xf32>, vector<16x16xf32> -> vector<16x16xf32>
    %211 = vector.extract_strided_slice %180 {offsets = [16, 0], sizes = [16, 16], strides = [1, 1]} : vector<32x16xf32> to vector<16x16xf32>
    %212 = vector.extract_strided_slice %186 {offsets = [16, 0], sizes = [16, 16], strides = [1, 1]} : vector<32x16xf32> to vector<16x16xf32>
    %cst_77 = arith.constant dense<0.000000e+00> : vector<16x16xf32>
    %213 = tpu.matmul %211, %212, %cst_77 {dimension_numbers = #tpu.dot_dimension_numbers<[1], [1], [0], [0], [0, 0, 1, 0], [], []>} : vector<16x16xf32>, vector<16x16xf32>, vector<16x16xf32> -> vector<16x16xf32>
    %214 = vector.extract_strided_slice %1 {offsets = [1, 0], sizes = [1, 16], strides = [1, 1]} : vector<2x16xf32> to vector<1x16xf32>
    %215 = vector.broadcast %214 : vector<1x16xf32> to vector<16x16xf32>
    %216 = arith.addf %213, %215 : vector<16x16xf32>
    %cst_78 = arith.constant dense<0xFF800000> : vector<16xf32>
    %217 = vector.multi_reduction <maximumf>, %216, %cst_78 [1] : vector<16x16xf32> to vector<16xf32>
    %218 = vector.shape_cast %217 : vector<16xf32> to vector<16x1xf32>
    %219 = vector.broadcast %218 : vector<16x1xf32> to vector<16x16xf32>
    %220 = arith.subf %216, %219 : vector<16x16xf32>
    %221 = math.exp %220 : vector<16x16xf32>
    %cst_79 = arith.constant dense<0.000000e+00> : vector<16xf32>
    %222 = vector.multi_reduction <add>, %221, %cst_79 [1] : vector<16x16xf32> to vector<16xf32>
    %223 = vector.shape_cast %222 : vector<16xf32> to vector<16x1xf32>
    %224 = tpu.reciprocal %223 {approx = true} : vector<16x1xf32> -> vector<16x1xf32>
    %225 = vector.broadcast %224 : vector<16x1xf32> to vector<16x16xf32>
    %226 = arith.mulf %221, %225 : vector<16x16xf32>
    %227 = vector.extract_strided_slice %192 {offsets = [16, 0], sizes = [16, 16], strides = [1, 1]} : vector<32x16xf32> to vector<16x16xf32>
    %cst_80 = arith.constant dense<0.000000e+00> : vector<16x16xf32>
    %228 = tpu.matmul %226, %227, %cst_80 {dimension_numbers = #tpu.dot_dimension_numbers<[1], [0], [0], [1], [0, 0, 1, 1], [], []>} : vector<16x16xf32>, vector<16x16xf32>, vector<16x16xf32> -> vector<16x16xf32>
    %229 = tpu.concatenate %210, %228 in 0 : vector<16x16xf32>, vector<16x16xf32> -> vector<32x16xf32>
    %230 = vector.extract_strided_slice %173 {offsets = [0, 0], sizes = [16, 64], strides = [1, 1]} : vector<64x64xf32> to vector<16x64xf32>
    %cst_81 = arith.constant dense<0.000000e+00> : vector<32x64xf32>
    %231 = tpu.matmul %229, %230, %cst_81 {dimension_numbers = #tpu.dot_dimension_numbers<[1], [0], [0], [1], [0, 0, 1, 1], [], []>} : vector<32x16xf32>, vector<16x64xf32>, vector<32x64xf32> -> vector<32x64xf32>
    %232 = arith.addf %174, %231 : vector<32x64xf32>
    %c3 = arith.constant 3 : index
    %c0_82 = arith.constant 0 : index
    %c0_83 = arith.constant 0 : index
    %233 = vector.load %arg8[%c3, %c0_82, %c0_83] : memref<24x64x16xf32, #tpu.memory_space<vmem>>, vector<1x64x16xf32>
    %234 = vector.shape_cast %233 : vector<1x64x16xf32> to vector<64x16xf32>
    %cst_84 = arith.constant dense<0.000000e+00> : vector<32x16xf32>
    %235 = tpu.matmul %171, %234, %cst_84 {dimension_numbers = #tpu.dot_dimension_numbers<[1], [0], [0], [1], [0, 0, 1, 1], [], []>} : vector<32x64xf32>, vector<64x16xf32>, vector<32x16xf32> -> vector<32x16xf32>
    %236 = vector.extract_strided_slice %102 {offsets = [3, 0], sizes = [1, 16], strides = [1, 1]} : vector<12x16xf32> to vector<1x16xf32>
    %237 = vector.broadcast %236 : vector<1x16xf32> to vector<32x16xf32>
    %238 = arith.addf %235, %237 : vector<32x16xf32>
    %c4 = arith.constant 4 : index
    %c0_85 = arith.constant 0 : index
    %c0_86 = arith.constant 0 : index
    %239 = vector.load %arg8[%c4, %c0_85, %c0_86] : memref<24x64x16xf32, #tpu.memory_space<vmem>>, vector<1x64x16xf32>
    %240 = vector.shape_cast %239 : vector<1x64x16xf32> to vector<64x16xf32>
    %cst_87 = arith.constant dense<0.000000e+00> : vector<32x16xf32>
    %241 = tpu.matmul %171, %240, %cst_87 {dimension_numbers = #tpu.dot_dimension_numbers<[1], [0], [0], [1], [0, 0, 1, 1], [], []>} : vector<32x64xf32>, vector<64x16xf32>, vector<32x16xf32> -> vector<32x16xf32>
    %242 = vector.extract_strided_slice %102 {offsets = [4, 0], sizes = [1, 16], strides = [1, 1]} : vector<12x16xf32> to vector<1x16xf32>
    %243 = vector.broadcast %242 : vector<1x16xf32> to vector<32x16xf32>
    %244 = arith.addf %241, %243 : vector<32x16xf32>
    %c5 = arith.constant 5 : index
    %c0_88 = arith.constant 0 : index
    %c0_89 = arith.constant 0 : index
    %245 = vector.load %arg8[%c5, %c0_88, %c0_89] : memref<24x64x16xf32, #tpu.memory_space<vmem>>, vector<1x64x16xf32>
    %246 = vector.shape_cast %245 : vector<1x64x16xf32> to vector<64x16xf32>
    %cst_90 = arith.constant dense<0.000000e+00> : vector<32x16xf32>
    %247 = tpu.matmul %171, %246, %cst_90 {dimension_numbers = #tpu.dot_dimension_numbers<[1], [0], [0], [1], [0, 0, 1, 1], [], []>} : vector<32x64xf32>, vector<64x16xf32>, vector<32x16xf32> -> vector<32x16xf32>
    %248 = vector.extract_strided_slice %102 {offsets = [5, 0], sizes = [1, 16], strides = [1, 1]} : vector<12x16xf32> to vector<1x16xf32>
    %249 = vector.broadcast %248 : vector<1x16xf32> to vector<32x16xf32>
    %250 = arith.addf %247, %249 : vector<32x16xf32>
    %251 = vector.extract_strided_slice %238 {offsets = [0, 0], sizes = [16, 16], strides = [1, 1]} : vector<32x16xf32> to vector<16x16xf32>
    %252 = vector.extract_strided_slice %244 {offsets = [0, 0], sizes = [16, 16], strides = [1, 1]} : vector<32x16xf32> to vector<16x16xf32>
    %cst_91 = arith.constant dense<0.000000e+00> : vector<16x16xf32>
    %253 = tpu.matmul %251, %252, %cst_91 {dimension_numbers = #tpu.dot_dimension_numbers<[1], [1], [0], [0], [0, 0, 1, 0], [], []>} : vector<16x16xf32>, vector<16x16xf32>, vector<16x16xf32> -> vector<16x16xf32>
    %254 = vector.extract_strided_slice %1 {offsets = [0, 0], sizes = [1, 16], strides = [1, 1]} : vector<2x16xf32> to vector<1x16xf32>
    %255 = vector.broadcast %254 : vector<1x16xf32> to vector<16x16xf32>
    %256 = arith.addf %253, %255 : vector<16x16xf32>
    %cst_92 = arith.constant dense<0xFF800000> : vector<16xf32>
    %257 = vector.multi_reduction <maximumf>, %256, %cst_92 [1] : vector<16x16xf32> to vector<16xf32>
    %258 = vector.shape_cast %257 : vector<16xf32> to vector<16x1xf32>
    %259 = vector.broadcast %258 : vector<16x1xf32> to vector<16x16xf32>
    %260 = arith.subf %256, %259 : vector<16x16xf32>
    %261 = math.exp %260 : vector<16x16xf32>
    %cst_93 = arith.constant dense<0.000000e+00> : vector<16xf32>
    %262 = vector.multi_reduction <add>, %261, %cst_93 [1] : vector<16x16xf32> to vector<16xf32>
    %263 = vector.shape_cast %262 : vector<16xf32> to vector<16x1xf32>
    %264 = tpu.reciprocal %263 {approx = true} : vector<16x1xf32> -> vector<16x1xf32>
    %265 = vector.broadcast %264 : vector<16x1xf32> to vector<16x16xf32>
    %266 = arith.mulf %261, %265 : vector<16x16xf32>
    %267 = vector.extract_strided_slice %250 {offsets = [0, 0], sizes = [16, 16], strides = [1, 1]} : vector<32x16xf32> to vector<16x16xf32>
    %cst_94 = arith.constant dense<0.000000e+00> : vector<16x16xf32>
    %268 = tpu.matmul %266, %267, %cst_94 {dimension_numbers = #tpu.dot_dimension_numbers<[1], [0], [0], [1], [0, 0, 1, 1], [], []>} : vector<16x16xf32>, vector<16x16xf32>, vector<16x16xf32> -> vector<16x16xf32>
    %269 = vector.extract_strided_slice %238 {offsets = [16, 0], sizes = [16, 16], strides = [1, 1]} : vector<32x16xf32> to vector<16x16xf32>
    %270 = vector.extract_strided_slice %244 {offsets = [16, 0], sizes = [16, 16], strides = [1, 1]} : vector<32x16xf32> to vector<16x16xf32>
    %cst_95 = arith.constant dense<0.000000e+00> : vector<16x16xf32>
    %271 = tpu.matmul %269, %270, %cst_95 {dimension_numbers = #tpu.dot_dimension_numbers<[1], [1], [0], [0], [0, 0, 1, 0], [], []>} : vector<16x16xf32>, vector<16x16xf32>, vector<16x16xf32> -> vector<16x16xf32>
    %272 = vector.extract_strided_slice %1 {offsets = [1, 0], sizes = [1, 16], strides = [1, 1]} : vector<2x16xf32> to vector<1x16xf32>
    %273 = vector.broadcast %272 : vector<1x16xf32> to vector<16x16xf32>
    %274 = arith.addf %271, %273 : vector<16x16xf32>
    %cst_96 = arith.constant dense<0xFF800000> : vector<16xf32>
    %275 = vector.multi_reduction <maximumf>, %274, %cst_96 [1] : vector<16x16xf32> to vector<16xf32>
    %276 = vector.shape_cast %275 : vector<16xf32> to vector<16x1xf32>
    %277 = vector.broadcast %276 : vector<16x1xf32> to vector<16x16xf32>
    %278 = arith.subf %274, %277 : vector<16x16xf32>
    %279 = math.exp %278 : vector<16x16xf32>
    %cst_97 = arith.constant dense<0.000000e+00> : vector<16xf32>
    %280 = vector.multi_reduction <add>, %279, %cst_97 [1] : vector<16x16xf32> to vector<16xf32>
    %281 = vector.shape_cast %280 : vector<16xf32> to vector<16x1xf32>
    %282 = tpu.reciprocal %281 {approx = true} : vector<16x1xf32> -> vector<16x1xf32>
    %283 = vector.broadcast %282 : vector<16x1xf32> to vector<16x16xf32>
    %284 = arith.mulf %279, %283 : vector<16x16xf32>
    %285 = vector.extract_strided_slice %250 {offsets = [16, 0], sizes = [16, 16], strides = [1, 1]} : vector<32x16xf32> to vector<16x16xf32>
    %cst_98 = arith.constant dense<0.000000e+00> : vector<16x16xf32>
    %286 = tpu.matmul %284, %285, %cst_98 {dimension_numbers = #tpu.dot_dimension_numbers<[1], [0], [0], [1], [0, 0, 1, 1], [], []>} : vector<16x16xf32>, vector<16x16xf32>, vector<16x16xf32> -> vector<16x16xf32>
    %287 = tpu.concatenate %268, %286 in 0 : vector<16x16xf32>, vector<16x16xf32> -> vector<32x16xf32>
    %288 = vector.extract_strided_slice %173 {offsets = [16, 0], sizes = [16, 64], strides = [1, 1]} : vector<64x64xf32> to vector<16x64xf32>
    %cst_99 = arith.constant dense<0.000000e+00> : vector<32x64xf32>
    %289 = tpu.matmul %287, %288, %cst_99 {dimension_numbers = #tpu.dot_dimension_numbers<[1], [0], [0], [1], [0, 0, 1, 1], [], []>} : vector<32x16xf32>, vector<16x64xf32>, vector<32x64xf32> -> vector<32x64xf32>
    %290 = arith.addf %232, %289 : vector<32x64xf32>
    %c6 = arith.constant 6 : index
    %c0_100 = arith.constant 0 : index
    %c0_101 = arith.constant 0 : index
    %291 = vector.load %arg8[%c6, %c0_100, %c0_101] : memref<24x64x16xf32, #tpu.memory_space<vmem>>, vector<1x64x16xf32>
    %292 = vector.shape_cast %291 : vector<1x64x16xf32> to vector<64x16xf32>
    %cst_102 = arith.constant dense<0.000000e+00> : vector<32x16xf32>
    %293 = tpu.matmul %171, %292, %cst_102 {dimension_numbers = #tpu.dot_dimension_numbers<[1], [0], [0], [1], [0, 0, 1, 1], [], []>} : vector<32x64xf32>, vector<64x16xf32>, vector<32x16xf32> -> vector<32x16xf32>
    %294 = vector.extract_strided_slice %102 {offsets = [6, 0], sizes = [1, 16], strides = [1, 1]} : vector<12x16xf32> to vector<1x16xf32>
    %295 = vector.broadcast %294 : vector<1x16xf32> to vector<32x16xf32>
    %296 = arith.addf %293, %295 : vector<32x16xf32>
    %c7 = arith.constant 7 : index
    %c0_103 = arith.constant 0 : index
    %c0_104 = arith.constant 0 : index
    %297 = vector.load %arg8[%c7, %c0_103, %c0_104] : memref<24x64x16xf32, #tpu.memory_space<vmem>>, vector<1x64x16xf32>
    %298 = vector.shape_cast %297 : vector<1x64x16xf32> to vector<64x16xf32>
    %cst_105 = arith.constant dense<0.000000e+00> : vector<32x16xf32>
    %299 = tpu.matmul %171, %298, %cst_105 {dimension_numbers = #tpu.dot_dimension_numbers<[1], [0], [0], [1], [0, 0, 1, 1], [], []>} : vector<32x64xf32>, vector<64x16xf32>, vector<32x16xf32> -> vector<32x16xf32>
    %300 = vector.extract_strided_slice %102 {offsets = [7, 0], sizes = [1, 16], strides = [1, 1]} : vector<12x16xf32> to vector<1x16xf32>
    %301 = vector.broadcast %300 : vector<1x16xf32> to vector<32x16xf32>
    %302 = arith.addf %299, %301 : vector<32x16xf32>
    %c8 = arith.constant 8 : index
    %c0_106 = arith.constant 0 : index
    %c0_107 = arith.constant 0 : index
    %303 = vector.load %arg8[%c8, %c0_106, %c0_107] : memref<24x64x16xf32, #tpu.memory_space<vmem>>, vector<1x64x16xf32>
    %304 = vector.shape_cast %303 : vector<1x64x16xf32> to vector<64x16xf32>
    %cst_108 = arith.constant dense<0.000000e+00> : vector<32x16xf32>
    %305 = tpu.matmul %171, %304, %cst_108 {dimension_numbers = #tpu.dot_dimension_numbers<[1], [0], [0], [1], [0, 0, 1, 1], [], []>} : vector<32x64xf32>, vector<64x16xf32>, vector<32x16xf32> -> vector<32x16xf32>
    %306 = vector.extract_strided_slice %102 {offsets = [8, 0], sizes = [1, 16], strides = [1, 1]} : vector<12x16xf32> to vector<1x16xf32>
    %307 = vector.broadcast %306 : vector<1x16xf32> to vector<32x16xf32>
    %308 = arith.addf %305, %307 : vector<32x16xf32>
    %309 = vector.extract_strided_slice %296 {offsets = [0, 0], sizes = [16, 16], strides = [1, 1]} : vector<32x16xf32> to vector<16x16xf32>
    %310 = vector.extract_strided_slice %302 {offsets = [0, 0], sizes = [16, 16], strides = [1, 1]} : vector<32x16xf32> to vector<16x16xf32>
    %cst_109 = arith.constant dense<0.000000e+00> : vector<16x16xf32>
    %311 = tpu.matmul %309, %310, %cst_109 {dimension_numbers = #tpu.dot_dimension_numbers<[1], [1], [0], [0], [0, 0, 1, 0], [], []>} : vector<16x16xf32>, vector<16x16xf32>, vector<16x16xf32> -> vector<16x16xf32>
    %312 = vector.extract_strided_slice %1 {offsets = [0, 0], sizes = [1, 16], strides = [1, 1]} : vector<2x16xf32> to vector<1x16xf32>
    %313 = vector.broadcast %312 : vector<1x16xf32> to vector<16x16xf32>
    %314 = arith.addf %311, %313 : vector<16x16xf32>
    %cst_110 = arith.constant dense<0xFF800000> : vector<16xf32>
    %315 = vector.multi_reduction <maximumf>, %314, %cst_110 [1] : vector<16x16xf32> to vector<16xf32>
    %316 = vector.shape_cast %315 : vector<16xf32> to vector<16x1xf32>
    %317 = vector.broadcast %316 : vector<16x1xf32> to vector<16x16xf32>
    %318 = arith.subf %314, %317 : vector<16x16xf32>
    %319 = math.exp %318 : vector<16x16xf32>
    %cst_111 = arith.constant dense<0.000000e+00> : vector<16xf32>
    %320 = vector.multi_reduction <add>, %319, %cst_111 [1] : vector<16x16xf32> to vector<16xf32>
    %321 = vector.shape_cast %320 : vector<16xf32> to vector<16x1xf32>
    %322 = tpu.reciprocal %321 {approx = true} : vector<16x1xf32> -> vector<16x1xf32>
    %323 = vector.broadcast %322 : vector<16x1xf32> to vector<16x16xf32>
    %324 = arith.mulf %319, %323 : vector<16x16xf32>
    %325 = vector.extract_strided_slice %308 {offsets = [0, 0], sizes = [16, 16], strides = [1, 1]} : vector<32x16xf32> to vector<16x16xf32>
    %cst_112 = arith.constant dense<0.000000e+00> : vector<16x16xf32>
    %326 = tpu.matmul %324, %325, %cst_112 {dimension_numbers = #tpu.dot_dimension_numbers<[1], [0], [0], [1], [0, 0, 1, 1], [], []>} : vector<16x16xf32>, vector<16x16xf32>, vector<16x16xf32> -> vector<16x16xf32>
    %327 = vector.extract_strided_slice %296 {offsets = [16, 0], sizes = [16, 16], strides = [1, 1]} : vector<32x16xf32> to vector<16x16xf32>
    %328 = vector.extract_strided_slice %302 {offsets = [16, 0], sizes = [16, 16], strides = [1, 1]} : vector<32x16xf32> to vector<16x16xf32>
    %cst_113 = arith.constant dense<0.000000e+00> : vector<16x16xf32>
    %329 = tpu.matmul %327, %328, %cst_113 {dimension_numbers = #tpu.dot_dimension_numbers<[1], [1], [0], [0], [0, 0, 1, 0], [], []>} : vector<16x16xf32>, vector<16x16xf32>, vector<16x16xf32> -> vector<16x16xf32>
    %330 = vector.extract_strided_slice %1 {offsets = [1, 0], sizes = [1, 16], strides = [1, 1]} : vector<2x16xf32> to vector<1x16xf32>
    %331 = vector.broadcast %330 : vector<1x16xf32> to vector<16x16xf32>
    %332 = arith.addf %329, %331 : vector<16x16xf32>
    %cst_114 = arith.constant dense<0xFF800000> : vector<16xf32>
    %333 = vector.multi_reduction <maximumf>, %332, %cst_114 [1] : vector<16x16xf32> to vector<16xf32>
    %334 = vector.shape_cast %333 : vector<16xf32> to vector<16x1xf32>
    %335 = vector.broadcast %334 : vector<16x1xf32> to vector<16x16xf32>
    %336 = arith.subf %332, %335 : vector<16x16xf32>
    %337 = math.exp %336 : vector<16x16xf32>
    %cst_115 = arith.constant dense<0.000000e+00> : vector<16xf32>
    %338 = vector.multi_reduction <add>, %337, %cst_115 [1] : vector<16x16xf32> to vector<16xf32>
    %339 = vector.shape_cast %338 : vector<16xf32> to vector<16x1xf32>
    %340 = tpu.reciprocal %339 {approx = true} : vector<16x1xf32> -> vector<16x1xf32>
    %341 = vector.broadcast %340 : vector<16x1xf32> to vector<16x16xf32>
    %342 = arith.mulf %337, %341 : vector<16x16xf32>
    %343 = vector.extract_strided_slice %308 {offsets = [16, 0], sizes = [16, 16], strides = [1, 1]} : vector<32x16xf32> to vector<16x16xf32>
    %cst_116 = arith.constant dense<0.000000e+00> : vector<16x16xf32>
    %344 = tpu.matmul %342, %343, %cst_116 {dimension_numbers = #tpu.dot_dimension_numbers<[1], [0], [0], [1], [0, 0, 1, 1], [], []>} : vector<16x16xf32>, vector<16x16xf32>, vector<16x16xf32> -> vector<16x16xf32>
    %345 = tpu.concatenate %326, %344 in 0 : vector<16x16xf32>, vector<16x16xf32> -> vector<32x16xf32>
    %346 = vector.extract_strided_slice %173 {offsets = [32, 0], sizes = [16, 64], strides = [1, 1]} : vector<64x64xf32> to vector<16x64xf32>
    %cst_117 = arith.constant dense<0.000000e+00> : vector<32x64xf32>
    %347 = tpu.matmul %345, %346, %cst_117 {dimension_numbers = #tpu.dot_dimension_numbers<[1], [0], [0], [1], [0, 0, 1, 1], [], []>} : vector<32x16xf32>, vector<16x64xf32>, vector<32x64xf32> -> vector<32x64xf32>
    %348 = arith.addf %290, %347 : vector<32x64xf32>
    %c9 = arith.constant 9 : index
    %c0_118 = arith.constant 0 : index
    %c0_119 = arith.constant 0 : index
    %349 = vector.load %arg8[%c9, %c0_118, %c0_119] : memref<24x64x16xf32, #tpu.memory_space<vmem>>, vector<1x64x16xf32>
    %350 = vector.shape_cast %349 : vector<1x64x16xf32> to vector<64x16xf32>
    %cst_120 = arith.constant dense<0.000000e+00> : vector<32x16xf32>
    %351 = tpu.matmul %171, %350, %cst_120 {dimension_numbers = #tpu.dot_dimension_numbers<[1], [0], [0], [1], [0, 0, 1, 1], [], []>} : vector<32x64xf32>, vector<64x16xf32>, vector<32x16xf32> -> vector<32x16xf32>
    %352 = vector.extract_strided_slice %102 {offsets = [9, 0], sizes = [1, 16], strides = [1, 1]} : vector<12x16xf32> to vector<1x16xf32>
    %353 = vector.broadcast %352 : vector<1x16xf32> to vector<32x16xf32>
    %354 = arith.addf %351, %353 : vector<32x16xf32>
    %c10 = arith.constant 10 : index
    %c0_121 = arith.constant 0 : index
    %c0_122 = arith.constant 0 : index
    %355 = vector.load %arg8[%c10, %c0_121, %c0_122] : memref<24x64x16xf32, #tpu.memory_space<vmem>>, vector<1x64x16xf32>
    %356 = vector.shape_cast %355 : vector<1x64x16xf32> to vector<64x16xf32>
    %cst_123 = arith.constant dense<0.000000e+00> : vector<32x16xf32>
    %357 = tpu.matmul %171, %356, %cst_123 {dimension_numbers = #tpu.dot_dimension_numbers<[1], [0], [0], [1], [0, 0, 1, 1], [], []>} : vector<32x64xf32>, vector<64x16xf32>, vector<32x16xf32> -> vector<32x16xf32>
    %358 = vector.extract_strided_slice %102 {offsets = [10, 0], sizes = [1, 16], strides = [1, 1]} : vector<12x16xf32> to vector<1x16xf32>
    %359 = vector.broadcast %358 : vector<1x16xf32> to vector<32x16xf32>
    %360 = arith.addf %357, %359 : vector<32x16xf32>
    %c11 = arith.constant 11 : index
    %c0_124 = arith.constant 0 : index
    %c0_125 = arith.constant 0 : index
    %361 = vector.load %arg8[%c11, %c0_124, %c0_125] : memref<24x64x16xf32, #tpu.memory_space<vmem>>, vector<1x64x16xf32>
    %362 = vector.shape_cast %361 : vector<1x64x16xf32> to vector<64x16xf32>
    %cst_126 = arith.constant dense<0.000000e+00> : vector<32x16xf32>
    %363 = tpu.matmul %171, %362, %cst_126 {dimension_numbers = #tpu.dot_dimension_numbers<[1], [0], [0], [1], [0, 0, 1, 1], [], []>} : vector<32x64xf32>, vector<64x16xf32>, vector<32x16xf32> -> vector<32x16xf32>
    %364 = vector.extract_strided_slice %102 {offsets = [11, 0], sizes = [1, 16], strides = [1, 1]} : vector<12x16xf32> to vector<1x16xf32>
    %365 = vector.broadcast %364 : vector<1x16xf32> to vector<32x16xf32>
    %366 = arith.addf %363, %365 : vector<32x16xf32>
    %367 = vector.extract_strided_slice %354 {offsets = [0, 0], sizes = [16, 16], strides = [1, 1]} : vector<32x16xf32> to vector<16x16xf32>
    %368 = vector.extract_strided_slice %360 {offsets = [0, 0], sizes = [16, 16], strides = [1, 1]} : vector<32x16xf32> to vector<16x16xf32>
    %cst_127 = arith.constant dense<0.000000e+00> : vector<16x16xf32>
    %369 = tpu.matmul %367, %368, %cst_127 {dimension_numbers = #tpu.dot_dimension_numbers<[1], [1], [0], [0], [0, 0, 1, 0], [], []>} : vector<16x16xf32>, vector<16x16xf32>, vector<16x16xf32> -> vector<16x16xf32>
    %370 = vector.extract_strided_slice %1 {offsets = [0, 0], sizes = [1, 16], strides = [1, 1]} : vector<2x16xf32> to vector<1x16xf32>
    %371 = vector.broadcast %370 : vector<1x16xf32> to vector<16x16xf32>
    %372 = arith.addf %369, %371 : vector<16x16xf32>
    %cst_128 = arith.constant dense<0xFF800000> : vector<16xf32>
    %373 = vector.multi_reduction <maximumf>, %372, %cst_128 [1] : vector<16x16xf32> to vector<16xf32>
    %374 = vector.shape_cast %373 : vector<16xf32> to vector<16x1xf32>
    %375 = vector.broadcast %374 : vector<16x1xf32> to vector<16x16xf32>
    %376 = arith.subf %372, %375 : vector<16x16xf32>
    %377 = math.exp %376 : vector<16x16xf32>
    %cst_129 = arith.constant dense<0.000000e+00> : vector<16xf32>
    %378 = vector.multi_reduction <add>, %377, %cst_129 [1] : vector<16x16xf32> to vector<16xf32>
    %379 = vector.shape_cast %378 : vector<16xf32> to vector<16x1xf32>
    %380 = tpu.reciprocal %379 {approx = true} : vector<16x1xf32> -> vector<16x1xf32>
    %381 = vector.broadcast %380 : vector<16x1xf32> to vector<16x16xf32>
    %382 = arith.mulf %377, %381 : vector<16x16xf32>
    %383 = vector.extract_strided_slice %366 {offsets = [0, 0], sizes = [16, 16], strides = [1, 1]} : vector<32x16xf32> to vector<16x16xf32>
    %cst_130 = arith.constant dense<0.000000e+00> : vector<16x16xf32>
    %384 = tpu.matmul %382, %383, %cst_130 {dimension_numbers = #tpu.dot_dimension_numbers<[1], [0], [0], [1], [0, 0, 1, 1], [], []>} : vector<16x16xf32>, vector<16x16xf32>, vector<16x16xf32> -> vector<16x16xf32>
    %385 = vector.extract_strided_slice %354 {offsets = [16, 0], sizes = [16, 16], strides = [1, 1]} : vector<32x16xf32> to vector<16x16xf32>
    %386 = vector.extract_strided_slice %360 {offsets = [16, 0], sizes = [16, 16], strides = [1, 1]} : vector<32x16xf32> to vector<16x16xf32>
    %cst_131 = arith.constant dense<0.000000e+00> : vector<16x16xf32>
    %387 = tpu.matmul %385, %386, %cst_131 {dimension_numbers = #tpu.dot_dimension_numbers<[1], [1], [0], [0], [0, 0, 1, 0], [], []>} : vector<16x16xf32>, vector<16x16xf32>, vector<16x16xf32> -> vector<16x16xf32>
    %388 = vector.extract_strided_slice %1 {offsets = [1, 0], sizes = [1, 16], strides = [1, 1]} : vector<2x16xf32> to vector<1x16xf32>
    %389 = vector.broadcast %388 : vector<1x16xf32> to vector<16x16xf32>
    %390 = arith.addf %387, %389 : vector<16x16xf32>
    %cst_132 = arith.constant dense<0xFF800000> : vector<16xf32>
    %391 = vector.multi_reduction <maximumf>, %390, %cst_132 [1] : vector<16x16xf32> to vector<16xf32>
    %392 = vector.shape_cast %391 : vector<16xf32> to vector<16x1xf32>
    %393 = vector.broadcast %392 : vector<16x1xf32> to vector<16x16xf32>
    %394 = arith.subf %390, %393 : vector<16x16xf32>
    %395 = math.exp %394 : vector<16x16xf32>
    %cst_133 = arith.constant dense<0.000000e+00> : vector<16xf32>
    %396 = vector.multi_reduction <add>, %395, %cst_133 [1] : vector<16x16xf32> to vector<16xf32>
    %397 = vector.shape_cast %396 : vector<16xf32> to vector<16x1xf32>
    %398 = tpu.reciprocal %397 {approx = true} : vector<16x1xf32> -> vector<16x1xf32>
    %399 = vector.broadcast %398 : vector<16x1xf32> to vector<16x16xf32>
    %400 = arith.mulf %395, %399 : vector<16x16xf32>
    %401 = vector.extract_strided_slice %366 {offsets = [16, 0], sizes = [16, 16], strides = [1, 1]} : vector<32x16xf32> to vector<16x16xf32>
    %cst_134 = arith.constant dense<0.000000e+00> : vector<16x16xf32>
    %402 = tpu.matmul %400, %401, %cst_134 {dimension_numbers = #tpu.dot_dimension_numbers<[1], [0], [0], [1], [0, 0, 1, 1], [], []>} : vector<16x16xf32>, vector<16x16xf32>, vector<16x16xf32> -> vector<16x16xf32>
    %403 = tpu.concatenate %384, %402 in 0 : vector<16x16xf32>, vector<16x16xf32> -> vector<32x16xf32>
    %404 = vector.extract_strided_slice %173 {offsets = [48, 0], sizes = [16, 64], strides = [1, 1]} : vector<64x64xf32> to vector<16x64xf32>
    %cst_135 = arith.constant dense<0.000000e+00> : vector<32x64xf32>
    %405 = tpu.matmul %403, %404, %cst_135 {dimension_numbers = #tpu.dot_dimension_numbers<[1], [0], [0], [1], [0, 0, 1, 1], [], []>} : vector<32x16xf32>, vector<16x64xf32>, vector<32x64xf32> -> vector<32x64xf32>
    %406 = arith.addf %348, %405 : vector<32x64xf32>
    %407 = arith.addf %147, %406 : vector<32x64xf32>
    %408 = vector.extract_strided_slice %98 {offsets = [10, 0], sizes = [1, 64], strides = [1, 1]} : vector<24x64xf32> to vector<1x64xf32>
    %409 = vector.broadcast %408 : vector<1x64xf32> to vector<32x64xf32>
    %410 = arith.addf %407, %409 : vector<32x64xf32>
    %411 = vector.extract_strided_slice %98 {offsets = [2, 0], sizes = [1, 64], strides = [1, 1]} : vector<24x64xf32> to vector<1x64xf32>
    %412 = vector.extract_strided_slice %98 {offsets = [6, 0], sizes = [1, 64], strides = [1, 1]} : vector<24x64xf32> to vector<1x64xf32>
    %cst_136 = arith.constant dense<0.000000e+00> : vector<32xf32>
    %413 = vector.multi_reduction <add>, %410, %cst_136 [1] : vector<32x64xf32> to vector<32xf32>
    %414 = vector.shape_cast %413 : vector<32xf32> to vector<32x1xf32>
    %cst_137 = arith.constant 6.400000e+01 : f32
    %415 = vector.broadcast %cst_137 : f32 to vector<32x1xf32>
    %416 = arith.divf %414, %415 : vector<32x1xf32>
    %417 = vector.broadcast %416 : vector<32x1xf32> to vector<32x64xf32>
    %418 = arith.subf %410, %417 : vector<32x64xf32>
    %419 = arith.mulf %418, %418 : vector<32x64xf32>
    %cst_138 = arith.constant dense<0.000000e+00> : vector<32xf32>
    %420 = vector.multi_reduction <add>, %419, %cst_138 [1] : vector<32x64xf32> to vector<32xf32>
    %421 = vector.shape_cast %420 : vector<32xf32> to vector<32x1xf32>
    %cst_139 = arith.constant 6.400000e+01 : f32
    %422 = vector.broadcast %cst_139 : f32 to vector<32x1xf32>
    %423 = arith.divf %421, %422 : vector<32x1xf32>
    %424 = vector.broadcast %416 : vector<32x1xf32> to vector<32x64xf32>
    %425 = arith.subf %410, %424 : vector<32x64xf32>
    %cst_140 = arith.constant 9.99999974E-6 : f32
    %426 = vector.broadcast %cst_140 : f32 to vector<32x1xf32>
    %427 = arith.addf %423, %426 : vector<32x1xf32>
    %428 = math.rsqrt %427 : vector<32x1xf32>
    %429 = vector.broadcast %428 : vector<32x1xf32> to vector<32x64xf32>
    %430 = arith.mulf %425, %429 : vector<32x64xf32>
    %431 = vector.broadcast %411 : vector<1x64xf32> to vector<32x64xf32>
    %432 = arith.mulf %430, %431 : vector<32x64xf32>
    %433 = vector.broadcast %412 : vector<1x64xf32> to vector<32x64xf32>
    %434 = arith.addf %432, %433 : vector<32x64xf32>
    %c1_141 = arith.constant 1 : index
    %c0_142 = arith.constant 0 : index
    %c0_143 = arith.constant 0 : index
    %435 = vector.load %arg9[%c1_141, %c0_142, %c0_143] : memref<8x64x64xf32, #tpu.memory_space<vmem>>, vector<1x64x64xf32>
    %436 = vector.shape_cast %435 : vector<1x64x64xf32> to vector<64x64xf32>
    %cst_144 = arith.constant dense<0.000000e+00> : vector<32x64xf32>
    %437 = tpu.matmul %434, %436, %cst_144 {dimension_numbers = #tpu.dot_dimension_numbers<[1], [0], [0], [1], [0, 0, 1, 1], [], []>} : vector<32x64xf32>, vector<64x64xf32>, vector<32x64xf32> -> vector<32x64xf32>
    %438 = vector.extract_strided_slice %98 {offsets = [11, 0], sizes = [1, 64], strides = [1, 1]} : vector<24x64xf32> to vector<1x64xf32>
    %439 = vector.broadcast %438 : vector<1x64xf32> to vector<32x64xf32>
    %440 = arith.addf %437, %439 : vector<32x64xf32>
    %c2_145 = arith.constant 2 : index
    %c0_146 = arith.constant 0 : index
    %c0_147 = arith.constant 0 : index
    %441 = vector.load %arg9[%c2_145, %c0_146, %c0_147] : memref<8x64x64xf32, #tpu.memory_space<vmem>>, vector<1x64x64xf32>
    %442 = vector.shape_cast %441 : vector<1x64x64xf32> to vector<64x64xf32>
    %cst_148 = arith.constant dense<0.000000e+00> : vector<32x64xf32>
    %443 = tpu.matmul %434, %442, %cst_148 {dimension_numbers = #tpu.dot_dimension_numbers<[1], [0], [0], [1], [0, 0, 1, 1], [], []>} : vector<32x64xf32>, vector<64x64xf32>, vector<32x64xf32> -> vector<32x64xf32>
    %444 = vector.extract_strided_slice %98 {offsets = [12, 0], sizes = [1, 64], strides = [1, 1]} : vector<24x64xf32> to vector<1x64xf32>
    %445 = vector.broadcast %444 : vector<1x64xf32> to vector<32x64xf32>
    %446 = arith.addf %443, %445 : vector<32x64xf32>
    %447 = arith.negf %446 : vector<32x64xf32>
    %448 = math.exp %447 : vector<32x64xf32>
    %cst_149 = arith.constant 1.000000e+00 : f32
    %449 = vector.broadcast %cst_149 : f32 to vector<32x64xf32>
    %450 = arith.addf %449, %448 : vector<32x64xf32>
    %451 = arith.divf %449, %450 : vector<32x64xf32>
    %452 = arith.mulf %440, %451 : vector<32x64xf32>
    %cst_150 = arith.constant 0.000000e+00 : f32
    %453 = vector.broadcast %cst_150 : f32 to vector<32x64xf32>
    %c3_i32_151 = arith.constant 3 : i32
    %454 = tpu.dynamic_rotate %452 by %c3_i32_151 dim 0 : vector<32x64xf32>, i32 -> vector<32x64xf32>
    %455 = vector.broadcast %30 : vector<32x1xf32> to vector<32x64xf32>
    %456 = arith.mulf %454, %455 : vector<32x64xf32>
    %457 = vector.extract_strided_slice %98 {offsets = [17, 0], sizes = [1, 64], strides = [1, 1]} : vector<24x64xf32> to vector<1x64xf32>
    %458 = vector.broadcast %457 : vector<1x64xf32> to vector<32x64xf32>
    %459 = arith.mulf %456, %458 : vector<32x64xf32>
    %460 = arith.addf %453, %459 : vector<32x64xf32>
    %c2_i32_152 = arith.constant 2 : i32
    %461 = tpu.dynamic_rotate %452 by %c2_i32_152 dim 0 : vector<32x64xf32>, i32 -> vector<32x64xf32>
    %462 = vector.broadcast %41 : vector<32x1xf32> to vector<32x64xf32>
    %463 = arith.mulf %461, %462 : vector<32x64xf32>
    %464 = vector.extract_strided_slice %98 {offsets = [18, 0], sizes = [1, 64], strides = [1, 1]} : vector<24x64xf32> to vector<1x64xf32>
    %465 = vector.broadcast %464 : vector<1x64xf32> to vector<32x64xf32>
    %466 = arith.mulf %463, %465 : vector<32x64xf32>
    %467 = arith.addf %460, %466 : vector<32x64xf32>
    %c1_i32_153 = arith.constant 1 : i32
    %468 = tpu.dynamic_rotate %452 by %c1_i32_153 dim 0 : vector<32x64xf32>, i32 -> vector<32x64xf32>
    %469 = vector.broadcast %52 : vector<32x1xf32> to vector<32x64xf32>
    %470 = arith.mulf %468, %469 : vector<32x64xf32>
    %471 = vector.extract_strided_slice %98 {offsets = [19, 0], sizes = [1, 64], strides = [1, 1]} : vector<24x64xf32> to vector<1x64xf32>
    %472 = vector.broadcast %471 : vector<1x64xf32> to vector<32x64xf32>
    %473 = arith.mulf %470, %472 : vector<32x64xf32>
    %474 = arith.addf %467, %473 : vector<32x64xf32>
    %475 = vector.broadcast %63 : vector<32x1xf32> to vector<32x64xf32>
    %476 = arith.mulf %452, %475 : vector<32x64xf32>
    %477 = vector.extract_strided_slice %98 {offsets = [20, 0], sizes = [1, 64], strides = [1, 1]} : vector<24x64xf32> to vector<1x64xf32>
    %478 = vector.broadcast %477 : vector<1x64xf32> to vector<32x64xf32>
    %479 = arith.mulf %476, %478 : vector<32x64xf32>
    %480 = arith.addf %474, %479 : vector<32x64xf32>
    %c31_i32 = arith.constant 31 : i32
    %481 = tpu.dynamic_rotate %452 by %c31_i32 dim 0 : vector<32x64xf32>, i32 -> vector<32x64xf32>
    %482 = vector.broadcast %74 : vector<32x1xf32> to vector<32x64xf32>
    %483 = arith.mulf %481, %482 : vector<32x64xf32>
    %484 = vector.extract_strided_slice %98 {offsets = [21, 0], sizes = [1, 64], strides = [1, 1]} : vector<24x64xf32> to vector<1x64xf32>
    %485 = vector.broadcast %484 : vector<1x64xf32> to vector<32x64xf32>
    %486 = arith.mulf %483, %485 : vector<32x64xf32>
    %487 = arith.addf %480, %486 : vector<32x64xf32>
    %c30_i32 = arith.constant 30 : i32
    %488 = tpu.dynamic_rotate %452 by %c30_i32 dim 0 : vector<32x64xf32>, i32 -> vector<32x64xf32>
    %489 = vector.broadcast %85 : vector<32x1xf32> to vector<32x64xf32>
    %490 = arith.mulf %488, %489 : vector<32x64xf32>
    %491 = vector.extract_strided_slice %98 {offsets = [22, 0], sizes = [1, 64], strides = [1, 1]} : vector<24x64xf32> to vector<1x64xf32>
    %492 = vector.broadcast %491 : vector<1x64xf32> to vector<32x64xf32>
    %493 = arith.mulf %490, %492 : vector<32x64xf32>
    %494 = arith.addf %487, %493 : vector<32x64xf32>
    %c29_i32 = arith.constant 29 : i32
    %495 = tpu.dynamic_rotate %452 by %c29_i32 dim 0 : vector<32x64xf32>, i32 -> vector<32x64xf32>
    %496 = vector.broadcast %96 : vector<32x1xf32> to vector<32x64xf32>
    %497 = arith.mulf %495, %496 : vector<32x64xf32>
    %498 = vector.extract_strided_slice %98 {offsets = [23, 0], sizes = [1, 64], strides = [1, 1]} : vector<24x64xf32> to vector<1x64xf32>
    %499 = vector.broadcast %498 : vector<1x64xf32> to vector<32x64xf32>
    %500 = arith.mulf %497, %499 : vector<32x64xf32>
    %501 = arith.addf %494, %500 : vector<32x64xf32>
    %502 = vector.extract_strided_slice %98 {offsets = [13, 0], sizes = [1, 64], strides = [1, 1]} : vector<24x64xf32> to vector<1x64xf32>
    %503 = vector.broadcast %502 : vector<1x64xf32> to vector<32x64xf32>
    %504 = arith.addf %501, %503 : vector<32x64xf32>
    %505 = vector.extract_strided_slice %98 {offsets = [14, 0], sizes = [1, 64], strides = [1, 1]} : vector<24x64xf32> to vector<1x64xf32>
    %506 = vector.broadcast %505 : vector<1x64xf32> to vector<32x64xf32>
    %507 = arith.mulf %504, %506 : vector<32x64xf32>
    %508 = vector.extract_strided_slice %98 {offsets = [15, 0], sizes = [1, 64], strides = [1, 1]} : vector<24x64xf32> to vector<1x64xf32>
    %509 = vector.broadcast %508 : vector<1x64xf32> to vector<32x64xf32>
    %510 = arith.addf %507, %509 : vector<32x64xf32>
    %511 = arith.negf %510 : vector<32x64xf32>
    %512 = math.exp %511 : vector<32x64xf32>
    %cst_154 = arith.constant 1.000000e+00 : f32
    %513 = vector.broadcast %cst_154 : f32 to vector<32x64xf32>
    %514 = arith.addf %513, %512 : vector<32x64xf32>
    %515 = arith.divf %513, %514 : vector<32x64xf32>
    %516 = arith.mulf %510, %515 : vector<32x64xf32>
    %c3_155 = arith.constant 3 : index
    %c0_156 = arith.constant 0 : index
    %c0_157 = arith.constant 0 : index
    %517 = vector.load %arg9[%c3_155, %c0_156, %c0_157] : memref<8x64x64xf32, #tpu.memory_space<vmem>>, vector<1x64x64xf32>
    %518 = vector.shape_cast %517 : vector<1x64x64xf32> to vector<64x64xf32>
    %cst_158 = arith.constant dense<0.000000e+00> : vector<32x64xf32>
    %519 = tpu.matmul %516, %518, %cst_158 {dimension_numbers = #tpu.dot_dimension_numbers<[1], [0], [0], [1], [0, 0, 1, 1], [], []>} : vector<32x64xf32>, vector<64x64xf32>, vector<32x64xf32> -> vector<32x64xf32>
    %520 = vector.extract_strided_slice %98 {offsets = [16, 0], sizes = [1, 64], strides = [1, 1]} : vector<24x64xf32> to vector<1x64xf32>
    %521 = vector.broadcast %520 : vector<1x64xf32> to vector<32x64xf32>
    %522 = arith.addf %519, %521 : vector<32x64xf32>
    %523 = arith.addf %410, %522 : vector<32x64xf32>
    %524 = vector.extract_strided_slice %98 {offsets = [3, 0], sizes = [1, 64], strides = [1, 1]} : vector<24x64xf32> to vector<1x64xf32>
    %525 = vector.extract_strided_slice %98 {offsets = [7, 0], sizes = [1, 64], strides = [1, 1]} : vector<24x64xf32> to vector<1x64xf32>
    %cst_159 = arith.constant dense<0.000000e+00> : vector<32xf32>
    %526 = vector.multi_reduction <add>, %523, %cst_159 [1] : vector<32x64xf32> to vector<32xf32>
    %527 = vector.shape_cast %526 : vector<32xf32> to vector<32x1xf32>
    %cst_160 = arith.constant 6.400000e+01 : f32
    %528 = vector.broadcast %cst_160 : f32 to vector<32x1xf32>
    %529 = arith.divf %527, %528 : vector<32x1xf32>
    %530 = vector.broadcast %529 : vector<32x1xf32> to vector<32x64xf32>
    %531 = arith.subf %523, %530 : vector<32x64xf32>
    %532 = arith.mulf %531, %531 : vector<32x64xf32>
    %cst_161 = arith.constant dense<0.000000e+00> : vector<32xf32>
    %533 = vector.multi_reduction <add>, %532, %cst_161 [1] : vector<32x64xf32> to vector<32xf32>
    %534 = vector.shape_cast %533 : vector<32xf32> to vector<32x1xf32>
    %cst_162 = arith.constant 6.400000e+01 : f32
    %535 = vector.broadcast %cst_162 : f32 to vector<32x1xf32>
    %536 = arith.divf %534, %535 : vector<32x1xf32>
    %537 = vector.broadcast %529 : vector<32x1xf32> to vector<32x64xf32>
    %538 = arith.subf %523, %537 : vector<32x64xf32>
    %cst_163 = arith.constant 9.99999974E-6 : f32
    %539 = vector.broadcast %cst_163 : f32 to vector<32x1xf32>
    %540 = arith.addf %536, %539 : vector<32x1xf32>
    %541 = math.rsqrt %540 : vector<32x1xf32>
    %542 = vector.broadcast %541 : vector<32x1xf32> to vector<32x64xf32>
    %543 = arith.mulf %538, %542 : vector<32x64xf32>
    %544 = vector.broadcast %524 : vector<1x64xf32> to vector<32x64xf32>
    %545 = arith.mulf %543, %544 : vector<32x64xf32>
    %546 = vector.broadcast %525 : vector<1x64xf32> to vector<32x64xf32>
    %547 = arith.addf %545, %546 : vector<32x64xf32>
    %c1_164 = arith.constant 1 : index
    %c0_165 = arith.constant 0 : index
    %c0_166 = arith.constant 0 : index
    %548 = vector.load %arg6[%c1_164, %c0_165, %c0_166] : memref<4x64x256xf32, #tpu.memory_space<vmem>>, vector<1x64x256xf32>
    %549 = vector.shape_cast %548 : vector<1x64x256xf32> to vector<64x256xf32>
    %cst_167 = arith.constant dense<0.000000e+00> : vector<32x256xf32>
    %550 = tpu.matmul %547, %549, %cst_167 {dimension_numbers = #tpu.dot_dimension_numbers<[1], [0], [0], [1], [0, 0, 1, 1], [], []>} : vector<32x64xf32>, vector<64x256xf32>, vector<32x256xf32> -> vector<32x256xf32>
    %551 = vector.extract_strided_slice %100 {offsets = [1, 0], sizes = [1, 256], strides = [1, 1]} : vector<2x256xf32> to vector<1x256xf32>
    %552 = vector.broadcast %551 : vector<1x256xf32> to vector<32x256xf32>
    %553 = arith.addf %550, %552 : vector<32x256xf32>
    %554 = arith.negf %553 : vector<32x256xf32>
    %555 = math.exp %554 : vector<32x256xf32>
    %cst_168 = arith.constant 1.000000e+00 : f32
    %556 = vector.broadcast %cst_168 : f32 to vector<32x256xf32>
    %557 = arith.addf %556, %555 : vector<32x256xf32>
    %558 = arith.divf %556, %557 : vector<32x256xf32>
    %559 = arith.mulf %553, %558 : vector<32x256xf32>
    %c1_169 = arith.constant 1 : index
    %c0_170 = arith.constant 0 : index
    %c0_171 = arith.constant 0 : index
    %560 = vector.load %arg7[%c1_169, %c0_170, %c0_171] : memref<4x256x64xf32, #tpu.memory_space<vmem>>, vector<1x256x64xf32>
    %561 = vector.shape_cast %560 : vector<1x256x64xf32> to vector<256x64xf32>
    %cst_172 = arith.constant dense<0.000000e+00> : vector<32x64xf32>
    %562 = tpu.matmul %559, %561, %cst_172 {dimension_numbers = #tpu.dot_dimension_numbers<[1], [0], [0], [1], [0, 0, 1, 1], [], []>} : vector<32x256xf32>, vector<256x64xf32>, vector<32x64xf32> -> vector<32x64xf32>
    %563 = vector.extract_strided_slice %98 {offsets = [9, 0], sizes = [1, 64], strides = [1, 1]} : vector<24x64xf32> to vector<1x64xf32>
    %564 = vector.broadcast %563 : vector<1x64xf32> to vector<32x64xf32>
    %565 = arith.addf %562, %564 : vector<32x64xf32>
    %cst_173 = arith.constant 5.000000e-01 : f32
    %566 = vector.broadcast %cst_173 : f32 to vector<32x64xf32>
    %567 = arith.mulf %566, %565 : vector<32x64xf32>
    %568 = arith.addf %523, %567 : vector<32x64xf32>
    %c1_174 = arith.constant 1 : index
    %c0_175 = arith.constant 0 : index
    %c0_176 = arith.constant 0 : index
    %569 = vector.load %arg3[%c1_174, %c0_175, %c0_176] : memref<2x24x64xf32, #tpu.memory_space<vmem>>, vector<1x24x64xf32>
    %570 = vector.shape_cast %569 : vector<1x24x64xf32> to vector<24x64xf32>
    %c1_177 = arith.constant 1 : index
    %c0_178 = arith.constant 0 : index
    %c0_179 = arith.constant 0 : index
    %571 = vector.load %arg4[%c1_177, %c0_178, %c0_179] : memref<2x2x256xf32, #tpu.memory_space<vmem>>, vector<1x2x256xf32>
    %572 = vector.shape_cast %571 : vector<1x2x256xf32> to vector<2x256xf32>
    %c1_180 = arith.constant 1 : index
    %c0_181 = arith.constant 0 : index
    %c0_182 = arith.constant 0 : index
    %573 = vector.load %arg5[%c1_180, %c0_181, %c0_182] : memref<2x12x16xf32, #tpu.memory_space<vmem>>, vector<1x12x16xf32>
    %574 = vector.shape_cast %573 : vector<1x12x16xf32> to vector<12x16xf32>
    %575 = vector.extract_strided_slice %570 {offsets = [0, 0], sizes = [1, 64], strides = [1, 1]} : vector<24x64xf32> to vector<1x64xf32>
    %576 = vector.extract_strided_slice %570 {offsets = [4, 0], sizes = [1, 64], strides = [1, 1]} : vector<24x64xf32> to vector<1x64xf32>
    %cst_183 = arith.constant dense<0.000000e+00> : vector<32xf32>
    %577 = vector.multi_reduction <add>, %568, %cst_183 [1] : vector<32x64xf32> to vector<32xf32>
    %578 = vector.shape_cast %577 : vector<32xf32> to vector<32x1xf32>
    %cst_184 = arith.constant 6.400000e+01 : f32
    %579 = vector.broadcast %cst_184 : f32 to vector<32x1xf32>
    %580 = arith.divf %578, %579 : vector<32x1xf32>
    %581 = vector.broadcast %580 : vector<32x1xf32> to vector<32x64xf32>
    %582 = arith.subf %568, %581 : vector<32x64xf32>
    %583 = arith.mulf %582, %582 : vector<32x64xf32>
    %cst_185 = arith.constant dense<0.000000e+00> : vector<32xf32>
    %584 = vector.multi_reduction <add>, %583, %cst_185 [1] : vector<32x64xf32> to vector<32xf32>
    %585 = vector.shape_cast %584 : vector<32xf32> to vector<32x1xf32>
    %cst_186 = arith.constant 6.400000e+01 : f32
    %586 = vector.broadcast %cst_186 : f32 to vector<32x1xf32>
    %587 = arith.divf %585, %586 : vector<32x1xf32>
    %588 = vector.broadcast %580 : vector<32x1xf32> to vector<32x64xf32>
    %589 = arith.subf %568, %588 : vector<32x64xf32>
    %cst_187 = arith.constant 9.99999974E-6 : f32
    %590 = vector.broadcast %cst_187 : f32 to vector<32x1xf32>
    %591 = arith.addf %587, %590 : vector<32x1xf32>
    %592 = math.rsqrt %591 : vector<32x1xf32>
    %593 = vector.broadcast %592 : vector<32x1xf32> to vector<32x64xf32>
    %594 = arith.mulf %589, %593 : vector<32x64xf32>
    %595 = vector.broadcast %575 : vector<1x64xf32> to vector<32x64xf32>
    %596 = arith.mulf %594, %595 : vector<32x64xf32>
    %597 = vector.broadcast %576 : vector<1x64xf32> to vector<32x64xf32>
    %598 = arith.addf %596, %597 : vector<32x64xf32>
    %c2_188 = arith.constant 2 : index
    %c0_189 = arith.constant 0 : index
    %c0_190 = arith.constant 0 : index
    %599 = vector.load %arg6[%c2_188, %c0_189, %c0_190] : memref<4x64x256xf32, #tpu.memory_space<vmem>>, vector<1x64x256xf32>
    %600 = vector.shape_cast %599 : vector<1x64x256xf32> to vector<64x256xf32>
    %cst_191 = arith.constant dense<0.000000e+00> : vector<32x256xf32>
    %601 = tpu.matmul %598, %600, %cst_191 {dimension_numbers = #tpu.dot_dimension_numbers<[1], [0], [0], [1], [0, 0, 1, 1], [], []>} : vector<32x64xf32>, vector<64x256xf32>, vector<32x256xf32> -> vector<32x256xf32>
    %602 = vector.extract_strided_slice %572 {offsets = [0, 0], sizes = [1, 256], strides = [1, 1]} : vector<2x256xf32> to vector<1x256xf32>
    %603 = vector.broadcast %602 : vector<1x256xf32> to vector<32x256xf32>
    %604 = arith.addf %601, %603 : vector<32x256xf32>
    %605 = arith.negf %604 : vector<32x256xf32>
    %606 = math.exp %605 : vector<32x256xf32>
    %cst_192 = arith.constant 1.000000e+00 : f32
    %607 = vector.broadcast %cst_192 : f32 to vector<32x256xf32>
    %608 = arith.addf %607, %606 : vector<32x256xf32>
    %609 = arith.divf %607, %608 : vector<32x256xf32>
    %610 = arith.mulf %604, %609 : vector<32x256xf32>
    %c2_193 = arith.constant 2 : index
    %c0_194 = arith.constant 0 : index
    %c0_195 = arith.constant 0 : index
    %611 = vector.load %arg7[%c2_193, %c0_194, %c0_195] : memref<4x256x64xf32, #tpu.memory_space<vmem>>, vector<1x256x64xf32>
    %612 = vector.shape_cast %611 : vector<1x256x64xf32> to vector<256x64xf32>
    %cst_196 = arith.constant dense<0.000000e+00> : vector<32x64xf32>
    %613 = tpu.matmul %610, %612, %cst_196 {dimension_numbers = #tpu.dot_dimension_numbers<[1], [0], [0], [1], [0, 0, 1, 1], [], []>} : vector<32x256xf32>, vector<256x64xf32>, vector<32x64xf32> -> vector<32x64xf32>
    %614 = vector.extract_strided_slice %570 {offsets = [8, 0], sizes = [1, 64], strides = [1, 1]} : vector<24x64xf32> to vector<1x64xf32>
    %615 = vector.broadcast %614 : vector<1x64xf32> to vector<32x64xf32>
    %616 = arith.addf %613, %615 : vector<32x64xf32>
    %cst_197 = arith.constant 5.000000e-01 : f32
    %617 = vector.broadcast %cst_197 : f32 to vector<32x64xf32>
    %618 = arith.mulf %617, %616 : vector<32x64xf32>
    %619 = arith.addf %568, %618 : vector<32x64xf32>
    %620 = vector.extract_strided_slice %570 {offsets = [1, 0], sizes = [1, 64], strides = [1, 1]} : vector<24x64xf32> to vector<1x64xf32>
    %621 = vector.extract_strided_slice %570 {offsets = [5, 0], sizes = [1, 64], strides = [1, 1]} : vector<24x64xf32> to vector<1x64xf32>
    %cst_198 = arith.constant dense<0.000000e+00> : vector<32xf32>
    %622 = vector.multi_reduction <add>, %619, %cst_198 [1] : vector<32x64xf32> to vector<32xf32>
    %623 = vector.shape_cast %622 : vector<32xf32> to vector<32x1xf32>
    %cst_199 = arith.constant 6.400000e+01 : f32
    %624 = vector.broadcast %cst_199 : f32 to vector<32x1xf32>
    %625 = arith.divf %623, %624 : vector<32x1xf32>
    %626 = vector.broadcast %625 : vector<32x1xf32> to vector<32x64xf32>
    %627 = arith.subf %619, %626 : vector<32x64xf32>
    %628 = arith.mulf %627, %627 : vector<32x64xf32>
    %cst_200 = arith.constant dense<0.000000e+00> : vector<32xf32>
    %629 = vector.multi_reduction <add>, %628, %cst_200 [1] : vector<32x64xf32> to vector<32xf32>
    %630 = vector.shape_cast %629 : vector<32xf32> to vector<32x1xf32>
    %cst_201 = arith.constant 6.400000e+01 : f32
    %631 = vector.broadcast %cst_201 : f32 to vector<32x1xf32>
    %632 = arith.divf %630, %631 : vector<32x1xf32>
    %633 = vector.broadcast %625 : vector<32x1xf32> to vector<32x64xf32>
    %634 = arith.subf %619, %633 : vector<32x64xf32>
    %cst_202 = arith.constant 9.99999974E-6 : f32
    %635 = vector.broadcast %cst_202 : f32 to vector<32x1xf32>
    %636 = arith.addf %632, %635 : vector<32x1xf32>
    %637 = math.rsqrt %636 : vector<32x1xf32>
    %638 = vector.broadcast %637 : vector<32x1xf32> to vector<32x64xf32>
    %639 = arith.mulf %634, %638 : vector<32x64xf32>
    %640 = vector.broadcast %620 : vector<1x64xf32> to vector<32x64xf32>
    %641 = arith.mulf %639, %640 : vector<32x64xf32>
    %642 = vector.broadcast %621 : vector<1x64xf32> to vector<32x64xf32>
    %643 = arith.addf %641, %642 : vector<32x64xf32>
    %c4_203 = arith.constant 4 : index
    %c0_204 = arith.constant 0 : index
    %c0_205 = arith.constant 0 : index
    %644 = vector.load %arg9[%c4_203, %c0_204, %c0_205] : memref<8x64x64xf32, #tpu.memory_space<vmem>>, vector<1x64x64xf32>
    %645 = vector.shape_cast %644 : vector<1x64x64xf32> to vector<64x64xf32>
    %cst_206 = arith.constant 0.000000e+00 : f32
    %646 = vector.broadcast %cst_206 : f32 to vector<32x64xf32>
    %c12 = arith.constant 12 : index
    %c0_207 = arith.constant 0 : index
    %c0_208 = arith.constant 0 : index
    %647 = vector.load %arg8[%c12, %c0_207, %c0_208] : memref<24x64x16xf32, #tpu.memory_space<vmem>>, vector<1x64x16xf32>
    %648 = vector.shape_cast %647 : vector<1x64x16xf32> to vector<64x16xf32>
    %cst_209 = arith.constant dense<0.000000e+00> : vector<32x16xf32>
    %649 = tpu.matmul %643, %648, %cst_209 {dimension_numbers = #tpu.dot_dimension_numbers<[1], [0], [0], [1], [0, 0, 1, 1], [], []>} : vector<32x64xf32>, vector<64x16xf32>, vector<32x16xf32> -> vector<32x16xf32>
    %650 = vector.extract_strided_slice %574 {offsets = [0, 0], sizes = [1, 16], strides = [1, 1]} : vector<12x16xf32> to vector<1x16xf32>
    %651 = vector.broadcast %650 : vector<1x16xf32> to vector<32x16xf32>
    %652 = arith.addf %649, %651 : vector<32x16xf32>
    %c13 = arith.constant 13 : index
    %c0_210 = arith.constant 0 : index
    %c0_211 = arith.constant 0 : index
    %653 = vector.load %arg8[%c13, %c0_210, %c0_211] : memref<24x64x16xf32, #tpu.memory_space<vmem>>, vector<1x64x16xf32>
    %654 = vector.shape_cast %653 : vector<1x64x16xf32> to vector<64x16xf32>
    %cst_212 = arith.constant dense<0.000000e+00> : vector<32x16xf32>
    %655 = tpu.matmul %643, %654, %cst_212 {dimension_numbers = #tpu.dot_dimension_numbers<[1], [0], [0], [1], [0, 0, 1, 1], [], []>} : vector<32x64xf32>, vector<64x16xf32>, vector<32x16xf32> -> vector<32x16xf32>
    %656 = vector.extract_strided_slice %574 {offsets = [1, 0], sizes = [1, 16], strides = [1, 1]} : vector<12x16xf32> to vector<1x16xf32>
    %657 = vector.broadcast %656 : vector<1x16xf32> to vector<32x16xf32>
    %658 = arith.addf %655, %657 : vector<32x16xf32>
    %c14 = arith.constant 14 : index
    %c0_213 = arith.constant 0 : index
    %c0_214 = arith.constant 0 : index
    %659 = vector.load %arg8[%c14, %c0_213, %c0_214] : memref<24x64x16xf32, #tpu.memory_space<vmem>>, vector<1x64x16xf32>
    %660 = vector.shape_cast %659 : vector<1x64x16xf32> to vector<64x16xf32>
    %cst_215 = arith.constant dense<0.000000e+00> : vector<32x16xf32>
    %661 = tpu.matmul %643, %660, %cst_215 {dimension_numbers = #tpu.dot_dimension_numbers<[1], [0], [0], [1], [0, 0, 1, 1], [], []>} : vector<32x64xf32>, vector<64x16xf32>, vector<32x16xf32> -> vector<32x16xf32>
    %662 = vector.extract_strided_slice %574 {offsets = [2, 0], sizes = [1, 16], strides = [1, 1]} : vector<12x16xf32> to vector<1x16xf32>
    %663 = vector.broadcast %662 : vector<1x16xf32> to vector<32x16xf32>
    %664 = arith.addf %661, %663 : vector<32x16xf32>
    %665 = vector.extract_strided_slice %652 {offsets = [0, 0], sizes = [16, 16], strides = [1, 1]} : vector<32x16xf32> to vector<16x16xf32>
    %666 = vector.extract_strided_slice %658 {offsets = [0, 0], sizes = [16, 16], strides = [1, 1]} : vector<32x16xf32> to vector<16x16xf32>
    %cst_216 = arith.constant dense<0.000000e+00> : vector<16x16xf32>
    %667 = tpu.matmul %665, %666, %cst_216 {dimension_numbers = #tpu.dot_dimension_numbers<[1], [1], [0], [0], [0, 0, 1, 0], [], []>} : vector<16x16xf32>, vector<16x16xf32>, vector<16x16xf32> -> vector<16x16xf32>
    %668 = vector.extract_strided_slice %1 {offsets = [0, 0], sizes = [1, 16], strides = [1, 1]} : vector<2x16xf32> to vector<1x16xf32>
    %669 = vector.broadcast %668 : vector<1x16xf32> to vector<16x16xf32>
    %670 = arith.addf %667, %669 : vector<16x16xf32>
    %cst_217 = arith.constant dense<0xFF800000> : vector<16xf32>
    %671 = vector.multi_reduction <maximumf>, %670, %cst_217 [1] : vector<16x16xf32> to vector<16xf32>
    %672 = vector.shape_cast %671 : vector<16xf32> to vector<16x1xf32>
    %673 = vector.broadcast %672 : vector<16x1xf32> to vector<16x16xf32>
    %674 = arith.subf %670, %673 : vector<16x16xf32>
    %675 = math.exp %674 : vector<16x16xf32>
    %cst_218 = arith.constant dense<0.000000e+00> : vector<16xf32>
    %676 = vector.multi_reduction <add>, %675, %cst_218 [1] : vector<16x16xf32> to vector<16xf32>
    %677 = vector.shape_cast %676 : vector<16xf32> to vector<16x1xf32>
    %678 = tpu.reciprocal %677 {approx = true} : vector<16x1xf32> -> vector<16x1xf32>
    %679 = vector.broadcast %678 : vector<16x1xf32> to vector<16x16xf32>
    %680 = arith.mulf %675, %679 : vector<16x16xf32>
    %681 = vector.extract_strided_slice %664 {offsets = [0, 0], sizes = [16, 16], strides = [1, 1]} : vector<32x16xf32> to vector<16x16xf32>
    %cst_219 = arith.constant dense<0.000000e+00> : vector<16x16xf32>
    %682 = tpu.matmul %680, %681, %cst_219 {dimension_numbers = #tpu.dot_dimension_numbers<[1], [0], [0], [1], [0, 0, 1, 1], [], []>} : vector<16x16xf32>, vector<16x16xf32>, vector<16x16xf32> -> vector<16x16xf32>
    %683 = vector.extract_strided_slice %652 {offsets = [16, 0], sizes = [16, 16], strides = [1, 1]} : vector<32x16xf32> to vector<16x16xf32>
    %684 = vector.extract_strided_slice %658 {offsets = [16, 0], sizes = [16, 16], strides = [1, 1]} : vector<32x16xf32> to vector<16x16xf32>
    %cst_220 = arith.constant dense<0.000000e+00> : vector<16x16xf32>
    %685 = tpu.matmul %683, %684, %cst_220 {dimension_numbers = #tpu.dot_dimension_numbers<[1], [1], [0], [0], [0, 0, 1, 0], [], []>} : vector<16x16xf32>, vector<16x16xf32>, vector<16x16xf32> -> vector<16x16xf32>
    %686 = vector.extract_strided_slice %1 {offsets = [1, 0], sizes = [1, 16], strides = [1, 1]} : vector<2x16xf32> to vector<1x16xf32>
    %687 = vector.broadcast %686 : vector<1x16xf32> to vector<16x16xf32>
    %688 = arith.addf %685, %687 : vector<16x16xf32>
    %cst_221 = arith.constant dense<0xFF800000> : vector<16xf32>
    %689 = vector.multi_reduction <maximumf>, %688, %cst_221 [1] : vector<16x16xf32> to vector<16xf32>
    %690 = vector.shape_cast %689 : vector<16xf32> to vector<16x1xf32>
    %691 = vector.broadcast %690 : vector<16x1xf32> to vector<16x16xf32>
    %692 = arith.subf %688, %691 : vector<16x16xf32>
    %693 = math.exp %692 : vector<16x16xf32>
    %cst_222 = arith.constant dense<0.000000e+00> : vector<16xf32>
    %694 = vector.multi_reduction <add>, %693, %cst_222 [1] : vector<16x16xf32> to vector<16xf32>
    %695 = vector.shape_cast %694 : vector<16xf32> to vector<16x1xf32>
    %696 = tpu.reciprocal %695 {approx = true} : vector<16x1xf32> -> vector<16x1xf32>
    %697 = vector.broadcast %696 : vector<16x1xf32> to vector<16x16xf32>
    %698 = arith.mulf %693, %697 : vector<16x16xf32>
    %699 = vector.extract_strided_slice %664 {offsets = [16, 0], sizes = [16, 16], strides = [1, 1]} : vector<32x16xf32> to vector<16x16xf32>
    %cst_223 = arith.constant dense<0.000000e+00> : vector<16x16xf32>
    %700 = tpu.matmul %698, %699, %cst_223 {dimension_numbers = #tpu.dot_dimension_numbers<[1], [0], [0], [1], [0, 0, 1, 1], [], []>} : vector<16x16xf32>, vector<16x16xf32>, vector<16x16xf32> -> vector<16x16xf32>
    %701 = tpu.concatenate %682, %700 in 0 : vector<16x16xf32>, vector<16x16xf32> -> vector<32x16xf32>
    %702 = vector.extract_strided_slice %645 {offsets = [0, 0], sizes = [16, 64], strides = [1, 1]} : vector<64x64xf32> to vector<16x64xf32>
    %cst_224 = arith.constant dense<0.000000e+00> : vector<32x64xf32>
    %703 = tpu.matmul %701, %702, %cst_224 {dimension_numbers = #tpu.dot_dimension_numbers<[1], [0], [0], [1], [0, 0, 1, 1], [], []>} : vector<32x16xf32>, vector<16x64xf32>, vector<32x64xf32> -> vector<32x64xf32>
    %704 = arith.addf %646, %703 : vector<32x64xf32>
    %c15 = arith.constant 15 : index
    %c0_225 = arith.constant 0 : index
    %c0_226 = arith.constant 0 : index
    %705 = vector.load %arg8[%c15, %c0_225, %c0_226] : memref<24x64x16xf32, #tpu.memory_space<vmem>>, vector<1x64x16xf32>
    %706 = vector.shape_cast %705 : vector<1x64x16xf32> to vector<64x16xf32>
    %cst_227 = arith.constant dense<0.000000e+00> : vector<32x16xf32>
    %707 = tpu.matmul %643, %706, %cst_227 {dimension_numbers = #tpu.dot_dimension_numbers<[1], [0], [0], [1], [0, 0, 1, 1], [], []>} : vector<32x64xf32>, vector<64x16xf32>, vector<32x16xf32> -> vector<32x16xf32>
    %708 = vector.extract_strided_slice %574 {offsets = [3, 0], sizes = [1, 16], strides = [1, 1]} : vector<12x16xf32> to vector<1x16xf32>
    %709 = vector.broadcast %708 : vector<1x16xf32> to vector<32x16xf32>
    %710 = arith.addf %707, %709 : vector<32x16xf32>
    %c16 = arith.constant 16 : index
    %c0_228 = arith.constant 0 : index
    %c0_229 = arith.constant 0 : index
    %711 = vector.load %arg8[%c16, %c0_228, %c0_229] : memref<24x64x16xf32, #tpu.memory_space<vmem>>, vector<1x64x16xf32>
    %712 = vector.shape_cast %711 : vector<1x64x16xf32> to vector<64x16xf32>
    %cst_230 = arith.constant dense<0.000000e+00> : vector<32x16xf32>
    %713 = tpu.matmul %643, %712, %cst_230 {dimension_numbers = #tpu.dot_dimension_numbers<[1], [0], [0], [1], [0, 0, 1, 1], [], []>} : vector<32x64xf32>, vector<64x16xf32>, vector<32x16xf32> -> vector<32x16xf32>
    %714 = vector.extract_strided_slice %574 {offsets = [4, 0], sizes = [1, 16], strides = [1, 1]} : vector<12x16xf32> to vector<1x16xf32>
    %715 = vector.broadcast %714 : vector<1x16xf32> to vector<32x16xf32>
    %716 = arith.addf %713, %715 : vector<32x16xf32>
    %c17 = arith.constant 17 : index
    %c0_231 = arith.constant 0 : index
    %c0_232 = arith.constant 0 : index
    %717 = vector.load %arg8[%c17, %c0_231, %c0_232] : memref<24x64x16xf32, #tpu.memory_space<vmem>>, vector<1x64x16xf32>
    %718 = vector.shape_cast %717 : vector<1x64x16xf32> to vector<64x16xf32>
    %cst_233 = arith.constant dense<0.000000e+00> : vector<32x16xf32>
    %719 = tpu.matmul %643, %718, %cst_233 {dimension_numbers = #tpu.dot_dimension_numbers<[1], [0], [0], [1], [0, 0, 1, 1], [], []>} : vector<32x64xf32>, vector<64x16xf32>, vector<32x16xf32> -> vector<32x16xf32>
    %720 = vector.extract_strided_slice %574 {offsets = [5, 0], sizes = [1, 16], strides = [1, 1]} : vector<12x16xf32> to vector<1x16xf32>
    %721 = vector.broadcast %720 : vector<1x16xf32> to vector<32x16xf32>
    %722 = arith.addf %719, %721 : vector<32x16xf32>
    %723 = vector.extract_strided_slice %710 {offsets = [0, 0], sizes = [16, 16], strides = [1, 1]} : vector<32x16xf32> to vector<16x16xf32>
    %724 = vector.extract_strided_slice %716 {offsets = [0, 0], sizes = [16, 16], strides = [1, 1]} : vector<32x16xf32> to vector<16x16xf32>
    %cst_234 = arith.constant dense<0.000000e+00> : vector<16x16xf32>
    %725 = tpu.matmul %723, %724, %cst_234 {dimension_numbers = #tpu.dot_dimension_numbers<[1], [1], [0], [0], [0, 0, 1, 0], [], []>} : vector<16x16xf32>, vector<16x16xf32>, vector<16x16xf32> -> vector<16x16xf32>
    %726 = vector.extract_strided_slice %1 {offsets = [0, 0], sizes = [1, 16], strides = [1, 1]} : vector<2x16xf32> to vector<1x16xf32>
    %727 = vector.broadcast %726 : vector<1x16xf32> to vector<16x16xf32>
    %728 = arith.addf %725, %727 : vector<16x16xf32>
    %cst_235 = arith.constant dense<0xFF800000> : vector<16xf32>
    %729 = vector.multi_reduction <maximumf>, %728, %cst_235 [1] : vector<16x16xf32> to vector<16xf32>
    %730 = vector.shape_cast %729 : vector<16xf32> to vector<16x1xf32>
    %731 = vector.broadcast %730 : vector<16x1xf32> to vector<16x16xf32>
    %732 = arith.subf %728, %731 : vector<16x16xf32>
    %733 = math.exp %732 : vector<16x16xf32>
    %cst_236 = arith.constant dense<0.000000e+00> : vector<16xf32>
    %734 = vector.multi_reduction <add>, %733, %cst_236 [1] : vector<16x16xf32> to vector<16xf32>
    %735 = vector.shape_cast %734 : vector<16xf32> to vector<16x1xf32>
    %736 = tpu.reciprocal %735 {approx = true} : vector<16x1xf32> -> vector<16x1xf32>
    %737 = vector.broadcast %736 : vector<16x1xf32> to vector<16x16xf32>
    %738 = arith.mulf %733, %737 : vector<16x16xf32>
    %739 = vector.extract_strided_slice %722 {offsets = [0, 0], sizes = [16, 16], strides = [1, 1]} : vector<32x16xf32> to vector<16x16xf32>
    %cst_237 = arith.constant dense<0.000000e+00> : vector<16x16xf32>
    %740 = tpu.matmul %738, %739, %cst_237 {dimension_numbers = #tpu.dot_dimension_numbers<[1], [0], [0], [1], [0, 0, 1, 1], [], []>} : vector<16x16xf32>, vector<16x16xf32>, vector<16x16xf32> -> vector<16x16xf32>
    %741 = vector.extract_strided_slice %710 {offsets = [16, 0], sizes = [16, 16], strides = [1, 1]} : vector<32x16xf32> to vector<16x16xf32>
    %742 = vector.extract_strided_slice %716 {offsets = [16, 0], sizes = [16, 16], strides = [1, 1]} : vector<32x16xf32> to vector<16x16xf32>
    %cst_238 = arith.constant dense<0.000000e+00> : vector<16x16xf32>
    %743 = tpu.matmul %741, %742, %cst_238 {dimension_numbers = #tpu.dot_dimension_numbers<[1], [1], [0], [0], [0, 0, 1, 0], [], []>} : vector<16x16xf32>, vector<16x16xf32>, vector<16x16xf32> -> vector<16x16xf32>
    %744 = vector.extract_strided_slice %1 {offsets = [1, 0], sizes = [1, 16], strides = [1, 1]} : vector<2x16xf32> to vector<1x16xf32>
    %745 = vector.broadcast %744 : vector<1x16xf32> to vector<16x16xf32>
    %746 = arith.addf %743, %745 : vector<16x16xf32>
    %cst_239 = arith.constant dense<0xFF800000> : vector<16xf32>
    %747 = vector.multi_reduction <maximumf>, %746, %cst_239 [1] : vector<16x16xf32> to vector<16xf32>
    %748 = vector.shape_cast %747 : vector<16xf32> to vector<16x1xf32>
    %749 = vector.broadcast %748 : vector<16x1xf32> to vector<16x16xf32>
    %750 = arith.subf %746, %749 : vector<16x16xf32>
    %751 = math.exp %750 : vector<16x16xf32>
    %cst_240 = arith.constant dense<0.000000e+00> : vector<16xf32>
    %752 = vector.multi_reduction <add>, %751, %cst_240 [1] : vector<16x16xf32> to vector<16xf32>
    %753 = vector.shape_cast %752 : vector<16xf32> to vector<16x1xf32>
    %754 = tpu.reciprocal %753 {approx = true} : vector<16x1xf32> -> vector<16x1xf32>
    %755 = vector.broadcast %754 : vector<16x1xf32> to vector<16x16xf32>
    %756 = arith.mulf %751, %755 : vector<16x16xf32>
    %757 = vector.extract_strided_slice %722 {offsets = [16, 0], sizes = [16, 16], strides = [1, 1]} : vector<32x16xf32> to vector<16x16xf32>
    %cst_241 = arith.constant dense<0.000000e+00> : vector<16x16xf32>
    %758 = tpu.matmul %756, %757, %cst_241 {dimension_numbers = #tpu.dot_dimension_numbers<[1], [0], [0], [1], [0, 0, 1, 1], [], []>} : vector<16x16xf32>, vector<16x16xf32>, vector<16x16xf32> -> vector<16x16xf32>
    %759 = tpu.concatenate %740, %758 in 0 : vector<16x16xf32>, vector<16x16xf32> -> vector<32x16xf32>
    %760 = vector.extract_strided_slice %645 {offsets = [16, 0], sizes = [16, 64], strides = [1, 1]} : vector<64x64xf32> to vector<16x64xf32>
    %cst_242 = arith.constant dense<0.000000e+00> : vector<32x64xf32>
    %761 = tpu.matmul %759, %760, %cst_242 {dimension_numbers = #tpu.dot_dimension_numbers<[1], [0], [0], [1], [0, 0, 1, 1], [], []>} : vector<32x16xf32>, vector<16x64xf32>, vector<32x64xf32> -> vector<32x64xf32>
    %762 = arith.addf %704, %761 : vector<32x64xf32>
    %c18 = arith.constant 18 : index
    %c0_243 = arith.constant 0 : index
    %c0_244 = arith.constant 0 : index
    %763 = vector.load %arg8[%c18, %c0_243, %c0_244] : memref<24x64x16xf32, #tpu.memory_space<vmem>>, vector<1x64x16xf32>
    %764 = vector.shape_cast %763 : vector<1x64x16xf32> to vector<64x16xf32>
    %cst_245 = arith.constant dense<0.000000e+00> : vector<32x16xf32>
    %765 = tpu.matmul %643, %764, %cst_245 {dimension_numbers = #tpu.dot_dimension_numbers<[1], [0], [0], [1], [0, 0, 1, 1], [], []>} : vector<32x64xf32>, vector<64x16xf32>, vector<32x16xf32> -> vector<32x16xf32>
    %766 = vector.extract_strided_slice %574 {offsets = [6, 0], sizes = [1, 16], strides = [1, 1]} : vector<12x16xf32> to vector<1x16xf32>
    %767 = vector.broadcast %766 : vector<1x16xf32> to vector<32x16xf32>
    %768 = arith.addf %765, %767 : vector<32x16xf32>
    %c19 = arith.constant 19 : index
    %c0_246 = arith.constant 0 : index
    %c0_247 = arith.constant 0 : index
    %769 = vector.load %arg8[%c19, %c0_246, %c0_247] : memref<24x64x16xf32, #tpu.memory_space<vmem>>, vector<1x64x16xf32>
    %770 = vector.shape_cast %769 : vector<1x64x16xf32> to vector<64x16xf32>
    %cst_248 = arith.constant dense<0.000000e+00> : vector<32x16xf32>
    %771 = tpu.matmul %643, %770, %cst_248 {dimension_numbers = #tpu.dot_dimension_numbers<[1], [0], [0], [1], [0, 0, 1, 1], [], []>} : vector<32x64xf32>, vector<64x16xf32>, vector<32x16xf32> -> vector<32x16xf32>
    %772 = vector.extract_strided_slice %574 {offsets = [7, 0], sizes = [1, 16], strides = [1, 1]} : vector<12x16xf32> to vector<1x16xf32>
    %773 = vector.broadcast %772 : vector<1x16xf32> to vector<32x16xf32>
    %774 = arith.addf %771, %773 : vector<32x16xf32>
    %c20 = arith.constant 20 : index
    %c0_249 = arith.constant 0 : index
    %c0_250 = arith.constant 0 : index
    %775 = vector.load %arg8[%c20, %c0_249, %c0_250] : memref<24x64x16xf32, #tpu.memory_space<vmem>>, vector<1x64x16xf32>
    %776 = vector.shape_cast %775 : vector<1x64x16xf32> to vector<64x16xf32>
    %cst_251 = arith.constant dense<0.000000e+00> : vector<32x16xf32>
    %777 = tpu.matmul %643, %776, %cst_251 {dimension_numbers = #tpu.dot_dimension_numbers<[1], [0], [0], [1], [0, 0, 1, 1], [], []>} : vector<32x64xf32>, vector<64x16xf32>, vector<32x16xf32> -> vector<32x16xf32>
    %778 = vector.extract_strided_slice %574 {offsets = [8, 0], sizes = [1, 16], strides = [1, 1]} : vector<12x16xf32> to vector<1x16xf32>
    %779 = vector.broadcast %778 : vector<1x16xf32> to vector<32x16xf32>
    %780 = arith.addf %777, %779 : vector<32x16xf32>
    %781 = vector.extract_strided_slice %768 {offsets = [0, 0], sizes = [16, 16], strides = [1, 1]} : vector<32x16xf32> to vector<16x16xf32>
    %782 = vector.extract_strided_slice %774 {offsets = [0, 0], sizes = [16, 16], strides = [1, 1]} : vector<32x16xf32> to vector<16x16xf32>
    %cst_252 = arith.constant dense<0.000000e+00> : vector<16x16xf32>
    %783 = tpu.matmul %781, %782, %cst_252 {dimension_numbers = #tpu.dot_dimension_numbers<[1], [1], [0], [0], [0, 0, 1, 0], [], []>} : vector<16x16xf32>, vector<16x16xf32>, vector<16x16xf32> -> vector<16x16xf32>
    %784 = vector.extract_strided_slice %1 {offsets = [0, 0], sizes = [1, 16], strides = [1, 1]} : vector<2x16xf32> to vector<1x16xf32>
    %785 = vector.broadcast %784 : vector<1x16xf32> to vector<16x16xf32>
    %786 = arith.addf %783, %785 : vector<16x16xf32>
    %cst_253 = arith.constant dense<0xFF800000> : vector<16xf32>
    %787 = vector.multi_reduction <maximumf>, %786, %cst_253 [1] : vector<16x16xf32> to vector<16xf32>
    %788 = vector.shape_cast %787 : vector<16xf32> to vector<16x1xf32>
    %789 = vector.broadcast %788 : vector<16x1xf32> to vector<16x16xf32>
    %790 = arith.subf %786, %789 : vector<16x16xf32>
    %791 = math.exp %790 : vector<16x16xf32>
    %cst_254 = arith.constant dense<0.000000e+00> : vector<16xf32>
    %792 = vector.multi_reduction <add>, %791, %cst_254 [1] : vector<16x16xf32> to vector<16xf32>
    %793 = vector.shape_cast %792 : vector<16xf32> to vector<16x1xf32>
    %794 = tpu.reciprocal %793 {approx = true} : vector<16x1xf32> -> vector<16x1xf32>
    %795 = vector.broadcast %794 : vector<16x1xf32> to vector<16x16xf32>
    %796 = arith.mulf %791, %795 : vector<16x16xf32>
    %797 = vector.extract_strided_slice %780 {offsets = [0, 0], sizes = [16, 16], strides = [1, 1]} : vector<32x16xf32> to vector<16x16xf32>
    %cst_255 = arith.constant dense<0.000000e+00> : vector<16x16xf32>
    %798 = tpu.matmul %796, %797, %cst_255 {dimension_numbers = #tpu.dot_dimension_numbers<[1], [0], [0], [1], [0, 0, 1, 1], [], []>} : vector<16x16xf32>, vector<16x16xf32>, vector<16x16xf32> -> vector<16x16xf32>
    %799 = vector.extract_strided_slice %768 {offsets = [16, 0], sizes = [16, 16], strides = [1, 1]} : vector<32x16xf32> to vector<16x16xf32>
    %800 = vector.extract_strided_slice %774 {offsets = [16, 0], sizes = [16, 16], strides = [1, 1]} : vector<32x16xf32> to vector<16x16xf32>
    %cst_256 = arith.constant dense<0.000000e+00> : vector<16x16xf32>
    %801 = tpu.matmul %799, %800, %cst_256 {dimension_numbers = #tpu.dot_dimension_numbers<[1], [1], [0], [0], [0, 0, 1, 0], [], []>} : vector<16x16xf32>, vector<16x16xf32>, vector<16x16xf32> -> vector<16x16xf32>
    %802 = vector.extract_strided_slice %1 {offsets = [1, 0], sizes = [1, 16], strides = [1, 1]} : vector<2x16xf32> to vector<1x16xf32>
    %803 = vector.broadcast %802 : vector<1x16xf32> to vector<16x16xf32>
    %804 = arith.addf %801, %803 : vector<16x16xf32>
    %cst_257 = arith.constant dense<0xFF800000> : vector<16xf32>
    %805 = vector.multi_reduction <maximumf>, %804, %cst_257 [1] : vector<16x16xf32> to vector<16xf32>
    %806 = vector.shape_cast %805 : vector<16xf32> to vector<16x1xf32>
    %807 = vector.broadcast %806 : vector<16x1xf32> to vector<16x16xf32>
    %808 = arith.subf %804, %807 : vector<16x16xf32>
    %809 = math.exp %808 : vector<16x16xf32>
    %cst_258 = arith.constant dense<0.000000e+00> : vector<16xf32>
    %810 = vector.multi_reduction <add>, %809, %cst_258 [1] : vector<16x16xf32> to vector<16xf32>
    %811 = vector.shape_cast %810 : vector<16xf32> to vector<16x1xf32>
    %812 = tpu.reciprocal %811 {approx = true} : vector<16x1xf32> -> vector<16x1xf32>
    %813 = vector.broadcast %812 : vector<16x1xf32> to vector<16x16xf32>
    %814 = arith.mulf %809, %813 : vector<16x16xf32>
    %815 = vector.extract_strided_slice %780 {offsets = [16, 0], sizes = [16, 16], strides = [1, 1]} : vector<32x16xf32> to vector<16x16xf32>
    %cst_259 = arith.constant dense<0.000000e+00> : vector<16x16xf32>
    %816 = tpu.matmul %814, %815, %cst_259 {dimension_numbers = #tpu.dot_dimension_numbers<[1], [0], [0], [1], [0, 0, 1, 1], [], []>} : vector<16x16xf32>, vector<16x16xf32>, vector<16x16xf32> -> vector<16x16xf32>
    %817 = tpu.concatenate %798, %816 in 0 : vector<16x16xf32>, vector<16x16xf32> -> vector<32x16xf32>
    %818 = vector.extract_strided_slice %645 {offsets = [32, 0], sizes = [16, 64], strides = [1, 1]} : vector<64x64xf32> to vector<16x64xf32>
    %cst_260 = arith.constant dense<0.000000e+00> : vector<32x64xf32>
    %819 = tpu.matmul %817, %818, %cst_260 {dimension_numbers = #tpu.dot_dimension_numbers<[1], [0], [0], [1], [0, 0, 1, 1], [], []>} : vector<32x16xf32>, vector<16x64xf32>, vector<32x64xf32> -> vector<32x64xf32>
    %820 = arith.addf %762, %819 : vector<32x64xf32>
    %c21 = arith.constant 21 : index
    %c0_261 = arith.constant 0 : index
    %c0_262 = arith.constant 0 : index
    %821 = vector.load %arg8[%c21, %c0_261, %c0_262] : memref<24x64x16xf32, #tpu.memory_space<vmem>>, vector<1x64x16xf32>
    %822 = vector.shape_cast %821 : vector<1x64x16xf32> to vector<64x16xf32>
    %cst_263 = arith.constant dense<0.000000e+00> : vector<32x16xf32>
    %823 = tpu.matmul %643, %822, %cst_263 {dimension_numbers = #tpu.dot_dimension_numbers<[1], [0], [0], [1], [0, 0, 1, 1], [], []>} : vector<32x64xf32>, vector<64x16xf32>, vector<32x16xf32> -> vector<32x16xf32>
    %824 = vector.extract_strided_slice %574 {offsets = [9, 0], sizes = [1, 16], strides = [1, 1]} : vector<12x16xf32> to vector<1x16xf32>
    %825 = vector.broadcast %824 : vector<1x16xf32> to vector<32x16xf32>
    %826 = arith.addf %823, %825 : vector<32x16xf32>
    %c22 = arith.constant 22 : index
    %c0_264 = arith.constant 0 : index
    %c0_265 = arith.constant 0 : index
    %827 = vector.load %arg8[%c22, %c0_264, %c0_265] : memref<24x64x16xf32, #tpu.memory_space<vmem>>, vector<1x64x16xf32>
    %828 = vector.shape_cast %827 : vector<1x64x16xf32> to vector<64x16xf32>
    %cst_266 = arith.constant dense<0.000000e+00> : vector<32x16xf32>
    %829 = tpu.matmul %643, %828, %cst_266 {dimension_numbers = #tpu.dot_dimension_numbers<[1], [0], [0], [1], [0, 0, 1, 1], [], []>} : vector<32x64xf32>, vector<64x16xf32>, vector<32x16xf32> -> vector<32x16xf32>
    %830 = vector.extract_strided_slice %574 {offsets = [10, 0], sizes = [1, 16], strides = [1, 1]} : vector<12x16xf32> to vector<1x16xf32>
    %831 = vector.broadcast %830 : vector<1x16xf32> to vector<32x16xf32>
    %832 = arith.addf %829, %831 : vector<32x16xf32>
    %c23 = arith.constant 23 : index
    %c0_267 = arith.constant 0 : index
    %c0_268 = arith.constant 0 : index
    %833 = vector.load %arg8[%c23, %c0_267, %c0_268] : memref<24x64x16xf32, #tpu.memory_space<vmem>>, vector<1x64x16xf32>
    %834 = vector.shape_cast %833 : vector<1x64x16xf32> to vector<64x16xf32>
    %cst_269 = arith.constant dense<0.000000e+00> : vector<32x16xf32>
    %835 = tpu.matmul %643, %834, %cst_269 {dimension_numbers = #tpu.dot_dimension_numbers<[1], [0], [0], [1], [0, 0, 1, 1], [], []>} : vector<32x64xf32>, vector<64x16xf32>, vector<32x16xf32> -> vector<32x16xf32>
    %836 = vector.extract_strided_slice %574 {offsets = [11, 0], sizes = [1, 16], strides = [1, 1]} : vector<12x16xf32> to vector<1x16xf32>
    %837 = vector.broadcast %836 : vector<1x16xf32> to vector<32x16xf32>
    %838 = arith.addf %835, %837 : vector<32x16xf32>
    %839 = vector.extract_strided_slice %826 {offsets = [0, 0], sizes = [16, 16], strides = [1, 1]} : vector<32x16xf32> to vector<16x16xf32>
    %840 = vector.extract_strided_slice %832 {offsets = [0, 0], sizes = [16, 16], strides = [1, 1]} : vector<32x16xf32> to vector<16x16xf32>
    %cst_270 = arith.constant dense<0.000000e+00> : vector<16x16xf32>
    %841 = tpu.matmul %839, %840, %cst_270 {dimension_numbers = #tpu.dot_dimension_numbers<[1], [1], [0], [0], [0, 0, 1, 0], [], []>} : vector<16x16xf32>, vector<16x16xf32>, vector<16x16xf32> -> vector<16x16xf32>
    %842 = vector.extract_strided_slice %1 {offsets = [0, 0], sizes = [1, 16], strides = [1, 1]} : vector<2x16xf32> to vector<1x16xf32>
    %843 = vector.broadcast %842 : vector<1x16xf32> to vector<16x16xf32>
    %844 = arith.addf %841, %843 : vector<16x16xf32>
    %cst_271 = arith.constant dense<0xFF800000> : vector<16xf32>
    %845 = vector.multi_reduction <maximumf>, %844, %cst_271 [1] : vector<16x16xf32> to vector<16xf32>
    %846 = vector.shape_cast %845 : vector<16xf32> to vector<16x1xf32>
    %847 = vector.broadcast %846 : vector<16x1xf32> to vector<16x16xf32>
    %848 = arith.subf %844, %847 : vector<16x16xf32>
    %849 = math.exp %848 : vector<16x16xf32>
    %cst_272 = arith.constant dense<0.000000e+00> : vector<16xf32>
    %850 = vector.multi_reduction <add>, %849, %cst_272 [1] : vector<16x16xf32> to vector<16xf32>
    %851 = vector.shape_cast %850 : vector<16xf32> to vector<16x1xf32>
    %852 = tpu.reciprocal %851 {approx = true} : vector<16x1xf32> -> vector<16x1xf32>
    %853 = vector.broadcast %852 : vector<16x1xf32> to vector<16x16xf32>
    %854 = arith.mulf %849, %853 : vector<16x16xf32>
    %855 = vector.extract_strided_slice %838 {offsets = [0, 0], sizes = [16, 16], strides = [1, 1]} : vector<32x16xf32> to vector<16x16xf32>
    %cst_273 = arith.constant dense<0.000000e+00> : vector<16x16xf32>
    %856 = tpu.matmul %854, %855, %cst_273 {dimension_numbers = #tpu.dot_dimension_numbers<[1], [0], [0], [1], [0, 0, 1, 1], [], []>} : vector<16x16xf32>, vector<16x16xf32>, vector<16x16xf32> -> vector<16x16xf32>
    %857 = vector.extract_strided_slice %826 {offsets = [16, 0], sizes = [16, 16], strides = [1, 1]} : vector<32x16xf32> to vector<16x16xf32>
    %858 = vector.extract_strided_slice %832 {offsets = [16, 0], sizes = [16, 16], strides = [1, 1]} : vector<32x16xf32> to vector<16x16xf32>
    %cst_274 = arith.constant dense<0.000000e+00> : vector<16x16xf32>
    %859 = tpu.matmul %857, %858, %cst_274 {dimension_numbers = #tpu.dot_dimension_numbers<[1], [1], [0], [0], [0, 0, 1, 0], [], []>} : vector<16x16xf32>, vector<16x16xf32>, vector<16x16xf32> -> vector<16x16xf32>
    %860 = vector.extract_strided_slice %1 {offsets = [1, 0], sizes = [1, 16], strides = [1, 1]} : vector<2x16xf32> to vector<1x16xf32>
    %861 = vector.broadcast %860 : vector<1x16xf32> to vector<16x16xf32>
    %862 = arith.addf %859, %861 : vector<16x16xf32>
    %cst_275 = arith.constant dense<0xFF800000> : vector<16xf32>
    %863 = vector.multi_reduction <maximumf>, %862, %cst_275 [1] : vector<16x16xf32> to vector<16xf32>
    %864 = vector.shape_cast %863 : vector<16xf32> to vector<16x1xf32>
    %865 = vector.broadcast %864 : vector<16x1xf32> to vector<16x16xf32>
    %866 = arith.subf %862, %865 : vector<16x16xf32>
    %867 = math.exp %866 : vector<16x16xf32>
    %cst_276 = arith.constant dense<0.000000e+00> : vector<16xf32>
    %868 = vector.multi_reduction <add>, %867, %cst_276 [1] : vector<16x16xf32> to vector<16xf32>
    %869 = vector.shape_cast %868 : vector<16xf32> to vector<16x1xf32>
    %870 = tpu.reciprocal %869 {approx = true} : vector<16x1xf32> -> vector<16x1xf32>
    %871 = vector.broadcast %870 : vector<16x1xf32> to vector<16x16xf32>
    %872 = arith.mulf %867, %871 : vector<16x16xf32>
    %873 = vector.extract_strided_slice %838 {offsets = [16, 0], sizes = [16, 16], strides = [1, 1]} : vector<32x16xf32> to vector<16x16xf32>
    %cst_277 = arith.constant dense<0.000000e+00> : vector<16x16xf32>
    %874 = tpu.matmul %872, %873, %cst_277 {dimension_numbers = #tpu.dot_dimension_numbers<[1], [0], [0], [1], [0, 0, 1, 1], [], []>} : vector<16x16xf32>, vector<16x16xf32>, vector<16x16xf32> -> vector<16x16xf32>
    %875 = tpu.concatenate %856, %874 in 0 : vector<16x16xf32>, vector<16x16xf32> -> vector<32x16xf32>
    %876 = vector.extract_strided_slice %645 {offsets = [48, 0], sizes = [16, 64], strides = [1, 1]} : vector<64x64xf32> to vector<16x64xf32>
    %cst_278 = arith.constant dense<0.000000e+00> : vector<32x64xf32>
    %877 = tpu.matmul %875, %876, %cst_278 {dimension_numbers = #tpu.dot_dimension_numbers<[1], [0], [0], [1], [0, 0, 1, 1], [], []>} : vector<32x16xf32>, vector<16x64xf32>, vector<32x64xf32> -> vector<32x64xf32>
    %878 = arith.addf %820, %877 : vector<32x64xf32>
    %879 = arith.addf %619, %878 : vector<32x64xf32>
    %880 = vector.extract_strided_slice %570 {offsets = [10, 0], sizes = [1, 64], strides = [1, 1]} : vector<24x64xf32> to vector<1x64xf32>
    %881 = vector.broadcast %880 : vector<1x64xf32> to vector<32x64xf32>
    %882 = arith.addf %879, %881 : vector<32x64xf32>
    %883 = vector.extract_strided_slice %570 {offsets = [2, 0], sizes = [1, 64], strides = [1, 1]} : vector<24x64xf32> to vector<1x64xf32>
    %884 = vector.extract_strided_slice %570 {offsets = [6, 0], sizes = [1, 64], strides = [1, 1]} : vector<24x64xf32> to vector<1x64xf32>
    %cst_279 = arith.constant dense<0.000000e+00> : vector<32xf32>
    %885 = vector.multi_reduction <add>, %882, %cst_279 [1] : vector<32x64xf32> to vector<32xf32>
    %886 = vector.shape_cast %885 : vector<32xf32> to vector<32x1xf32>
    %cst_280 = arith.constant 6.400000e+01 : f32
    %887 = vector.broadcast %cst_280 : f32 to vector<32x1xf32>
    %888 = arith.divf %886, %887 : vector<32x1xf32>
    %889 = vector.broadcast %888 : vector<32x1xf32> to vector<32x64xf32>
    %890 = arith.subf %882, %889 : vector<32x64xf32>
    %891 = arith.mulf %890, %890 : vector<32x64xf32>
    %cst_281 = arith.constant dense<0.000000e+00> : vector<32xf32>
    %892 = vector.multi_reduction <add>, %891, %cst_281 [1] : vector<32x64xf32> to vector<32xf32>
    %893 = vector.shape_cast %892 : vector<32xf32> to vector<32x1xf32>
    %cst_282 = arith.constant 6.400000e+01 : f32
    %894 = vector.broadcast %cst_282 : f32 to vector<32x1xf32>
    %895 = arith.divf %893, %894 : vector<32x1xf32>
    %896 = vector.broadcast %888 : vector<32x1xf32> to vector<32x64xf32>
    %897 = arith.subf %882, %896 : vector<32x64xf32>
    %cst_283 = arith.constant 9.99999974E-6 : f32
    %898 = vector.broadcast %cst_283 : f32 to vector<32x1xf32>
    %899 = arith.addf %895, %898 : vector<32x1xf32>
    %900 = math.rsqrt %899 : vector<32x1xf32>
    %901 = vector.broadcast %900 : vector<32x1xf32> to vector<32x64xf32>
    %902 = arith.mulf %897, %901 : vector<32x64xf32>
    %903 = vector.broadcast %883 : vector<1x64xf32> to vector<32x64xf32>
    %904 = arith.mulf %902, %903 : vector<32x64xf32>
    %905 = vector.broadcast %884 : vector<1x64xf32> to vector<32x64xf32>
    %906 = arith.addf %904, %905 : vector<32x64xf32>
    %c5_284 = arith.constant 5 : index
    %c0_285 = arith.constant 0 : index
    %c0_286 = arith.constant 0 : index
    %907 = vector.load %arg9[%c5_284, %c0_285, %c0_286] : memref<8x64x64xf32, #tpu.memory_space<vmem>>, vector<1x64x64xf32>
    %908 = vector.shape_cast %907 : vector<1x64x64xf32> to vector<64x64xf32>
    %cst_287 = arith.constant dense<0.000000e+00> : vector<32x64xf32>
    %909 = tpu.matmul %906, %908, %cst_287 {dimension_numbers = #tpu.dot_dimension_numbers<[1], [0], [0], [1], [0, 0, 1, 1], [], []>} : vector<32x64xf32>, vector<64x64xf32>, vector<32x64xf32> -> vector<32x64xf32>
    %910 = vector.extract_strided_slice %570 {offsets = [11, 0], sizes = [1, 64], strides = [1, 1]} : vector<24x64xf32> to vector<1x64xf32>
    %911 = vector.broadcast %910 : vector<1x64xf32> to vector<32x64xf32>
    %912 = arith.addf %909, %911 : vector<32x64xf32>
    %c6_288 = arith.constant 6 : index
    %c0_289 = arith.constant 0 : index
    %c0_290 = arith.constant 0 : index
    %913 = vector.load %arg9[%c6_288, %c0_289, %c0_290] : memref<8x64x64xf32, #tpu.memory_space<vmem>>, vector<1x64x64xf32>
    %914 = vector.shape_cast %913 : vector<1x64x64xf32> to vector<64x64xf32>
    %cst_291 = arith.constant dense<0.000000e+00> : vector<32x64xf32>
    %915 = tpu.matmul %906, %914, %cst_291 {dimension_numbers = #tpu.dot_dimension_numbers<[1], [0], [0], [1], [0, 0, 1, 1], [], []>} : vector<32x64xf32>, vector<64x64xf32>, vector<32x64xf32> -> vector<32x64xf32>
    %916 = vector.extract_strided_slice %570 {offsets = [12, 0], sizes = [1, 64], strides = [1, 1]} : vector<24x64xf32> to vector<1x64xf32>
    %917 = vector.broadcast %916 : vector<1x64xf32> to vector<32x64xf32>
    %918 = arith.addf %915, %917 : vector<32x64xf32>
    %919 = arith.negf %918 : vector<32x64xf32>
    %920 = math.exp %919 : vector<32x64xf32>
    %cst_292 = arith.constant 1.000000e+00 : f32
    %921 = vector.broadcast %cst_292 : f32 to vector<32x64xf32>
    %922 = arith.addf %921, %920 : vector<32x64xf32>
    %923 = arith.divf %921, %922 : vector<32x64xf32>
    %924 = arith.mulf %912, %923 : vector<32x64xf32>
    %cst_293 = arith.constant 0.000000e+00 : f32
    %925 = vector.broadcast %cst_293 : f32 to vector<32x64xf32>
    %c3_i32_294 = arith.constant 3 : i32
    %926 = tpu.dynamic_rotate %924 by %c3_i32_294 dim 0 : vector<32x64xf32>, i32 -> vector<32x64xf32>
    %927 = vector.broadcast %30 : vector<32x1xf32> to vector<32x64xf32>
    %928 = arith.mulf %926, %927 : vector<32x64xf32>
    %929 = vector.extract_strided_slice %570 {offsets = [17, 0], sizes = [1, 64], strides = [1, 1]} : vector<24x64xf32> to vector<1x64xf32>
    %930 = vector.broadcast %929 : vector<1x64xf32> to vector<32x64xf32>
    %931 = arith.mulf %928, %930 : vector<32x64xf32>
    %932 = arith.addf %925, %931 : vector<32x64xf32>
    %c2_i32_295 = arith.constant 2 : i32
    %933 = tpu.dynamic_rotate %924 by %c2_i32_295 dim 0 : vector<32x64xf32>, i32 -> vector<32x64xf32>
    %934 = vector.broadcast %41 : vector<32x1xf32> to vector<32x64xf32>
    %935 = arith.mulf %933, %934 : vector<32x64xf32>
    %936 = vector.extract_strided_slice %570 {offsets = [18, 0], sizes = [1, 64], strides = [1, 1]} : vector<24x64xf32> to vector<1x64xf32>
    %937 = vector.broadcast %936 : vector<1x64xf32> to vector<32x64xf32>
    %938 = arith.mulf %935, %937 : vector<32x64xf32>
    %939 = arith.addf %932, %938 : vector<32x64xf32>
    %c1_i32_296 = arith.constant 1 : i32
    %940 = tpu.dynamic_rotate %924 by %c1_i32_296 dim 0 : vector<32x64xf32>, i32 -> vector<32x64xf32>
    %941 = vector.broadcast %52 : vector<32x1xf32> to vector<32x64xf32>
    %942 = arith.mulf %940, %941 : vector<32x64xf32>
    %943 = vector.extract_strided_slice %570 {offsets = [19, 0], sizes = [1, 64], strides = [1, 1]} : vector<24x64xf32> to vector<1x64xf32>
    %944 = vector.broadcast %943 : vector<1x64xf32> to vector<32x64xf32>
    %945 = arith.mulf %942, %944 : vector<32x64xf32>
    %946 = arith.addf %939, %945 : vector<32x64xf32>
    %947 = vector.broadcast %63 : vector<32x1xf32> to vector<32x64xf32>
    %948 = arith.mulf %924, %947 : vector<32x64xf32>
    %949 = vector.extract_strided_slice %570 {offsets = [20, 0], sizes = [1, 64], strides = [1, 1]} : vector<24x64xf32> to vector<1x64xf32>
    %950 = vector.broadcast %949 : vector<1x64xf32> to vector<32x64xf32>
    %951 = arith.mulf %948, %950 : vector<32x64xf32>
    %952 = arith.addf %946, %951 : vector<32x64xf32>
    %c31_i32_297 = arith.constant 31 : i32
    %953 = tpu.dynamic_rotate %924 by %c31_i32_297 dim 0 : vector<32x64xf32>, i32 -> vector<32x64xf32>
    %954 = vector.broadcast %74 : vector<32x1xf32> to vector<32x64xf32>
    %955 = arith.mulf %953, %954 : vector<32x64xf32>
    %956 = vector.extract_strided_slice %570 {offsets = [21, 0], sizes = [1, 64], strides = [1, 1]} : vector<24x64xf32> to vector<1x64xf32>
    %957 = vector.broadcast %956 : vector<1x64xf32> to vector<32x64xf32>
    %958 = arith.mulf %955, %957 : vector<32x64xf32>
    %959 = arith.addf %952, %958 : vector<32x64xf32>
    %c30_i32_298 = arith.constant 30 : i32
    %960 = tpu.dynamic_rotate %924 by %c30_i32_298 dim 0 : vector<32x64xf32>, i32 -> vector<32x64xf32>
    %961 = vector.broadcast %85 : vector<32x1xf32> to vector<32x64xf32>
    %962 = arith.mulf %960, %961 : vector<32x64xf32>
    %963 = vector.extract_strided_slice %570 {offsets = [22, 0], sizes = [1, 64], strides = [1, 1]} : vector<24x64xf32> to vector<1x64xf32>
    %964 = vector.broadcast %963 : vector<1x64xf32> to vector<32x64xf32>
    %965 = arith.mulf %962, %964 : vector<32x64xf32>
    %966 = arith.addf %959, %965 : vector<32x64xf32>
    %c29_i32_299 = arith.constant 29 : i32
    %967 = tpu.dynamic_rotate %924 by %c29_i32_299 dim 0 : vector<32x64xf32>, i32 -> vector<32x64xf32>
    %968 = vector.broadcast %96 : vector<32x1xf32> to vector<32x64xf32>
    %969 = arith.mulf %967, %968 : vector<32x64xf32>
    %970 = vector.extract_strided_slice %570 {offsets = [23, 0], sizes = [1, 64], strides = [1, 1]} : vector<24x64xf32> to vector<1x64xf32>
    %971 = vector.broadcast %970 : vector<1x64xf32> to vector<32x64xf32>
    %972 = arith.mulf %969, %971 : vector<32x64xf32>
    %973 = arith.addf %966, %972 : vector<32x64xf32>
    %974 = vector.extract_strided_slice %570 {offsets = [13, 0], sizes = [1, 64], strides = [1, 1]} : vector<24x64xf32> to vector<1x64xf32>
    %975 = vector.broadcast %974 : vector<1x64xf32> to vector<32x64xf32>
    %976 = arith.addf %973, %975 : vector<32x64xf32>
    %977 = vector.extract_strided_slice %570 {offsets = [14, 0], sizes = [1, 64], strides = [1, 1]} : vector<24x64xf32> to vector<1x64xf32>
    %978 = vector.broadcast %977 : vector<1x64xf32> to vector<32x64xf32>
    %979 = arith.mulf %976, %978 : vector<32x64xf32>
    %980 = vector.extract_strided_slice %570 {offsets = [15, 0], sizes = [1, 64], strides = [1, 1]} : vector<24x64xf32> to vector<1x64xf32>
    %981 = vector.broadcast %980 : vector<1x64xf32> to vector<32x64xf32>
    %982 = arith.addf %979, %981 : vector<32x64xf32>
    %983 = arith.negf %982 : vector<32x64xf32>
    %984 = math.exp %983 : vector<32x64xf32>
    %cst_300 = arith.constant 1.000000e+00 : f32
    %985 = vector.broadcast %cst_300 : f32 to vector<32x64xf32>
    %986 = arith.addf %985, %984 : vector<32x64xf32>
    %987 = arith.divf %985, %986 : vector<32x64xf32>
    %988 = arith.mulf %982, %987 : vector<32x64xf32>
    %c7_301 = arith.constant 7 : index
    %c0_302 = arith.constant 0 : index
    %c0_303 = arith.constant 0 : index
    %989 = vector.load %arg9[%c7_301, %c0_302, %c0_303] : memref<8x64x64xf32, #tpu.memory_space<vmem>>, vector<1x64x64xf32>
    %990 = vector.shape_cast %989 : vector<1x64x64xf32> to vector<64x64xf32>
    %cst_304 = arith.constant dense<0.000000e+00> : vector<32x64xf32>
    %991 = tpu.matmul %988, %990, %cst_304 {dimension_numbers = #tpu.dot_dimension_numbers<[1], [0], [0], [1], [0, 0, 1, 1], [], []>} : vector<32x64xf32>, vector<64x64xf32>, vector<32x64xf32> -> vector<32x64xf32>
    %992 = vector.extract_strided_slice %570 {offsets = [16, 0], sizes = [1, 64], strides = [1, 1]} : vector<24x64xf32> to vector<1x64xf32>
    %993 = vector.broadcast %992 : vector<1x64xf32> to vector<32x64xf32>
    %994 = arith.addf %991, %993 : vector<32x64xf32>
    %995 = arith.addf %882, %994 : vector<32x64xf32>
    %996 = vector.extract_strided_slice %570 {offsets = [3, 0], sizes = [1, 64], strides = [1, 1]} : vector<24x64xf32> to vector<1x64xf32>
    %997 = vector.extract_strided_slice %570 {offsets = [7, 0], sizes = [1, 64], strides = [1, 1]} : vector<24x64xf32> to vector<1x64xf32>
    %cst_305 = arith.constant dense<0.000000e+00> : vector<32xf32>
    %998 = vector.multi_reduction <add>, %995, %cst_305 [1] : vector<32x64xf32> to vector<32xf32>
    %999 = vector.shape_cast %998 : vector<32xf32> to vector<32x1xf32>
    %cst_306 = arith.constant 6.400000e+01 : f32
    %1000 = vector.broadcast %cst_306 : f32 to vector<32x1xf32>
    %1001 = arith.divf %999, %1000 : vector<32x1xf32>
    %1002 = vector.broadcast %1001 : vector<32x1xf32> to vector<32x64xf32>
    %1003 = arith.subf %995, %1002 : vector<32x64xf32>
    %1004 = arith.mulf %1003, %1003 : vector<32x64xf32>
    %cst_307 = arith.constant dense<0.000000e+00> : vector<32xf32>
    %1005 = vector.multi_reduction <add>, %1004, %cst_307 [1] : vector<32x64xf32> to vector<32xf32>
    %1006 = vector.shape_cast %1005 : vector<32xf32> to vector<32x1xf32>
    %cst_308 = arith.constant 6.400000e+01 : f32
    %1007 = vector.broadcast %cst_308 : f32 to vector<32x1xf32>
    %1008 = arith.divf %1006, %1007 : vector<32x1xf32>
    %1009 = vector.broadcast %1001 : vector<32x1xf32> to vector<32x64xf32>
    %1010 = arith.subf %995, %1009 : vector<32x64xf32>
    %cst_309 = arith.constant 9.99999974E-6 : f32
    %1011 = vector.broadcast %cst_309 : f32 to vector<32x1xf32>
    %1012 = arith.addf %1008, %1011 : vector<32x1xf32>
    %1013 = math.rsqrt %1012 : vector<32x1xf32>
    %1014 = vector.broadcast %1013 : vector<32x1xf32> to vector<32x64xf32>
    %1015 = arith.mulf %1010, %1014 : vector<32x64xf32>
    %1016 = vector.broadcast %996 : vector<1x64xf32> to vector<32x64xf32>
    %1017 = arith.mulf %1015, %1016 : vector<32x64xf32>
    %1018 = vector.broadcast %997 : vector<1x64xf32> to vector<32x64xf32>
    %1019 = arith.addf %1017, %1018 : vector<32x64xf32>
    %c3_310 = arith.constant 3 : index
    %c0_311 = arith.constant 0 : index
    %c0_312 = arith.constant 0 : index
    %1020 = vector.load %arg6[%c3_310, %c0_311, %c0_312] : memref<4x64x256xf32, #tpu.memory_space<vmem>>, vector<1x64x256xf32>
    %1021 = vector.shape_cast %1020 : vector<1x64x256xf32> to vector<64x256xf32>
    %cst_313 = arith.constant dense<0.000000e+00> : vector<32x256xf32>
    %1022 = tpu.matmul %1019, %1021, %cst_313 {dimension_numbers = #tpu.dot_dimension_numbers<[1], [0], [0], [1], [0, 0, 1, 1], [], []>} : vector<32x64xf32>, vector<64x256xf32>, vector<32x256xf32> -> vector<32x256xf32>
    %1023 = vector.extract_strided_slice %572 {offsets = [1, 0], sizes = [1, 256], strides = [1, 1]} : vector<2x256xf32> to vector<1x256xf32>
    %1024 = vector.broadcast %1023 : vector<1x256xf32> to vector<32x256xf32>
    %1025 = arith.addf %1022, %1024 : vector<32x256xf32>
    %1026 = arith.negf %1025 : vector<32x256xf32>
    %1027 = math.exp %1026 : vector<32x256xf32>
    %cst_314 = arith.constant 1.000000e+00 : f32
    %1028 = vector.broadcast %cst_314 : f32 to vector<32x256xf32>
    %1029 = arith.addf %1028, %1027 : vector<32x256xf32>
    %1030 = arith.divf %1028, %1029 : vector<32x256xf32>
    %1031 = arith.mulf %1025, %1030 : vector<32x256xf32>
    %c3_315 = arith.constant 3 : index
    %c0_316 = arith.constant 0 : index
    %c0_317 = arith.constant 0 : index
    %1032 = vector.load %arg7[%c3_315, %c0_316, %c0_317] : memref<4x256x64xf32, #tpu.memory_space<vmem>>, vector<1x256x64xf32>
    %1033 = vector.shape_cast %1032 : vector<1x256x64xf32> to vector<256x64xf32>
    %cst_318 = arith.constant dense<0.000000e+00> : vector<32x64xf32>
    %1034 = tpu.matmul %1031, %1033, %cst_318 {dimension_numbers = #tpu.dot_dimension_numbers<[1], [0], [0], [1], [0, 0, 1, 1], [], []>} : vector<32x256xf32>, vector<256x64xf32>, vector<32x64xf32> -> vector<32x64xf32>
    %1035 = vector.extract_strided_slice %570 {offsets = [9, 0], sizes = [1, 64], strides = [1, 1]} : vector<24x64xf32> to vector<1x64xf32>
    %1036 = vector.broadcast %1035 : vector<1x64xf32> to vector<32x64xf32>
    %1037 = arith.addf %1034, %1036 : vector<32x64xf32>
    %cst_319 = arith.constant 5.000000e-01 : f32
    %1038 = vector.broadcast %cst_319 : f32 to vector<32x64xf32>
    %1039 = arith.mulf %1038, %1037 : vector<32x64xf32>
    %1040 = arith.addf %995, %1039 : vector<32x64xf32>
    %c0_320 = arith.constant 0 : index
    %c0_321 = arith.constant 0 : index
    %1041 = vector.load %arg10[%c0_320, %c0_321] : memref<66x32xf32, #tpu.memory_space<vmem>>, vector<64x32xf32>
    %c64 = arith.constant 64 : index
    %c0_322 = arith.constant 0 : index
    %1042 = vector.load %arg10[%c64, %c0_322] : memref<66x32xf32, #tpu.memory_space<vmem>>, vector<1x32xf32>
    %c65 = arith.constant 65 : index
    %c0_323 = arith.constant 0 : index
    %1043 = vector.load %arg10[%c65, %c0_323] : memref<66x32xf32, #tpu.memory_space<vmem>>, vector<1x32xf32>
    %1044 = vector.extract_strided_slice %1040 {offsets = [0, 0], sizes = [16, 64], strides = [1, 1]} : vector<32x64xf32> to vector<16x64xf32>
    %cst_324 = arith.constant dense<0.000000e+00> : vector<16x32xf32>
    %1045 = tpu.matmul %1044, %1041, %cst_324 {dimension_numbers = #tpu.dot_dimension_numbers<[1], [0], [0], [1], [0, 0, 1, 1], [], []>} : vector<16x64xf32>, vector<64x32xf32>, vector<16x32xf32> -> vector<16x32xf32>
    %1046 = vector.broadcast %1042 : vector<1x32xf32> to vector<16x32xf32>
    %1047 = arith.addf %1045, %1046 : vector<16x32xf32>
    %1048 = math.tanh %1047 : vector<16x32xf32>
    %1049 = vector.broadcast %1043 : vector<1x32xf32> to vector<16x32xf32>
    %1050 = arith.mulf %1048, %1049 : vector<16x32xf32>
    %cst_325 = arith.constant dense<0.000000e+00> : vector<16xf32>
    %1051 = vector.multi_reduction <add>, %1050, %cst_325 [1] : vector<16x32xf32> to vector<16xf32>
    %1052 = vector.shape_cast %1051 : vector<16xf32> to vector<16x1xf32>
    %1053 = vector.extract_strided_slice %2 {offsets = [0, 0], sizes = [16, 1], strides = [1, 1]} : vector<32x1xf32> to vector<16x1xf32>
    %1054 = arith.addf %1052, %1053 : vector<16x1xf32>
    %cst_326 = arith.constant dense<0xFF800000> : vector<1xf32>
    %1055 = vector.multi_reduction <maximumf>, %1054, %cst_326 [0] : vector<16x1xf32> to vector<1xf32>
    %1056 = vector.shape_cast %1055 : vector<1xf32> to vector<1x1xf32>
    %1057 = vector.broadcast %1056 : vector<1x1xf32> to vector<16x1xf32>
    %1058 = arith.subf %1054, %1057 : vector<16x1xf32>
    %1059 = math.exp %1058 : vector<16x1xf32>
    %cst_327 = arith.constant dense<0.000000e+00> : vector<1xf32>
    %1060 = vector.multi_reduction <add>, %1059, %cst_327 [0] : vector<16x1xf32> to vector<1xf32>
    %1061 = vector.shape_cast %1060 : vector<1xf32> to vector<1x1xf32>
    %1062 = tpu.reciprocal %1061 {approx = true} : vector<1x1xf32> -> vector<1x1xf32>
    %1063 = vector.broadcast %1062 : vector<1x1xf32> to vector<16x1xf32>
    %1064 = arith.mulf %1059, %1063 : vector<16x1xf32>
    %1065 = vector.broadcast %1064 : vector<16x1xf32> to vector<16x64xf32>
    %1066 = arith.mulf %1044, %1065 : vector<16x64xf32>
    %cst_328 = arith.constant dense<0.000000e+00> : vector<64xf32>
    %1067 = vector.multi_reduction <add>, %1066, %cst_328 [0] : vector<16x64xf32> to vector<64xf32>
    %1068 = vector.shape_cast %1067 : vector<64xf32> to vector<1x64xf32>
    %1069 = arith.mulf %1044, %1044 : vector<16x64xf32>
    %1070 = vector.broadcast %1064 : vector<16x1xf32> to vector<16x64xf32>
    %1071 = arith.mulf %1069, %1070 : vector<16x64xf32>
    %cst_329 = arith.constant dense<0.000000e+00> : vector<64xf32>
    %1072 = vector.multi_reduction <add>, %1071, %cst_329 [0] : vector<16x64xf32> to vector<64xf32>
    %1073 = vector.shape_cast %1072 : vector<64xf32> to vector<1x64xf32>
    %1074 = arith.mulf %1068, %1068 : vector<1x64xf32>
    %1075 = arith.subf %1073, %1074 : vector<1x64xf32>
    %cst_330 = arith.constant 9.99999971E-10 : f32
    %1076 = vector.broadcast %cst_330 : f32 to vector<1x64xf32>
    %1077 = arith.maximumf %1075, %1076 : vector<1x64xf32>
    %1078 = math.sqrt %1077 : vector<1x64xf32>
    %1079 = vector.extract_strided_slice %1040 {offsets = [16, 0], sizes = [16, 64], strides = [1, 1]} : vector<32x64xf32> to vector<16x64xf32>
    %cst_331 = arith.constant dense<0.000000e+00> : vector<16x32xf32>
    %1080 = tpu.matmul %1079, %1041, %cst_331 {dimension_numbers = #tpu.dot_dimension_numbers<[1], [0], [0], [1], [0, 0, 1, 1], [], []>} : vector<16x64xf32>, vector<64x32xf32>, vector<16x32xf32> -> vector<16x32xf32>
    %1081 = vector.broadcast %1042 : vector<1x32xf32> to vector<16x32xf32>
    %1082 = arith.addf %1080, %1081 : vector<16x32xf32>
    %1083 = math.tanh %1082 : vector<16x32xf32>
    %1084 = vector.broadcast %1043 : vector<1x32xf32> to vector<16x32xf32>
    %1085 = arith.mulf %1083, %1084 : vector<16x32xf32>
    %cst_332 = arith.constant dense<0.000000e+00> : vector<16xf32>
    %1086 = vector.multi_reduction <add>, %1085, %cst_332 [1] : vector<16x32xf32> to vector<16xf32>
    %1087 = vector.shape_cast %1086 : vector<16xf32> to vector<16x1xf32>
    %1088 = vector.extract_strided_slice %2 {offsets = [16, 0], sizes = [16, 1], strides = [1, 1]} : vector<32x1xf32> to vector<16x1xf32>
    %1089 = arith.addf %1087, %1088 : vector<16x1xf32>
    %cst_333 = arith.constant dense<0xFF800000> : vector<1xf32>
    %1090 = vector.multi_reduction <maximumf>, %1089, %cst_333 [0] : vector<16x1xf32> to vector<1xf32>
    %1091 = vector.shape_cast %1090 : vector<1xf32> to vector<1x1xf32>
    %1092 = vector.broadcast %1091 : vector<1x1xf32> to vector<16x1xf32>
    %1093 = arith.subf %1089, %1092 : vector<16x1xf32>
    %1094 = math.exp %1093 : vector<16x1xf32>
    %cst_334 = arith.constant dense<0.000000e+00> : vector<1xf32>
    %1095 = vector.multi_reduction <add>, %1094, %cst_334 [0] : vector<16x1xf32> to vector<1xf32>
    %1096 = vector.shape_cast %1095 : vector<1xf32> to vector<1x1xf32>
    %1097 = tpu.reciprocal %1096 {approx = true} : vector<1x1xf32> -> vector<1x1xf32>
    %1098 = vector.broadcast %1097 : vector<1x1xf32> to vector<16x1xf32>
    %1099 = arith.mulf %1094, %1098 : vector<16x1xf32>
    %1100 = vector.broadcast %1099 : vector<16x1xf32> to vector<16x64xf32>
    %1101 = arith.mulf %1079, %1100 : vector<16x64xf32>
    %cst_335 = arith.constant dense<0.000000e+00> : vector<64xf32>
    %1102 = vector.multi_reduction <add>, %1101, %cst_335 [0] : vector<16x64xf32> to vector<64xf32>
    %1103 = vector.shape_cast %1102 : vector<64xf32> to vector<1x64xf32>
    %1104 = arith.mulf %1079, %1079 : vector<16x64xf32>
    %1105 = vector.broadcast %1099 : vector<16x1xf32> to vector<16x64xf32>
    %1106 = arith.mulf %1104, %1105 : vector<16x64xf32>
    %cst_336 = arith.constant dense<0.000000e+00> : vector<64xf32>
    %1107 = vector.multi_reduction <add>, %1106, %cst_336 [0] : vector<16x64xf32> to vector<64xf32>
    %1108 = vector.shape_cast %1107 : vector<64xf32> to vector<1x64xf32>
    %1109 = arith.mulf %1103, %1103 : vector<1x64xf32>
    %1110 = arith.subf %1108, %1109 : vector<1x64xf32>
    %cst_337 = arith.constant 9.99999971E-10 : f32
    %1111 = vector.broadcast %cst_337 : f32 to vector<1x64xf32>
    %1112 = arith.maximumf %1110, %1111 : vector<1x64xf32>
    %1113 = math.sqrt %1112 : vector<1x64xf32>
    %1114 = tpu.concatenate %1068, %1103 in 0 : vector<1x64xf32>, vector<1x64xf32> -> vector<2x64xf32>
    %1115 = tpu.concatenate %1078, %1113 in 0 : vector<1x64xf32>, vector<1x64xf32> -> vector<2x64xf32>
    %c0_338 = arith.constant 0 : index
    %c0_339 = arith.constant 0 : index
    %1116 = vector.load %arg11[%c0_338, %c0_339] : memref<258x128xf32, #tpu.memory_space<vmem>>, vector<64x128xf32>
    %c64_340 = arith.constant 64 : index
    %c0_341 = arith.constant 0 : index
    %1117 = vector.load %arg11[%c64_340, %c0_341] : memref<258x128xf32, #tpu.memory_space<vmem>>, vector<64x128xf32>
    %c128 = arith.constant 128 : index
    %c0_342 = arith.constant 0 : index
    %1118 = vector.load %arg11[%c128, %c0_342] : memref<258x128xf32, #tpu.memory_space<vmem>>, vector<128x128xf32>
    %c256 = arith.constant 256 : index
    %c0_343 = arith.constant 0 : index
    %1119 = vector.load %arg11[%c256, %c0_343] : memref<258x128xf32, #tpu.memory_space<vmem>>, vector<1x128xf32>
    %c257 = arith.constant 257 : index
    %c0_344 = arith.constant 0 : index
    %1120 = vector.load %arg11[%c257, %c0_344] : memref<258x128xf32, #tpu.memory_space<vmem>>, vector<1x128xf32>
    %cst_345 = arith.constant dense<0.000000e+00> : vector<2x128xf32>
    %1121 = tpu.matmul %1114, %1116, %cst_345 {dimension_numbers = #tpu.dot_dimension_numbers<[1], [0], [0], [1], [0, 0, 1, 1], [], []>} : vector<2x64xf32>, vector<64x128xf32>, vector<2x128xf32> -> vector<2x128xf32>
    %cst_346 = arith.constant dense<0.000000e+00> : vector<2x128xf32>
    %1122 = tpu.matmul %1115, %1117, %cst_346 {dimension_numbers = #tpu.dot_dimension_numbers<[1], [0], [0], [1], [0, 0, 1, 1], [], []>} : vector<2x64xf32>, vector<64x128xf32>, vector<2x128xf32> -> vector<2x128xf32>
    %1123 = arith.addf %1121, %1122 : vector<2x128xf32>
    %1124 = vector.broadcast %1119 : vector<1x128xf32> to vector<2x128xf32>
    %1125 = arith.addf %1123, %1124 : vector<2x128xf32>
    %cst_347 = arith.constant 0.000000e+00 : f32
    %1126 = vector.broadcast %cst_347 : f32 to vector<2x128xf32>
    %1127 = arith.maximumf %1125, %1126 : vector<2x128xf32>
    %cst_348 = arith.constant dense<0.000000e+00> : vector<2x128xf32>
    %1128 = tpu.matmul %1127, %1118, %cst_348 {dimension_numbers = #tpu.dot_dimension_numbers<[1], [0], [0], [1], [0, 0, 1, 1], [], []>} : vector<2x128xf32>, vector<128x128xf32>, vector<2x128xf32> -> vector<2x128xf32>
    %1129 = vector.broadcast %1120 : vector<1x128xf32> to vector<2x128xf32>
    %1130 = arith.addf %1128, %1129 : vector<2x128xf32>
    %c0_349 = arith.constant 0 : index
    %c0_350 = arith.constant 0 : index
    %1131 = vector.load %arg12[%c0_349, %c0_350] : memref<2x128xf32, #tpu.memory_space<vmem>>, vector<2x128xf32>
    tpu.vector_store %arg12[%c0_349, %c0_350], %1130 {strides = array<i32>} : memref<2x128xf32, #tpu.memory_space<vmem>>, vector<2x128xf32>,
    return
  }
}

</mosaic_0001>

<bundles_post_ra>
// kernel: forward.1
= control target key start
LH: loop header
LB: loop body
LE: loop exit
PB: predicated region body
PF: predicated region fallthrough
CT: control target
= control target key end

     0   :  { %vm16553_vm0 = vcmask 523264   ;;  %v16556_v36 = vmov 0.0   ;;  %v50_v52 = vlaneseq  ;;  %vm16552_vm1 = vcmask 130048   ;;  %s16536_s0 = inlined_call_operand.vmem [shape: f32[32,64], index: 0, kind: input, shape index: {}]   ;;  %s16537_s6 = inlined_call_operand.vmem [shape: f32[4,64,256], index: 6, kind: input, shape index: {}]   ;;  %s16538_s3 = inlined_call_operand.vmem [shape: f32[2,24,64], index: 3, kind: input, shape index: {}]   ;;  %s16539_s7 = inlined_call_operand.vmem [shape: f32[4,256,64], index: 7, kind: input, shape index: {}]   ;;  %s16540_s4 = inlined_call_operand.vmem [shape: f32[2,2,256], index: 4, kind: input, shape index: {}]   ;;  %s16541_s8 = inlined_call_operand.vmem [shape: f32[24,64,16], index: 8, kind: input, shape index: {}]   ;;  %s16542_s5 = inlined_call_operand.vmem [shape: f32[2,12,16], index: 5, kind: input, shape index: {}]   ;;  %s16543_s1 = inlined_call_operand.vmem [shape: f32[2,16], index: 1, kind: input, shape index: {}]   ;;  %s16544_s9 = inlined_call_operand.vmem [shape: f32[8,64,64], index: 9, kind: input, shape index: {}]   ;;  %s16545_s10 = inlined_call_operand.vmem [shape: f32[66,32], index: 10, kind: input, shape index: {}]   ;;  %s16546_s2 = inlined_call_operand.vmem [shape: f32[32,1], index: 2, kind: input, shape index: {}]   ;;  %s16547_s11 = inlined_call_operand.vmem [shape: f32[258,128], index: 11, kind: input, shape index: {}]   ;;  %s16548_s12 = inlined_call_operand.vmem [shape: f32[2,128], index: 12, kind: output, shape index: {}]  }
   0x1   :  { %v13177_v0 = vld [vmem:[%s16536_s0] sm:$0xff]  ;;  %v13182_v1 = vld [vmem:[%s16536_s0 + $0x10] sm:$0xff]  ;;  %v13187_v2 = vld [vmem:[%s16536_s0 + $0x8] sm:$0xff]  ;;  %454 = vmatprep.mubr.f32.mxu1 %v16556_v36 }
   0x2   :  { %v274_v3 = vsel %vm16553_vm0, %v13177_v0, 0.0  ;;  %v280_v4 = vsel %vm16553_vm0, %v13182_v1, 0.0  ;;  %v13196_v5 = vld [vmem:[%s16536_s0 + $0x18] sm:$0xff]  ;;  %v277_v6 = vsel %vm16553_vm0, %v13187_v2, 0.0  ;;  %v357_v29 = vld [vmem:[%s16537_s6 + $0x70] sm:$0xff]  ;;  %v356_v30 = vld [vmem:[%s16537_s6 + $0x68] sm:$0xff] }
   0x3   :  { %275 = vadd.xlane.f32.xlu0 %v274_v3  ;;  %281 = vadd.xlane.f32.xlu1 %v280_v4  ;;  %v283_v7 = vsel %vm16553_vm0, %v13196_v5, 0.0  ;;  %v358_v28 = vld [vmem:[%s16537_s6 + $0x78] sm:$0xff]  ;;  %v355_v31 = vld [vmem:[%s16537_s6 + $0x60] sm:$0xff]  ;;  %v353_v33 = vld [vmem:[%s16537_s6 + $0x50] sm:$0xff]  ;;  %v13275_v57 = vshrl.u32 %v50_v52, 7 }
   0x4   :  { %406 = vmatprep.subr.mxu1 %v358_v28  ;;  %v354_v32 = vld [vmem:[%s16537_s6 + $0x58] sm:$0xff]  ;;  %v352_v34 = vld [vmem:[%s16537_s6 + $0x48] sm:$0xff]  ;;  %v351_v35 = vld [vmem:[%s16537_s6 + $0x40] sm:$0xff] }
   0x5   :  { %407 = vmatpush1.msra.mxu1 %v357_v29  ;;  %v350_v37 = vld [vmem:[%s16537_s6 + $0x38] sm:$0xff]  ;;  %v349_v38 = vld [vmem:[%s16537_s6 + $0x30] sm:$0xff]  ;;  %v348_v39 = vld [vmem:[%s16537_s6 + $0x28] sm:$0xff]  ;;  %v13278_v59 = vsub.s32 0, %v13275_v57  ;;  %v13286_v61 = vsub.s32 4, %v13275_v57  ;;  %vm4172_vm2 = vcmp.lt.s32.totalorder %v13275_v57, 3 }
   0x6   :  { %408 = vmatprep.subr.mxu1 %v356_v30  ;;  %v347_v40 = vld [vmem:[%s16537_s6 + $0x20] sm:$0xff]  ;;  %v346_v41 = vld [vmem:[%s16537_s6 + $0x18] sm:$0xff]  ;;  %v345_v42 = vld [vmem:[%s16537_s6 + $0x10] sm:$0xff]  ;;  %vm4197_vm3 = vcmp.lt.s32.totalorder %v13275_v57, 2  ;;  %vm4222_vm4 = vcmp.lt.s32.totalorder %v13275_v57, 1  ;;  %vm4263_vm5 = vcmp.lt.s32.totalorder %v13275_v57, 7 }
   0x7   :  { %278 = vadd.xlane.f32.xlu0 %v277_v6  ;;  %284 = vadd.xlane.f32.xlu1 %v283_v7  ;;  %v344_v43 = vld [vmem:[%s16537_s6 + $0x8] sm:$0xff]  ;;  %v343_v44 = vld [vmem:[%s16537_s6] sm:$0xff]  ;;  %16596 = vst [vmem:[#allocation2_spill] sm:$0xff] %v13286_v61  ;;  %v562_v28 = vld [vmem:[%s16539_s7 + $0xd8] sm:$0xff]  ;;  %vm16555_vm6 = vcmp.lt.s32.totalorder %v13275_v57, 6  ;;  %vm16554_vm7 = vcmp.lt.s32.totalorder %v13275_v57, 5 }
   0x8   :  { %409 = vmatpush1.msra.mxu1 %v355_v31  ;;  %v13283_v60 = vld [vmem:[%s16538_s3] sm:$0xff]  ;;  %v546_v29 = vld [vmem:[%s16539_s7 + $0x58] sm:$0xff]  ;;  %v561_v30 = vld [vmem:[%s16539_s7 + $0xd0] sm:$0xff] }
   0x9   :  { %410 = vmatprep.subr.mxu1 %v354_v32  ;;  %v330_v62 = vrot.slane %v13283_v60, %v13278_v59  ;;  %v338_v4 = vrot.slane %v13283_v60, %v13286_v61  ;;  %v545_v31 = vld [vmem:[%s16539_s7 + $0x50] sm:$0xff]  ;;  %v560_v32 = vld [vmem:[%s16539_s7 + $0xc8] sm:$0xff]  ;;  %v535_v52 = vld [vmem:[%s16539_s7] sm:$0xff] }
   0xa   :  { %411 = vmatpush1.msra.mxu1 %v353_v33  ;;  %v544_v33 = vld [vmem:[%s16539_s7 + $0x48] sm:$0xff] }
   0xb   :  { %412 = vmatprep.subr.mxu1 %v352_v34  ;;  %v559_v34 = vld [vmem:[%s16539_s7 + $0xc0] sm:$0xff] }
   0xc   :  { %413 = vmatpush1.msra.mxu1 %v351_v35  ;;  %v543_v35 = vld [vmem:[%s16539_s7 + $0x40] sm:$0xff] }
   0xd   :  { %414 = vmatprep.subr.mxu1 %v350_v37  ;;  %v558_v37 = vld [vmem:[%s16539_s7 + $0xb8] sm:$0xff] }
   0xe   :  { %415 = vmatpush1.msra.mxu1 %v349_v38  ;;  %v542_v38 = vld [vmem:[%s16539_s7 + $0x38] sm:$0xff] }
   0xf   :  { %416 = vmatprep.subr.mxu1 %v348_v39  ;;  %v557_v39 = vld [vmem:[%s16539_s7 + $0xb0] sm:$0xff] }
  0x10   :  { %417 = vmatpush1.msra.mxu1 %v347_v40  ;;  %v541_v40 = vld [vmem:[%s16539_s7 + $0x30] sm:$0xff] }
  0x11   :  { %418 = vmatprep.subr.mxu1 %v346_v41  ;;  %v556_v41 = vld [vmem:[%s16539_s7 + $0xa8] sm:$0xff] }
  0x12   :  { %419 = vmatpush1.msra.mxu1 %v345_v42  ;;  %v540_v42 = vld [vmem:[%s16539_s7 + $0x28] sm:$0xff] }
  0x13   :  { %420 = vmatprep.subr.mxu1 %v344_v43  ;;  %v555_v43 = vld [vmem:[%s16539_s7 + $0xa0] sm:$0xff] }
  0x14   :  { %421 = vmatpush1.msra.mxu1 %v343_v44  ;;  %v539_v44 = vld [vmem:[%s16539_s7 + $0x20] sm:$0xff] }
  0x8c   :  { %v276_v8 = vpop.xlane.xlu0 %275  ;;  %v282_v9 = vpop.xlane.xlu1 %281 }
  0x8d   :  { %v287_v10 = vmul.f32 0.015625, %v276_v8  ;;  %v289_v11 = vmul.f32 0.015625, %v282_v9 }
  0x8f   :  { %v13203_v12 = vsub.f32 %v13177_v0, %v287_v10  ;;  %v13206_v13 = vsub.f32 %v13182_v1, %v289_v11 }
  0x90   :  { %v279_v14 = vpop.xlane.xlu0 %278  ;;  %v285_v15 = vpop.xlane.xlu1 %284 }
  0x91   :  { %v288_v16 = vmul.f32 0.015625, %v279_v14  ;;  %v290_v17 = vmul.f32 0.015625, %v285_v15  ;;  %v295_v18 = vmul.f32 %v13203_v12, %v13203_v12  ;;  %v297_v19 = vmul.f32 %v13206_v13, %v13206_v13 }
  0x93   :  { %v13213_v20 = vsub.f32 %v13187_v2, %v288_v16  ;;  %v13216_v21 = vsub.f32 %v13196_v5, %v290_v17  ;;  %v299_v22 = vsel %vm16553_vm0, %v295_v18, 0.0  ;;  %v305_v23 = vsel %vm16553_vm0, %v297_v19, 0.0 }
  0x94   :  { %300 = vadd.xlane.f32.xlu0 %v299_v22  ;;  %v565_v22 = vld [vmem:[%s16539_s7 + $0xf0] sm:$0xff] }
  0x95   :  { %v296_v24 = vmul.f32 %v13213_v20, %v13213_v20  ;;  %v298_v25 = vmul.f32 %v13216_v21, %v13216_v21 }
  0x97   :  { %v302_v26 = vsel %vm16553_vm0, %v296_v24, 0.0  ;;  %v308_v27 = vsel %vm16553_vm0, %v298_v25, 0.0  ;;  %v564_v24 = vld [vmem:[%s16539_s7 + $0xe8] sm:$0xff] }
  0x98   :  { %306 = vadd.xlane.f32.xlu0 %v305_v23  ;;  %303 = vadd.xlane.f32.xlu1 %v302_v26  ;;  %v549_v23 = vld [vmem:[%s16539_s7 + $0x70] sm:$0xff]  ;;  %v548_v25 = vld [vmem:[%s16539_s7 + $0x68] sm:$0xff]  ;;  %v563_v26 = vld [vmem:[%s16539_s7 + $0xe0] sm:$0xff] }
  0x9c   :  { %309 = vadd.xlane.f32.xlu1 %v308_v27  ;;  %v547_v27 = vld [vmem:[%s16539_s7 + $0x60] sm:$0xff] }
 0x11d   :  { %v301_v45 = vpop.xlane.xlu0 %300 }
 0x11e   :  { %v311_v46 = vmul.f32 0.015625, %v301_v45  ;;  %v554_v45 = vld [vmem:[%s16539_s7 + $0x98] sm:$0xff] }
 0x120   :  { %v315_v47 = vadd.f32 1e-05, %v311_v46  ;;  %v538_v46 = vld [vmem:[%s16539_s7 + $0x18] sm:$0xff] }
 0x121   :  { %v304_v48 = vpop.xlane.xlu1 %303  ;;  %v307_v49 = vpop.xlane.xlu0 %306 }
 0x122   :  { %12690 = vrsqrt.f32 %v315_v47  ;;  %v312_v50 = vmul.f32 0.015625, %v304_v48  ;;  %v313_v51 = vmul.f32 0.015625, %v307_v49  ;;  %v553_v47 = vld [vmem:[%s16539_s7 + $0x90] sm:$0xff]  ;;  %v552_v49 = vld [vmem:[%s16539_s7 + $0x88] sm:$0xff] }
 0x123   :  { %v537_v48 = vld [vmem:[%s16539_s7 + $0x10] sm:$0xff] }
 0x124   :  { %v316_v53 = vadd.f32 1e-05, %v312_v50  ;;  %v317_v54 = vadd.f32 1e-05, %v313_v51  ;;  %v536_v50 = vld [vmem:[%s16539_s7 + $0x8] sm:$0xff]  ;;  %v551_v51 = vld [vmem:[%s16539_s7 + $0x80] sm:$0xff] }
 0x125   :  { %v310_v55 = vpop.xlane.xlu1 %309 }
 0x126   :  { %12692 = vrsqrt.f32 %v316_v53  ;;  %v314_v56 = vmul.f32 0.015625, %v310_v55  ;;  %v270_v53 = vld [vmem:[%s16540_s4] sm:$0xf] }
 0x127   :  { %12694 = vrsqrt.f32 %v317_v54  ;;  %v13403_v54 = vsub.s32 2, %v13275_v57  ;;  %v363_v55 = vrot.slane %v270_v53, %v13278_v59 }
 0x128   :  { %v318_v58 = vadd.f32 1e-05, %v314_v56 }
 0x129   :  { %16597 = vst [vmem:[#allocation3_spill] sm:$0xff] %v13403_v54  ;;  %v367_v56 = vrot.slane %v270_v53, %v13403_v54 }
 0x12a   :  { %12696 = vrsqrt.f32 %v318_v58  ;;  %v373_v58 = vrot.slane %v363_v55, %v13278_v59 }
 0x12f   :  { %v12691_v63 = vpop.eup %12690 }
 0x130   :  { %v323_v3 = vmul.f32 %v12691_v63, %v13203_v12 }
 0x132   :  { %v331_v6 = vmul.f32 %v330_v62, %v323_v3 }
 0x133   :  { %v12693_v7 = vpop.eup %12692 }
 0x134   :  { %v12695_v8 = vpop.eup %12694  ;;  %v339_v9 = vadd.f32 %v338_v4, %v331_v6  ;;  %v324_v10 = vmul.f32 %v12693_v7, %v13213_v20  ;;  %v566_v20 = vld [vmem:[%s16539_s7 + $0xf8] sm:$0xff] }
 0x135   :  { %v325_v11 = vmul.f32 %v12695_v8, %v13206_v13  ;;  %10843 = vmatprep.subr.mxu1 %v566_v20 }
 0x136   :  { %10131 = vmatmul.mubr.msk.f32.vlgmr.msra.gmra.mxu1 %vm16553_vm0, %v339_v9  ;;  %v332_v14 = vmul.f32 %v330_v62, %v324_v10 }
 0x137   :  { %v12697_v15 = vpop.eup %12696  ;;  %460 = vmatprep.mubr.f32.mxu1 %v16556_v36  ;;  %v333_v17 = vmul.f32 %v330_v62, %v325_v11 }
 0x138   :  { %v340_v16 = vadd.f32 %v338_v4, %v332_v14  ;;  %v326_v12 = vmul.f32 %v12697_v15, %v13216_v21  ;;  %v550_v21 = vld [vmem:[%s16539_s7 + $0x78] sm:$0xff] }
 0x139   :  { %v341_v18 = vadd.f32 %v338_v4, %v333_v17  ;;  %10844 = vmatpush3.msra.mxu1 %v550_v21 }
 0x13a   :  { %10132 = vmatmul.mubr.msk.f32.gmra.mxu1 %vm16553_vm0, %v340_v16  ;;  %v334_v19 = vmul.f32 %v330_v62, %v326_v12  ;;  %10845 = vmatprep.subr.mxu1 %v565_v22  ;;  %v377_v62 = vrot.slane %v367_v56, %v13278_v59 }
 0x13b   :  { %466 = vmatprep.mubr.f32.mxu1 %v16556_v36  ;;  %10846 = vmatpush3.msra.mxu1 %v549_v23 }
 0x13c   :  { %v342_v13 = vadd.f32 %v338_v4, %v334_v19  ;;  %10847 = vmatprep.subr.mxu1 %v564_v24 }
 0x13d   :  { %10848 = vmatpush3.msra.mxu1 %v548_v25 }
 0x13e   :  { %10133 = vmatmul.mubr.msk.f32.gmra.mxu1 %vm16553_vm0, %v341_v18  ;;  %10849 = vmatprep.subr.mxu1 %v563_v26 }
 0x13f   :  { %472 = vmatprep.mubr.f32.mxu1 %v16556_v36  ;;  %10850 = vmatpush3.msra.mxu1 %v547_v27 }
 0x140   :  { %10851 = vmatprep.subr.mxu1 %v562_v28 }
 0x141   :  { %10852 = vmatpush3.msra.mxu1 %v546_v29 }
 0x142   :  { %10134 = vmatmul.mubr.msk.f32.gmra.mxu1 %vm16553_vm0, %v342_v13  ;;  %10853 = vmatprep.subr.mxu1 %v561_v30 }
 0x143   :  { %10854 = vmatpush3.msra.mxu1 %v545_v31 }
 0x144   :  { %10855 = vmatprep.subr.mxu1 %v560_v32 }
 0x145   :  { %10856 = vmatpush3.msra.mxu1 %v544_v33 }
 0x146   :  { %10857 = vmatprep.subr.mxu1 %v559_v34 }
 0x147   :  { %10858 = vmatpush3.msra.mxu1 %v543_v35 }
 0x148   :  { %10859 = vmatprep.subr.mxu1 %v558_v37 }
 0x149   :  { %10860 = vmatpush3.msra.mxu1 %v542_v38 }
 0x14a   :  { %10861 = vmatprep.subr.mxu1 %v557_v39 }
 0x14b   :  { %10862 = vmatpush3.msra.mxu1 %v541_v40 }
 0x14c   :  { %10863 = vmatprep.subr.mxu1 %v556_v41 }
 0x14d   :  { %10864 = vmatpush3.msra.mxu1 %v540_v42 }
 0x14e   :  { %10865 = vmatprep.subr.mxu1 %v555_v43 }
 0x14f   :  { %10866 = vmatpush3.msra.mxu1 %v539_v44 }
 0x150   :  { %10867 = vmatprep.subr.mxu1 %v554_v45 }
 0x151   :  { %10868 = vmatpush3.msra.mxu1 %v538_v46 }
 0x152   :  { %10869 = vmatprep.subr.mxu1 %v553_v47 }
 0x153   :  { %10870 = vmatpush3.msra.mxu1 %v537_v48 }
 0x154   :  { %10871 = vmatprep.subr.mxu1 %v552_v49 }
 0x155   :  { %10872 = vmatpush3.msra.mxu1 %v536_v50 }
 0x156   :  { %10873 = vmatprep.subr.mxu1 %v551_v51 }
 0x157   :  { %10874 = vmatpush3.msra.mxu1 %v535_v52 }
 0x1f6   :  { %v456_v63 = vpop.f32.mrf.mxu1 }
 0x1f7   :  { %v457_v3 = vadd.f32 %v456_v63, %v373_v58 }
 0x1f8   :  { %v458_v4 = vpop.f32.mrf.mxu1 }
 0x1f9   :  { %v10135_v6 = vmul.f32 -1.442695, %v457_v3  ;;  %v459_v7 = vadd.f32 %v458_v4, %v377_v62 }
 0x1fa   :  { %v462_v8 = vpop.f32.mrf.mxu1 }
 0x1fb   :  { %12698 = vpow2.f32 %v10135_v6  ;;  %v10136_v9 = vmul.f32 -1.442695, %v459_v7  ;;  %v463_v10 = vadd.f32 %v462_v8, %v373_v58 }
 0x1fc   :  { %v464_v11 = vpop.f32.mrf.mxu1 }
 0x1fd   :  { %12700 = vpow2.f32 %v10136_v9  ;;  %v10137_v14 = vmul.f32 -1.442695, %v463_v10  ;;  %v465_v15 = vadd.f32 %v464_v11, %v377_v62 }
 0x1fe   :  { %v468_v16 = vpop.f32.mrf.mxu1 }
 0x1ff   :  { %12702 = vpow2.f32 %v10137_v14  ;;  %v10138_v17 = vmul.f32 -1.442695, %v465_v15  ;;  %v469_v12 = vadd.f32 %v468_v16, %v373_v58 }
 0x200   :  { %v470_v18 = vpop.f32.mrf.mxu1 }
 0x201   :  { %12704 = vpow2.f32 %v10138_v17  ;;  %v10139_v19 = vmul.f32 -1.442695, %v469_v12  ;;  %v471_v13 = vadd.f32 %v470_v18, %v377_v62 }
 0x202   :  { %v474_v20 = vpop.f32.mrf.mxu1 }
 0x203   :  { %12706 = vpow2.f32 %v10139_v19  ;;  %v10140_v21 = vmul.f32 -1.442695, %v471_v13  ;;  %v475_v22 = vadd.f32 %v474_v20, %v373_v58 }
 0x204   :  { %v476_v23 = vpop.f32.mrf.mxu1 }
 0x205   :  { %12708 = vpow2.f32 %v10140_v21  ;;  %v10141_v24 = vmul.f32 -1.442695, %v475_v22  ;;  %v477_v25 = vadd.f32 %v476_v23, %v377_v62 }
 0x207   :  { %12710 = vpow2.f32 %v10141_v24  ;;  %v10142_v26 = vmul.f32 -1.442695, %v477_v25 }
 0x208   :  { %v12699_v27 = vpop.eup %12698 }
 0x209   :  { %v503_v28 = vadd.f32 1.0, %v12699_v27  ;;  %12712 = vpow2.f32 %v10142_v26 }
 0x20a   :  { %v12701_v29 = vpop.eup %12700 }
 0x20b   :  { %v504_v30 = vadd.f32 1.0, %v12701_v29  ;;  %12714 = vrcp.f32 %v503_v28 }
 0x20c   :  { %v12703_v31 = vpop.eup %12702 }
 0x20d   :  { %12716 = vrcp.f32 %v504_v30  ;;  %v505_v32 = vadd.f32 1.0, %v12703_v31 }
 0x20e   :  { %v12705_v33 = vpop.eup %12704 }
 0x20f   :  { %v506_v34 = vadd.f32 1.0, %v12705_v33  ;;  %12718 = vrcp.f32 %v505_v32 }
 0x210   :  { %v12707_v35 = vpop.eup %12706 }
 0x211   :  { %12720 = vrcp.f32 %v506_v34  ;;  %v507_v37 = vadd.f32 1.0, %v12707_v35 }
 0x212   :  { %v12709_v38 = vpop.eup %12708 }
 0x213   :  { %v508_v39 = vadd.f32 1.0, %v12709_v38  ;;  %12722 = vrcp.f32 %v507_v37 }
 0x214   :  { %v12711_v40 = vpop.eup %12710 }
 0x215   :  { %12724 = vrcp.f32 %v508_v39  ;;  %v509_v41 = vadd.f32 1.0, %v12711_v40 }
 0x216   :  { %v12713_v42 = vpop.eup %12712 }
 0x217   :  { %v510_v43 = vadd.f32 1.0, %v12713_v42  ;;  %12726 = vrcp.f32 %v509_v41 }
 0x218   :  { %v12715_v44 = vpop.eup %12714 }
 0x219   :  { %12728 = vrcp.f32 %v510_v43  ;;  %v527_v47 = vmul.f32 %v12715_v44, %v457_v3  ;;  %v268_v3 = vld [vmem:[%s16538_s3 + $0x8] sm:$0xff] }
 0x21a   :  { %v12717_v45 = vpop.eup %12716 }
 0x21b   :  { %v528_v46 = vmul.f32 %v12717_v45, %v459_v7  ;;  %v570_v7 = vrot.slane %v268_v3, %v13278_v59  ;;  %v743_v3 = vld [vmem:[%s16541_s8 + $0x18] sm:$0xff] }
 0x21c   :  { %v12719_v48 = vpop.eup %12718 }
 0x21d   :  { %635 = vmatprep.mubr.f32.mxu1 %v528_v46  ;;  %v529_v51 = vmul.f32 %v12719_v48, %v463_v10 }
 0x21e   :  { %v12721_v49 = vpop.eup %12720  ;;  %636 = vmatmul.mubr.f32.vlgmr.msra.gmra.mxu1 %v527_v47 }
 0x21f   :  { %v530_v50 = vmul.f32 %v12721_v49, %v465_v15 }
 0x220   :  { %v12723_v52 = vpop.eup %12722 }
 0x221   :  { %640 = vmatprep.mubr.f32.mxu1 %v530_v50  ;;  %v531_v56 = vmul.f32 %v12723_v52, %v469_v12  ;;  %v747_v52 = vld [vmem:[%s16541_s8 + $0x38] sm:$0xff] }
 0x222   :  { %v12725_v53 = vpop.eup %12724  ;;  %641 = vmatmul.mubr.f32.gmra.mxu1 %v529_v51  ;;  %11610 = vmatprep.subr.mxu0 %v747_v52 }
 0x223   :  { %v532_v55 = vmul.f32 %v12725_v53, %v471_v13  ;;  %v10166_v53 = vld [vmem:[%s16541_s8 + $0xb8] sm:$0xff]  ;;  %11611 = vmatpush3.msra.mxu0 %v747_v52  ;;  %v10147_v52 = vld [vmem:[%s16541_s8 + $0x40] sm:$0xff] }
 0x224   :  { %v12727_v58 = vpop.eup %12726  ;;  %11654 = vmatprep.subr.mxu1 %v10166_v53 }
 0x225   :  { %645 = vmatprep.mubr.f32.mxu1 %v532_v55  ;;  %v533_v4 = vmul.f32 %v12727_v58, %v475_v22  ;;  %v746_v55 = vld [vmem:[%s16541_s8 + $0x30] sm:$0xff]  ;;  %11655 = vmatpush3.msra.mxu1 %v10166_v53  ;;  %v745_v58 = vld [vmem:[%s16541_s8 + $0x28] sm:$0xff]  ;;  %v13578_v53 = vld [vmem:[%s16542_s5] sm:$0xff] }
 0x226   :  { %v12729_v62 = vpop.eup %12728  ;;  %646 = vmatmul.mubr.f32.gmra.mxu1 %v531_v56  ;;  %11612 = vmatprep.subr.mxu0 %v746_v55  ;;  %v10165_v56 = vld [vmem:[%s16541_s8 + $0xb0] sm:$0xff] }
 0x227   :  { %v534_v63 = vmul.f32 %v12729_v62, %v477_v25  ;;  %11613 = vmatpush3.msra.mxu0 %v746_v55  ;;  %11656 = vmatprep.subr.mxu1 %v10165_v56  ;;  %v10164_v62 = vld [vmem:[%s16541_s8 + $0xa8] sm:$0xff]  ;;  %v13582_v55 = vrot.slane %v13578_v53, %v13403_v54 }
 0x228   :  { %11614 = vmatprep.subr.mxu0 %v745_v58  ;;  %11657 = vmatpush3.msra.mxu1 %v10165_v56 }
 0x229   :  { %650 = vmatprep.mubr.f32.mxu1 %v534_v63  ;;  %11615 = vmatpush3.msra.mxu0 %v745_v58  ;;  %v744_v63 = vld [vmem:[%s16541_s8 + $0x20] sm:$0xff] }
 0x22a   :  { %651 = vmatmul.mubr.f32.gmra.mxu1 %v533_v4  ;;  %11658 = vmatprep.subr.mxu1 %v10164_v62  ;;  %v10163_v4 = vld [vmem:[%s16541_s8 + $0xa0] sm:$0xff] }
 0x22b   :  { %11616 = vmatprep.subr.mxu0 %v744_v63  ;;  %11659 = vmatpush3.msra.mxu1 %v10164_v62  ;;  %v751_v62 = vrot.slane %v13578_v53, %v13278_v59 }
 0x22c   :  { %11617 = vmatpush3.msra.mxu0 %v744_v63  ;;  %11660 = vmatprep.subr.mxu1 %v10163_v4 }
 0x22d   :  { %11618 = vmatprep.subr.mxu0 %v743_v3  ;;  %11661 = vmatpush3.msra.mxu1 %v10163_v4 }
 0x22e   :  { %11619 = vmatpush3.msra.mxu0 %v743_v3 }
 0x2de   :  { %v10875_v6 = vpop.f32.mrf.mxu1 }
 0x2e0   :  { %v10876_v8 = vpop.f32.mrf.mxu1 }
 0x2e1   :  { %v10877_v9 = vadd.f32 %v10876_v8, %v10875_v6  ;;  %v10162_v6 = vld [vmem:[%s16541_s8 + $0x98] sm:$0xff]  ;;  %v10161_v8 = vld [vmem:[%s16541_s8 + $0x90] sm:$0xff] }
 0x2e2   :  { %v10878_v10 = vpop.f32.mrf.mxu1  ;;  %11662 = vmatprep.subr.mxu1 %v10162_v6 }
 0x2e3   :  { %v638_v11 = vadd.f32 %v10877_v9, %v570_v7  ;;  %11663 = vmatpush3.msra.mxu1 %v10162_v6  ;;  %v741_v9 = vld [vmem:[%s16541_s8 + $0x8] sm:$0xff] }
 0x2e4   :  { %v10879_v14 = vpop.f32.mrf.mxu1  ;;  %11664 = vmatprep.subr.mxu1 %v10161_v8 }
 0x2e5   :  { %v656_v15 = vmul.f32 0.5, %v638_v11  ;;  %v10880_v16 = vadd.f32 %v10879_v14, %v10878_v10  ;;  %11665 = vmatpush3.msra.mxu1 %v10161_v8  ;;  %v10160_v10 = vld [vmem:[%s16541_s8 + $0x88] sm:$0xff]  ;;  %v740_v11 = vld [vmem:[%s16541_s8] sm:$0xff] }
 0x2e6   :  { %v10881_v17 = vpop.f32.mrf.mxu1  ;;  %11666 = vmatprep.subr.mxu1 %v10160_v10  ;;  %v10159_v14 = vld [vmem:[%s16541_s8 + $0x80] sm:$0xff] }
 0x2e7   :  { %v643_v12 = vadd.f32 %v10880_v16, %v570_v7  ;;  %v13414_v18 = vadd.f32 %v656_v15, %v13177_v0  ;;  %11667 = vmatpush3.msra.mxu1 %v10160_v10  ;;  %v10154_v15 = vld [vmem:[%s16541_s8 + $0x78] sm:$0xff] }
 0x2e8   :  { %v10882_v19 = vpop.f32.mrf.mxu1  ;;  %11668 = vmatprep.subr.mxu1 %v10159_v14 }
 0x2e9   :  { %v657_v13 = vmul.f32 0.5, %v643_v12  ;;  %v10883_v20 = vadd.f32 %v10882_v19, %v10881_v17  ;;  %v664_v21 = vsel %vm16553_vm0, %v13414_v18, 0.0  ;;  %11669 = vmatpush3.msra.mxu1 %v10159_v14 }
 0x2ea   :  { %665 = vadd.xlane.f32.xlu0 %v664_v21  ;;  %v10884_v22 = vpop.f32.mrf.mxu1 }
 0x2eb   :  { %v648_v23 = vadd.f32 %v10883_v20, %v570_v7  ;;  %v13419_v24 = vadd.f32 %v657_v13, %v13187_v2 }
 0x2ec   :  { %v10885_v25 = vpop.f32.mrf.mxu1 }
 0x2ed   :  { %v658_v26 = vmul.f32 0.5, %v648_v23  ;;  %v10886_v27 = vadd.f32 %v10885_v25, %v10884_v22  ;;  %v667_v28 = vsel %vm16553_vm0, %v13419_v24, 0.0 }
 0x2ee   :  { %668 = vadd.xlane.f32.xlu1 %v667_v28  ;;  %v13512_v28 = vsub.s32 5, %v13275_v57 }
 0x2ef   :  { %v653_v0 = vadd.f32 %v10886_v27, %v570_v7  ;;  %v13424_v29 = vadd.f32 %v658_v26, %v13182_v1  ;;  %v742_v7 = vld [vmem:[%s16541_s8 + $0x10] sm:$0xff]  ;;  %v13509_v26 = vsub.s32 1, %v13275_v57 }
 0x2f0   :  { %11620 = vmatprep.subr.mxu0 %v742_v7  ;;  %16599 = vst [vmem:[#allocation5_spill] sm:$0xff] %v13512_v28 }
 0x2f1   :  { %v659_v30 = vmul.f32 0.5, %v653_v0  ;;  %v670_v31 = vsel %vm16553_vm0, %v13424_v29, 0.0  ;;  %11621 = vmatpush3.msra.mxu0 %v742_v7  ;;  %16598 = vst [vmem:[#allocation4_spill] sm:$0xff] %v13509_v26 }
 0x2f2   :  { %671 = vadd.xlane.f32.xlu0 %v670_v31  ;;  %11622 = vmatprep.subr.mxu0 %v741_v9 }
 0x2f3   :  { %v13429_v32 = vadd.f32 %v659_v30, %v13196_v5  ;;  %11623 = vmatpush3.msra.mxu0 %v741_v9  ;;  %v719_v30 = vrot.slane %v13283_v60, %v13509_v26 }
 0x2f4   :  { %11624 = vmatprep.subr.mxu0 %v740_v11 }
 0x2f5   :  { %v673_v2 = vsel %vm16553_vm0, %v13429_v32, 0.0  ;;  %11625 = vmatpush3.msra.mxu0 %v740_v11  ;;  %v861_v11 = vrot.slane %v13578_v53, %v13509_v26 }
 0x2f6   :  { %674 = vadd.xlane.f32.xlu1 %v673_v2  ;;  %11632 = vmatprep.subr.mxu0 %v10154_v15  ;;  %v727_v2 = vrot.slane %v13283_v60, %v13512_v28 }
 0x373   :  { %v666_v33 = vpop.xlane.xlu0 %665 }
 0x374   :  { %v676_v34 = vmul.f32 0.015625, %v666_v33 }
 0x376   :  { %v13434_v35 = vsub.f32 %v13414_v18, %v676_v34 }
 0x377   :  { %v669_v37 = vpop.xlane.xlu1 %668 }
 0x378   :  { %v677_v1 = vmul.f32 0.015625, %v669_v37  ;;  %v684_v38 = vmul.f32 %v13434_v35, %v13434_v35 }
 0x37a   :  { %v13439_v39 = vsub.f32 %v13419_v24, %v677_v1  ;;  %v688_v5 = vsel %vm16553_vm0, %v684_v38, 0.0 }
 0x37b   :  { %689 = vadd.xlane.f32.xlu0 %v688_v5  ;;  %v672_v40 = vpop.xlane.xlu0 %671 }
 0x37c   :  { %v678_v41 = vmul.f32 0.015625, %v672_v40  ;;  %v685_v42 = vmul.f32 %v13439_v39, %v13439_v39 }
 0x37e   :  { %v13445_v43 = vsub.f32 %v13424_v29, %v678_v41  ;;  %v691_v44 = vsel %vm16553_vm0, %v685_v42, 0.0 }
 0x37f   :  { %692 = vadd.xlane.f32.xlu1 %v691_v44  ;;  %v675_v45 = vpop.xlane.xlu1 %674  ;;  %v10152_v44 = vld [vmem:[%s16541_s8 + $0x68] sm:$0xff] }
 0x380   :  { %v679_v46 = vmul.f32 0.015625, %v675_v45  ;;  %v686_v47 = vmul.f32 %v13445_v43, %v13445_v43 }
 0x382   :  { %v13451_v48 = vsub.f32 %v13429_v32, %v679_v46  ;;  %v694_v49 = vsel %vm16553_vm0, %v686_v47, 0.0  ;;  %v10151_v46 = vld [vmem:[%s16541_s8 + $0x60] sm:$0xff] }
 0x383   :  { %695 = vadd.xlane.f32.xlu0 %v694_v49  ;;  %v10150_v49 = vld [vmem:[%s16541_s8 + $0x58] sm:$0xff] }
 0x384   :  { %v687_v50 = vmul.f32 %v13451_v48, %v13451_v48 }
 0x386   :  { %v697_v51 = vsel %vm16553_vm0, %v687_v50, 0.0  ;;  %v10149_v50 = vld [vmem:[%s16541_s8 + $0x50] sm:$0xff] }
 0x387   :  { %698 = vadd.xlane.f32.xlu1 %v697_v51  ;;  %v10148_v51 = vld [vmem:[%s16541_s8 + $0x48] sm:$0xff] }
 0x404   :  { %v690_v16 = vpop.xlane.xlu0 %689 }
 0x405   :  { %v700_v17 = vmul.f32 0.015625, %v690_v16 }
 0x407   :  { %v704_v12 = vadd.f32 1e-05, %v700_v17 }
 0x408   :  { %v693_v19 = vpop.xlane.xlu1 %692 }
 0x409   :  { %12730 = vrsqrt.f32 %v704_v12  ;;  %v701_v13 = vmul.f32 0.015625, %v693_v19 }
 0x40b   :  { %v705_v20 = vadd.f32 1e-05, %v701_v13 }
 0x40c   :  { %v696_v21 = vpop.xlane.xlu0 %695 }
 0x40d   :  { %12732 = vrsqrt.f32 %v705_v20  ;;  %v702_v22 = vmul.f32 0.015625, %v696_v21 }
 0x40f   :  { %v706_v23 = vadd.f32 1e-05, %v702_v22 }
 0x410   :  { %v699_v25 = vpop.xlane.xlu1 %698 }
 0x411   :  { %12734 = vrsqrt.f32 %v706_v23  ;;  %v703_v27 = vmul.f32 0.015625, %v699_v25  ;;  %v10202_v25 = vld [vmem:[%s16541_s8 + $0x138] sm:$0xff] }
 0x413   :  { %v707_v0 = vadd.f32 1e-05, %v703_v27 }
 0x415   :  { %12736 = vrsqrt.f32 %v707_v0  ;;  %v10201_v0 = vld [vmem:[%s16541_s8 + $0x130] sm:$0xff] }
 0x416   :  { %v12731_v31 = vpop.eup %12730 }
 0x417   :  { %v712_v33 = vmul.f32 %v12731_v31, %v13434_v35  ;;  %v10153_v35 = vld [vmem:[%s16541_s8 + $0x70] sm:$0xff]  ;;  %v10199_v31 = vld [vmem:[%s16541_s8 + $0x120] sm:$0xff] }
 0x419   :  { %v720_v34 = vmul.f32 %v719_v30, %v712_v33  ;;  %v10197_v33 = vld [vmem:[%s16541_s8 + $0x110] sm:$0xff] }
 0x41a   :  { %v12733_v37 = vpop.eup %12732 }
 0x41b   :  { %v13519_v1 = vadd.f32 %v727_v2, %v720_v34  ;;  %v713_v38 = vmul.f32 %v12733_v37, %v13439_v39  ;;  %v10196_v34 = vld [vmem:[%s16541_s8 + $0x108] sm:$0xff]  ;;  %v10195_v37 = vld [vmem:[%s16541_s8 + $0x100] sm:$0xff] }
 0x41d   :  { %v721_v5 = vmul.f32 %v719_v30, %v713_v38  ;;  %11626 = vmatprep.mubr.msk.f32.mxu0 %vm16553_vm0, %v13519_v1  ;;  %11670 = vmatprep.mubr.msk.f32.mxu1 %vm16553_vm0, %v13519_v1  ;;  %v45_v38 = vld [vmem:[%s16543_s1] sm:$0x3] }
 0x41e   :  { %v12735_v40 = vpop.eup %12734 }
 0x41f   :  { %v13526_v41 = vadd.f32 %v727_v2, %v721_v5  ;;  %v714_v60 = vmul.f32 %v12735_v40, %v13445_v43  ;;  %v13642_v5 = vrot.slane %v45_v38, %v13278_v59 }
 0x421   :  { %v722_v42 = vmul.f32 %v719_v30, %v714_v60  ;;  %11627 = vmatmul.mubr.msk.f32.vlgmr.msra.gmra.mxu0 %vm16553_vm0, %v13526_v41  ;;  %11671 = vmatmul.mubr.msk.f32.vlgmr.msra.gmra.mxu1 %vm16553_vm0, %v13526_v41  ;;  %16600 = vst [vmem:[#allocation6_spill] sm:$0xff] %v13642_v5 }
 0x422   :  { %v12737_v39 = vpop.eup %12736  ;;  %11633 = vmatpush3.msra.mxu0 %v10154_v15 }
 0x423   :  { %v13539_v45 = vadd.f32 %v727_v2, %v722_v42  ;;  %v715_v43 = vmul.f32 %v12737_v39, %v13451_v48  ;;  %11634 = vmatprep.subr.mxu0 %v10153_v35 }
 0x424   :  { %11635 = vmatpush3.msra.mxu0 %v10153_v35 }
 0x425   :  { %v723_v47 = vmul.f32 %v719_v30, %v715_v43  ;;  %11636 = vmatprep.subr.mxu0 %v10152_v44  ;;  %11629 = vmatprep.mubr.msk.f32.mxu0 %vm16553_vm0, %v13539_v45  ;;  %v10200_v30 = vld [vmem:[%s16541_s8 + $0x128] sm:$0xff]  ;;  %v13649_v43 = vrot.slane %v45_v38, %v13509_v26 }
 0x426   :  { %11637 = vmatpush3.msra.mxu0 %v10152_v44  ;;  %11673 = vmatprep.mubr.msk.f32.mxu1 %vm16553_vm0, %v13539_v45 }
 0x427   :  { %v13552_v48 = vadd.f32 %v727_v2, %v723_v47  ;;  %11638 = vmatprep.subr.mxu0 %v10151_v46  ;;  %v10198_v2 = vld [vmem:[%s16541_s8 + $0x118] sm:$0xff]  ;;  %16601 = vst [vmem:[#allocation7_spill] sm:$0xff] %v13649_v43 }
 0x428   :  { %11639 = vmatpush3.msra.mxu0 %v10151_v46 }
 0x429   :  { %11640 = vmatprep.subr.mxu0 %v10150_v49  ;;  %11630 = vmatmul.mubr.msk.f32.gmra.mxu0 %vm16553_vm0, %v13552_v48 }
 0x42a   :  { %11641 = vmatpush3.msra.mxu0 %v10150_v49  ;;  %11674 = vmatmul.mubr.msk.f32.gmra.mxu1 %vm16553_vm0, %v13552_v48 }
 0x42b   :  { %11642 = vmatprep.subr.mxu0 %v10149_v50  ;;  %11648 = vmatprep.mubr.msk.f32.mxu0 %vm16553_vm0, %v13519_v1 }
 0x42c   :  { %11643 = vmatpush3.msra.mxu0 %v10149_v50 }
 0x42d   :  { %11644 = vmatprep.subr.mxu0 %v10148_v51 }
 0x42e   :  { %11645 = vmatpush3.msra.mxu0 %v10148_v51 }
 0x42f   :  { %11646 = vmatprep.subr.mxu0 %v10147_v52 }
 0x430   :  { %11647 = vmatpush3.msra.mxu0 %v10147_v52 }
 0x431   :  { %11649 = vmatmul.mubr.msk.f32.vlgmr.msra.gmra.mxu0 %vm16553_vm0, %v13526_v41 }
 0x432   :  { %11651 = vmatprep.mubr.msk.f32.mxu0 %vm16553_vm0, %v13539_v45 }
 0x435   :  { %11652 = vmatmul.mubr.msk.f32.gmra.mxu0 %vm16553_vm0, %v13552_v48 }
 0x4e1   :  { %v11628_v56 = vpop.f32.mrf.mxu0  ;;  %v11672_v58 = vpop.f32.mrf.mxu1 }
 0x4e2   :  { %v1032_v63 = vadd.f32 %v11672_v58, %v13582_v55  ;;  %v836_v21 = vadd.f32 %v11628_v56, %v751_v62  ;;  %v13657_v56 = vrot.slane %v13578_v53, %v13286_v61 }
 0x4e3   :  { %v830_v4 = vpop.f32.mrf.mxu0  ;;  %v1026_v3 = vpop.f32.mrf.mxu1 }
 0x4e4   :  { %v831_v6 = vadd.f32 %v830_v4, %v751_v62  ;;  %v1027_v7 = vadd.f32 %v1026_v3, %v13582_v55  ;;  %11683 = vmatprep.subr.mxu1 %v1032_v63 }
 0x4e5   :  { %11684 = vmatpush3.msra.mxu1 %v1032_v63 }
 0x4e6   :  { %11680 = vmatprep.mubr.msk.f32.mxu0 %vm16552_vm1, %v831_v6  ;;  %11685 = vmatprep.subr.mxu1 %v1027_v7 }
 0x4e7   :  { %11686 = vmatpush3.msra.mxu1 %v1027_v7 }
 0x4e9   :  { %v11631_v9 = vpop.f32.mrf.mxu0 }
 0x4ea   :  { %v11675_v8 = vpop.f32.mrf.mxu1  ;;  %v846_v27 = vadd.f32 %v11631_v9, %v751_v62 }
 0x4eb   :  { %v13590_v10 = vadd.f32 %v11675_v8, %v13582_v55  ;;  %v840_v14 = vpop.f32.mrf.mxu0 }
 0x4ec   :  { %v841_v22 = vadd.f32 %v840_v14, %v751_v62  ;;  %v1036_v38 = vpop.f32.mrf.mxu1 }
 0x4ed   :  { %11697 = vmatprep.subr.mxu1 %v13590_v10 }
 0x4f1   :  { %v11650_v15 = vpop.f32.mrf.mxu0 }
 0x4f2   :  { %v934_v16 = vadd.f32 %v11650_v15, %v861_v11 }
 0x4f3   :  { %v928_v17 = vpop.f32.mrf.mxu0 }
 0x4f4   :  { %v929_v12 = vadd.f32 %v928_v17, %v861_v11  ;;  %11676 = vmatprep.subr.msk.mxu0 %vm16552_vm1, %v934_v16 }
 0x4f5   :  { %v11653_v19 = vpop.f32.mrf.mxu0  ;;  %11677 = vmatpush3.xpose.msk.msra.mxu0 %vm16552_vm1, %v934_v16 }
 0x4f6   :  { %11678 = vmatprep.subr.msk.mxu0 %vm16552_vm1, %v929_v12  ;;  %v944_v13 = vadd.f32 %v11653_v19, %v861_v11 }
 0x4f7   :  { %v938_v20 = vpop.f32.mrf.mxu0 }
 0x4f8   :  { %v939_v23 = vadd.f32 %v938_v20, %v861_v11 }
 0x4f9   :  { %11679 = vmatpush3.xpose.msk.msra.mxu0 %vm16552_vm1, %v929_v12 }
 0x4fa   :  { %11690 = vmatprep.subr.msk.mxu0 %vm16552_vm1, %v944_v13 }
 0x4fc   :  { %11681 = vmatmul.mubr.msk.f32.vlgmr.msra.gmra.mxu0 %vm16552_vm1, %v836_v21 }
 0x4fd   :  { %11691 = vmatpush3.xpose.msk.msra.mxu0 %vm16552_vm1, %v944_v13  ;;  %11694 = vmatprep.mubr.msk.f32.mxu0 %vm16552_vm1, %v841_v22 }
 0x4fe   :  { %11692 = vmatprep.subr.msk.mxu0 %vm16552_vm1, %v939_v23 }
 0x501   :  { %11693 = vmatpush3.xpose.msk.msra.mxu0 %vm16552_vm1, %v939_v23 }
 0x502   :  { %11726 = vmatprep.subr.mxu0 %v10202_v25 }
 0x504   :  { %11695 = vmatmul.mubr.msk.f32.vlgmr.msra.gmra.mxu0 %vm16552_vm1, %v846_v27 }
 0x505   :  { %11727 = vmatpush3.msra.mxu0 %v10202_v25  ;;  %11742 = vmatprep.mubr.msk.f32.mxu0 %vm16553_vm0, %v13519_v1 }
 0x506   :  { %11728 = vmatprep.subr.mxu0 %v10201_v0 }
 0x507   :  { %11729 = vmatpush3.msra.mxu0 %v10201_v0 }
 0x508   :  { %11730 = vmatprep.subr.mxu0 %v10200_v30 }
 0x509   :  { %11731 = vmatpush3.msra.mxu0 %v10200_v30 }
 0x50a   :  { %11732 = vmatprep.subr.mxu0 %v10199_v31 }
 0x50b   :  { %11733 = vmatpush3.msra.mxu0 %v10199_v31 }
 0x50c   :  { %11734 = vmatprep.subr.mxu0 %v10198_v2 }
 0x50d   :  { %11735 = vmatpush3.msra.mxu0 %v10198_v2 }
 0x50e   :  { %11736 = vmatprep.subr.mxu0 %v10197_v33 }
 0x50f   :  { %11737 = vmatpush3.msra.mxu0 %v10197_v33 }
 0x510   :  { %11738 = vmatprep.subr.mxu0 %v10196_v34 }
 0x511   :  { %11739 = vmatpush3.msra.mxu0 %v10196_v34 }
 0x512   :  { %11740 = vmatprep.subr.mxu0 %v10195_v37 }
 0x513   :  { %11741 = vmatpush3.msra.mxu0 %v10195_v37 }
 0x514   :  { %11743 = vmatmul.mubr.msk.f32.vlgmr.msra.gmra.mxu0 %vm16553_vm0, %v13526_v41 }
 0x515   :  { %11745 = vmatprep.mubr.msk.f32.mxu0 %vm16553_vm0, %v13539_v45 }
 0x518   :  { %11746 = vmatmul.mubr.msk.f32.gmra.mxu0 %vm16553_vm0, %v13552_v48 }
 0x5bc   :  { %v11682_v40 = vpop.f32.mrf.mxu0 }
 0x5bd   :  { %v1134_v60 = vadd.f32 %v11682_v40, %v13642_v5 }
 0x5be   :  { %v1128_v35 = vpop.f32.mrf.mxu0 }
 0x5bf   :  { %v1129_v42 = vadd.f32 %v1128_v35, %v13642_v5  ;;  %v1140_v39 = vsel %vm16552_vm1, %v1134_v60, -inf  ;;  %v1037_v35 = vadd.f32 %v1036_v38, %v13582_v55  ;;  %v10189_v55 = vld [vmem:[%s16541_s8 + $0xf0] sm:$0xff] }
 0x5c0   :  { %1141 = vmax.xlane.f32.xlu1 %v1140_v39 }
 0x5c1   :  { %v1137_v44 = vsel %vm16552_vm1, %v1129_v42, -inf }
 0x5c2   :  { %1138 = vmax.xlane.f32.xlu0 %v1137_v44 }
 0x5c4   :  { %v11696_v46 = vpop.f32.mrf.mxu0 }
 0x5c5   :  { %v1328_v47 = vadd.f32 %v11696_v46, %v13649_v43 }
 0x5c6   :  { %v1322_v49 = vpop.f32.mrf.mxu0 }
 0x5c7   :  { %v1323_v50 = vadd.f32 %v1322_v49, %v13649_v43  ;;  %v1334_v51 = vsel %vm16552_vm1, %v1328_v47, -inf  ;;  %v10187_v49 = vld [vmem:[%s16541_s8 + $0xe0] sm:$0xff] }
 0x5c8   :  { %1335 = vmax.xlane.f32.xlu1 %v1334_v51  ;;  %v10185_v51 = vld [vmem:[%s16541_s8 + $0xd0] sm:$0xff] }
 0x5c9   :  { %v1331_v52 = vsel %vm16552_vm1, %v1323_v50, -inf }
 0x5ca   :  { %1332 = vmax.xlane.f32.xlu0 %v1331_v52  ;;  %v10184_v52 = vld [vmem:[%s16541_s8 + $0xc8] sm:$0xff] }
 0x5d4   :  { %v11744_v58 = vpop.f32.mrf.mxu0 }
 0x5d5   :  { %v1617_v62 = vadd.f32 %v11744_v58, %v13657_v56  ;;  %v10183_v58 = vld [vmem:[%s16541_s8 + $0xc0] sm:$0xff] }
 0x5d6   :  { %v1611_v63 = vpop.f32.mrf.mxu0 }
 0x5d7   :  { %v1612_v4 = vadd.f32 %v1611_v63, %v13657_v56  ;;  %11770 = vmatprep.subr.msk.mxu0 %vm16552_vm1, %v1617_v62  ;;  %v10213_v63 = vld [vmem:[%s16541_s8 + $0x170] sm:$0xff] }
 0x5d8   :  { %11771 = vmatpush3.xpose.msk.msra.mxu0 %vm16552_vm1, %v1617_v62  ;;  %v10214_v62 = vld [vmem:[%s16541_s8 + $0x178] sm:$0xff] }
 0x5d9   :  { %11772 = vmatprep.subr.msk.mxu0 %vm16552_vm1, %v1612_v4 }
 0x5dc   :  { %11773 = vmatpush3.xpose.msk.msra.mxu0 %vm16552_vm1, %v1612_v4  ;;  %v10212_v4 = vld [vmem:[%s16541_s8 + $0x168] sm:$0xff] }
 0x649   :  { %v1142_v3 = vpop.xlane.xlu1 %1141 }
 0x64a   :  { %v1144_v6 = vsub.f32 %v1134_v60, %v1142_v3  ;;  %v10211_v3 = vld [vmem:[%s16541_s8 + $0x160] sm:$0xff] }
 0x64b   :  { %v1139_v7 = vpop.xlane.xlu0 %1138 }
 0x64c   :  { %v1147_v8 = vmul.f32 1.442695, %v1144_v6  ;;  %v1143_v9 = vsub.f32 %v1129_v42, %v1139_v7  ;;  %v10190_v42 = vld [vmem:[%s16541_s8 + $0xf8] sm:$0xff]  ;;  %v10209_v7 = vld [vmem:[%s16541_s8 + $0x150] sm:$0xff] }
 0x64d   :  { %v10210_v6 = vld [vmem:[%s16541_s8 + $0x158] sm:$0xff] }
 0x64e   :  { %12738 = vpow2.f32 %v1147_v8  ;;  %v1145_v11 = vmul.f32 1.442695, %v1143_v9  ;;  %v10208_v8 = vld [vmem:[%s16541_s8 + $0x148] sm:$0xff]  ;;  %v10207_v9 = vld [vmem:[%s16541_s8 + $0x140] sm:$0xff] }
 0x650   :  { %12740 = vpow2.f32 %v1145_v11 }
 0x651   :  { %v1336_v14 = vpop.xlane.xlu1 %1335 }
 0x652   :  { %v1338_v15 = vsub.f32 %v1328_v47, %v1336_v14 }
 0x653   :  { %v1333_v16 = vpop.xlane.xlu0 %1332 }
 0x654   :  { %v1341_v17 = vmul.f32 1.442695, %v1338_v15  ;;  %v1337_v12 = vsub.f32 %v1323_v50, %v1333_v16  ;;  %v10186_v50 = vld [vmem:[%s16541_s8 + $0xd8] sm:$0xff]  ;;  %v13746_v16 = vsub.s32 3, %v13275_v57 }
 0x656   :  { %12742 = vpow2.f32 %v1341_v17  ;;  %v1339_v19 = vmul.f32 1.442695, %v1337_v12  ;;  %v1446_v12 = vrot.slane %v13578_v53, %v13746_v16 }
 0x658   :  { %12744 = vpow2.f32 %v1339_v19 }
 0x65b   :  { %v12739_v13 = vpop.eup %12738 }
 0x65c   :  { %v1152_v20 = vsel %vm16552_vm1, %v12739_v13, 0.0 }
 0x65d   :  { %v12741_v21 = vpop.eup %12740  ;;  %1153 = vadd.xlane.f32.xlu1 %v1152_v20 }
 0x65e   :  { %v1149_v22 = vsel %vm16552_vm1, %v12741_v21, 0.0 }
 0x65f   :  { %1150 = vadd.xlane.f32.xlu0 %v1149_v22 }
 0x663   :  { %v12743_v23 = vpop.eup %12742 }
 0x664   :  { %v1346_v25 = vsel %vm16552_vm1, %v12743_v23, 0.0 }
 0x665   :  { %v12745_v27 = vpop.eup %12744  ;;  %1347 = vadd.xlane.f32.xlu1 %v1346_v25  ;;  %v1642_v25 = vrot.slane %v13578_v53, %v13512_v28 }
 0x666   :  { %v1343_v0 = vsel %vm16552_vm1, %v12745_v27, 0.0 }
 0x667   :  { %1344 = vadd.xlane.f32.xlu0 %v1343_v0 }
 0x6e6   :  { %v1154_v30 = vpop.xlane.xlu1 %1153 }
 0x6e7   :  { %12746 = vrcp.f32 %v1154_v30 }
 0x6e8   :  { %v1151_v31 = vpop.xlane.xlu0 %1150 }
 0x6e9   :  { %12748 = vrcp.f32 %v1151_v31  ;;  %v11747_v31 = vpop.f32.mrf.mxu0 }
 0x6ee   :  { %v1348_v2 = vpop.xlane.xlu1 %1347 }
 0x6ef   :  { %12750 = vrcp.f32 %v1348_v2 }
 0x6f0   :  { %v1345_v33 = vpop.xlane.xlu0 %1344 }
 0x6f1   :  { %12752 = vrcp.f32 %v1345_v33 }
 0x6f4   :  { %v12747_v34 = vpop.eup %12746 }
 0x6f5   :  { %v1158_v60 = vmul.f32 %v12747_v34, %v12739_v13 }
 0x6f6   :  { %v12749_v37 = vpop.eup %12748 }
 0x6f7   :  { %v1157_v40 = vmul.f32 %v12749_v37, %v12741_v21  ;;  %v1627_v37 = vadd.f32 %v11747_v31, %v13657_v56 }
 0x6f9   :  { %11687 = vmatprep.mubr.msk.f32.mxu1 %vm16552_vm1, %v1157_v40 }
 0x6fa   :  { %11688 = vmatmul.mubr.msk.f32.vlgmr.msra.gmra.mxu1 %vm16552_vm1, %v1158_v60 }
 0x6fb   :  { %11698 = vmatpush3.msra.mxu1 %v13590_v10  ;;  %v10188_v10 = vld [vmem:[%s16541_s8 + $0xe8] sm:$0xff] }
 0x6fc   :  { %11699 = vmatprep.subr.mxu1 %v1037_v35  ;;  %v12751_v39 = vpop.eup %12750 }
 0x6fd   :  { %11700 = vmatpush3.msra.mxu1 %v1037_v35  ;;  %v1352_v47 = vmul.f32 %v12751_v39, %v12743_v23  ;;  %v1621_v35 = vpop.f32.mrf.mxu0 }
 0x6fe   :  { %v12753_v44 = vpop.eup %12752  ;;  %11704 = vmatprep.subr.mxu1 %v10190_v42 }
 0x6ff   :  { %v1351_v46 = vmul.f32 %v12753_v44, %v12745_v27 }
 0x701   :  { %11701 = vmatprep.mubr.msk.f32.mxu1 %vm16552_vm1, %v1351_v46 }
 0x702   :  { %11702 = vmatmul.mubr.msk.f32.vlgmr.msra.gmra.mxu1 %vm16552_vm1, %v1352_v47 }
 0x703   :  { %11705 = vmatpush3.msra.mxu1 %v10190_v42  ;;  %11720 = vmatprep.mubr.msk.f32.mxu1 %vm16553_vm0, %v13519_v1 }
 0x704   :  { %11706 = vmatprep.subr.mxu1 %v10189_v55 }
 0x705   :  { %11707 = vmatpush3.msra.mxu1 %v10189_v55 }
 0x706   :  { %11708 = vmatprep.subr.mxu1 %v10188_v10 }
 0x707   :  { %11709 = vmatpush3.msra.mxu1 %v10188_v10 }
 0x708   :  { %11710 = vmatprep.subr.mxu1 %v10187_v49 }
 0x709   :  { %11711 = vmatpush3.msra.mxu1 %v10187_v49 }
 0x70a   :  { %11712 = vmatprep.subr.mxu1 %v10186_v50 }
 0x70b   :  { %11713 = vmatpush3.msra.mxu1 %v10186_v50 }
 0x70c   :  { %11714 = vmatprep.subr.mxu1 %v10185_v51 }
 0x70d   :  { %11715 = vmatpush3.msra.mxu1 %v10185_v51 }
 0x70e   :  { %11716 = vmatprep.subr.mxu1 %v10184_v52 }
 0x70f   :  { %11717 = vmatpush3.msra.mxu1 %v10184_v52 }
 0x710   :  { %11718 = vmatprep.subr.mxu1 %v10183_v58 }
 0x711   :  { %11719 = vmatpush3.msra.mxu1 %v10183_v58 }
 0x712   :  { %11721 = vmatmul.mubr.msk.f32.vlgmr.msra.gmra.mxu1 %vm16553_vm0, %v13526_v41  ;;  %11748 = vmatprep.subr.mxu1 %v10214_v62 }
 0x713   :  { %11723 = vmatprep.mubr.msk.f32.mxu1 %vm16553_vm0, %v13539_v45  ;;  %11749 = vmatpush3.msra.mxu1 %v10214_v62 }
 0x714   :  { %11750 = vmatprep.subr.mxu1 %v10213_v63 }
 0x715   :  { %11751 = vmatpush3.msra.mxu1 %v10213_v63 }
 0x716   :  { %11724 = vmatmul.mubr.msk.f32.gmra.mxu1 %vm16553_vm0, %v13552_v48  ;;  %11752 = vmatprep.subr.mxu1 %v10212_v4 }
 0x717   :  { %11753 = vmatpush3.msra.mxu1 %v10212_v4  ;;  %11764 = vmatprep.mubr.msk.f32.mxu1 %vm16553_vm0, %v13519_v1 }
 0x718   :  { %11754 = vmatprep.subr.mxu1 %v10211_v3 }
 0x719   :  { %11755 = vmatpush3.msra.mxu1 %v10211_v3 }
 0x71a   :  { %11756 = vmatprep.subr.mxu1 %v10210_v6 }
 0x71b   :  { %11757 = vmatpush3.msra.mxu1 %v10210_v6 }
 0x71c   :  { %11758 = vmatprep.subr.mxu1 %v10209_v7 }
 0x71d   :  { %11759 = vmatpush3.msra.mxu1 %v10209_v7 }
 0x71e   :  { %11760 = vmatprep.subr.mxu1 %v10208_v8 }
 0x71f   :  { %11761 = vmatpush3.msra.mxu1 %v10208_v8 }
 0x720   :  { %11762 = vmatprep.subr.mxu1 %v10207_v9 }
 0x721   :  { %11763 = vmatpush3.msra.mxu1 %v10207_v9 }
 0x722   :  { %11765 = vmatmul.mubr.msk.f32.vlgmr.msra.gmra.mxu1 %vm16553_vm0, %v13526_v41 }
 0x723   :  { %11767 = vmatprep.mubr.msk.f32.mxu1 %vm16553_vm0, %v13539_v45 }
 0x726   :  { %11768 = vmatmul.mubr.msk.f32.gmra.mxu1 %vm16553_vm0, %v13552_v48 }
 0x7ba   :  { %v13739_v11 = vpop.f32.mrf.mxu1 }
 0x7bc   :  { %v13741_v14 = vpop.f32.mrf.mxu1 }
 0x7c2   :  { %v13743_v15 = vpop.f32.mrf.mxu1 }
 0x7c4   :  { %v13748_v17 = vpop.f32.mrf.mxu1 }
 0x7d2   :  { %v11722_v19 = vpop.f32.mrf.mxu1 }
 0x7d3   :  { %v1519_v21 = vadd.f32 %v11722_v19, %v1446_v12 }
 0x7d4   :  { %v1513_v13 = vpop.f32.mrf.mxu1 }
 0x7d5   :  { %v1514_v20 = vadd.f32 %v1513_v13, %v1446_v12 }
 0x7d6   :  { %v11725_v22 = vpop.f32.mrf.mxu1 }
 0x7d7   :  { %v13752_v23 = vadd.f32 %v11725_v22, %v1446_v12  ;;  %11774 = vmatprep.mubr.msk.f32.mxu0 %vm16552_vm1, %v1514_v20 }
 0x7d8   :  { %11775 = vmatmul.mubr.msk.f32.vlgmr.msra.gmra.mxu0 %vm16552_vm1, %v1519_v21  ;;  %v1523_v27 = vpop.f32.mrf.mxu1  ;;  %v1622_v21 = vadd.f32 %v1621_v35, %v13657_v56  ;;  %v734_v56 = vld [vmem:[%s16544_s9 + $0x10] sm:$0xff] }
 0x7d9   :  { %v1524_v20 = vadd.f32 %v1523_v27, %v1446_v12  ;;  %v735_v12 = vld [vmem:[%s16544_s9 + $0x18] sm:$0xff] }
 0x7e2   :  { %v11766_v0 = vpop.f32.mrf.mxu1 }
 0x7e3   :  { %v1715_v30 = vadd.f32 %v11766_v0, %v1642_v25 }
 0x7e4   :  { %v1709_v2 = vpop.f32.mrf.mxu1 }
 0x7e5   :  { %v1710_v33 = vadd.f32 %v1709_v2, %v1642_v25  ;;  %11777 = vmatprep.subr.mxu0 %v1715_v30 }
 0x7e6   :  { %v11769_v34 = vpop.f32.mrf.mxu1  ;;  %11778 = vmatpush3.msra.mxu0 %v1715_v30 }
 0x7e7   :  { %v1725_v38 = vadd.f32 %v11769_v34, %v1642_v25  ;;  %11779 = vmatprep.subr.mxu0 %v1710_v33 }
 0x7e8   :  { %v1719_v40 = vpop.f32.mrf.mxu1  ;;  %11780 = vmatpush3.msra.mxu0 %v1710_v33 }
 0x7e9   :  { %v1720_v60 = vadd.f32 %v1719_v40, %v1642_v25  ;;  %11784 = vmatprep.subr.msk.mxu0 %vm16552_vm1, %v1627_v37  ;;  %11791 = vmatprep.subr.mxu1 %v1725_v38 }
 0x7ea   :  { %11792 = vmatpush3.msra.mxu1 %v1725_v38 }
 0x7eb   :  { %11793 = vmatprep.subr.mxu1 %v1720_v60 }
 0x7ec   :  { %11794 = vmatpush3.msra.mxu1 %v1720_v60 }
 0x898   :  { %v11776_v42 = vpop.f32.mrf.mxu0 }
 0x899   :  { %v1812_v39 = vadd.f32 %v11776_v42, %v13642_v5 }
 0x89a   :  { %v1806_v44 = vpop.f32.mrf.mxu0 }
 0x89b   :  { %v1807_v46 = vadd.f32 %v1806_v44, %v13642_v5  ;;  %v1818_v47 = vsel %vm16552_vm1, %v1812_v39, -inf }
 0x89c   :  { %1819 = vmax.xlane.f32.xlu1 %v1818_v47  ;;  %v10246_v47 = vld [vmem:[%s16541_s8 + $0x1b8] sm:$0xff] }
 0x89d   :  { %v1815_v55 = vsel %vm16552_vm1, %v1807_v46, -inf }
 0x89e   :  { %1816 = vmax.xlane.f32.xlu0 %v1815_v55  ;;  %v10245_v55 = vld [vmem:[%s16541_s8 + $0x1b0] sm:$0xff] }
 0x925   :  { %v1820_v10 = vpop.xlane.xlu1 %1819 }
 0x926   :  { %v1822_v49 = vsub.f32 %v1812_v39, %v1820_v10  ;;  %v10244_v10 = vld [vmem:[%s16541_s8 + $0x1a8] sm:$0xff] }
 0x927   :  { %v1817_v50 = vpop.xlane.xlu0 %1816 }
 0x928   :  { %v1825_v51 = vmul.f32 1.442695, %v1822_v49  ;;  %v1821_v52 = vsub.f32 %v1807_v46, %v1817_v50  ;;  %v733_v46 = vld [vmem:[%s16544_s9 + $0x8] sm:$0xff]  ;;  %v10243_v49 = vld [vmem:[%s16541_s8 + $0x1a0] sm:$0xff]  ;;  %v10242_v50 = vld [vmem:[%s16541_s8 + $0x198] sm:$0xff] }
 0x929   :  { %11808 = vmatprep.subr.mxu1 %v733_v46 }
 0x92a   :  { %12754 = vpow2.f32 %v1825_v51  ;;  %v1823_v58 = vmul.f32 1.442695, %v1821_v52 }
 0x92c   :  { %12756 = vpow2.f32 %v1823_v58 }
 0x937   :  { %v12755_v62 = vpop.eup %12754 }
 0x938   :  { %v1830_v63 = vsel %vm16552_vm1, %v12755_v62, 0.0 }
 0x939   :  { %v12757_v4 = vpop.eup %12756  ;;  %1831 = vadd.xlane.f32.xlu1 %v1830_v63 }
 0x93a   :  { %v1827_v3 = vsel %vm16552_vm1, %v12757_v4, 0.0 }
 0x93b   :  { %1828 = vadd.xlane.f32.xlu0 %v1827_v3  ;;  %v732_v3 = vld [vmem:[%s16544_s9] sm:$0xff] }
 0x9c2   :  { %v1832_v6 = vpop.xlane.xlu1 %1831 }
 0x9c3   :  { %12758 = vrcp.f32 %v1832_v6  ;;  %v10258_v6 = vld [vmem:[%s16541_s8 + $0x1f8] sm:$0xff] }
 0x9c4   :  { %v1829_v7 = vpop.xlane.xlu0 %1828 }
 0x9c5   :  { %12760 = vrcp.f32 %v1829_v7  ;;  %v10257_v7 = vld [vmem:[%s16541_s8 + $0x1f0] sm:$0xff] }
 0x9d0   :  { %v12759_v8 = vpop.eup %12758 }
 0x9d1   :  { %v1836_v13 = vmul.f32 %v12759_v8, %v12755_v62  ;;  %v10255_v8 = vld [vmem:[%s16541_s8 + $0x1e0] sm:$0xff] }
 0x9d2   :  { %v12761_v9 = vpop.eup %12760 }
 0x9d3   :  { %v1835_v19 = vmul.f32 %v12761_v9, %v12757_v4  ;;  %v10251_v9 = vld [vmem:[%s16541_s8 + $0x1c0] sm:$0xff] }
 0x9d5   :  { %11781 = vmatprep.mubr.msk.f32.mxu0 %vm16552_vm1, %v1835_v19  ;;  %v10241_v19 = vld [vmem:[%s16541_s8 + $0x190] sm:$0xff] }
 0x9d6   :  { %11782 = vmatmul.mubr.msk.f32.vlgmr.msra.gmra.mxu0 %vm16552_vm1, %v1836_v13  ;;  %v10240_v13 = vld [vmem:[%s16541_s8 + $0x188] sm:$0xff] }
 0x9d7   :  { %11785 = vmatpush3.xpose.msk.msra.mxu0 %vm16552_vm1, %v1627_v37  ;;  %11788 = vmatprep.mubr.msk.f32.mxu0 %vm16552_vm1, %v1524_v20  ;;  %v10239_v20 = vld [vmem:[%s16541_s8 + $0x180] sm:$0xff] }
 0x9d8   :  { %11786 = vmatprep.subr.msk.mxu0 %vm16552_vm1, %v1622_v21 }
 0x9db   :  { %11787 = vmatpush3.xpose.msk.msra.mxu0 %vm16552_vm1, %v1622_v21  ;;  %v10270_v21 = vld [vmem:[%s16541_s8 + $0x238] sm:$0xff] }
 0x9dc   :  { %11798 = vmatprep.subr.mxu0 %v735_v12 }
 0x9de   :  { %11789 = vmatmul.mubr.msk.f32.vlgmr.msra.gmra.mxu0 %vm16552_vm1, %v13752_v23 }
 0x9df   :  { %11799 = vmatpush3.msra.mxu0 %v735_v12 }
 0x9e0   :  { %11800 = vmatprep.subr.mxu0 %v734_v56 }
 0x9e1   :  { %11801 = vmatpush3.msra.mxu0 %v734_v56 }
 0x9e2   :  { %11818 = vmatprep.subr.mxu0 %v10246_v47 }
 0xa96   :  { %v11783_v22 = vpop.f32.mrf.mxu0 }
 0xa98   :  { %v1909_v25 = vpop.f32.mrf.mxu0 }
 0xa99   :  { %11802 = vmatprep.mubr.msk.f32.mxu0 %vm16552_vm1, %v1909_v25  ;;  %v10269_v25 = vld [vmem:[%s16541_s8 + $0x230] sm:$0xff] }
 0xa9a   :  { %11803 = vmatmul.mubr.msk.f32.vlgmr.msra.gmra.mxu0 %vm16552_vm1, %v11783_v22 }
 0xa9b   :  { %11819 = vmatpush3.msra.mxu0 %v10246_v47 }
 0xa9c   :  { %11820 = vmatprep.subr.mxu0 %v10245_v55 }
 0xa9d   :  { %11821 = vmatpush3.msra.mxu0 %v10245_v55  ;;  %v13931_v55 = vsub.s32 6, %v13275_v57 }
 0xa9e   :  { %v11790_v27 = vpop.f32.mrf.mxu0  ;;  %11822 = vmatprep.subr.mxu0 %v10244_v10 }
 0xa9f   :  { %v2002_v23 = vadd.f32 %v11790_v27, %v13649_v43  ;;  %11823 = vmatpush3.msra.mxu0 %v10244_v10  ;;  %v10268_v27 = vld [vmem:[%s16541_s8 + $0x228] sm:$0xff]  ;;  %16603 = vst [vmem:[#allocation9_spill] sm:$0xff] %v13931_v55 }
 0xaa0   :  { %v1996_v0 = vpop.f32.mrf.mxu0  ;;  %11824 = vmatprep.subr.mxu0 %v10243_v49 }
 0xaa1   :  { %v1997_v30 = vadd.f32 %v1996_v0, %v13649_v43  ;;  %v2008_v31 = vsel %vm16552_vm1, %v2002_v23, -inf  ;;  %11825 = vmatpush3.msra.mxu0 %v10243_v49  ;;  %v10267_v0 = vld [vmem:[%s16541_s8 + $0x220] sm:$0xff]  ;;  %v2314_v49 = vrot.slane %v13578_v53, %v13931_v55 }
 0xaa2   :  { %2009 = vmax.xlane.f32.xlu1 %v2008_v31  ;;  %11826 = vmatprep.subr.mxu0 %v10242_v50  ;;  %v13893_v31 = vsub.s32 7, %v13275_v57 }
 0xaa3   :  { %v2005_v2 = vsel %vm16552_vm1, %v1997_v30, -inf  ;;  %11827 = vmatpush3.msra.mxu0 %v10242_v50 }
 0xaa4   :  { %2006 = vmax.xlane.f32.xlu0 %v2005_v2  ;;  %11828 = vmatprep.subr.mxu0 %v10241_v19  ;;  %16602 = vst [vmem:[#allocation8_spill] sm:$0xff] %v13893_v31 }
 0xaa5   :  { %11829 = vmatpush3.msra.mxu0 %v10241_v19 }
 0xaa6   :  { %11830 = vmatprep.subr.mxu0 %v10240_v13 }
 0xaa7   :  { %11831 = vmatpush3.msra.mxu0 %v10240_v13 }
 0xaa8   :  { %11832 = vmatprep.subr.mxu0 %v10239_v20 }
 0xaa9   :  { %11833 = vmatpush3.msra.mxu0 %v10239_v20 }
 0xaaa   :  { %11862 = vmatprep.subr.mxu0 %v10270_v21 }
 0xb2b   :  { %v2010_v33 = vpop.xlane.xlu1 %2009 }
 0xb2c   :  { %v2012_v34 = vsub.f32 %v2002_v23, %v2010_v33  ;;  %v10265_v33 = vld [vmem:[%s16541_s8 + $0x210] sm:$0xff] }
 0xb2d   :  { %v2007_v37 = vpop.xlane.xlu0 %2006 }
 0xb2e   :  { %v2015_v38 = vmul.f32 1.442695, %v2012_v34  ;;  %v2011_v40 = vsub.f32 %v1997_v30, %v2007_v37  ;;  %v10266_v30 = vld [vmem:[%s16541_s8 + $0x218] sm:$0xff]  ;;  %v13902_v34 = vrot.slane %v13578_v53, %v13893_v31  ;;  %v10264_v37 = vld [vmem:[%s16541_s8 + $0x208] sm:$0xff] }
 0xb30   :  { %12762 = vpow2.f32 %v2015_v38  ;;  %v2013_v60 = vmul.f32 1.442695, %v2011_v40  ;;  %v10263_v40 = vld [vmem:[%s16541_s8 + $0x200] sm:$0xff] }
 0xb32   :  { %12764 = vpow2.f32 %v2013_v60 }
 0xb3d   :  { %v12763_v35 = vpop.eup %12762 }
 0xb3e   :  { %v2020_v42 = vsel %vm16552_vm1, %v12763_v35, 0.0 }
 0xb3f   :  { %v12765_v39 = vpop.eup %12764  ;;  %2021 = vadd.xlane.f32.xlu1 %v2020_v42 }
 0xb40   :  { %v2017_v44 = vsel %vm16552_vm1, %v12765_v39, 0.0 }
 0xb41   :  { %2018 = vadd.xlane.f32.xlu0 %v2017_v44 }
 0xb5a   :  { %v13924_v44 = vpop.f32.mrf.mxu0 }
 0xbc8   :  { %v2022_v51 = vpop.xlane.xlu1 %2021 }
 0xbc9   :  { %12766 = vrcp.f32 %v2022_v51 }
 0xbca   :  { %v2019_v52 = vpop.xlane.xlu0 %2018 }
 0xbcb   :  { %12768 = vrcp.f32 %v2019_v52 }
 0xbd6   :  { %v12767_v58 = vpop.eup %12766 }
 0xbd7   :  { %v2026_v4 = vmul.f32 %v12767_v58, %v12763_v35 }
 0xbd8   :  { %v12769_v62 = vpop.eup %12768 }
 0xbd9   :  { %v2025_v63 = vmul.f32 %v12769_v62, %v12765_v39 }
 0xbdb   :  { %11795 = vmatprep.mubr.msk.f32.mxu1 %vm16552_vm1, %v2025_v63 }
 0xbdc   :  { %11796 = vmatmul.mubr.msk.f32.vlgmr.msra.gmra.mxu1 %vm16552_vm1, %v2026_v4 }
 0xbdd   :  { %11809 = vmatpush3.msra.mxu1 %v733_v46  ;;  %11812 = vmatprep.mubr.msk.f32.mxu1 %vm16552_vm1, %v13741_v14  ;;  %v10256_v14 = vld [vmem:[%s16541_s8 + $0x1e8] sm:$0xff]  ;;  %v13926_v46 = vpop.f32.mrf.mxu0 }
 0xbde   :  { %11810 = vmatprep.subr.mxu1 %v732_v3 }
 0xbdf   :  { %11811 = vmatpush3.msra.mxu1 %v732_v3 }
 0xbe0   :  { %11840 = vmatprep.subr.mxu1 %v10258_v6  ;;  %11813 = vmatmul.mubr.msk.f32.vlgmr.msra.gmra.mxu1 %vm16552_vm1, %v13739_v11  ;;  %v10254_v11 = vld [vmem:[%s16541_s8 + $0x1d8] sm:$0xff] }
 0xbe1   :  { %11841 = vmatpush3.msra.mxu1 %v10258_v6  ;;  %11815 = vmatprep.mubr.msk.f32.mxu1 %vm16552_vm1, %v13748_v17  ;;  %v10253_v17 = vld [vmem:[%s16541_s8 + $0x1d0] sm:$0xff]  ;;  %v13944_v6 = vld [vmem:[%s16542_s5 + $0x8] sm:$0xf] }
 0xbe2   :  { %11842 = vmatprep.subr.mxu1 %v10257_v7  ;;  %v2510_v53 = vrot.slane %v13944_v6, %v13278_v59 }
 0xbe3   :  { %11843 = vmatpush3.msra.mxu1 %v10257_v7 }
 0xbe4   :  { %11844 = vmatprep.subr.mxu1 %v10256_v14  ;;  %11816 = vmatmul.mubr.msk.f32.gmra.mxu1 %vm16552_vm1, %v13743_v15  ;;  %v10252_v15 = vld [vmem:[%s16541_s8 + $0x1c8] sm:$0xff] }
 0xbe5   :  { %11845 = vmatpush3.msra.mxu1 %v10256_v14  ;;  %11856 = vmatprep.mubr.msk.f32.mxu1 %vm16553_vm0, %v13519_v1 }
 0xbe6   :  { %11846 = vmatprep.subr.mxu1 %v10255_v8 }
 0xbe7   :  { %11847 = vmatpush3.msra.mxu1 %v10255_v8 }
 0xbe8   :  { %11848 = vmatprep.subr.mxu1 %v10254_v11 }
 0xbe9   :  { %11849 = vmatpush3.msra.mxu1 %v10254_v11 }
 0xbea   :  { %11850 = vmatprep.subr.mxu1 %v10253_v17 }
 0xbeb   :  { %11851 = vmatpush3.msra.mxu1 %v10253_v17 }
 0xbec   :  { %11852 = vmatprep.subr.mxu1 %v10252_v15 }
 0xbed   :  { %11853 = vmatpush3.msra.mxu1 %v10252_v15 }
 0xbee   :  { %11854 = vmatprep.subr.mxu1 %v10251_v9 }
 0xbef   :  { %11855 = vmatpush3.msra.mxu1 %v10251_v9 }
 0xbf0   :  { %11857 = vmatmul.mubr.msk.f32.vlgmr.msra.gmra.mxu1 %vm16553_vm0, %v13526_v41 }
 0xbf1   :  { %11859 = vmatprep.mubr.msk.f32.mxu1 %vm16553_vm0, %v13539_v45 }
 0xbf4   :  { %11860 = vmatmul.mubr.msk.f32.gmra.mxu1 %vm16553_vm0, %v13552_v48 }
 0xc9c   :  { %v11797_v12 = vpop.f32.mrf.mxu1 }
 0xc9e   :  { %v2099_v56 = vpop.f32.mrf.mxu1 }
 0xc9f   :  { %11805 = vmatprep.mubr.msk.f32.mxu0 %vm16552_vm1, %v2099_v56 }
 0xca0   :  { %11806 = vmatmul.mubr.msk.f32.gmra.mxu0 %vm16552_vm1, %v11797_v12  ;;  %v13868_v22 = vpop.f32.mrf.mxu1 }
 0xca1   :  { %11834 = vmatprep.mubr.msk.f32.mxu0 %vm16553_vm0, %v13519_v1 }
 0xca2   :  { %v13880_v23 = vpop.f32.mrf.mxu1 }
 0xca4   :  { %11835 = vmatmul.mubr.msk.f32.vlgmr.msra.gmra.mxu0 %vm16553_vm0, %v13526_v41  ;;  %v13895_v2 = vpop.f32.mrf.mxu1 }
 0xca5   :  { %11863 = vmatpush3.msra.mxu0 %v10270_v21  ;;  %11837 = vmatprep.mubr.msk.f32.mxu0 %vm16553_vm0, %v13539_v45 }
 0xca6   :  { %11864 = vmatprep.subr.mxu0 %v10269_v25  ;;  %v13907_v38 = vpop.f32.mrf.mxu1 }
 0xca7   :  { %11865 = vmatpush3.msra.mxu0 %v10269_v25 }
 0xca8   :  { %11866 = vmatprep.subr.mxu0 %v10268_v27  ;;  %11838 = vmatmul.mubr.msk.f32.gmra.mxu0 %vm16553_vm0, %v13552_v48 }
 0xca9   :  { %11867 = vmatpush3.msra.mxu0 %v10268_v27  ;;  %11878 = vmatprep.mubr.msk.f32.mxu0 %vm16553_vm0, %v13519_v1 }
 0xcaa   :  { %11868 = vmatprep.subr.mxu0 %v10267_v0 }
 0xcab   :  { %11869 = vmatpush3.msra.mxu0 %v10267_v0 }
 0xcac   :  { %11870 = vmatprep.subr.mxu0 %v10266_v30 }
 0xcad   :  { %11871 = vmatpush3.msra.mxu0 %v10266_v30 }
 0xcae   :  { %11872 = vmatprep.subr.mxu0 %v10265_v33 }
 0xcaf   :  { %11873 = vmatpush3.msra.mxu0 %v10265_v33 }
 0xcb0   :  { %v11858_v60 = vpop.f32.mrf.mxu1  ;;  %11874 = vmatprep.subr.mxu0 %v10264_v37 }
 0xcb1   :  { %v2485_v35 = vadd.f32 %v11858_v60, %v13902_v34  ;;  %11875 = vmatpush3.msra.mxu0 %v10264_v37 }
 0xcb2   :  { %v2479_v42 = vpop.f32.mrf.mxu1  ;;  %11876 = vmatprep.subr.mxu0 %v10263_v40 }
 0xcb3   :  { %v2480_v39 = vadd.f32 %v2479_v42, %v13902_v34  ;;  %11877 = vmatpush3.msra.mxu0 %v10263_v40  ;;  %11884 = vmatprep.subr.msk.mxu1 %vm16552_vm1, %v2485_v35 }
 0xcb4   :  { %11879 = vmatmul.mubr.msk.f32.vlgmr.msra.gmra.mxu0 %vm16553_vm0, %v13526_v41  ;;  %11885 = vmatpush3.xpose.msk.msra.mxu1 %vm16552_vm1, %v2485_v35  ;;  %v11861_v8 = vpop.f32.mrf.mxu1 }
 0xcb5   :  { %11881 = vmatprep.mubr.msk.f32.mxu0 %vm16553_vm0, %v13539_v45  ;;  %11886 = vmatprep.subr.msk.mxu1 %vm16552_vm1, %v2480_v39  ;;  %v2495_v9 = vadd.f32 %v11861_v8, %v13902_v34  ;;  %v737_v8 = vld [vmem:[%s16544_s9 + $0x28] sm:$0xff] }
 0xcb6   :  { %v2489_v21 = vpop.f32.mrf.mxu1 }
 0xcb8   :  { %11882 = vmatmul.mubr.msk.f32.gmra.mxu0 %vm16553_vm0, %v13552_v48  ;;  %11887 = vmatpush3.xpose.msk.msra.mxu1 %vm16552_vm1, %v2480_v39 }
 0xd60   :  { %v13928_v47 = vpop.f32.mrf.mxu0 }
 0xd62   :  { %v13933_v10 = vpop.f32.mrf.mxu0 }
 0xd64   :  { %v11836_v50 = vpop.f32.mrf.mxu0 }
 0xd65   :  { %v2387_v58 = vadd.f32 %v11836_v50, %v2314_v49 }
 0xd66   :  { %v2381_v51 = vpop.f32.mrf.mxu0 }
 0xd67   :  { %v2382_v52 = vadd.f32 %v2381_v51, %v2314_v49 }
 0xd68   :  { %v11839_v62 = vpop.f32.mrf.mxu0 }
 0xd69   :  { %v13937_v63 = vadd.f32 %v11839_v62, %v2314_v49  ;;  %11888 = vmatprep.mubr.msk.f32.mxu1 %vm16552_vm1, %v2382_v52 }
 0xd6a   :  { %v2391_v4 = vpop.f32.mrf.mxu0  ;;  %11889 = vmatmul.mubr.msk.f32.vlgmr.msra.gmra.mxu1 %vm16552_vm1, %v2387_v58 }
 0xd6b   :  { %v2392_v3 = vadd.f32 %v2391_v4, %v2314_v49 }
 0xd74   :  { %v11880_v7 = vpop.f32.mrf.mxu0 }
 0xd75   :  { %v2583_v14 = vadd.f32 %v11880_v7, %v2510_v53 }
 0xd76   :  { %v2577_v11 = vpop.f32.mrf.mxu0 }
 0xd77   :  { %v2578_v17 = vadd.f32 %v2577_v11, %v2510_v53  ;;  %11891 = vmatprep.subr.mxu1 %v2583_v14 }
 0xd78   :  { %v11883_v15 = vpop.f32.mrf.mxu0  ;;  %11892 = vmatpush3.msra.mxu1 %v2583_v14  ;;  %v2490_v14 = vadd.f32 %v2489_v21, %v13902_v34  ;;  %v736_v34 = vld [vmem:[%s16544_s9 + $0x20] sm:$0xff] }
 0xd79   :  { %v2593_v19 = vadd.f32 %v11883_v15, %v2510_v53  ;;  %11893 = vmatprep.subr.mxu1 %v2578_v17 }
 0xd7a   :  { %v2587_v13 = vpop.f32.mrf.mxu0  ;;  %11894 = vmatpush3.msra.mxu1 %v2578_v17 }
 0xd7b   :  { %v2588_v20 = vadd.f32 %v2587_v13, %v2510_v53  ;;  %11898 = vmatprep.subr.msk.mxu1 %vm16552_vm1, %v2495_v9  ;;  %11905 = vmatprep.subr.mxu0 %v2593_v19 }
 0xd7c   :  { %11906 = vmatpush3.msra.mxu0 %v2593_v19 }
 0xd7d   :  { %11907 = vmatprep.subr.mxu0 %v2588_v20 }
 0xd7e   :  { %11908 = vmatpush3.msra.mxu0 %v2588_v20 }
 0xe2a   :  { %v11890_v12 = vpop.f32.mrf.mxu1 }
 0xe2b   :  { %v2680_v56 = vadd.f32 %v11890_v12, %v13642_v5 }
 0xe2c   :  { %v2674_v25 = vpop.f32.mrf.mxu1 }
 0xe2d   :  { %v2675_v27 = vadd.f32 %v2674_v25, %v13642_v5  ;;  %v2686_v0 = vsel %vm16552_vm1, %v2680_v56, -inf }
 0xe2e   :  { %2687 = vmax.xlane.f32.xlu1 %v2686_v0 }
 0xe2f   :  { %v2683_v30 = vsel %vm16552_vm1, %v2675_v27, -inf }
 0xe30   :  { %2684 = vmax.xlane.f32.xlu0 %v2683_v30 }
 0xeb7   :  { %v2688_v33 = vpop.xlane.xlu1 %2687 }
 0xeb8   :  { %v2690_v37 = vsub.f32 %v2680_v56, %v2688_v33 }
 0xeb9   :  { %v2685_v40 = vpop.xlane.xlu0 %2684 }
 0xeba   :  { %v2693_v60 = vmul.f32 1.442695, %v2690_v37  ;;  %v2689_v35 = vsub.f32 %v2675_v27, %v2685_v40  ;;  %v2289_v40 = vadd.f32 %v13868_v22, %v13924_v44  ;;  %v10308_v22 = vld [vmem:[%s16541_s8 + $0x2a8] sm:$0xff]  ;;  %v10307_v44 = vld [vmem:[%s16541_s8 + $0x2a0] sm:$0xff] }
 0xebc   :  { %12770 = vpow2.f32 %v2693_v60  ;;  %v2691_v42 = vmul.f32 1.442695, %v2689_v35  ;;  %v10298_v35 = vld [vmem:[%s16541_s8 + $0x278] sm:$0xff] }
 0xebd   :  { %11922 = vmatprep.subr.mxu0 %v10298_v35 }
 0xebe   :  { %12772 = vpow2.f32 %v2691_v42 }
 0xec9   :  { %v12771_v39 = vpop.eup %12770 }
 0xeca   :  { %v2698_v49 = vsel %vm16552_vm1, %v12771_v39, 0.0 }
 0xecb   :  { %v12773_v50 = vpop.eup %12772  ;;  %2699 = vadd.xlane.f32.xlu1 %v2698_v49  ;;  %v10309_v49 = vld [vmem:[%s16541_s8 + $0x2b0] sm:$0xff] }
 0xecc   :  { %v2695_v51 = vsel %vm16552_vm1, %v12773_v50, 0.0 }
 0xecd   :  { %2696 = vadd.xlane.f32.xlu0 %v2695_v51 }
 0xf54   :  { %v2700_v52 = vpop.xlane.xlu1 %2699 }
 0xf55   :  { %12774 = vrcp.f32 %v2700_v52 }
 0xf56   :  { %v2697_v58 = vpop.xlane.xlu0 %2696 }
 0xf57   :  { %12776 = vrcp.f32 %v2697_v58 }
 0xf62   :  { %v12775_v62 = vpop.eup %12774 }
 0xf63   :  { %v2704_v7 = vmul.f32 %v12775_v62, %v12771_v39  ;;  %v10310_v39 = vld [vmem:[%s16541_s8 + $0x2b8] sm:$0xff] }
 0xf64   :  { %v12777_v4 = vpop.eup %12776 }
 0xf65   :  { %v2703_v53 = vmul.f32 %v12777_v4, %v12773_v50 }
 0xf67   :  { %11895 = vmatprep.mubr.msk.f32.mxu1 %vm16552_vm1, %v2703_v53  ;;  %v10297_v53 = vld [vmem:[%s16541_s8 + $0x270] sm:$0xff] }
 0xf68   :  { %11896 = vmatmul.mubr.msk.f32.vlgmr.msra.gmra.mxu1 %vm16552_vm1, %v2704_v7  ;;  %v10296_v7 = vld [vmem:[%s16541_s8 + $0x268] sm:$0xff] }
 0xf69   :  { %11899 = vmatpush3.xpose.msk.msra.mxu1 %vm16552_vm1, %v2495_v9  ;;  %11902 = vmatprep.mubr.msk.f32.mxu1 %vm16552_vm1, %v2392_v3 }
 0xf6a   :  { %11900 = vmatprep.subr.msk.mxu1 %vm16552_vm1, %v2490_v14 }
 0xf6d   :  { %11901 = vmatpush3.xpose.msk.msra.mxu1 %vm16552_vm1, %v2490_v14  ;;  %v10295_v14 = vld [vmem:[%s16541_s8 + $0x260] sm:$0xff] }
 0xf6e   :  { %11912 = vmatprep.subr.mxu1 %v737_v8 }
 0xf70   :  { %11903 = vmatmul.mubr.msk.f32.vlgmr.msra.gmra.mxu1 %vm16552_vm1, %v13937_v63 }
 0xf71   :  { %11913 = vmatpush3.msra.mxu1 %v737_v8  ;;  %v10294_v8 = vld [vmem:[%s16541_s8 + $0x258] sm:$0xff] }
 0xf72   :  { %11914 = vmatprep.subr.mxu1 %v736_v34 }
 0xf73   :  { %11915 = vmatpush3.msra.mxu1 %v736_v34  ;;  %v10293_v34 = vld [vmem:[%s16541_s8 + $0x250] sm:$0xff] }
 0xf74   :  { %11944 = vmatprep.subr.mxu1 %v10310_v39 }
0x1028   :  { %v11897_v3 = vpop.f32.mrf.mxu1 }
0x102a   :  { %v2777_v11 = vpop.f32.mrf.mxu1 }
0x102b   :  { %11916 = vmatprep.mubr.msk.f32.mxu1 %vm16552_vm1, %v2777_v11  ;;  %v10291_v11 = vld [vmem:[%s16541_s8 + $0x240] sm:$0xff] }
0x102c   :  { %11917 = vmatmul.mubr.msk.f32.vlgmr.msra.gmra.mxu1 %vm16552_vm1, %v11897_v3  ;;  %v10292_v3 = vld [vmem:[%s16541_s8 + $0x248] sm:$0xff] }
0x102d   :  { %11945 = vmatpush3.msra.mxu1 %v10310_v39 }
0x102e   :  { %11946 = vmatprep.subr.mxu1 %v10309_v49 }
0x102f   :  { %11947 = vmatpush3.msra.mxu1 %v10309_v49 }
0x1030   :  { %v11904_v17 = vpop.f32.mrf.mxu1  ;;  %11948 = vmatprep.subr.mxu1 %v10308_v22 }
0x1031   :  { %v2870_v63 = vadd.f32 %v11904_v17, %v13649_v43  ;;  %11949 = vmatpush3.msra.mxu1 %v10308_v22  ;;  %v10322_v17 = vld [vmem:[%s16541_s8 + $0x2f8] sm:$0xff] }
0x1032   :  { %v2864_v15 = vpop.f32.mrf.mxu1  ;;  %11950 = vmatprep.subr.mxu1 %v10307_v44 }
0x1033   :  { %v2865_v9 = vadd.f32 %v2864_v15, %v13649_v43  ;;  %v2876_v19 = vsel %vm16552_vm1, %v2870_v63, -inf  ;;  %11951 = vmatpush3.msra.mxu1 %v10307_v44  ;;  %v10320_v15 = vld [vmem:[%s16541_s8 + $0x2e8] sm:$0xff] }
0x1034   :  { %2877 = vmax.xlane.f32.xlu1 %v2876_v19  ;;  %v10318_v19 = vld [vmem:[%s16541_s8 + $0x2d8] sm:$0xff] }
0x1035   :  { %v2873_v13 = vsel %vm16552_vm1, %v2865_v9, -inf }
0x1036   :  { %2874 = vmax.xlane.f32.xlu0 %v2873_v13  ;;  %v10317_v13 = vld [vmem:[%s16541_s8 + $0x2d0] sm:$0xff] }
0x10bd   :  { %v2878_v20 = vpop.xlane.xlu1 %2877 }
0x10be   :  { %v2880_v21 = vsub.f32 %v2870_v63, %v2878_v20  ;;  %v10321_v63 = vld [vmem:[%s16541_s8 + $0x2f0] sm:$0xff]  ;;  %v10316_v20 = vld [vmem:[%s16541_s8 + $0x2c8] sm:$0xff] }
0x10bf   :  { %v2875_v12 = vpop.xlane.xlu0 %2874 }
0x10c0   :  { %v2883_v56 = vmul.f32 1.442695, %v2880_v21  ;;  %v2879_v25 = vsub.f32 %v2865_v9, %v2875_v12  ;;  %v10319_v9 = vld [vmem:[%s16541_s8 + $0x2e0] sm:$0xff]  ;;  %v10306_v12 = vld [vmem:[%s16541_s8 + $0x298] sm:$0xff] }
0x10c1   :  { %v10315_v21 = vld [vmem:[%s16541_s8 + $0x2c0] sm:$0xff]  ;;  %11952 = vmatprep.subr.mxu1 %v10306_v12 }
0x10c2   :  { %12778 = vpow2.f32 %v2883_v56  ;;  %v2881_v27 = vmul.f32 1.442695, %v2879_v25  ;;  %11953 = vmatpush3.msra.mxu1 %v10306_v12  ;;  %v10305_v56 = vld [vmem:[%s16541_s8 + $0x290] sm:$0xff]  ;;  %v10304_v25 = vld [vmem:[%s16541_s8 + $0x288] sm:$0xff] }
0x10c3   :  { %11954 = vmatprep.subr.mxu1 %v10305_v56 }
0x10c4   :  { %12780 = vpow2.f32 %v2881_v27  ;;  %11955 = vmatpush3.msra.mxu1 %v10305_v56  ;;  %v10303_v27 = vld [vmem:[%s16541_s8 + $0x280] sm:$0xff] }
0x10c5   :  { %11956 = vmatprep.subr.mxu1 %v10304_v25 }
0x10c6   :  { %11957 = vmatpush3.msra.mxu1 %v10304_v25 }
0x10c7   :  { %11958 = vmatprep.subr.mxu1 %v10303_v27 }
0x10c8   :  { %11959 = vmatpush3.msra.mxu1 %v10303_v27 }
0x10cf   :  { %v12779_v0 = vpop.eup %12778 }
0x10d0   :  { %v2888_v30 = vsel %vm16552_vm1, %v12779_v0, 0.0 }
0x10d1   :  { %v12781_v33 = vpop.eup %12780  ;;  %2889 = vadd.xlane.f32.xlu1 %v2888_v30 }
0x10d2   :  { %v2885_v37 = vsel %vm16552_vm1, %v12781_v33, 0.0 }
0x10d3   :  { %2886 = vadd.xlane.f32.xlu0 %v2885_v37 }
0x10ec   :  { %v11918_v60 = vpop.f32.mrf.mxu1 }
0x10ed   :  { %v13984_v42 = vadd.f32 %v11918_v60, %v2289_v40 }
0x115a   :  { %v2890_v50 = vpop.xlane.xlu1 %2889 }
0x115b   :  { %12782 = vrcp.f32 %v2890_v50 }
0x115c   :  { %v2887_v51 = vpop.xlane.xlu0 %2886 }
0x115d   :  { %12784 = vrcp.f32 %v2887_v51 }
0x1168   :  { %v12783_v52 = vpop.eup %12782 }
0x1169   :  { %v2894_v4 = vmul.f32 %v12783_v52, %v12779_v0 }
0x116a   :  { %v12785_v58 = vpop.eup %12784 }
0x116b   :  { %v2893_v62 = vmul.f32 %v12785_v58, %v12781_v33  ;;  %v3089_v33 = vrot.slane %v13944_v6, %v13509_v26 }
0x116d   :  { %11909 = vmatprep.mubr.msk.f32.mxu0 %vm16552_vm1, %v2893_v62 }
0x116e   :  { %11910 = vmatmul.mubr.msk.f32.vlgmr.msra.gmra.mxu0 %vm16552_vm1, %v2894_v4  ;;  %v14092_v4 = vpop.f32.mrf.mxu1 }
0x116f   :  { %11923 = vmatpush3.msra.mxu0 %v10298_v35  ;;  %11938 = vmatprep.mubr.msk.f32.mxu0 %vm16553_vm0, %v13519_v1 }
0x1170   :  { %11924 = vmatprep.subr.mxu0 %v10297_v53 }
0x1171   :  { %11925 = vmatpush3.msra.mxu0 %v10297_v53  ;;  %v2299_v53 = vadd.f32 %v13895_v2, %v13928_v47 }
0x1172   :  { %11926 = vmatprep.subr.mxu0 %v10296_v7 }
0x1173   :  { %11927 = vmatpush3.msra.mxu0 %v10296_v7 }
0x1174   :  { %11928 = vmatprep.subr.mxu0 %v10295_v14 }
0x1175   :  { %11929 = vmatpush3.msra.mxu0 %v10295_v14  ;;  %v2294_v14 = vadd.f32 %v13907_v38, %v13933_v10 }
0x1176   :  { %11930 = vmatprep.subr.mxu0 %v10294_v8 }
0x1177   :  { %11931 = vmatpush3.msra.mxu0 %v10294_v8 }
0x1178   :  { %11932 = vmatprep.subr.mxu0 %v10293_v34 }
0x1179   :  { %11933 = vmatpush3.msra.mxu0 %v10293_v34  ;;  %v3187_v34 = vrot.slane %v13944_v6, %v13403_v54 }
0x117a   :  { %11934 = vmatprep.subr.mxu0 %v10292_v3 }
0x117b   :  { %11935 = vmatpush3.msra.mxu0 %v10292_v3 }
0x117c   :  { %11936 = vmatprep.subr.mxu0 %v10291_v11 }
0x117d   :  { %11937 = vmatpush3.msra.mxu0 %v10291_v11 }
0x117e   :  { %11939 = vmatmul.mubr.msk.f32.vlgmr.msra.gmra.mxu0 %vm16553_vm0, %v13526_v41  ;;  %11966 = vmatprep.subr.mxu0 %v10322_v17 }
0x117f   :  { %11941 = vmatprep.mubr.msk.f32.mxu0 %vm16553_vm0, %v13539_v45  ;;  %11967 = vmatpush3.msra.mxu0 %v10322_v17 }
0x1180   :  { %11968 = vmatprep.subr.mxu0 %v10321_v63 }
0x1181   :  { %11969 = vmatpush3.msra.mxu0 %v10321_v63 }
0x1182   :  { %11942 = vmatmul.mubr.msk.f32.gmra.mxu0 %vm16553_vm0, %v13552_v48  ;;  %11970 = vmatprep.subr.mxu0 %v10320_v15 }
0x1183   :  { %11971 = vmatpush3.msra.mxu0 %v10320_v15  ;;  %11982 = vmatprep.mubr.msk.f32.mxu0 %vm16553_vm0, %v13519_v1 }
0x1184   :  { %11972 = vmatprep.subr.mxu0 %v10319_v9 }
0x1185   :  { %11973 = vmatpush3.msra.mxu0 %v10319_v9 }
0x1186   :  { %11974 = vmatprep.subr.mxu0 %v10318_v19 }
0x1187   :  { %11975 = vmatpush3.msra.mxu0 %v10318_v19 }
0x1188   :  { %11976 = vmatprep.subr.mxu0 %v10317_v13 }
0x1189   :  { %11977 = vmatpush3.msra.mxu0 %v10317_v13 }
0x118a   :  { %11978 = vmatprep.subr.mxu0 %v10316_v20 }
0x118b   :  { %11979 = vmatpush3.msra.mxu0 %v10316_v20 }
0x118c   :  { %11980 = vmatprep.subr.mxu0 %v10315_v21 }
0x118d   :  { %11981 = vmatpush3.msra.mxu0 %v10315_v21 }
0x118e   :  { %11983 = vmatmul.mubr.msk.f32.vlgmr.msra.gmra.mxu0 %vm16553_vm0, %v13526_v41 }
0x118f   :  { %11985 = vmatprep.mubr.msk.f32.mxu0 %vm16553_vm0, %v13539_v45 }
0x1192   :  { %11986 = vmatmul.mubr.msk.f32.gmra.mxu0 %vm16553_vm0, %v13552_v48 }
0x122e   :  { %v11911_v0 = vpop.f32.mrf.mxu0 }
0x1230   :  { %v2967_v30 = vpop.f32.mrf.mxu0 }
0x1231   :  { %11919 = vmatprep.mubr.msk.f32.mxu1 %vm16552_vm1, %v2967_v30 }
0x1232   :  { %11920 = vmatmul.mubr.msk.f32.gmra.mxu1 %vm16552_vm1, %v11911_v0 }
0x1233   :  { %11960 = vmatprep.mubr.msk.f32.mxu1 %vm16553_vm0, %v13519_v1 }
0x1236   :  { %11961 = vmatmul.mubr.msk.f32.vlgmr.msra.gmra.mxu1 %vm16553_vm0, %v13526_v41 }
0x1237   :  { %11963 = vmatprep.mubr.msk.f32.mxu1 %vm16553_vm0, %v13539_v45  ;;  %v3285_v45 = vrot.slane %v13944_v6, %v13746_v16 }
0x123a   :  { %11964 = vmatmul.mubr.msk.f32.gmra.mxu1 %vm16553_vm0, %v13552_v48 }
0x123e   :  { %v11940_v37 = vpop.f32.mrf.mxu0 }
0x123f   :  { %v3162_v40 = vadd.f32 %v11940_v37, %v3089_v33 }
0x1240   :  { %v3156_v60 = vpop.f32.mrf.mxu0 }
0x1241   :  { %v3157_v35 = vadd.f32 %v3156_v60, %v3089_v33 }
0x1242   :  { %v11943_v39 = vpop.f32.mrf.mxu0 }
0x1243   :  { %v14085_v49 = vadd.f32 %v11943_v39, %v3089_v33  ;;  %11992 = vmatprep.mubr.msk.f32.mxu1 %vm16552_vm1, %v3157_v35 }
0x1244   :  { %v3166_v1 = vpop.f32.mrf.mxu0 }
0x1245   :  { %v14088_v41 = vadd.f32 %v3166_v1, %v3089_v33 }
0x124e   :  { %v11984_v22 = vpop.f32.mrf.mxu0 }
0x124f   :  { %v3358_v48 = vadd.f32 %v11984_v22, %v3285_v45 }
0x1250   :  { %v3352_v44 = vpop.f32.mrf.mxu0 }
0x1251   :  { %v3353_v50 = vadd.f32 %v3352_v44, %v3285_v45 }
0x1252   :  { %v11987_v51 = vpop.f32.mrf.mxu0 }
0x1253   :  { %v3368_v52 = vadd.f32 %v11987_v51, %v3285_v45  ;;  %v738_v51 = vld [vmem:[%s16544_s9 + $0x30] sm:$0xff] }
0x1254   :  { %v3362_v58 = vpop.f32.mrf.mxu0 }
0x1255   :  { %v3363_v62 = vadd.f32 %v3362_v58, %v3285_v45  ;;  %12009 = vmatprep.subr.mxu0 %v3368_v52 }
0x1256   :  { %12010 = vmatpush3.msra.mxu0 %v3368_v52 }
0x1257   :  { %12011 = vmatprep.subr.mxu0 %v3363_v62 }
0x1258   :  { %12012 = vmatpush3.msra.mxu0 %v3363_v62 }
0x12f2   :  { %v11921_v7 = vpop.f32.mrf.mxu1 }
0x12f3   :  { %v14098_v8 = vadd.f32 %v11921_v7, %v2299_v53 }
0x12f4   :  { %v3064_v3 = vpop.f32.mrf.mxu1 }
0x12f5   :  { %v14102_v11 = vadd.f32 %v3064_v3, %v2294_v14 }
0x12f6   :  { %v11962_v17 = vpop.f32.mrf.mxu1 }
0x12f7   :  { %v3260_v63 = vadd.f32 %v11962_v17, %v3187_v34 }
0x12f8   :  { %v3254_v15 = vpop.f32.mrf.mxu1 }
0x12f9   :  { %v3255_v9 = vadd.f32 %v3254_v15, %v3187_v34  ;;  %11988 = vmatprep.subr.msk.mxu1 %vm16552_vm1, %v3260_v63 }
0x12fa   :  { %11989 = vmatpush3.xpose.msk.msra.mxu1 %vm16552_vm1, %v3260_v63  ;;  %v11965_v2 = vpop.f32.mrf.mxu1 }
0x12fb   :  { %11990 = vmatprep.subr.msk.mxu1 %vm16552_vm1, %v3255_v9  ;;  %v3270_v38 = vadd.f32 %v11965_v2, %v3187_v34 }
0x12fc   :  { %v3264_v47 = vpop.f32.mrf.mxu1 }
0x12fd   :  { %v3265_v44 = vadd.f32 %v3264_v47, %v3187_v34 }
0x12fe   :  { %11991 = vmatpush3.xpose.msk.msra.mxu1 %vm16552_vm1, %v3255_v9 }
0x12ff   :  { %11995 = vmatprep.subr.mxu1 %v3358_v48 }
0x1301   :  { %11993 = vmatmul.mubr.msk.f32.vlgmr.msra.gmra.mxu1 %vm16552_vm1, %v3162_v40 }
0x1302   :  { %11996 = vmatpush3.msra.mxu1 %v3358_v48 }
0x1303   :  { %11997 = vmatprep.subr.mxu1 %v3353_v50 }
0x1304   :  { %11998 = vmatpush3.msra.mxu1 %v3353_v50  ;;  %v739_v50 = vld [vmem:[%s16544_s9 + $0x38] sm:$0xff] }
0x1305   :  { %12002 = vmatprep.subr.msk.mxu1 %vm16552_vm1, %v3270_v38 }
0x13c1   :  { %v11994_v10 = vpop.f32.mrf.mxu1 }
0x13c2   :  { %v3455_v6 = vadd.f32 %v11994_v10, %v13642_v5 }
0x13c3   :  { %v3449_v19 = vpop.f32.mrf.mxu1 }
0x13c4   :  { %v3450_v13 = vadd.f32 %v3449_v19, %v13642_v5  ;;  %v3461_v20 = vsel %vm16552_vm1, %v3455_v6, -inf }
0x13c5   :  { %3462 = vmax.xlane.f32.xlu1 %v3461_v20 }
0x13c6   :  { %v3458_v21 = vsel %vm16552_vm1, %v3450_v13, -inf }
0x13c7   :  { %3459 = vmax.xlane.f32.xlu0 %v3458_v21  ;;  %v14146_v21 = vld [vmem:[%s16538_s3 + $0x8] sm:$0xff] }
0x144e   :  { %v3463_v12 = vpop.xlane.xlu1 %3462 }
0x144f   :  { %v3465_v56 = vsub.f32 %v3455_v6, %v3463_v12  ;;  %v2284_v6 = vadd.f32 %v13880_v23, %v13926_v46  ;;  %v3859_v12 = vrot.slane %v14146_v21, %v13403_v54 }
0x1450   :  { %v3460_v25 = vpop.xlane.xlu0 %3459 }
0x1451   :  { %v3468_v27 = vmul.f32 1.442695, %v3465_v56  ;;  %v3464_v0 = vsub.f32 %v3450_v13, %v3460_v25  ;;  %v3073_v13 = vadd.f32 %v14092_v4, %v2284_v6  ;;  %v10345_v6 = vld [vmem:[%s16544_s9 + $0x50] sm:$0xff] }
0x1453   :  { %12786 = vpow2.f32 %v3468_v27  ;;  %v3466_v30 = vmul.f32 1.442695, %v3464_v0 }
0x1455   :  { %12788 = vpow2.f32 %v3466_v30 }
0x1460   :  { %v12787_v33 = vpop.eup %12786 }
0x1461   :  { %v3473_v37 = vsel %vm16552_vm1, %v12787_v33, 0.0 }
0x1462   :  { %v12789_v40 = vpop.eup %12788  ;;  %3474 = vadd.xlane.f32.xlu1 %v3473_v37 }
0x1463   :  { %v3470_v60 = vsel %vm16552_vm1, %v12789_v40, 0.0 }
0x1464   :  { %3471 = vadd.xlane.f32.xlu0 %v3470_v60 }
0x14eb   :  { %v3475_v35 = vpop.xlane.xlu1 %3474 }
0x14ec   :  { %12790 = vrcp.f32 %v3475_v35 }
0x14ed   :  { %v3472_v39 = vpop.xlane.xlu0 %3471 }
0x14ee   :  { %12792 = vrcp.f32 %v3472_v39 }
0x14f9   :  { %v12791_v1 = vpop.eup %12790 }
0x14fa   :  { %v3479_v48 = vmul.f32 %v12791_v1, %v12787_v33 }
0x14fb   :  { %v12793_v45 = vpop.eup %12792 }
0x14fc   :  { %v3478_v22 = vmul.f32 %v12793_v45, %v12789_v40 }
0x14fe   :  { %11999 = vmatprep.mubr.msk.f32.mxu1 %vm16552_vm1, %v3478_v22 }
0x14ff   :  { %12000 = vmatmul.mubr.msk.f32.vlgmr.msra.gmra.mxu1 %vm16552_vm1, %v3479_v48 }
0x1500   :  { %12003 = vmatpush3.xpose.msk.msra.mxu1 %vm16552_vm1, %v3270_v38  ;;  %12006 = vmatprep.mubr.msk.f32.mxu1 %vm16552_vm1, %v14088_v41 }
0x1501   :  { %12004 = vmatprep.subr.msk.mxu1 %vm16552_vm1, %v3265_v44 }
0x1504   :  { %12005 = vmatpush3.xpose.msk.msra.mxu1 %vm16552_vm1, %v3265_v44 }
0x1505   :  { %12016 = vmatprep.subr.mxu1 %v739_v50 }
0x1507   :  { %12007 = vmatmul.mubr.msk.f32.vlgmr.msra.gmra.mxu1 %vm16552_vm1, %v14085_v49 }
0x1508   :  { %12017 = vmatpush3.msra.mxu1 %v739_v50 }
0x1509   :  { %12018 = vmatprep.subr.mxu1 %v738_v51 }
0x150a   :  { %12019 = vmatpush3.msra.mxu1 %v738_v51 }
0x15bf   :  { %v12001_v41 = vpop.f32.mrf.mxu1 }
0x15c1   :  { %v3552_v52 = vpop.f32.mrf.mxu1 }
0x15c2   :  { %12020 = vmatprep.mubr.msk.f32.mxu1 %vm16552_vm1, %v3552_v52 }
0x15c3   :  { %12021 = vmatmul.mubr.msk.f32.vlgmr.msra.gmra.mxu1 %vm16552_vm1, %v12001_v41 }
0x15c7   :  { %v12008_v58 = vpop.f32.mrf.mxu1 }
0x15c8   :  { %v3645_v49 = vadd.f32 %v12008_v58, %v13649_v43 }
0x15c9   :  { %v3639_v62 = vpop.f32.mrf.mxu1 }
0x15ca   :  { %v3640_v53 = vadd.f32 %v3639_v62, %v13649_v43  ;;  %v3651_v7 = vsel %vm16552_vm1, %v3645_v49, -inf }
0x15cb   :  { %3652 = vmax.xlane.f32.xlu1 %v3651_v7 }
0x15cc   :  { %v3648_v14 = vsel %vm16552_vm1, %v3640_v53, -inf }
0x15cd   :  { %3649 = vmax.xlane.f32.xlu0 %v3648_v14 }
0x1654   :  { %v3653_v34 = vpop.xlane.xlu1 %3652 }
0x1655   :  { %v3655_v3 = vsub.f32 %v3645_v49, %v3653_v34  ;;  %v10350_v34 = vld [vmem:[%s16544_s9 + $0x78] sm:$0xff] }
0x1656   :  { %v3650_v17 = vpop.xlane.xlu0 %3649  ;;  %12026 = vmatprep.subr.mxu0 %v10350_v34 }
0x1657   :  { %v3658_v63 = vmul.f32 1.442695, %v3655_v3  ;;  %v3654_v15 = vsub.f32 %v3640_v53, %v3650_v17  ;;  %v10362_v3 = vld [vmem:[%s16544_s9 + $0xb8] sm:$0xff]  ;;  %v10349_v17 = vld [vmem:[%s16544_s9 + $0x70] sm:$0xff] }
0x1658   :  { %12048 = vmatprep.subr.mxu1 %v10362_v3 }
0x1659   :  { %12794 = vpow2.f32 %v3658_v63  ;;  %v3656_v9 = vmul.f32 1.442695, %v3654_v15  ;;  %12049 = vmatpush3.msra.mxu1 %v10362_v3  ;;  %v10361_v63 = vld [vmem:[%s16544_s9 + $0xb0] sm:$0xff]  ;;  %v10348_v15 = vld [vmem:[%s16544_s9 + $0x68] sm:$0xff] }
0x165a   :  { %12050 = vmatprep.subr.mxu1 %v10361_v63 }
0x165b   :  { %12796 = vpow2.f32 %v3656_v9  ;;  %12051 = vmatpush3.msra.mxu1 %v10361_v63  ;;  %v10360_v9 = vld [vmem:[%s16544_s9 + $0xa8] sm:$0xff] }
0x165c   :  { %12052 = vmatprep.subr.mxu1 %v10360_v9 }
0x165d   :  { %12053 = vmatpush3.msra.mxu1 %v10360_v9 }
0x1666   :  { %v12795_v2 = vpop.eup %12794 }
0x1667   :  { %v3663_v38 = vsel %vm16552_vm1, %v12795_v2, 0.0 }
0x1668   :  { %v12797_v47 = vpop.eup %12796  ;;  %3664 = vadd.xlane.f32.xlu1 %v3663_v38  ;;  %v10359_v38 = vld [vmem:[%s16544_s9 + $0xa0] sm:$0xff] }
0x1669   :  { %v3660_v10 = vsel %vm16552_vm1, %v12797_v47, 0.0  ;;  %12054 = vmatprep.subr.mxu1 %v10359_v38 }
0x166a   :  { %3661 = vadd.xlane.f32.xlu0 %v3660_v10  ;;  %12055 = vmatpush3.msra.mxu1 %v10359_v38  ;;  %v10358_v10 = vld [vmem:[%s16544_s9 + $0x98] sm:$0xff] }
0x166b   :  { %12056 = vmatprep.subr.mxu1 %v10358_v10 }
0x166c   :  { %12057 = vmatpush3.msra.mxu1 %v10358_v10 }
0x1683   :  { %v12022_v19 = vpop.f32.mrf.mxu1 }
0x1684   :  { %v3849_v20 = vadd.f32 %v12022_v19, %v13984_v42  ;;  %v10357_v19 = vld [vmem:[%s16544_s9 + $0x90] sm:$0xff] }
0x1685   :  { %v3829_v56 = vpop.f32.mrf.mxu1  ;;  %12058 = vmatprep.subr.mxu1 %v10357_v19 }
0x1686   :  { %v3853_v25 = vadd.f32 %v3849_v20, %v13419_v24  ;;  %v3848_v27 = vadd.f32 %v3829_v56, %v3073_v13  ;;  %v10344_v13 = vld [vmem:[%s16544_s9 + $0x48] sm:$0xff]  ;;  %12059 = vmatpush3.msra.mxu1 %v10357_v19  ;;  %v10355_v56 = vld [vmem:[%s16544_s9 + $0x80] sm:$0xff]  ;;  %v10381_v19 = vld [vmem:[%s16544_s9 + $0xf0] sm:$0xff] }
0x1687   :  { %v10356_v20 = vld [vmem:[%s16544_s9 + $0x88] sm:$0xff] }
0x1688   :  { %v14151_v0 = vadd.f32 %v3859_v12, %v3853_v25  ;;  %v3852_v23 = vadd.f32 %v3848_v27, %v13414_v18  ;;  %12060 = vmatprep.subr.mxu1 %v10356_v20 }
0x1689   :  { %12061 = vmatpush3.msra.mxu1 %v10356_v20  ;;  %v10379_v20 = vld [vmem:[%s16544_s9 + $0xe0] sm:$0xff] }
0x168a   :  { %v14154_v46 = vadd.f32 %v3859_v12, %v3852_v23  ;;  %v3867_v42 = vsel %vm16553_vm0, %v14151_v0, 0.0  ;;  %12062 = vmatprep.subr.mxu1 %v10355_v56 }
0x168b   :  { %3868 = vadd.xlane.f32.xlu1 %v3867_v42  ;;  %12063 = vmatpush3.msra.mxu1 %v10355_v56  ;;  %v10377_v56 = vld [vmem:[%s16544_s9 + $0xd0] sm:$0xff] }
0x168c   :  { %v3864_v4 = vsel %vm16553_vm0, %v14154_v46, 0.0 }
0x168d   :  { %3865 = vadd.xlane.f32.xlu0 %v3864_v4 }
0x16f1   :  { %v3665_v30 = vpop.xlane.xlu1 %3664 }
0x16f2   :  { %12798 = vrcp.f32 %v3665_v30 }
0x16f3   :  { %v3662_v33 = vpop.xlane.xlu0 %3661 }
0x16f4   :  { %12800 = vrcp.f32 %v3662_v33 }
0x16ff   :  { %v12799_v24 = vpop.eup %12798 }
0x1700   :  { %v3669_v60 = vmul.f32 %v12799_v24, %v12795_v2  ;;  %v10347_v2 = vld [vmem:[%s16544_s9 + $0x60] sm:$0xff] }
0x1701   :  { %v12801_v37 = vpop.eup %12800 }
0x1702   :  { %v3668_v40 = vmul.f32 %v12801_v37, %v12797_v47  ;;  %v10346_v47 = vld [vmem:[%s16544_s9 + $0x58] sm:$0xff] }
0x1704   :  { %12013 = vmatprep.mubr.msk.f32.mxu0 %vm16552_vm1, %v3668_v40 }
0x1705   :  { %12014 = vmatmul.mubr.msk.f32.vlgmr.msra.gmra.mxu0 %vm16552_vm1, %v3669_v60 }
0x1706   :  { %12027 = vmatpush3.msra.mxu0 %v10350_v34 }
0x1707   :  { %12028 = vmatprep.subr.mxu0 %v10349_v17 }
0x1708   :  { %12029 = vmatpush3.msra.mxu0 %v10349_v17 }
0x1709   :  { %12030 = vmatprep.subr.mxu0 %v10348_v15 }
0x170a   :  { %12031 = vmatpush3.msra.mxu0 %v10348_v15 }
0x170b   :  { %12032 = vmatprep.subr.mxu0 %v10347_v2 }
0x170c   :  { %12033 = vmatpush3.msra.mxu0 %v10347_v2 }
0x170d   :  { %12034 = vmatprep.subr.mxu0 %v10346_v47 }
0x170e   :  { %12035 = vmatpush3.msra.mxu0 %v10346_v47 }
0x170f   :  { %12036 = vmatprep.subr.mxu0 %v10345_v6 }
0x1710   :  { %12037 = vmatpush3.msra.mxu0 %v10345_v6  ;;  %v10382_v6 = vld [vmem:[%s16544_s9 + $0xf8] sm:$0xff] }
0x1711   :  { %12038 = vmatprep.subr.mxu0 %v10344_v13 }
0x1712   :  { %12039 = vmatpush3.msra.mxu0 %v10344_v13  ;;  %v10380_v13 = vld [vmem:[%s16544_s9 + $0xe8] sm:$0xff] }
0x1714   :  { %v3869_v39 = vpop.xlane.xlu1 %3868 }
0x1715   :  { %v3877_v45 = vmul.f32 0.015625, %v3869_v39 }
0x1716   :  { %v3866_v1 = vpop.xlane.xlu0 %3865 }
0x1717   :  { %v3876_v48 = vmul.f32 0.015625, %v3866_v1  ;;  %v14166_v51 = vsub.f32 %v14151_v0, %v3877_v45 }
0x1719   :  { %v14171_v58 = vsub.f32 %v14154_v46, %v3876_v48  ;;  %v3885_v7 = vmul.f32 %v14166_v51, %v14166_v51  ;;  %v14243_v48 = vld [vmem:[%s16538_s3] sm:$0xff] }
0x171a   :  { %16604 = vst [vmem:[#allocation10_spill] sm:$0xff] %v14243_v48 }
0x171b   :  { %v3891_v14 = vsel %vm16553_vm0, %v3885_v7, 0.0 }
0x17c5   :  { %v12015_v18 = vpop.f32.mrf.mxu0 }
0x17c7   :  { %v3742_v35 = vpop.f32.mrf.mxu0 }
0x17c8   :  { %12023 = vmatprep.mubr.msk.f32.mxu1 %vm16552_vm1, %v3742_v35 }
0x17c9   :  { %12024 = vmatmul.mubr.msk.f32.gmra.mxu1 %vm16552_vm1, %v12015_v18 }
0x1889   :  { %v12025_v22 = vpop.f32.mrf.mxu1 }
0x188a   :  { %v3851_v44 = vadd.f32 %v12025_v22, %v14098_v8 }
0x188b   :  { %v3839_v50 = vpop.f32.mrf.mxu1 }
0x188c   :  { %v3855_v41 = vadd.f32 %v3851_v44, %v13429_v32  ;;  %v3850_v52 = vadd.f32 %v3839_v50, %v14102_v11  ;;  %v3884_v11 = vmul.f32 %v14171_v58, %v14171_v58  ;;  %v3919_v44 = vrot.slane %v14243_v48, %v13403_v54 }
0x188e   :  { %v14173_v49 = vadd.f32 %v3859_v12, %v3855_v41  ;;  %v3854_v62 = vadd.f32 %v3850_v52, %v13424_v29  ;;  %v3888_v29 = vsel %vm16553_vm0, %v3884_v11, 0.0 }
0x1890   :  { %v14176_v53 = vadd.f32 %v3859_v12, %v3854_v62  ;;  %v3873_v8 = vsel %vm16553_vm0, %v14173_v49, 0.0  ;;  %v10343_v12 = vld [vmem:[%s16544_s9 + $0x40] sm:$0xff]  ;;  %v3927_v62 = vrot.slane %v14243_v48, %v13931_v55 }
0x1891   :  { %3874 = vadd.xlane.f32.xlu1 %v3873_v8  ;;  %12040 = vmatprep.subr.mxu0 %v10343_v12 }
0x1892   :  { %v3870_v32 = vsel %vm16553_vm0, %v14176_v53, 0.0  ;;  %12041 = vmatpush3.msra.mxu0 %v10343_v12  ;;  %v10378_v12 = vld [vmem:[%s16544_s9 + $0xd8] sm:$0xff] }
0x1893   :  { %3871 = vadd.xlane.f32.xlu0 %v3870_v32  ;;  %12070 = vmatprep.subr.mxu0 %v10382_v6 }
0x1895   :  { %3892 = vadd.xlane.f32.xlu1 %v3891_v14 }
0x1897   :  { %3889 = vadd.xlane.f32.xlu0 %v3888_v29 }
0x191a   :  { %v3875_v25 = vpop.xlane.xlu1 %3874 }
0x191b   :  { %v3879_v27 = vmul.f32 0.015625, %v3875_v25  ;;  %v10376_v25 = vld [vmem:[%s16544_s9 + $0xc8] sm:$0xff] }
0x191c   :  { %v3872_v23 = vpop.xlane.xlu0 %3871 }
0x191d   :  { %v3883_v42 = vsub.f32 %v14173_v49, %v3879_v27  ;;  %v3878_v4 = vmul.f32 0.015625, %v3872_v23  ;;  %v10375_v27 = vld [vmem:[%s16544_s9 + $0xc0] sm:$0xff] }
0x191e   :  { %v3893_v30 = vpop.xlane.xlu1 %3892 }
0x191f   :  { %v3882_v33 = vsub.f32 %v14176_v53, %v3878_v4  ;;  %v3901_v24 = vmul.f32 0.015625, %v3893_v30  ;;  %v3887_v37 = vmul.f32 %v3883_v42, %v3883_v42  ;;  %v4054_v4 = vrot.slane %v14146_v21, %v13286_v61 }
0x1920   :  { %v3890_v40 = vpop.xlane.xlu0 %3889 }
0x1921   :  { %v3905_v60 = vadd.f32 1e-05, %v3901_v24  ;;  %v3900_v18 = vmul.f32 0.015625, %v3890_v40  ;;  %v3897_v35 = vsel %vm16553_vm0, %v3887_v37, 0.0  ;;  %v3886_v39 = vmul.f32 %v3882_v33, %v3882_v33 }
0x1922   :  { %3898 = vadd.xlane.f32.xlu1 %v3897_v35 }
0x1923   :  { %12802 = vrsqrt.f32 %v3905_v60  ;;  %v3904_v1 = vadd.f32 1e-05, %v3900_v18  ;;  %v3894_v45 = vsel %vm16553_vm0, %v3886_v39, 0.0 }
0x1924   :  { %3895 = vadd.xlane.f32.xlu0 %v3894_v45 }
0x1925   :  { %12804 = vrsqrt.f32 %v3904_v1 }
0x1930   :  { %v12803_v22 = vpop.eup %12802 }
0x1931   :  { %v3913_v50 = vmul.f32 %v12803_v22, %v14166_v51 }
0x1932   :  { %v12805_v41 = vpop.eup %12804 }
0x1933   :  { %v3912_v52 = vmul.f32 %v12805_v41, %v14171_v58  ;;  %v3921_v8 = vmul.f32 %v3919_v44, %v3913_v50  ;;  %v14288_v50 = vrot.slane %v14146_v21, %v13746_v16 }
0x1935   :  { %v3920_v7 = vmul.f32 %v3919_v44, %v3912_v52  ;;  %v3929_v11 = vadd.f32 %v3927_v62, %v3921_v8 }
0x1937   :  { %v3928_v32 = vadd.f32 %v3927_v62, %v3920_v7 }
0x1939   :  { %12042 = vmatprep.mubr.msk.f32.mxu0 %vm16553_vm0, %v3928_v32  ;;  %12064 = vmatprep.mubr.msk.f32.mxu1 %vm16553_vm0, %v3928_v32 }
0x193a   :  { %12043 = vmatmul.mubr.msk.f32.vlgmr.msra.gmra.mxu0 %vm16553_vm0, %v3929_v11  ;;  %12065 = vmatmul.mubr.msk.f32.vlgmr.msra.gmra.mxu1 %vm16553_vm0, %v3929_v11 }
0x193b   :  { %12071 = vmatpush3.msra.mxu0 %v10382_v6 }
0x193c   :  { %12072 = vmatprep.subr.mxu0 %v10381_v19 }
0x193d   :  { %12073 = vmatpush3.msra.mxu0 %v10381_v19 }
0x193e   :  { %12074 = vmatprep.subr.mxu0 %v10380_v13 }
0x193f   :  { %12075 = vmatpush3.msra.mxu0 %v10380_v13 }
0x1940   :  { %12076 = vmatprep.subr.mxu0 %v10379_v20 }
0x1941   :  { %12077 = vmatpush3.msra.mxu0 %v10379_v20 }
0x1942   :  { %12078 = vmatprep.subr.mxu0 %v10378_v12 }
0x1943   :  { %12079 = vmatpush3.msra.mxu0 %v10378_v12 }
0x1944   :  { %12080 = vmatprep.subr.mxu0 %v10377_v56 }
0x1945   :  { %12081 = vmatpush3.msra.mxu0 %v10377_v56 }
0x1946   :  { %12082 = vmatprep.subr.mxu0 %v10376_v25 }
0x1947   :  { %12083 = vmatpush3.msra.mxu0 %v10376_v25  ;;  %v52_v25 = vadd.s32 8, %v13275_v57 }
0x1948   :  { %12084 = vmatprep.subr.mxu0 %v10375_v27 }
0x1949   :  { %12085 = vmatpush3.msra.mxu0 %v10375_v27 }
0x19ab   :  { %v3899_v14 = vpop.xlane.xlu1 %3898 }
0x19ac   :  { %v3903_v51 = vmul.f32 0.015625, %v3899_v14 }
0x19ad   :  { %v3896_v29 = vpop.xlane.xlu0 %3895 }
0x19ae   :  { %v3907_v34 = vadd.f32 1e-05, %v3903_v51  ;;  %v3902_v58 = vmul.f32 0.015625, %v3896_v29 }
0x19b0   :  { %12806 = vrsqrt.f32 %v3907_v34  ;;  %v3906_v3 = vadd.f32 1e-05, %v3902_v58  ;;  %v14303_v58 = vld [vmem:[%s16538_s3 + $0x10] sm:$0xff] }
0x19b1   :  { %v14340_v6 = vrot.slane %v14303_v58, %v13512_v28  ;;  %v14345_v13 = vrot.slane %v14303_v58, %v13931_v55 }
0x19b2   :  { %12808 = vrsqrt.f32 %v3906_v3 }
0x19bd   :  { %v12807_v17 = vpop.eup %12806 }
0x19be   :  { %v3915_v63 = vmul.f32 %v12807_v17, %v3883_v42 }
0x19bf   :  { %v12809_v15 = vpop.eup %12808 }
0x19c0   :  { %v3914_v9 = vmul.f32 %v12809_v15, %v3882_v33  ;;  %v3923_v2 = vmul.f32 %v3919_v44, %v3915_v63  ;;  %v14309_v63 = vrot.slane %v14303_v58, %v13509_v26  ;;  %v14313_v15 = vrot.slane %v14303_v58, %v13403_v54 }
0x19c2   :  { %v3922_v38 = vmul.f32 %v3919_v44, %v3914_v9  ;;  %v3931_v10 = vadd.f32 %v3927_v62, %v3923_v2 }
0x19c4   :  { %v3930_v47 = vadd.f32 %v3927_v62, %v3922_v38  ;;  %v14330_v38 = vrot.slane %v14303_v58, %v13286_v61 }
0x19c6   :  { %12045 = vmatprep.mubr.msk.f32.mxu0 %vm16553_vm0, %v3930_v47  ;;  %12067 = vmatprep.mubr.msk.f32.mxu1 %vm16553_vm0, %v3930_v47 }
0x19c7   :  { %12046 = vmatmul.mubr.msk.f32.gmra.mxu0 %vm16553_vm0, %v3931_v10  ;;  %12068 = vmatmul.mubr.msk.f32.gmra.mxu1 %vm16553_vm0, %v3931_v10  ;;  %v14335_v10 = vrot.slane %v14303_v58, %v13746_v16 }
0x19c8   :  { %4679 = vmatprep.mubr.f32.mxu1 %v16556_v36 }
0x19fa   :  { %v12066_v23 = vpop.f32.mrf.mxu1  ;;  %v12044_v39 = vpop.f32.mrf.mxu0 }
0x19fb   :  { %v4127_v33 = vadd.f32 %v12066_v23, %v4054_v4  ;;  %v4029_v11 = vadd.f32 %v12044_v39, %v14288_v50 }
0x19fc   :  { %v4121_v42 = vpop.f32.mrf.mxu1  ;;  %v4023_v22 = vpop.f32.mrf.mxu0 }
0x19fd   :  { %v4122_v30 = vadd.f32 %v4121_v42, %v4054_v4  ;;  %v10368_v37 = vmul.f32 -1.442695, %v4127_v33  ;;  %v4024_v8 = vadd.f32 %v4023_v22, %v14288_v50  ;;  %v59_v42 = vand.u32 15, %v13275_v57 }
0x19fe   :  { %v53_v33 = vadd.s32 16, %v13275_v57 }
0x19ff   :  { %v10367_v24 = vmul.f32 -1.442695, %v4122_v30  ;;  %v14356_v30 = vrot.slane %v14303_v58, %v13893_v31 }
0x1a01   :  { %12810 = vpow2.f32 %v10367_v24 }
0x1a02   :  { %12812 = vpow2.f32 %v10368_v37 }
0x1a0e   :  { %v12811_v40 = vpop.eup %12810 }
0x1a0f   :  { %v12813_v60 = vpop.eup %12812  ;;  %v4152_v18 = vadd.f32 1.0, %v12811_v40  ;;  %v54_v40 = vadd.s32 24, %v13275_v57 }
0x1a10   :  { %v4153_v35 = vadd.f32 1.0, %v12813_v60 }
0x1a11   :  { %12814 = vrcp.f32 %v4152_v18 }
0x1a12   :  { %12816 = vrcp.f32 %v4153_v35 }
0x1a1e   :  { %v12815_v62 = vpop.eup %12814 }
0x1a1f   :  { %v12817_v32 = vpop.eup %12816  ;;  %v14292_v14 = vmul.f32 %v12815_v62, %v4024_v8  ;;  %v73_v62 = vand.u32 15, %v53_v33  ;;  %v127_v8 = vadd.s32 4294967294, %v59_v42 }
0x1a20   :  { %v14294_v51 = vmul.f32 %v12817_v32, %v4029_v11  ;;  %v80_v11 = vand.u32 15, %v54_v40 }
0x1a21   :  { %v4168_v29 = vrot.slane %v14292_v14, 5  ;;  %v4193_v34 = vrot.slane %v14292_v14, 6  ;;  %v4218_v47 = vrot.slane %v14292_v14, 7  ;;  %v16549_v18 = vrot.slane %v14292_v14, 2 }
0x1a22   :  { %v16560_v3 = vrot.slane %v14294_v51, 5  ;;  %v16559_v17 = vrot.slane %v14294_v51, 6  ;;  %v16551_v27 = vrot.slane %v14294_v51, 7  ;;  %v4260_v60 = vrot.slane %v14294_v51, 1 }
0x1a23   :  { %v16558_v35 = vrot.slane %v14292_v14, 3  ;;  %v16561_v22 = vrot.slane %v14294_v51, 3  ;;  %v4252_v32 = vmul.f32 %v14330_v38, %v14294_v51  ;;  %v105_v33 = vadd.s32 4294967293, %v73_v62 }
0x1a24   :  { %v4175_v9 = vsel %vm4172_vm2, %v4168_v29, %v16560_v3  ;;  %v4200_v2 = vsel %vm4197_vm3, %v4193_v34, %v16559_v17  ;;  %v4225_v37 = vsel %vm4222_vm4, %v4218_v47, %v16551_v27  ;;  %vm131_vm9 = vcmp.ge.s32.totalorder %v127_v8, 0 }
0x1a25   :  { %v4186_v20 = vmul.f32 %v14309_v63, %v4175_v9  ;;  %v4211_v12 = vmul.f32 %v14313_v15, %v4200_v2  ;;  %v151_v9 = vadd.s32 4294967295, %v59_v42  ;;  %v198_v40 = vadd.s32 1, %v80_v11 }
0x1a26   :  { %vm109_vm14 = vcmp.ge.s32.totalorder %v105_v33, 0 }
0x1a27   :  { %v4215_v39 = vadd.f32 %v4211_v12, %v4186_v20  ;;  %vm155_vm10 = vcmp.ge.s32.totalorder %v151_v9, 0  ;;  %vm206_vm0 = vcmp.lt.s32.totalorder %v198_v40, 16 }
0x1a87   :  { %v12069_v1 = vpop.f32.mrf.mxu1 }
0x1a88   :  { %v4137_v45 = vadd.f32 %v12069_v1, %v4054_v4  ;;  %v66_v1 = vand.u32 15, %v52_v25 }
0x1a89   :  { %v4131_v44 = vpop.f32.mrf.mxu1 }
0x1a8a   :  { %v10370_v41 = vmul.f32 -1.442695, %v4137_v45  ;;  %v4132_v52 = vadd.f32 %v4131_v44, %v4054_v4  ;;  %v16550_v4 = vrot.slane %v14292_v14, 1  ;;  %v16562_v45 = vrot.slane %v14294_v51, 2 }
0x1a8b   :  { %v103_v44 = vadd.s32 4294967293, %v59_v42  ;;  %v196_v12 = vadd.s32 1, %v66_v1  ;;  %v244_v25 = vadd.s32 3, %v66_v1  ;;  %v12047_v42 = vpop.f32.mrf.mxu0 }
0x1a8c   :  { %12818 = vpow2.f32 %v10370_v41  ;;  %v10369_v7 = vmul.f32 -1.442695, %v4132_v52  ;;  %v4266_v41 = vsel %vm4263_vm5, %v16550_v4, %v4260_v60  ;;  %v4236_v52 = vmul.f32 %v14335_v10, %v4225_v37 }
0x1a8d   :  { %v4291_v2 = vsel %vm16555_vm6, %v16549_v18, %v16562_v45  ;;  %vm107_vm8 = vcmp.ge.s32.totalorder %v103_v44, 0  ;;  %v153_v37 = vadd.s32 4294967295, %v73_v62  ;;  %v222_v18 = vadd.s32 2, %v80_v11  ;;  %v4033_v44 = vpop.f32.mrf.mxu0 }
0x1a8e   :  { %12820 = vpow2.f32 %v10369_v7  ;;  %v14380_v7 = vmul.f32 %v14330_v38, %v14292_v14  ;;  %v4240_v20 = vadd.f32 %v4236_v52, %v4215_v39  ;;  %v246_v4 = vadd.s32 3, %v80_v11 }
0x1a8f   :  { %v14400_v27 = vmul.f32 %v14345_v13, %v4291_v2  ;;  %vm204_vm11 = vcmp.lt.s32.totalorder %v196_v12, 16  ;;  %vm252_vm13 = vcmp.lt.s32.totalorder %v244_v25, 16  ;;  %v14411_v52 = vsel %vm131_vm9, 1.0, %v16556_v36 }
0x1a90   :  { %16606 = vst [vmem:[#allocation12_spill] sm:$0xff] %v14411_v52  ;;  %vm157_vm1 = vcmp.ge.s32.totalorder %v153_v37, 0  ;;  %vm254_vm6 = vcmp.lt.s32.totalorder %v246_v4, 16  ;;  %v14419_v11 = vsel %vm204_vm11, 1.0, %v16556_v36  ;;  %v4034_v12 = vadd.f32 %v4033_v44, %v14288_v50 }
0x1a91   :  { %16608 = vst [vmem:[#allocation14_spill] sm:$0xff] %v14419_v11  ;;  %v14431_v4 = vsel %vm109_vm14, 1.0, %v16556_v36  ;;  %v14440_v25 = vsel %vm206_vm0, 1.0, %v16556_v36  ;;  %v14446_v33 = vsel %vm254_vm6, 1.0, %v16556_v36  ;;  %v14453_v44 = vrot.slane %v14146_v21, %v13512_v28 }
0x1a92   :  { %vm16610_vm0 = vcmp.lt.s32.totalorder %v13275_v57, 6 }
0x1a93   :  { %vm16616_vm6 = vmmov %vm16610_vm0 }
0x1a99   :  { %v12819_v19 = vpop.eup %12818 }
0x1a9a   :  { %v4155_v56 = vadd.f32 1.0, %v12819_v19  ;;  %v4316_v19 = vsel %vm16554_vm7, %v16558_v35, %v16561_v22  ;;  %vm230_vm7 = vcmp.lt.s32.totalorder %v222_v18, 16 }
0x1a9b   :  { %v12821_v23 = vpop.eup %12820  ;;  %v14403_v39 = vmul.f32 %v14356_v30, %v4316_v19  ;;  %v14425_v19 = vsel %vm252_vm13, 1.0, %v16556_v36 }
0x1a9c   :  { %12822 = vrcp.f32 %v4155_v56  ;;  %v4154_v24 = vadd.f32 1.0, %v12821_v23  ;;  %v220_v56 = vadd.s32 2, %v66_v1  ;;  %v14397_v23 = vmul.f32 %v14340_v6, %v4266_v41 }
0x1a9d   :  { %v14405_v1 = vadd.f32 %v4252_v32, %v4240_v20  ;;  %v14408_v41 = vsel %vm107_vm8, 1.0, %v16556_v36  ;;  %v14416_v32 = vsel %vm155_vm10, 1.0, %v16556_v36  ;;  %vm16620_vm8 = vmmov %vm16610_vm0  ;;  %vm16623_vm10 = vcmask 523264  }
0x1a9e   :  { %12824 = vrcp.f32 %v4154_v24  ;;  %v129_v24 = vadd.s32 4294967294, %v73_v62  ;;  %16605 = vst [vmem:[#allocation11_spill] sm:$0xff] %v14408_v41  ;;  %vm228_vm12 = vcmp.lt.s32.totalorder %v220_v56, 16  ;;  %v4039_v62 = vadd.f32 %v12047_v42, %v14288_v50  ;;  %16607 = vst [vmem:[#allocation13_spill] sm:$0xff] %v14416_v32 }
0x1a9f   :  { %v14422_v2 = vsel %vm228_vm12, 1.0, %v16556_v36  ;;  %v14437_v56 = vsel %vm157_vm1, 1.0, %v16556_v36  ;;  %v14443_v42 = vsel %vm230_vm7, 1.0, %v16556_v36  ;;  %vm16612_vm1 = vcmp.lt.s32.totalorder %v13275_v57, 5  ;;  %vm16624_vm11 = vmmov %vm16623_vm10 }
0x1aa0   :  { %vm133_vm15 = vcmp.ge.s32.totalorder %v129_v24, 0  ;;  %vm16617_vm7 = vmmov %vm16612_vm1 }
0x1aa1   :  { %v14434_v18 = vsel %vm133_vm15, 1.0, %v16556_v36  ;;  %vm16622_vm9 = vmmov %vm16612_vm1 }
0x1aa2   :  { %vm16625_vm12 = vmmov %vm16623_vm10 }
0x1aa3   :  { %vm16626_vm13 = vmmov %vm16623_vm10 }
0x1aa4   :  { %vm16627_vm14 = vmmov %vm16623_vm10 }
0x1aa5   :  { %vm16628_vm15 = vmmov %vm16623_vm10 }
0x1aa9   :  { %v12823_v8 = vpop.eup %12822 }
0x1aaa   :  { %v14427_v20 = vmul.f32 %v12823_v8, %v4039_v62  ;;  %v14457_v62 = vrot.slane %v14146_v21, %v13931_v55  ;;  %v14461_v8 = vrot.slane %v14146_v21, %v13893_v31 }
0x1aab   :  { %v12825_v9 = vpop.eup %12824 }
0x1aac   :  { %v4166_v50 = vmul.f32 %v12825_v9, %v4034_v12  ;;  %v4171_v24 = vrot.slane %v14427_v20, 5  ;;  %v4196_v37 = vrot.slane %v14427_v20, 6  ;;  %v4221_v40 = vrot.slane %v14427_v20, 7 }
0x1aad   :  { %v4262_v12 = vrot.slane %v14427_v20, 1  ;;  %v4287_v26 = vrot.slane %v14427_v20, 2 }
0x1aae   :  { %v4176_v9 = vsel %vm4172_vm2, %v4171_v24, %v4168_v29  ;;  %v4201_v36 = vsel %vm4197_vm3, %v4196_v37, %v4193_v34  ;;  %v4226_v35 = vsel %vm4222_vm4, %v4221_v40, %v4218_v47  ;;  %v4261_v17 = vrot.slane %v4166_v50, 1 }
0x1aaf   :  { %v4177_v21 = vmul.f32 %v14408_v41, %v4176_v9  ;;  %v4202_v3 = vmul.f32 %v14411_v52, %v4201_v36  ;;  %v4227_v22 = vmul.f32 %v14416_v32, %v4226_v35  ;;  %v4286_v45 = vrot.slane %v4166_v50, 2 }
0x1ab0   :  { %v4265_v29 = vsel %vm4263_vm5, %v4260_v60, %v4261_v17  ;;  %v4311_v55 = vrot.slane %v4166_v50, 3  ;;  %v4170_v34 = vrot.slane %v4166_v50, 5  ;;  %v4195_v43 = vrot.slane %v4166_v50, 6 }
0x1ab1   :  { %v4185_v5 = vmul.f32 %v14309_v63, %v4177_v21  ;;  %v4210_v47 = vmul.f32 %v14313_v15, %v4202_v3  ;;  %v4235_v28 = vmul.f32 %v14335_v10, %v4227_v22  ;;  %v4269_v9 = vmul.f32 %v14419_v11, %v4265_v29 }
0x1ab2   :  { %v16609_v36 = vrot.slane %v14294_v51, 2  ;;  %v16611_v32 = vrot.slane %v14294_v51, 3  ;;  %v16613_v52 = vrot.slane %v14294_v51, 5  ;;  %v16614_v3 = vrot.slane %v14294_v51, 6 }
0x1ab3   :  { %v4214_v29 = vadd.f32 %v4210_v47, %v4185_v5  ;;  %v4277_v41 = vmul.f32 %v14340_v6, %v4269_v9  ;;  %v4220_v61 = vrot.slane %v4166_v50, 7  ;;  %v4312_v5 = vrot.slane %v14427_v20, 3 }
0x1ab4   :  { %v4290_v35 = vsel %vm16610_vm0, %v16609_v36, %v4286_v45  ;;  %v4315_v60 = vsel %vm16612_vm1, %v16611_v32, %v4311_v55  ;;  %v4174_v21 = vsel %vm4172_vm2, %v16613_v52, %v4170_v34  ;;  %v4199_v22 = vsel %vm4197_vm3, %v16614_v3, %v4195_v43  ;;  %vm16629_vm0 = vmmov %vm16623_vm10 }
0x1ab5   :  { %v4294_v11 = vmul.f32 %v14422_v2, %v4290_v35  ;;  %v4319_v36 = vmul.f32 %v14425_v19, %v4315_v60  ;;  %v4179_v54 = vmul.f32 %v14431_v4, %v4174_v21  ;;  %v4204_v32 = vmul.f32 %v14434_v18, %v4199_v22  ;;  %vm16630_vm1 = vmmov %vm16629_vm0 }
0x1ab6   :  { %v4239_v52 = vadd.f32 %v4235_v28, %v4214_v29  ;;  %v4281_v31 = vadd.f32 %v4277_v41, %v14405_v1  ;;  %v16615_v9 = vrot.slane %v14294_v51, 7  ;;  %v4264_v21 = vsel %vm4263_vm5, %v4261_v17, %v4262_v12 }
0x1ab7   :  { %v4302_v48 = vmul.f32 %v14345_v13, %v4294_v11  ;;  %v4187_v47 = vmul.f32 %v14309_v63, %v4179_v54  ;;  %v4212_v35 = vmul.f32 %v14313_v15, %v4204_v32  ;;  %v4327_v1 = vmul.f32 %v14356_v30, %v4319_v36 }
0x1ab8   :  { %v4224_v60 = vsel %vm4222_vm4, %v16615_v9, %v4220_v61  ;;  %v4255_v28 = vadd.f32 %v14380_v7, %v4239_v52  ;;  %v4253_v54 = vmul.f32 %v14330_v38, %v4166_v50  ;;  %v4278_v22 = vmul.f32 %v14340_v6, %v4264_v21 }
0x1ab9   :  { %v4306_v3 = vadd.f32 %v4302_v48, %v4281_v31  ;;  %v4229_v41 = vmul.f32 %v14437_v56, %v4224_v60  ;;  %v4216_v11 = vadd.f32 %v4212_v35, %v4187_v47  ;;  %v4173_v51 = vsel %vm4172_vm2, %v4170_v34, %v4171_v24 }
0x1aba   :  { %v4280_v29 = vadd.f32 %v14397_v23, %v4255_v28  ;;  %v4289_v31 = vsel %vm16616_vm6, %v4286_v45, %v4287_v26  ;;  %v4314_v48 = vsel %vm16617_vm7, %v4311_v55, %v4312_v5  ;;  %v4188_v7 = vmul.f32 %v14309_v63, %v4173_v51  ;;  %vm16631_vm6 = vmmov %vm16629_vm0 }
0x1abb   :  { %v4331_v32 = vadd.f32 %v4327_v1, %v4306_v3  ;;  %v4237_v17 = vmul.f32 %v14335_v10, %v4229_v41  ;;  %v4198_v50 = vsel %vm4197_vm3, %v4195_v43, %v4196_v37  ;;  %v4223_v36 = vsel %vm4222_vm4, %v4220_v61, %v4221_v40  ;;  %vm16632_vm7 = vmmov %vm16629_vm0 }
0x1abc   :  { %v4305_v24 = vadd.f32 %v14400_v27, %v4280_v29  ;;  %v4213_v52 = vmul.f32 %v14313_v15, %v4198_v50  ;;  %v4238_v45 = vmul.f32 %v14335_v10, %v4223_v36  ;;  %v16618_v47 = vrot.slane %v14292_v14, 1 }
0x1abd   :  { %v4339_v23 = vadd.f32 %v14453_v44, %v4331_v32  ;;  %v4241_v34 = vadd.f32 %v4237_v17, %v4216_v11  ;;  %v16619_v63 = vrot.slane %v14292_v14, 2  ;;  %v16621_v61 = vrot.slane %v14292_v14, 3 }
0x1abe   :  { %v4267_v55 = vsel %vm4263_vm5, %v4262_v12, %v16618_v47  ;;  %v4330_v37 = vadd.f32 %v14403_v39, %v4305_v24  ;;  %v4217_v40 = vadd.f32 %v4213_v52, %v4188_v7  ;;  %v4303_v35 = vmul.f32 %v14345_v13, %v4289_v31 }
0x1abf   :  { %v4292_v43 = vsel %vm16620_vm8, %v4287_v26, %v16619_v63  ;;  %v4317_v27 = vsel %vm16622_vm9, %v4312_v5, %v16621_v61  ;;  %v4347_v15 = vmul.f32 %v14457_v62, %v4339_v23  ;;  %v4257_v10 = vadd.f32 %v4253_v54, %v4241_v34  ;;  %vm16633_vm8 = vmmov %vm16629_vm0 }
0x1ac0   :  { %v4254_v12 = vmul.f32 %v14330_v38, %v14427_v20  ;;  %v4271_v9 = vmul.f32 %v14440_v25, %v4267_v55  ;;  %v4296_v26 = vmul.f32 %v14443_v42, %v4292_v43  ;;  %v4338_v14 = vadd.f32 %v14453_v44, %v4330_v37  ;;  %vm16634_vm9 = vmmov %vm16629_vm0 }
0x1ac1   :  { %v4355_v60 = vadd.f32 %v14461_v8, %v4347_v15  ;;  %v4282_v5 = vadd.f32 %v4278_v22, %v4257_v10  ;;  %v4242_v21 = vadd.f32 %v4238_v45, %v4217_v40  ;;  %v4328_v39 = vmul.f32 %v14356_v30, %v4314_v48 }
0x1ac2   :  { %v4279_v28 = vmul.f32 %v14340_v6, %v4271_v9  ;;  %v4321_v3 = vmul.f32 %v14446_v33, %v4317_v27  ;;  %v4346_v1 = vmul.f32 %v14457_v62, %v4338_v14  ;;  %v4304_v11 = vmul.f32 %v14345_v13, %v4296_v26 }
0x1ac3   :  { %v10372_v41 = vmul.f32 -1.442695, %v4355_v60  ;;  %v4307_v38 = vadd.f32 %v4303_v35, %v4282_v5  ;;  %v4258_v20 = vadd.f32 %v4254_v12, %v4242_v21  ;;  %v4398_v40 = vrot.slane %v14303_v58, %v13278_v59 }
0x1ac4   :  { %v4354_v54 = vadd.f32 %v14461_v8, %v4346_v1  ;;  %v4329_v6 = vmul.f32 %v14356_v30, %v4321_v3 }
0x1ac5   :  { %12826 = vpow2.f32 %v10372_v41  ;;  %v4332_v51 = vadd.f32 %v4328_v39, %v4307_v38  ;;  %v4283_v29 = vadd.f32 %v4279_v28, %v4258_v20 }
0x1ac6   :  { %v10371_v22 = vmul.f32 -1.442695, %v4354_v54 }
0x1ac7   :  { %v4340_v32 = vadd.f32 %v14453_v44, %v4332_v51  ;;  %v4308_v17 = vadd.f32 %v4304_v11, %v4283_v29 }
0x1ac8   :  { %12828 = vpow2.f32 %v10371_v22 }
0x1ac9   :  { %v4348_v31 = vmul.f32 %v14457_v62, %v4340_v32  ;;  %v4333_v48 = vadd.f32 %v4329_v6, %v4308_v17 }
0x1acb   :  { %v4356_v7 = vadd.f32 %v14461_v8, %v4348_v31  ;;  %v4341_v50 = vadd.f32 %v14453_v44, %v4333_v48 }
0x1acd   :  { %v10373_v13 = vmul.f32 -1.442695, %v4356_v7  ;;  %v4349_v36 = vmul.f32 %v14457_v62, %v4341_v50 }
0x1acf   :  { %12830 = vpow2.f32 %v10373_v13  ;;  %v4357_v24 = vadd.f32 %v14461_v8, %v4349_v36 }
0x1ad1   :  { %v10374_v23 = vmul.f32 -1.442695, %v4357_v24 }
0x1ad2   :  { %v12827_v34 = vpop.eup %12826 }
0x1ad3   :  { %12832 = vpow2.f32 %v10374_v23  ;;  %v4371_v52 = vadd.f32 1.0, %v12827_v34  ;;  %v10402_v34 = vld [vmem:[%s16537_s6 + $0xf8] sm:$0xff] }
0x1ad4   :  { %4631 = vmatprep.subr.mxu1 %v10402_v34 }
0x1ad5   :  { %v12829_v45 = vpop.eup %12828  ;;  %12834 = vrcp.f32 %v4371_v52  ;;  %v10401_v52 = vld [vmem:[%s16537_s6 + $0xf0] sm:$0xff] }
0x1ad6   :  { %v4370_v30 = vadd.f32 1.0, %v12829_v45  ;;  %v10400_v45 = vld [vmem:[%s16537_s6 + $0xe8] sm:$0xff]  ;;  %4632 = vmatpush1.msra.mxu1 %v10401_v52 }
0x1ad7   :  { %4633 = vmatprep.subr.mxu1 %v10400_v45  ;;  %v10445_v45 = vld [vmem:[%s16539_s7 + $0x1f0] sm:$0xff] }
0x1ad8   :  { %12836 = vrcp.f32 %v4370_v30  ;;  %v10399_v30 = vld [vmem:[%s16537_s6 + $0xe0] sm:$0xff] }
0x1ad9   :  { %4634 = vmatpush1.msra.mxu1 %v10399_v30  ;;  %v10429_v30 = vld [vmem:[%s16539_s7 + $0x170] sm:$0xff] }
0x1adc   :  { %v12831_v47 = vpop.eup %12830 }
0x1add   :  { %v4372_v55 = vadd.f32 1.0, %v12831_v47  ;;  %v10398_v47 = vld [vmem:[%s16537_s6 + $0xd8] sm:$0xff] }
0x1ade   :  { %4635 = vmatprep.subr.mxu1 %v10398_v47  ;;  %v10444_v47 = vld [vmem:[%s16539_s7 + $0x1e8] sm:$0xff] }
0x1adf   :  { %12838 = vrcp.f32 %v4372_v55  ;;  %v10397_v55 = vld [vmem:[%s16537_s6 + $0xd0] sm:$0xff] }
0x1ae0   :  { %v12833_v63 = vpop.eup %12832  ;;  %4636 = vmatpush1.msra.mxu1 %v10397_v55  ;;  %v10428_v55 = vld [vmem:[%s16539_s7 + $0x168] sm:$0xff] }
0x1ae1   :  { %v4373_v43 = vadd.f32 1.0, %v12833_v63  ;;  %v10396_v63 = vld [vmem:[%s16537_s6 + $0xc8] sm:$0xff] }
0x1ae2   :  { %v12835_v44 = vpop.eup %12834  ;;  %4637 = vmatprep.subr.mxu1 %v10396_v63  ;;  %v10443_v63 = vld [vmem:[%s16539_s7 + $0x1e0] sm:$0xff] }
0x1ae3   :  { %12840 = vrcp.f32 %v4373_v43  ;;  %v4383_v27 = vmul.f32 %v12835_v44, %v4355_v60  ;;  %v10395_v43 = vld [vmem:[%s16537_s6 + $0xc0] sm:$0xff]  ;;  %v10394_v44 = vld [vmem:[%s16537_s6 + $0xb8] sm:$0xff] }
0x1ae4   :  { %4638 = vmatpush1.msra.mxu1 %v10395_v43  ;;  %v10427_v43 = vld [vmem:[%s16539_s7 + $0x160] sm:$0xff] }
0x1ae5   :  { %v12837_v61 = vpop.eup %12836  ;;  %4639 = vmatprep.subr.mxu1 %v10394_v44  ;;  %v10442_v44 = vld [vmem:[%s16539_s7 + $0x1d8] sm:$0xff] }
0x1ae6   :  { %v4382_v62 = vmul.f32 %v12837_v61, %v4354_v54  ;;  %v10393_v61 = vld [vmem:[%s16537_s6 + $0xb0] sm:$0xff] }
0x1ae7   :  { %4640 = vmatpush1.msra.mxu1 %v10393_v61  ;;  %v10426_v61 = vld [vmem:[%s16539_s7 + $0x158] sm:$0xff] }
0x1ae8   :  { %12086 = vmatprep.mubr.msk.f32.mxu0 %vm16623_vm10, %v4382_v62  ;;  %v10392_v62 = vld [vmem:[%s16537_s6 + $0xa8] sm:$0xff]  ;;  %vm16637_vm10 = vmmov %vm16629_vm0 }
0x1ae9   :  { %12087 = vmatmul.mubr.msk.f32.vlgmr.msra.gmra.mxu0 %vm16624_vm11, %v4383_v27  ;;  %v10391_v27 = vld [vmem:[%s16537_s6 + $0xa0] sm:$0xff]  ;;  %4641 = vmatprep.subr.mxu1 %v10392_v62  ;;  %vm16639_vm11 = vmmov %vm16629_vm0  ;;  %v10441_v62 = vld [vmem:[%s16539_s7 + $0x1d0] sm:$0xff] }
0x1aea   :  { %4642 = vmatpush1.msra.mxu1 %v10391_v27  ;;  %v10425_v27 = vld [vmem:[%s16539_s7 + $0x150] sm:$0xff] }
0x1aec   :  { %v12839_v8 = vpop.eup %12838 }
0x1aed   :  { %v4384_v37 = vmul.f32 %v12839_v8, %v4356_v7  ;;  %v10390_v8 = vld [vmem:[%s16537_s6 + $0x98] sm:$0xff] }
0x1aee   :  { %4643 = vmatprep.subr.mxu1 %v10390_v8  ;;  %v10440_v8 = vld [vmem:[%s16539_s7 + $0x1c8] sm:$0xff] }
0x1aef   :  { %12089 = vmatprep.mubr.msk.f32.mxu0 %vm16625_vm12, %v4384_v37  ;;  %v10389_v37 = vld [vmem:[%s16537_s6 + $0x90] sm:$0xff]  ;;  %vm16640_vm12 = vmmov %vm16629_vm0 }
0x1af0   :  { %v12841_v15 = vpop.eup %12840  ;;  %4644 = vmatpush1.msra.mxu1 %v10389_v37  ;;  %v10424_v37 = vld [vmem:[%s16539_s7 + $0x148] sm:$0xff] }
0x1af1   :  { %v4385_v10 = vmul.f32 %v12841_v15, %v4357_v24  ;;  %v10388_v15 = vld [vmem:[%s16537_s6 + $0x88] sm:$0xff] }
0x1af2   :  { %4645 = vmatprep.subr.mxu1 %v10388_v15  ;;  %v10439_v15 = vld [vmem:[%s16539_s7 + $0x1c0] sm:$0xff] }
0x1af3   :  { %12090 = vmatmul.mubr.msk.f32.gmra.mxu0 %vm16626_vm13, %v4385_v10  ;;  %v10387_v10 = vld [vmem:[%s16537_s6 + $0x80] sm:$0xff]  ;;  %vm16641_vm13 = vmmov %vm16629_vm0 }
0x1af4   :  { %4646 = vmatpush1.msra.mxu1 %v10387_v10  ;;  %v10423_v10 = vld [vmem:[%s16539_s7 + $0x140] sm:$0xff] }
0x1ba9   :  { %v12088_v35 = vpop.f32.mrf.mxu0 }
0x1baa   :  { %v4483_v12 = vadd.f32 %v12088_v35, %v4398_v40 }
0x1bab   :  { %v4477_v9 = vpop.f32.mrf.mxu0 }
0x1bac   :  { %v14583_v26 = vadd.f32 %v4483_v12, %v14151_v0  ;;  %v4478_v14 = vadd.f32 %v4477_v9, %v4398_v40 }
0x1bae   :  { %v14586_v60 = vadd.f32 %v4478_v14, %v14154_v46  ;;  %v4503_v5 = vsel %vm16627_vm14, %v14583_v26, 0.0  ;;  %vm16643_vm14 = vmmov %vm16629_vm0 }
0x1baf   :  { %4504 = vadd.xlane.f32.xlu1 %v4503_v5 }
0x1bb0   :  { %v4500_v21 = vsel %vm16628_vm15, %v14586_v60, 0.0  ;;  %vm16644_vm15 = vmmov %vm16629_vm0 }
0x1bb1   :  { %4501 = vadd.xlane.f32.xlu0 %v4500_v21 }
0x1bb3   :  { %v12091_v39 = vpop.f32.mrf.mxu0 }
0x1bb4   :  { %v4493_v58 = vadd.f32 %v12091_v39, %v4398_v40 }
0x1bb5   :  { %v4487_v28 = vpop.f32.mrf.mxu0 }
0x1bb6   :  { %v14593_v3 = vadd.f32 %v4493_v58, %v14173_v49  ;;  %v4488_v0 = vadd.f32 %v4487_v28, %v4398_v40 }
0x1bb8   :  { %v14596_v1 = vadd.f32 %v4488_v0, %v14176_v53  ;;  %v4509_v46 = vsel %vm16629_vm0, %v14593_v3, 0.0 }
0x1bb9   :  { %4510 = vadd.xlane.f32.xlu1 %v4509_v46 }
0x1bba   :  { %v4506_v41 = vsel %vm16630_vm1, %v14596_v1, 0.0  ;;  %vm16645_vm1 = vmmov %vm16629_vm0 }
0x1bbb   :  { %4507 = vadd.xlane.f32.xlu0 %v4506_v41 }
0x1c38   :  { %v4505_v38 = vpop.xlane.xlu1 %4504 }
0x1c39   :  { %v4513_v20 = vmul.f32 0.015625, %v4505_v38 }
0x1c3a   :  { %v4502_v11 = vpop.xlane.xlu0 %4501 }
0x1c3b   :  { %v14603_v54 = vsub.f32 %v14583_v26, %v4513_v20  ;;  %v4512_v49 = vmul.f32 0.015625, %v4502_v11  ;;  %v16635_v20 = vld [vmem:[#allocation10_spill] sm:$0xff] }
0x1c3c   :  { %v4555_v11 = vrot.slane %v16635_v20, %v13746_v16 }
0x1c3d   :  { %v14606_v51 = vsub.f32 %v14586_v60, %v4512_v49  ;;  %v4521_v53 = vmul.f32 %v14603_v54, %v14603_v54 }
0x1c3f   :  { %v4527_v29 = vsel %vm16631_vm6, %v4521_v53, 0.0  ;;  %v4520_v22 = vmul.f32 %v14606_v51, %v14606_v51  ;;  %vm16646_vm6 = vmmov %vm16629_vm0 }
0x1c40   :  { %4528 = vadd.xlane.f32.xlu1 %v4527_v29 }
0x1c41   :  { %v4524_v17 = vsel %vm16632_vm7, %v4520_v22, 0.0  ;;  %v16636_v22 = vld [vmem:[#allocation8_spill] sm:$0xff]  ;;  %vm16647_vm7 = vmmov %vm16629_vm0 }
0x1c42   :  { %v4511_v32 = vpop.xlane.xlu1 %4510  ;;  %4525 = vadd.xlane.f32.xlu0 %v4524_v17 }
0x1c43   :  { %v4515_v6 = vmul.f32 0.015625, %v4511_v32  ;;  %v4563_v32 = vrot.slane %v16635_v20, %v16636_v22  ;;  %v10431_v20 = vld [vmem:[%s16539_s7 + $0x180] sm:$0xff] }
0x1c44   :  { %v4508_v31 = vpop.xlane.xlu0 %4507 }
0x1c45   :  { %v14615_v48 = vsub.f32 %v14593_v3, %v4515_v6  ;;  %v4514_v7 = vmul.f32 0.015625, %v4508_v31 }
0x1c47   :  { %v14618_v50 = vsub.f32 %v14596_v1, %v4514_v7  ;;  %v4523_v13 = vmul.f32 %v14615_v48, %v14615_v48  ;;  %v16638_v7 = vmov 0.0  }
0x1c49   :  { %v4533_v36 = vsel %vm16633_vm8, %v4523_v13, 0.0  ;;  %v4522_v24 = vmul.f32 %v14618_v50, %v14618_v50  ;;  %vm16648_vm8 = vmmov %vm16629_vm0 }
0x1c4a   :  { %4534 = vadd.xlane.f32.xlu1 %v4533_v36 }
0x1c4b   :  { %v4530_v23 = vsel %vm16634_vm9, %v4522_v24, 0.0  ;;  %vm16649_vm9 = vmmov %vm16629_vm0 }
0x1c4c   :  { %4531 = vadd.xlane.f32.xlu0 %v4530_v23 }
0x1cc9   :  { %v4529_v40 = vpop.xlane.xlu1 %4528 }
0x1cca   :  { %v4537_v35 = vmul.f32 0.015625, %v4529_v40  ;;  %v10438_v40 = vld [vmem:[%s16539_s7 + $0x1b8] sm:$0xff] }
0x1ccb   :  { %v4526_v12 = vpop.xlane.xlu0 %4525 }
0x1ccc   :  { %v4541_v9 = vadd.f32 1e-05, %v4537_v35  ;;  %v4536_v14 = vmul.f32 0.015625, %v4526_v12  ;;  %v10422_v35 = vld [vmem:[%s16539_s7 + $0x138] sm:$0xff]  ;;  %v10437_v12 = vld [vmem:[%s16539_s7 + $0x1b0] sm:$0xff] }
0x1cce   :  { %12842 = vrsqrt.f32 %v4541_v9  ;;  %v4540_v5 = vadd.f32 1e-05, %v4536_v14  ;;  %v10421_v9 = vld [vmem:[%s16539_s7 + $0x130] sm:$0xff]  ;;  %v10436_v14 = vld [vmem:[%s16539_s7 + $0x1a8] sm:$0xff] }
0x1cd0   :  { %12844 = vrsqrt.f32 %v4540_v5  ;;  %v10420_v5 = vld [vmem:[%s16539_s7 + $0x128] sm:$0xff] }
0x1cd3   :  { %v4535_v21 = vpop.xlane.xlu1 %4534 }
0x1cd4   :  { %v4539_v39 = vmul.f32 0.015625, %v4535_v21  ;;  %v10435_v21 = vld [vmem:[%s16539_s7 + $0x1a0] sm:$0xff] }
0x1cd5   :  { %v4532_v58 = vpop.xlane.xlu0 %4531 }
0x1cd6   :  { %v4543_v28 = vadd.f32 1e-05, %v4539_v39  ;;  %v4538_v0 = vmul.f32 0.015625, %v4532_v58  ;;  %v10419_v39 = vld [vmem:[%s16539_s7 + $0x120] sm:$0xff]  ;;  %v10434_v58 = vld [vmem:[%s16539_s7 + $0x198] sm:$0xff] }
0x1cd8   :  { %12846 = vrsqrt.f32 %v4543_v28  ;;  %v4542_v46 = vadd.f32 1e-05, %v4538_v0  ;;  %v10418_v28 = vld [vmem:[%s16539_s7 + $0x118] sm:$0xff]  ;;  %v10433_v0 = vld [vmem:[%s16539_s7 + $0x190] sm:$0xff] }
0x1cda   :  { %12848 = vrsqrt.f32 %v4542_v46  ;;  %v10417_v46 = vld [vmem:[%s16539_s7 + $0x110] sm:$0xff] }
0x1cdb   :  { %v12843_v41 = vpop.eup %12842 }
0x1cdc   :  { %v4549_v53 = vmul.f32 %v12843_v41, %v14603_v54  ;;  %v10432_v41 = vld [vmem:[%s16539_s7 + $0x188] sm:$0xff] }
0x1cdd   :  { %v12845_v38 = vpop.eup %12844 }
0x1cde   :  { %v4548_v49 = vmul.f32 %v12845_v38, %v14606_v51  ;;  %v4557_v6 = vmul.f32 %v4555_v11, %v4549_v53  ;;  %v10416_v38 = vld [vmem:[%s16539_s7 + $0x108] sm:$0xff]  ;;  %v16642_v53 = vld [vmem:[#allocation4_spill] sm:$0xff] }
0x1ce0   :  { %v4556_v29 = vmul.f32 %v4555_v11, %v4548_v49  ;;  %v4565_v36 = vadd.f32 %v4563_v32, %v4557_v6  ;;  %v13100_v49 = vld [vmem:[%s16540_s4] sm:$0xf] }
0x1ce2   :  { %v4564_v17 = vadd.f32 %v4563_v32, %v4556_v29  ;;  %v4588_v29 = vrot.slane %v13100_v49, %v16642_v53 }
0x1ce4   :  { %10403 = vmatmul.mubr.msk.f32.vlgmr.msra.gmra.mxu1 %vm16637_vm10, %v4564_v17  ;;  %v4598_v17 = vrot.slane %v4588_v29, %v16642_v53  ;;  %vm16651_vm10 = vmmov %vm16629_vm0 }
0x1ce5   :  { %v12847_v31 = vpop.eup %12846  ;;  %4685 = vmatprep.mubr.f32.mxu1 %v16638_v7 }
0x1ce6   :  { %v4551_v23 = vmul.f32 %v12847_v31, %v14615_v48  ;;  %v10446_v48 = vld [vmem:[%s16539_s7 + $0x1f8] sm:$0xff] }
0x1ce7   :  { %v12849_v13 = vpop.eup %12848  ;;  %11155 = vmatprep.subr.mxu0 %v10446_v48 }
0x1ce8   :  { %v4550_v24 = vmul.f32 %v12849_v13, %v14618_v50  ;;  %10404 = vmatmul.mubr.msk.f32.gmra.mxu1 %vm16639_vm11, %v4565_v36  ;;  %v4559_v34 = vmul.f32 %v4555_v11, %v4551_v23  ;;  %v10430_v50 = vld [vmem:[%s16539_s7 + $0x178] sm:$0xff]  ;;  %vm16652_vm11 = vmmov %vm16629_vm0 }
0x1ce9   :  { %4691 = vmatprep.mubr.f32.mxu1 %v16638_v7  ;;  %11156 = vmatpush3.msra.mxu0 %v10430_v50 }
0x1cea   :  { %v4558_v54 = vmul.f32 %v4555_v11, %v4550_v24  ;;  %v4567_v52 = vadd.f32 %v4563_v32, %v4559_v34  ;;  %11157 = vmatprep.subr.mxu0 %v10445_v45  ;;  %v10415_v11 = vld [vmem:[%s16539_s7 + $0x100] sm:$0xff] }
0x1ceb   :  { %11158 = vmatpush3.msra.mxu0 %v10429_v30 }
0x1cec   :  { %v4566_v51 = vadd.f32 %v4563_v32, %v4558_v54  ;;  %11159 = vmatprep.subr.mxu0 %v10444_v47  ;;  %v4592_v32 = vrot.slane %v13100_v49, %v13746_v16 }
0x1ced   :  { %11160 = vmatpush3.msra.mxu0 %v10428_v55 }
0x1cee   :  { %10405 = vmatmul.mubr.msk.f32.gmra.mxu1 %vm16640_vm12, %v4566_v51  ;;  %11161 = vmatprep.subr.mxu0 %v10443_v63  ;;  %v4602_v6 = vrot.slane %v4592_v32, %v16642_v53  ;;  %vm16653_vm12 = vmmov %vm16629_vm0 }
0x1cef   :  { %4697 = vmatprep.mubr.f32.mxu1 %v16638_v7  ;;  %11162 = vmatpush3.msra.mxu0 %v10427_v43 }
0x1cf0   :  { %11163 = vmatprep.subr.mxu0 %v10442_v44 }
0x1cf1   :  { %11164 = vmatpush3.msra.mxu0 %v10426_v61 }
0x1cf2   :  { %10406 = vmatmul.mubr.msk.f32.gmra.mxu1 %vm16641_vm13, %v4567_v52  ;;  %11165 = vmatprep.subr.mxu0 %v10441_v62  ;;  %vm16654_vm13 = vmmov %vm16629_vm0 }
0x1cf3   :  { %5079 = vmatprep.mubr.f32.mxu1 %v16638_v7  ;;  %11166 = vmatpush3.msra.mxu0 %v10425_v27 }
0x1cf4   :  { %11167 = vmatprep.subr.mxu0 %v10440_v8 }
0x1cf5   :  { %11168 = vmatpush3.msra.mxu0 %v10424_v37 }
0x1cf6   :  { %11169 = vmatprep.subr.mxu0 %v10439_v15 }
0x1cf7   :  { %11170 = vmatpush3.msra.mxu0 %v10423_v10 }
0x1cf8   :  { %11171 = vmatprep.subr.mxu0 %v10438_v40 }
0x1cf9   :  { %11172 = vmatpush3.msra.mxu0 %v10422_v35 }
0x1cfa   :  { %11173 = vmatprep.subr.mxu0 %v10437_v12 }
0x1cfb   :  { %11174 = vmatpush3.msra.mxu0 %v10421_v9 }
0x1cfc   :  { %11175 = vmatprep.subr.mxu0 %v10436_v14 }
0x1cfd   :  { %11176 = vmatpush3.msra.mxu0 %v10420_v5 }
0x1cfe   :  { %11177 = vmatprep.subr.mxu0 %v10435_v21 }
0x1cff   :  { %11178 = vmatpush3.msra.mxu0 %v10419_v39 }
0x1d00   :  { %11179 = vmatprep.subr.mxu0 %v10434_v58 }
0x1d01   :  { %11180 = vmatpush3.msra.mxu0 %v10418_v28 }
0x1d02   :  { %11181 = vmatprep.subr.mxu0 %v10433_v0 }
0x1d03   :  { %11182 = vmatpush3.msra.mxu0 %v10417_v46 }
0x1d04   :  { %11183 = vmatprep.subr.mxu0 %v10432_v41 }
0x1d05   :  { %11184 = vmatpush3.msra.mxu0 %v10416_v38 }
0x1d06   :  { %11185 = vmatprep.subr.mxu0 %v10431_v20 }
0x1d07   :  { %11186 = vmatpush3.msra.mxu0 %v10415_v11 }
0x1da4   :  { %v4681_v31 = vpop.f32.mrf.mxu1 }
0x1da5   :  { %v4682_v13 = vadd.f32 %v4681_v31, %v4598_v17 }
0x1da6   :  { %v4683_v36 = vpop.f32.mrf.mxu1 }
0x1da7   :  { %v10407_v24 = vmul.f32 -1.442695, %v4682_v13  ;;  %v4684_v23 = vadd.f32 %v4683_v36, %v4602_v6 }
0x1da8   :  { %v4687_v54 = vpop.f32.mrf.mxu1 }
0x1da9   :  { %12850 = vpow2.f32 %v10407_v24  ;;  %v10408_v51 = vmul.f32 -1.442695, %v4684_v23  ;;  %v4688_v34 = vadd.f32 %v4687_v54, %v4598_v17 }
0x1daa   :  { %v4689_v52 = vpop.f32.mrf.mxu1 }
0x1dab   :  { %12852 = vpow2.f32 %v10408_v51  ;;  %v10409_v48 = vmul.f32 -1.442695, %v4688_v34  ;;  %v4690_v50 = vadd.f32 %v4689_v52, %v4602_v6 }
0x1dad   :  { %12854 = vpow2.f32 %v10409_v48  ;;  %v10410_v45 = vmul.f32 -1.442695, %v4690_v50 }
0x1dae   :  { %v4693_v30 = vpop.f32.mrf.mxu1 }
0x1daf   :  { %v4694_v47 = vadd.f32 %v4693_v30, %v4598_v17  ;;  %12856 = vpow2.f32 %v10410_v45 }
0x1db0   :  { %v4695_v55 = vpop.f32.mrf.mxu1 }
0x1db1   :  { %v10411_v63 = vmul.f32 -1.442695, %v4694_v47  ;;  %v4696_v43 = vadd.f32 %v4695_v55, %v4602_v6 }
0x1db2   :  { %v4699_v44 = vpop.f32.mrf.mxu1 }
0x1db3   :  { %12858 = vpow2.f32 %v10411_v63  ;;  %v10412_v61 = vmul.f32 -1.442695, %v4696_v43  ;;  %v4700_v62 = vadd.f32 %v4699_v44, %v4598_v17 }
0x1db4   :  { %v4701_v27 = vpop.f32.mrf.mxu1 }
0x1db5   :  { %12860 = vpow2.f32 %v10412_v61  ;;  %v10413_v8 = vmul.f32 -1.442695, %v4700_v62  ;;  %v4702_v37 = vadd.f32 %v4701_v27, %v4602_v6 }
0x1db6   :  { %v12851_v15 = vpop.eup %12850 }
0x1db7   :  { %12862 = vpow2.f32 %v10413_v8  ;;  %v10414_v10 = vmul.f32 -1.442695, %v4702_v37  ;;  %v4728_v40 = vadd.f32 1.0, %v12851_v15 }
0x1db8   :  { %v12853_v35 = vpop.eup %12852 }
0x1db9   :  { %12864 = vpow2.f32 %v10414_v10  ;;  %v4729_v12 = vadd.f32 1.0, %v12853_v35 }
0x1dba   :  { %v12855_v9 = vpop.eup %12854  ;;  %12866 = vrcp.f32 %v4728_v40 }
0x1dbb   :  { %12868 = vrcp.f32 %v4729_v12  ;;  %v4730_v14 = vadd.f32 1.0, %v12855_v9 }
0x1dbc   :  { %v12857_v5 = vpop.eup %12856 }
0x1dbd   :  { %v4731_v21 = vadd.f32 1.0, %v12857_v5  ;;  %12870 = vrcp.f32 %v4730_v14 }
0x1dbf   :  { %12872 = vrcp.f32 %v4731_v21 }
0x1dc0   :  { %v12859_v39 = vpop.eup %12858 }
0x1dc1   :  { %v4732_v58 = vadd.f32 1.0, %v12859_v39 }
0x1dc2   :  { %v12861_v28 = vpop.eup %12860 }
0x1dc3   :  { %v4733_v0 = vadd.f32 1.0, %v12861_v28  ;;  %12874 = vrcp.f32 %v4732_v58 }
0x1dc4   :  { %v12863_v46 = vpop.eup %12862 }
0x1dc5   :  { %12876 = vrcp.f32 %v4733_v0  ;;  %v4734_v41 = vadd.f32 1.0, %v12863_v46 }
0x1dc6   :  { %v12865_v38 = vpop.eup %12864 }
0x1dc7   :  { %v4735_v20 = vadd.f32 1.0, %v12865_v38  ;;  %v12867_v11 = vpop.eup %12866  ;;  %12878 = vrcp.f32 %v4734_v41 }
0x1dc8   :  { %v12869_v49 = vpop.eup %12868  ;;  %v4752_v32 = vmul.f32 %v12867_v11, %v4682_v13 }
0x1dc9   :  { %12880 = vrcp.f32 %v4735_v20  ;;  %v4753_v29 = vmul.f32 %v12869_v49, %v4684_v23  ;;  %v13101_v23 = vld [vmem:[%s16538_s3 + $0x8] sm:$0xff] }
0x1dca   :  { %v12871_v17 = vpop.eup %12870 }
0x1dcb   :  { %4861 = vmatprep.mubr.f32.mxu0 %v4753_v29  ;;  %v4754_v36 = vmul.f32 %v12871_v17, %v4688_v34  ;;  %v4796_v34 = vrot.slane %v13101_v23, %v16642_v53  ;;  %v10467_v23 = vld [vmem:[%s16537_s6 + $0x170] sm:$0xff] }
0x1dcc   :  { %v12873_v6 = vpop.eup %12872  ;;  %4862 = vmatmul.mubr.f32.vlgmr.msra.gmra.mxu0 %v4752_v32 }
0x1dcd   :  { %v4755_v31 = vmul.f32 %v12873_v6, %v4690_v50 }
0x1dcf   :  { %4866 = vmatprep.mubr.f32.mxu0 %v4755_v31 }
0x1dd0   :  { %v12875_v24 = vpop.eup %12874  ;;  %4867 = vmatmul.mubr.f32.gmra.mxu0 %v4754_v36 }
0x1dd1   :  { %v4756_v52 = vmul.f32 %v12875_v24, %v4694_v47 }
0x1dd2   :  { %v12877_v54 = vpop.eup %12876 }
0x1dd3   :  { %v4757_v51 = vmul.f32 %v12877_v54, %v4696_v43 }
0x1dd4   :  { %v12879_v48 = vpop.eup %12878 }
0x1dd5   :  { %4871 = vmatprep.mubr.f32.mxu0 %v4757_v51  ;;  %v4758_v55 = vmul.f32 %v12879_v48, %v4700_v62 }
0x1dd6   :  { %v12881_v45 = vpop.eup %12880  ;;  %4872 = vmatmul.mubr.f32.gmra.mxu0 %v4756_v52 }
0x1dd7   :  { %v4759_v30 = vmul.f32 %v12881_v45, %v4702_v37 }
0x1dd9   :  { %4876 = vmatprep.mubr.f32.mxu0 %v4759_v30 }
0x1dda   :  { %4877 = vmatmul.mubr.f32.gmra.mxu0 %v4758_v55 }
0x1e8c   :  { %v11187_v13 = vpop.f32.mrf.mxu0 }
0x1e8e   :  { %v11188_v50 = vpop.f32.mrf.mxu0 }
0x1e8f   :  { %v11189_v63 = vadd.f32 %v11188_v50, %v11187_v13  ;;  %v10468_v13 = vld [vmem:[%s16537_s6 + $0x178] sm:$0xff]  ;;  %v10465_v50 = vld [vmem:[%s16537_s6 + $0x160] sm:$0xff] }
0x1e90   :  { %v11190_v44 = vpop.f32.mrf.mxu0  ;;  %5031 = vmatprep.subr.mxu1 %v10468_v13 }
0x1e91   :  { %v4864_v43 = vadd.f32 %v11189_v63, %v4796_v34  ;;  %5032 = vmatpush1.msra.mxu1 %v10467_v23  ;;  %v10464_v63 = vld [vmem:[%s16537_s6 + $0x158] sm:$0xff] }
0x1e92   :  { %v11191_v47 = vpop.f32.mrf.mxu0 }
0x1e93   :  { %v4882_v61 = vmul.f32 0.5, %v4864_v43  ;;  %v11192_v27 = vadd.f32 %v11191_v47, %v11190_v44  ;;  %v10463_v44 = vld [vmem:[%s16537_s6 + $0x150] sm:$0xff]  ;;  %v10462_v43 = vld [vmem:[%s16537_s6 + $0x148] sm:$0xff]  ;;  %v10461_v47 = vld [vmem:[%s16537_s6 + $0x140] sm:$0xff] }
0x1e95   :  { %v4869_v8 = vadd.f32 %v11192_v27, %v4796_v34  ;;  %v14798_v62 = vadd.f32 %v4882_v61, %v14586_v60  ;;  %v10460_v61 = vld [vmem:[%s16537_s6 + $0x138] sm:$0xff]  ;;  %v10459_v27 = vld [vmem:[%s16537_s6 + $0x130] sm:$0xff] }
0x1e96   :  { %v11193_v15 = vpop.f32.mrf.mxu0 }
0x1e97   :  { %v4883_v37 = vmul.f32 0.5, %v4869_v8  ;;  %v4899_v40 = vsel %vm16643_vm14, %v14798_v62, 0.0  ;;  %v10458_v8 = vld [vmem:[%s16537_s6 + $0x128] sm:$0xff]  ;;  %vm16656_vm14 = vmmov %vm16629_vm0 }
0x1e98   :  { %v11194_v10 = vpop.f32.mrf.mxu0  ;;  %4900 = vadd.xlane.f32.xlu0 %v4899_v40  ;;  %v10454_v40 = vld [vmem:[%s16537_s6 + $0x108] sm:$0xff] }
0x1e99   :  { %v11195_v35 = vadd.f32 %v11194_v10, %v11193_v15  ;;  %v14803_v9 = vadd.f32 %v4883_v37, %v14583_v26  ;;  %v10457_v15 = vld [vmem:[%s16537_s6 + $0x120] sm:$0xff]  ;;  %v10456_v37 = vld [vmem:[%s16537_s6 + $0x118] sm:$0xff]  ;;  %v10455_v10 = vld [vmem:[%s16537_s6 + $0x110] sm:$0xff] }
0x1e9a   :  { %v11196_v12 = vpop.f32.mrf.mxu0 }
0x1e9b   :  { %v4874_v14 = vadd.f32 %v11195_v35, %v4796_v34  ;;  %v4902_v21 = vsel %vm16644_vm15, %v14803_v9, 0.0  ;;  %v10453_v35 = vld [vmem:[%s16537_s6 + $0x100] sm:$0xff]  ;;  %vm16657_vm15 = vmmov %vm16629_vm0 }
0x1e9c   :  { %v11197_v5 = vpop.f32.mrf.mxu0  ;;  %4903 = vadd.xlane.f32.xlu1 %v4902_v21 }
0x1e9d   :  { %v4884_v39 = vmul.f32 0.5, %v4874_v14  ;;  %v11198_v58 = vadd.f32 %v11197_v5, %v11196_v12 }
0x1e9f   :  { %v4879_v60 = vadd.f32 %v11198_v58, %v4796_v34  ;;  %v14808_v28 = vadd.f32 %v4884_v39, %v14596_v1  ;;  %v10466_v34 = vld [vmem:[%s16537_s6 + $0x168] sm:$0xff] }
0x1ea0   :  { %5033 = vmatprep.subr.mxu1 %v10466_v34 }
0x1ea1   :  { %v4885_v0 = vmul.f32 0.5, %v4879_v60  ;;  %v4905_v46 = vsel %vm16629_vm0, %v14808_v28, 0.0  ;;  %5034 = vmatpush1.msra.mxu1 %v10465_v50 }
0x1ea2   :  { %4906 = vadd.xlane.f32.xlu0 %v4905_v46  ;;  %5035 = vmatprep.subr.mxu1 %v10464_v63  ;;  %v10496_v63 = vld [vmem:[%s16539_s7 + $0x278] sm:$0xff] }
0x1ea3   :  { %v14813_v26 = vadd.f32 %v4885_v0, %v14593_v3  ;;  %5036 = vmatpush1.msra.mxu1 %v10463_v44  ;;  %v10495_v44 = vld [vmem:[%s16539_s7 + $0x270] sm:$0xff] }
0x1ea4   :  { %5037 = vmatprep.subr.mxu1 %v10462_v43  ;;  %v10510_v43 = vld [vmem:[%s16539_s7 + $0x2e8] sm:$0xff] }
0x1ea5   :  { %v4908_v41 = vsel %vm16645_vm1, %v14813_v26, 0.0  ;;  %5038 = vmatpush1.msra.mxu1 %v10461_v47  ;;  %v10494_v47 = vld [vmem:[%s16539_s7 + $0x268] sm:$0xff]  ;;  %vm16658_vm1 = vmmov %vm16629_vm0 }
0x1ea6   :  { %4909 = vadd.xlane.f32.xlu1 %v4908_v41  ;;  %5039 = vmatprep.subr.mxu1 %v10460_v61  ;;  %v10509_v61 = vld [vmem:[%s16539_s7 + $0x2e0] sm:$0xff] }
0x1ea7   :  { %5040 = vmatpush1.msra.mxu1 %v10459_v27  ;;  %v10493_v27 = vld [vmem:[%s16539_s7 + $0x260] sm:$0xff] }
0x1ea8   :  { %5041 = vmatprep.subr.mxu1 %v10458_v8  ;;  %v10508_v8 = vld [vmem:[%s16539_s7 + $0x2d8] sm:$0xff] }
0x1ea9   :  { %5042 = vmatpush1.msra.mxu1 %v10457_v15  ;;  %v10492_v15 = vld [vmem:[%s16539_s7 + $0x258] sm:$0xff] }
0x1eaa   :  { %5043 = vmatprep.subr.mxu1 %v10456_v37  ;;  %v10507_v37 = vld [vmem:[%s16539_s7 + $0x2d0] sm:$0xff] }
0x1eab   :  { %5044 = vmatpush1.msra.mxu1 %v10455_v10  ;;  %v10491_v10 = vld [vmem:[%s16539_s7 + $0x250] sm:$0xff] }
0x1eac   :  { %5045 = vmatprep.subr.mxu1 %v10454_v40  ;;  %v10506_v40 = vld [vmem:[%s16539_s7 + $0x2c8] sm:$0xff] }
0x1ead   :  { %5046 = vmatpush1.msra.mxu1 %v10453_v35  ;;  %v10490_v35 = vld [vmem:[%s16539_s7 + $0x248] sm:$0xff] }
0x1f21   :  { %v4901_v38 = vpop.xlane.xlu0 %4900 }
0x1f22   :  { %v4911_v20 = vmul.f32 0.015625, %v4901_v38  ;;  %v14892_v38 = vld [vmem:[%s16538_s3 + $0x18] sm:$0xff] }
0x1f24   :  { %v14818_v11 = vsub.f32 %v14798_v62, %v4911_v20 }
0x1f25   :  { %v4904_v49 = vpop.xlane.xlu1 %4903 }
0x1f26   :  { %v4912_v1 = vmul.f32 0.015625, %v4904_v49  ;;  %v4919_v29 = vmul.f32 %v14818_v11, %v14818_v11 }
0x1f28   :  { %v14823_v32 = vsub.f32 %v14803_v9, %v4912_v1  ;;  %v4923_v3 = vsel %vm16646_vm6, %v4919_v29, 0.0  ;;  %v4954_v1 = vrot.slane %v14892_v38, %v13278_v59  ;;  %vm16659_vm6 = vmmov %vm16629_vm0 }
0x1f29   :  { %4924 = vadd.xlane.f32.xlu0 %v4923_v3 }
0x1f2a   :  { %v4920_v6 = vmul.f32 %v14823_v32, %v14823_v32 }
0x1f2b   :  { %v4907_v17 = vpop.xlane.xlu0 %4906 }
0x1f2c   :  { %v4913_v31 = vmul.f32 0.015625, %v4907_v17  ;;  %v4926_v36 = vsel %vm16647_vm7, %v4920_v6, 0.0  ;;  %v16650_v17 = vld [vmem:[#allocation2_spill] sm:$0xff]  ;;  %vm16660_vm7 = vmmov %vm16629_vm0 }
0x1f2d   :  { %4927 = vadd.xlane.f32.xlu1 %v4926_v36  ;;  %v4962_v6 = vrot.slane %v14892_v38, %v16650_v17 }
0x1f2e   :  { %v14830_v24 = vsub.f32 %v14808_v28, %v4913_v31 }
0x1f2f   :  { %v4910_v54 = vpop.xlane.xlu1 %4909 }
0x1f30   :  { %v4914_v51 = vmul.f32 0.015625, %v4910_v54  ;;  %v4921_v52 = vmul.f32 %v14830_v24, %v14830_v24 }
0x1f32   :  { %v14835_v48 = vsub.f32 %v14813_v26, %v4914_v51  ;;  %v4929_v45 = vsel %vm16648_vm8, %v4921_v52, 0.0  ;;  %vm16661_vm8 = vmmov %vm16629_vm0 }
0x1f33   :  { %4930 = vadd.xlane.f32.xlu0 %v4929_v45 }
0x1f34   :  { %v4922_v30 = vmul.f32 %v14835_v48, %v14835_v48 }
0x1f36   :  { %v4932_v55 = vsel %vm16649_vm9, %v4922_v30, 0.0  ;;  %vm16662_vm9 = vmmov %vm16629_vm0 }
0x1f37   :  { %4933 = vadd.xlane.f32.xlu1 %v4932_v55 }
0x1fb2   :  { %v4925_v12 = vpop.xlane.xlu0 %4924 }
0x1fb3   :  { %v4935_v14 = vmul.f32 0.015625, %v4925_v12  ;;  %v10505_v12 = vld [vmem:[%s16539_s7 + $0x2c0] sm:$0xff] }
0x1fb5   :  { %v4939_v5 = vadd.f32 1e-05, %v4935_v14  ;;  %v10489_v14 = vld [vmem:[%s16539_s7 + $0x240] sm:$0xff] }
0x1fb6   :  { %v4928_v21 = vpop.xlane.xlu1 %4927 }
0x1fb7   :  { %12882 = vrsqrt.f32 %v4939_v5  ;;  %v4936_v39 = vmul.f32 0.015625, %v4928_v21  ;;  %v10504_v5 = vld [vmem:[%s16539_s7 + $0x2b8] sm:$0xff] }
0x1fb8   :  { %v10488_v21 = vld [vmem:[%s16539_s7 + $0x238] sm:$0xff] }
0x1fb9   :  { %v4940_v58 = vadd.f32 1e-05, %v4936_v39  ;;  %v10503_v39 = vld [vmem:[%s16539_s7 + $0x2b0] sm:$0xff] }
0x1fbb   :  { %12884 = vrsqrt.f32 %v4940_v58  ;;  %v10487_v58 = vld [vmem:[%s16539_s7 + $0x230] sm:$0xff] }
0x1fbc   :  { %v4931_v60 = vpop.xlane.xlu0 %4930 }
0x1fbd   :  { %v4937_v0 = vmul.f32 0.015625, %v4931_v60  ;;  %v10502_v60 = vld [vmem:[%s16539_s7 + $0x2a8] sm:$0xff] }
0x1fbf   :  { %v4941_v46 = vadd.f32 1e-05, %v4937_v0  ;;  %v10486_v0 = vld [vmem:[%s16539_s7 + $0x228] sm:$0xff] }
0x1fc0   :  { %v4934_v41 = vpop.xlane.xlu1 %4933 }
0x1fc1   :  { %12886 = vrsqrt.f32 %v4941_v46  ;;  %v4938_v20 = vmul.f32 0.015625, %v4934_v41  ;;  %v10501_v46 = vld [vmem:[%s16539_s7 + $0x2a0] sm:$0xff] }
0x1fc2   :  { %v10485_v41 = vld [vmem:[%s16539_s7 + $0x220] sm:$0xff] }
0x1fc3   :  { %v4942_v49 = vadd.f32 1e-05, %v4938_v20  ;;  %v10500_v20 = vld [vmem:[%s16539_s7 + $0x298] sm:$0xff] }
0x1fc4   :  { %v12883_v29 = vpop.eup %12882 }
0x1fc5   :  { %12888 = vrsqrt.f32 %v4942_v49  ;;  %v4947_v3 = vmul.f32 %v12883_v29, %v14818_v11  ;;  %v10484_v49 = vld [vmem:[%s16539_s7 + $0x218] sm:$0xff]  ;;  %v10483_v29 = vld [vmem:[%s16539_s7 + $0x210] sm:$0xff] }
0x1fc7   :  { %v4955_v31 = vmul.f32 %v4954_v1, %v4947_v3  ;;  %v10498_v3 = vld [vmem:[%s16539_s7 + $0x288] sm:$0xff] }
0x1fc8   :  { %v12885_v36 = vpop.eup %12884 }
0x1fc9   :  { %v4963_v54 = vadd.f32 %v4962_v6, %v4955_v31  ;;  %v4948_v51 = vmul.f32 %v12885_v36, %v14823_v32  ;;  %v10497_v31 = vld [vmem:[%s16539_s7 + $0x280] sm:$0xff] }
0x1fca   :  { %v10481_v36 = vld [vmem:[%s16539_s7 + $0x200] sm:$0xff] }
0x1fcb   :  { %10469 = vmatmul.mubr.msk.f32.vlgmr.msra.gmra.mxu1 %vm16651_vm10, %v4963_v54  ;;  %v4956_v52 = vmul.f32 %v4954_v1, %v4948_v51  ;;  %v10450_v54 = vld [vmem:[%s16540_s4 + $0x4] sm:$0xf]  ;;  %vm16664_vm10 = vmmov %vm16629_vm0 }
0x1fcc   :  { %5085 = vmatprep.mubr.f32.mxu1 %v16638_v7  ;;  %v4988_v51 = vrot.slane %v10450_v54, %v13278_v59 }
0x1fcd   :  { %v4964_v30 = vadd.f32 %v4962_v6, %v4956_v52  ;;  %v16655_v52 = vld [vmem:[#allocation3_spill] sm:$0xff] }
0x1fce   :  { %v12887_v45 = vpop.eup %12886 }
0x1fcf   :  { %v4949_v55 = vmul.f32 %v12887_v45, %v14830_v24  ;;  %10470 = vmatmul.mubr.msk.f32.gmra.mxu1 %vm16652_vm11, %v4964_v30  ;;  %v10512_v24 = vld [vmem:[%s16539_s7 + $0x2f8] sm:$0xff]  ;;  %v4992_v45 = vrot.slane %v10450_v54, %v16655_v52  ;;  %v4998_v30 = vrot.slane %v4988_v51, %v13278_v59  ;;  %vm16665_vm11 = vmmov %vm16629_vm0 }
0x1fd0   :  { %5091 = vmatprep.mubr.f32.mxu1 %v16638_v7  ;;  %11199 = vmatprep.subr.mxu1 %v10512_v24 }
0x1fd1   :  { %v4957_v11 = vmul.f32 %v4954_v1, %v4949_v55  ;;  %11200 = vmatpush3.msra.mxu1 %v10496_v63  ;;  %v5002_v55 = vrot.slane %v4992_v45, %v13278_v59 }
0x1fd2   :  { %v12889_v13 = vpop.eup %12888 }
0x1fd3   :  { %v4965_v23 = vadd.f32 %v4962_v6, %v4957_v11  ;;  %v4950_v34 = vmul.f32 %v12889_v13, %v14835_v48  ;;  %v10511_v48 = vld [vmem:[%s16539_s7 + $0x2f0] sm:$0xff] }
0x1fd4   :  { %11201 = vmatprep.subr.mxu1 %v10511_v48 }
0x1fd5   :  { %10471 = vmatmul.mubr.msk.f32.gmra.mxu1 %vm16653_vm12, %v4965_v23  ;;  %v4958_v32 = vmul.f32 %v4954_v1, %v4950_v34  ;;  %v10499_v1 = vld [vmem:[%s16539_s7 + $0x290] sm:$0xff]  ;;  %vm16666_vm12 = vmmov %vm16629_vm0 }
0x1fd6   :  { %5097 = vmatprep.mubr.f32.mxu1 %v16638_v7  ;;  %11202 = vmatpush3.msra.mxu1 %v10495_v44 }
0x1fd7   :  { %v4966_v50 = vadd.f32 %v4962_v6, %v4958_v32  ;;  %11203 = vmatprep.subr.mxu1 %v10510_v43  ;;  %v10482_v6 = vld [vmem:[%s16539_s7 + $0x208] sm:$0xff] }
0x1fd8   :  { %11204 = vmatpush3.msra.mxu1 %v10494_v47 }
0x1fd9   :  { %10472 = vmatmul.mubr.msk.f32.gmra.mxu1 %vm16654_vm13, %v4966_v50  ;;  %11205 = vmatprep.subr.mxu1 %v10509_v61  ;;  %vm16667_vm13 = vmmov %vm16629_vm0 }
0x1fda   :  { %11206 = vmatpush3.msra.mxu1 %v10493_v27 }
0x1fdb   :  { %11207 = vmatprep.subr.mxu1 %v10508_v8 }
0x1fdc   :  { %11208 = vmatpush3.msra.mxu1 %v10492_v15 }
0x1fdd   :  { %11209 = vmatprep.subr.mxu1 %v10507_v37 }
0x1fde   :  { %11210 = vmatpush3.msra.mxu1 %v10491_v10 }
0x1fdf   :  { %11211 = vmatprep.subr.mxu1 %v10506_v40 }
0x1fe0   :  { %11212 = vmatpush3.msra.mxu1 %v10490_v35 }
0x1fe1   :  { %11213 = vmatprep.subr.mxu1 %v10505_v12 }
0x1fe2   :  { %11214 = vmatpush3.msra.mxu1 %v10489_v14 }
0x1fe3   :  { %11215 = vmatprep.subr.mxu1 %v10504_v5 }
0x1fe4   :  { %11216 = vmatpush3.msra.mxu1 %v10488_v21 }
0x1fe5   :  { %11217 = vmatprep.subr.mxu1 %v10503_v39 }
0x1fe6   :  { %11218 = vmatpush3.msra.mxu1 %v10487_v58 }
0x1fe7   :  { %11219 = vmatprep.subr.mxu1 %v10502_v60 }
0x1fe8   :  { %11220 = vmatpush3.msra.mxu1 %v10486_v0 }
0x1fe9   :  { %11221 = vmatprep.subr.mxu1 %v10501_v46 }
0x1fea   :  { %11222 = vmatpush3.msra.mxu1 %v10485_v41 }
0x1feb   :  { %11223 = vmatprep.subr.mxu1 %v10500_v20 }
0x1fec   :  { %11224 = vmatpush3.msra.mxu1 %v10484_v49 }
0x1fed   :  { %11225 = vmatprep.subr.mxu1 %v10499_v1 }
0x1fee   :  { %11226 = vmatpush3.msra.mxu1 %v10483_v29 }
0x1fef   :  { %11227 = vmatprep.subr.mxu1 %v10498_v3 }
0x1ff0   :  { %11228 = vmatpush3.msra.mxu1 %v10482_v6 }
0x1ff1   :  { %11229 = vmatprep.subr.mxu1 %v10497_v31 }
0x1ff2   :  { %11230 = vmatpush3.msra.mxu1 %v10481_v36 }
0x208b   :  { %v5081_v11 = vpop.f32.mrf.mxu1 }
0x208c   :  { %v5082_v13 = vadd.f32 %v5081_v11, %v4998_v30 }
0x208d   :  { %v5083_v23 = vpop.f32.mrf.mxu1 }
0x208e   :  { %v10473_v34 = vmul.f32 -1.442695, %v5082_v13  ;;  %v5084_v32 = vadd.f32 %v5083_v23, %v5002_v55 }
0x208f   :  { %v5087_v50 = vpop.f32.mrf.mxu1 }
0x2090   :  { %12890 = vpow2.f32 %v10473_v34  ;;  %v10474_v24 = vmul.f32 -1.442695, %v5084_v32  ;;  %v5088_v63 = vadd.f32 %v5087_v50, %v4998_v30 }
0x2091   :  { %v5089_v48 = vpop.f32.mrf.mxu1 }
0x2092   :  { %12892 = vpow2.f32 %v10474_v24  ;;  %v10475_v44 = vmul.f32 -1.442695, %v5088_v63  ;;  %v5090_v43 = vadd.f32 %v5089_v48, %v5002_v55 }
0x2094   :  { %12894 = vpow2.f32 %v10475_v44  ;;  %v10476_v47 = vmul.f32 -1.442695, %v5090_v43 }
0x2095   :  { %v5093_v61 = vpop.f32.mrf.mxu1 }
0x2096   :  { %v5094_v27 = vadd.f32 %v5093_v61, %v4998_v30  ;;  %12896 = vpow2.f32 %v10476_v47 }
0x2097   :  { %v5095_v8 = vpop.f32.mrf.mxu1 }
0x2098   :  { %v10477_v15 = vmul.f32 -1.442695, %v5094_v27  ;;  %v5096_v37 = vadd.f32 %v5095_v8, %v5002_v55 }
0x2099   :  { %v5099_v10 = vpop.f32.mrf.mxu1 }
0x209a   :  { %12898 = vpow2.f32 %v10477_v15  ;;  %v10478_v40 = vmul.f32 -1.442695, %v5096_v37  ;;  %v5100_v35 = vadd.f32 %v5099_v10, %v4998_v30 }
0x209b   :  { %v5101_v12 = vpop.f32.mrf.mxu1 }
0x209c   :  { %12900 = vpow2.f32 %v10478_v40  ;;  %v10479_v14 = vmul.f32 -1.442695, %v5100_v35  ;;  %v5102_v5 = vadd.f32 %v5101_v12, %v5002_v55 }
0x209d   :  { %v12891_v21 = vpop.eup %12890 }
0x209e   :  { %12902 = vpow2.f32 %v10479_v14  ;;  %v10480_v39 = vmul.f32 -1.442695, %v5102_v5  ;;  %v5128_v58 = vadd.f32 1.0, %v12891_v21 }
0x209f   :  { %v12893_v60 = vpop.eup %12892 }
0x20a0   :  { %12904 = vpow2.f32 %v10480_v39  ;;  %v5129_v0 = vadd.f32 1.0, %v12893_v60 }
0x20a1   :  { %v12895_v46 = vpop.eup %12894  ;;  %12906 = vrcp.f32 %v5128_v58 }
0x20a2   :  { %12908 = vrcp.f32 %v5129_v0  ;;  %v5130_v41 = vadd.f32 1.0, %v12895_v46 }
0x20a3   :  { %v12897_v20 = vpop.eup %12896 }
0x20a4   :  { %v5131_v49 = vadd.f32 1.0, %v12897_v20  ;;  %12910 = vrcp.f32 %v5130_v41 }
0x20a6   :  { %12912 = vrcp.f32 %v5131_v49 }
0x20a7   :  { %v12899_v1 = vpop.eup %12898 }
0x20a8   :  { %v5132_v29 = vadd.f32 1.0, %v12899_v1 }
0x20a9   :  { %v12901_v3 = vpop.eup %12900 }
0x20aa   :  { %v5133_v6 = vadd.f32 1.0, %v12901_v3  ;;  %12914 = vrcp.f32 %v5132_v29 }
0x20ab   :  { %v12903_v31 = vpop.eup %12902 }
0x20ac   :  { %12916 = vrcp.f32 %v5133_v6  ;;  %v5134_v36 = vadd.f32 1.0, %v12903_v31 }
0x20ad   :  { %v12905_v54 = vpop.eup %12904 }
0x20ae   :  { %v5135_v51 = vadd.f32 1.0, %v12905_v54  ;;  %v12907_v45 = vpop.eup %12906  ;;  %12918 = vrcp.f32 %v5134_v36 }
0x20af   :  { %v12909_v30 = vpop.eup %12908  ;;  %v5152_v11 = vmul.f32 %v12907_v45, %v5082_v13  ;;  %v10448_v13 = vld [vmem:[%s16538_s3 + $0x20] sm:$0xff] }
0x20b0   :  { %12920 = vrcp.f32 %v5135_v51  ;;  %v5153_v55 = vmul.f32 %v12909_v30, %v5084_v32 }
0x20b1   :  { %v12911_v23 = vpop.eup %12910 }
0x20b2   :  { %5261 = vmatprep.mubr.f32.mxu1 %v5153_v55  ;;  %v5154_v24 = vmul.f32 %v12911_v23, %v5088_v63  ;;  %v5196_v63 = vrot.slane %v10448_v13, %v13278_v59 }
0x20b3   :  { %v12913_v34 = vpop.eup %12912  ;;  %5262 = vmatmul.mubr.f32.vlgmr.msra.gmra.mxu1 %v5152_v11 }
0x20b4   :  { %v5155_v50 = vmul.f32 %v12913_v34, %v5090_v43 }
0x20b6   :  { %5266 = vmatprep.mubr.f32.mxu1 %v5155_v50 }
0x20b7   :  { %v12915_v48 = vpop.eup %12914  ;;  %5267 = vmatmul.mubr.f32.gmra.mxu1 %v5154_v24 }
0x20b8   :  { %v5156_v61 = vmul.f32 %v12915_v48, %v5094_v27 }
0x20b9   :  { %v12917_v44 = vpop.eup %12916 }
0x20ba   :  { %v5157_v47 = vmul.f32 %v12917_v44, %v5096_v37 }
0x20bb   :  { %v12919_v8 = vpop.eup %12918 }
0x20bc   :  { %5271 = vmatprep.mubr.f32.mxu1 %v5157_v47  ;;  %v5158_v40 = vmul.f32 %v12919_v8, %v5100_v35 }
0x20bd   :  { %v12921_v15 = vpop.eup %12920  ;;  %5272 = vmatmul.mubr.f32.gmra.mxu1 %v5156_v61 }
0x20be   :  { %v5159_v10 = vmul.f32 %v12921_v15, %v5102_v5 }
0x20c0   :  { %5276 = vmatprep.mubr.f32.mxu1 %v5159_v10 }
0x20c1   :  { %5277 = vmatmul.mubr.f32.gmra.mxu1 %v5158_v40 }
0x2173   :  { %v11231_v32 = vpop.f32.mrf.mxu1 }
0x2175   :  { %v11232_v43 = vpop.f32.mrf.mxu1 }
0x2176   :  { %v11233_v12 = vadd.f32 %v11232_v43, %v11231_v32  ;;  %v10528_v43 = vld [vmem:[%s16541_s8 + $0x338] sm:$0xff] }
0x2177   :  { %v11234_v14 = vpop.f32.mrf.mxu1  ;;  %12092 = vmatprep.subr.mxu0 %v10528_v43 }
0x2178   :  { %v5264_v37 = vadd.f32 %v11233_v12, %v5196_v63  ;;  %v10552_v12 = vld [vmem:[%s16541_s8 + $0x3b8] sm:$0xff]  ;;  %12093 = vmatpush3.msra.mxu0 %v10528_v43 }
0x2179   :  { %v11235_v27 = vpop.f32.mrf.mxu1  ;;  %12136 = vmatprep.subr.mxu1 %v10552_v12 }
0x217a   :  { %v5282_v21 = vmul.f32 0.5, %v5264_v37  ;;  %v11236_v39 = vadd.f32 %v11235_v27, %v11234_v14  ;;  %v10527_v14 = vld [vmem:[%s16541_s8 + $0x330] sm:$0xff]  ;;  %12137 = vmatpush3.msra.mxu1 %v10552_v12  ;;  %v10526_v27 = vld [vmem:[%s16541_s8 + $0x328] sm:$0xff] }
0x217b   :  { %12094 = vmatprep.subr.mxu0 %v10527_v14  ;;  %v10551_v37 = vld [vmem:[%s16541_s8 + $0x3b0] sm:$0xff] }
0x217c   :  { %v5269_v58 = vadd.f32 %v11236_v39, %v5196_v63  ;;  %v15017_v35 = vadd.f32 %v5282_v21, %v14798_v62  ;;  %12095 = vmatpush3.msra.mxu0 %v10527_v14  ;;  %12138 = vmatprep.subr.mxu1 %v10551_v37  ;;  %v10550_v21 = vld [vmem:[%s16541_s8 + $0x3a8] sm:$0xff]  ;;  %v10525_v39 = vld [vmem:[%s16541_s8 + $0x320] sm:$0xff] }
0x217d   :  { %v11237_v60 = vpop.f32.mrf.mxu1  ;;  %12096 = vmatprep.subr.mxu0 %v10526_v27  ;;  %12139 = vmatpush3.msra.mxu1 %v10551_v37  ;;  %v10538_v14 = vld [vmem:[%s16541_s8 + $0x368] sm:$0xff] }
0x217e   :  { %v5283_v5 = vmul.f32 0.5, %v5269_v58  ;;  %v5290_v46 = vsel %vm16656_vm14, %v15017_v35, 0.0  ;;  %12097 = vmatpush3.msra.mxu0 %v10526_v27  ;;  %12140 = vmatprep.subr.mxu1 %v10550_v21  ;;  %v10549_v58 = vld [vmem:[%s16541_s8 + $0x3a0] sm:$0xff]  ;;  %vm16668_vm14 = vmmov %vm16629_vm0 }
0x217f   :  { %v11238_v0 = vpop.f32.mrf.mxu1  ;;  %5291 = vadd.xlane.f32.xlu0 %v5290_v46  ;;  %12098 = vmatprep.subr.mxu0 %v10525_v39  ;;  %v10547_v46 = vld [vmem:[%s16541_s8 + $0x390] sm:$0xff] }
0x2180   :  { %v11239_v41 = vadd.f32 %v11238_v0, %v11237_v60  ;;  %v15022_v49 = vadd.f32 %v5283_v5, %v14803_v9  ;;  %12141 = vmatpush3.msra.mxu1 %v10550_v21  ;;  %12099 = vmatpush3.msra.mxu0 %v10525_v39  ;;  %v10524_v60 = vld [vmem:[%s16541_s8 + $0x318] sm:$0xff]  ;;  %v10523_v0 = vld [vmem:[%s16541_s8 + $0x310] sm:$0xff]  ;;  %v10537_v21 = vld [vmem:[%s16541_s8 + $0x360] sm:$0xff] }
0x2181   :  { %v11240_v20 = vpop.f32.mrf.mxu1  ;;  %12142 = vmatprep.subr.mxu1 %v10549_v58  ;;  %12100 = vmatprep.subr.mxu0 %v10524_v60  ;;  %v10548_v5 = vld [vmem:[%s16541_s8 + $0x398] sm:$0xff] }
0x2182   :  { %v5274_v1 = vadd.f32 %v11239_v41, %v5196_v63  ;;  %v5293_v3 = vsel %vm16657_vm15, %v15022_v49, 0.0  ;;  %12143 = vmatpush3.msra.mxu1 %v10549_v58  ;;  %12101 = vmatpush3.msra.mxu0 %v10524_v60  ;;  %v10522_v41 = vld [vmem:[%s16541_s8 + $0x308] sm:$0xff]  ;;  %v10536_v58 = vld [vmem:[%s16541_s8 + $0x358] sm:$0xff]  ;;  %vm16669_vm15 = vmmov %vm16629_vm0 }
0x2183   :  { %v11241_v29 = vpop.f32.mrf.mxu1  ;;  %5294 = vadd.xlane.f32.xlu1 %v5293_v3  ;;  %12144 = vmatprep.subr.mxu1 %v10548_v5  ;;  %v10540_v3 = vld [vmem:[%s16541_s8 + $0x378] sm:$0xff]  ;;  %v10535_v60 = vld [vmem:[%s16541_s8 + $0x350] sm:$0xff] }
0x2184   :  { %v5284_v6 = vmul.f32 0.5, %v5274_v1  ;;  %v11242_v31 = vadd.f32 %v11241_v29, %v11240_v20  ;;  %12102 = vmatprep.subr.mxu0 %v10523_v0  ;;  %12145 = vmatpush3.msra.mxu1 %v10548_v5  ;;  %v10546_v20 = vld [vmem:[%s16541_s8 + $0x388] sm:$0xff]  ;;  %v10521_v1 = vld [vmem:[%s16541_s8 + $0x300] sm:$0xff] }
0x2185   :  { %12103 = vmatpush3.msra.mxu0 %v10523_v0  ;;  %12146 = vmatprep.subr.mxu1 %v10547_v46  ;;  %v10545_v29 = vld [vmem:[%s16541_s8 + $0x380] sm:$0xff]  ;;  %v10534_v5 = vld [vmem:[%s16541_s8 + $0x348] sm:$0xff] }
0x2186   :  { %v5279_v62 = vadd.f32 %v11242_v31, %v5196_v63  ;;  %v15027_v36 = vadd.f32 %v5284_v6, %v14808_v28  ;;  %12104 = vmatprep.subr.mxu0 %v10522_v41  ;;  %12147 = vmatpush3.msra.mxu1 %v10547_v46  ;;  %v10533_v0 = vld [vmem:[%s16541_s8 + $0x340] sm:$0xff]  ;;  %v15175_v46 = vld [vmem:[%s16542_s5 + $0x10] sm:$0xff] }
0x2187   :  { %12105 = vmatpush3.msra.mxu0 %v10522_v41  ;;  %12148 = vmatprep.subr.mxu1 %v10546_v20  ;;  %v15179_v41 = vrot.slane %v15175_v46, %v16655_v52 }
0x2188   :  { %v5285_v54 = vmul.f32 0.5, %v5279_v62  ;;  %v5296_v51 = vsel %vm16629_vm0, %v15027_v36, 0.0  ;;  %12106 = vmatprep.subr.mxu0 %v10521_v1  ;;  %12149 = vmatpush3.msra.mxu1 %v10546_v20 }
0x2189   :  { %5297 = vadd.xlane.f32.xlu0 %v5296_v51  ;;  %12107 = vmatpush3.msra.mxu0 %v10521_v1 }
0x218a   :  { %v15032_v9 = vadd.f32 %v5285_v54, %v14813_v26  ;;  %12150 = vmatprep.subr.mxu1 %v10545_v29  ;;  %12114 = vmatprep.subr.mxu0 %v10540_v3 }
0x218b   :  { %12151 = vmatpush3.msra.mxu1 %v10545_v29  ;;  %v5379_v29 = vrot.slane %v15175_v46, %v13278_v59 }
0x218c   :  { %v5299_v45 = vsel %vm16658_vm1, %v15032_v9, 0.0  ;;  %vm16670_vm1 = vmmov %vm16629_vm0 }
0x218d   :  { %5300 = vadd.xlane.f32.xlu1 %v5299_v45 }
0x2208   :  { %v5292_v30 = vpop.xlane.xlu0 %5291 }
0x2209   :  { %v5302_v55 = vmul.f32 0.015625, %v5292_v30 }
0x220b   :  { %v15037_v11 = vsub.f32 %v15017_v35, %v5302_v55 }
0x220c   :  { %v5295_v23 = vpop.xlane.xlu1 %5294 }
0x220d   :  { %v5303_v28 = vmul.f32 0.015625, %v5295_v23  ;;  %v5310_v34 = vmul.f32 %v15037_v11, %v15037_v11 }
0x220f   :  { %v15042_v50 = vsub.f32 %v15022_v49, %v5303_v28  ;;  %v5314_v26 = vsel %vm16659_vm6, %v5310_v34, 0.0  ;;  %vm16671_vm6 = vmmov %vm16629_vm0 }
0x2210   :  { %5315 = vadd.xlane.f32.xlu0 %v5314_v26 }
0x2211   :  { %v5311_v48 = vmul.f32 %v15042_v50, %v15042_v50 }
0x2212   :  { %v5298_v24 = vpop.xlane.xlu0 %5297 }
0x2213   :  { %v5304_v44 = vmul.f32 0.015625, %v5298_v24  ;;  %v5317_v47 = vsel %vm16660_vm7, %v5311_v48, 0.0  ;;  %v5345_v24 = vrot.slane %v14892_v38, %v16642_v53  ;;  %vm16672_vm7 = vmmov %vm16629_vm0 }
0x2214   :  { %5318 = vadd.xlane.f32.xlu1 %v5317_v47 }
0x2215   :  { %v15049_v61 = vsub.f32 %v15027_v36, %v5304_v44  ;;  %v16663_v44 = vld [vmem:[#allocation5_spill] sm:$0xff] }
0x2216   :  { %v5301_v8 = vpop.xlane.xlu1 %5300  ;;  %v5353_v47 = vrot.slane %v14892_v38, %v16663_v44 }
0x2217   :  { %v5305_v15 = vmul.f32 0.015625, %v5301_v8  ;;  %v5312_v10 = vmul.f32 %v15049_v61, %v15049_v61 }
0x2219   :  { %v15054_v40 = vsub.f32 %v15032_v9, %v5305_v15  ;;  %v5320_v13 = vsel %vm16661_vm8, %v5312_v10, 0.0  ;;  %vm16673_vm8 = vmmov %vm16629_vm0 }
0x221a   :  { %5321 = vadd.xlane.f32.xlu0 %v5320_v13 }
0x221b   :  { %v5313_v32 = vmul.f32 %v15054_v40, %v15054_v40 }
0x221d   :  { %v5323_v63 = vsel %vm16662_vm9, %v5313_v32, 0.0  ;;  %vm16674_vm9 = vmmov %vm16629_vm0 }
0x221e   :  { %5324 = vadd.xlane.f32.xlu1 %v5323_v63 }
0x2299   :  { %v5316_v6 = vpop.xlane.xlu0 %5315 }
0x229a   :  { %v5326_v31 = vmul.f32 0.015625, %v5316_v6 }
0x229c   :  { %v5330_v62 = vadd.f32 1e-05, %v5326_v31 }
0x229d   :  { %v5319_v54 = vpop.xlane.xlu1 %5318 }
0x229e   :  { %12922 = vrsqrt.f32 %v5330_v62  ;;  %v5327_v51 = vmul.f32 0.015625, %v5319_v54 }
0x22a0   :  { %v5331_v45 = vadd.f32 1e-05, %v5327_v51 }
0x22a2   :  { %12924 = vrsqrt.f32 %v5331_v45 }
0x22a3   :  { %v5322_v30 = vpop.xlane.xlu0 %5321 }
0x22a4   :  { %v5328_v55 = vmul.f32 0.015625, %v5322_v30 }
0x22a6   :  { %v5332_v23 = vadd.f32 1e-05, %v5328_v55  ;;  %v5489_v55 = vrot.slane %v15175_v46, %v16642_v53 }
0x22a7   :  { %v5325_v28 = vpop.xlane.xlu1 %5324 }
0x22a8   :  { %12926 = vrsqrt.f32 %v5332_v23  ;;  %v5329_v34 = vmul.f32 0.015625, %v5325_v28 }
0x22aa   :  { %v5333_v26 = vadd.f32 1e-05, %v5329_v34 }
0x22ab   :  { %v12923_v48 = vpop.eup %12922 }
0x22ac   :  { %12928 = vrsqrt.f32 %v5333_v26  ;;  %v5338_v8 = vmul.f32 %v12923_v48, %v15037_v11  ;;  %v10539_v11 = vld [vmem:[%s16541_s8 + $0x370] sm:$0xff] }
0x22ae   :  { %v5346_v15 = vmul.f32 %v5345_v24, %v5338_v8 }
0x22af   :  { %v12925_v10 = vpop.eup %12924 }
0x22b0   :  { %v15116_v13 = vadd.f32 %v5353_v47, %v5346_v15  ;;  %v5339_v32 = vmul.f32 %v12925_v10, %v15042_v50 }
0x22b2   :  { %v5347_v63 = vmul.f32 %v5345_v24, %v5339_v32  ;;  %12108 = vmatprep.mubr.msk.f32.mxu0 %vm16664_vm10, %v15116_v13  ;;  %12152 = vmatprep.mubr.msk.f32.mxu1 %vm16665_vm11, %v15116_v13  ;;  %vm16675_vm10 = vcmask 130048  }
0x22b3   :  { %vm16676_vm11 = vmmov %vm16675_vm10 }
0x22b4   :  { %v15123_v12 = vadd.f32 %v5353_v47, %v5347_v63  ;;  %v10588_v63 = vld [vmem:[%s16541_s8 + $0x438] sm:$0xff] }
0x22b5   :  { %v12927_v43 = vpop.eup %12926 }
0x22b6   :  { %v5340_v38 = vmul.f32 %v12927_v43, %v15049_v61  ;;  %12109 = vmatmul.mubr.msk.f32.vlgmr.msra.gmra.mxu0 %vm16666_vm12, %v15123_v12  ;;  %12153 = vmatmul.mubr.msk.f32.vlgmr.msra.gmra.mxu1 %vm16667_vm13, %v15123_v12  ;;  %vm16677_vm12 = vmmov %vm16675_vm10 }
0x22b7   :  { %12115 = vmatpush3.msra.mxu0 %v10540_v3  ;;  %vm16678_vm13 = vmmov %vm16675_vm10 }
0x22b8   :  { %v5348_v50 = vmul.f32 %v5345_v24, %v5340_v38  ;;  %12116 = vmatprep.subr.mxu0 %v10539_v11  ;;  %v10587_v38 = vld [vmem:[%s16541_s8 + $0x430] sm:$0xff] }
0x22b9   :  { %v12929_v37 = vpop.eup %12928  ;;  %12117 = vmatpush3.msra.mxu0 %v10539_v11  ;;  %v10586_v11 = vld [vmem:[%s16541_s8 + $0x428] sm:$0xff] }
0x22ba   :  { %v15136_v27 = vadd.f32 %v5353_v47, %v5348_v50  ;;  %v5341_v61 = vmul.f32 %v12929_v37, %v15054_v40  ;;  %12118 = vmatprep.subr.mxu0 %v10538_v14  ;;  %v10585_v50 = vld [vmem:[%s16541_s8 + $0x420] sm:$0xff]  ;;  %v10583_v37 = vld [vmem:[%s16541_s8 + $0x410] sm:$0xff] }
0x22bb   :  { %12119 = vmatpush3.msra.mxu0 %v10538_v14  ;;  %v10584_v14 = vld [vmem:[%s16541_s8 + $0x418] sm:$0xff] }
0x22bc   :  { %v5349_v39 = vmul.f32 %v5345_v24, %v5341_v61  ;;  %12111 = vmatprep.mubr.msk.f32.mxu0 %vm16668_vm14, %v15136_v27  ;;  %12155 = vmatprep.mubr.msk.f32.mxu1 %vm16669_vm15, %v15136_v27  ;;  %vm16679_vm14 = vmmov %vm16675_vm10  ;;  %v10582_v61 = vld [vmem:[%s16541_s8 + $0x408] sm:$0xff] }
0x22bd   :  { %12120 = vmatprep.subr.mxu0 %v10537_v21  ;;  %vm16680_vm15 = vmmov %vm16675_vm10 }
0x22be   :  { %v15149_v40 = vadd.f32 %v5353_v47, %v5349_v39  ;;  %12121 = vmatpush3.msra.mxu0 %v10537_v21  ;;  %v10581_v21 = vld [vmem:[%s16541_s8 + $0x400] sm:$0xff] }
0x22bf   :  { %12122 = vmatprep.subr.mxu0 %v10536_v58 }
0x22c0   :  { %12112 = vmatmul.mubr.msk.f32.gmra.mxu0 %vm16629_vm0, %v15149_v40  ;;  %12156 = vmatmul.mubr.msk.f32.gmra.mxu1 %vm16670_vm1, %v15149_v40  ;;  %vm16681_vm0 = vmmov %vm16675_vm10 }
0x22c1   :  { %12123 = vmatpush3.msra.mxu0 %v10536_v58  ;;  %12130 = vmatprep.mubr.msk.f32.mxu0 %vm16671_vm6, %v15116_v13  ;;  %vm16682_vm1 = vmmov %vm16681_vm0  ;;  %v16691_v58 = vld [vmem:[#allocation6_spill] sm:$0xff] }
0x22c2   :  { %12124 = vmatprep.subr.mxu0 %v10535_v60  ;;  %vm16683_vm6 = vmmov %vm16681_vm0 }
0x22c3   :  { %12125 = vmatpush3.msra.mxu0 %v10535_v60 }
0x22c4   :  { %12126 = vmatprep.subr.mxu0 %v10534_v5 }
0x22c5   :  { %12127 = vmatpush3.msra.mxu0 %v10534_v5 }
0x22c6   :  { %12128 = vmatprep.subr.mxu0 %v10533_v0 }
0x22c7   :  { %12129 = vmatpush3.msra.mxu0 %v10533_v0 }
0x22c8   :  { %12131 = vmatmul.mubr.msk.f32.vlgmr.msra.gmra.mxu0 %vm16672_vm7, %v15123_v12  ;;  %vm16684_vm7 = vmmov %vm16681_vm0 }
0x22c9   :  { %12133 = vmatprep.mubr.msk.f32.mxu0 %vm16673_vm8, %v15136_v27  ;;  %vm16685_vm8 = vmmov %vm16681_vm0 }
0x22cc   :  { %12134 = vmatmul.mubr.msk.f32.gmra.mxu0 %vm16674_vm9, %v15149_v40  ;;  %vm16686_vm9 = vmmov %vm16681_vm0 }
0x2376   :  { %v12110_v20 = vpop.f32.mrf.mxu0  ;;  %v12154_v1 = vpop.f32.mrf.mxu1 }
0x2377   :  { %v5660_v3 = vadd.f32 %v12154_v1, %v15179_v41  ;;  %v5464_v15 = vadd.f32 %v12110_v20, %v5379_v29 }
0x2378   :  { %v5458_v6 = vpop.f32.mrf.mxu0  ;;  %v5654_v31 = vpop.f32.mrf.mxu1 }
0x2379   :  { %v5459_v62 = vadd.f32 %v5458_v6, %v5379_v29  ;;  %v5655_v54 = vadd.f32 %v5654_v31, %v15179_v41  ;;  %12165 = vmatprep.subr.mxu1 %v5660_v3 }
0x237a   :  { %12166 = vmatpush3.msra.mxu1 %v5660_v3  ;;  %v16694_v3 = vld [vmem:[#allocation7_spill] sm:$0xff] }
0x237b   :  { %12162 = vmatprep.mubr.msk.f32.mxu0 %vm16675_vm10, %v5459_v62  ;;  %12167 = vmatprep.subr.mxu1 %v5655_v54  ;;  %vm16687_vm10 = vcmask 523264  }
0x237c   :  { %12168 = vmatpush3.msra.mxu1 %v5655_v54 }
0x2380   :  { %v12157_v51 = vpop.f32.mrf.mxu1  ;;  %v12113_v30 = vpop.f32.mrf.mxu0 }
0x2381   :  { %v15187_v45 = vadd.f32 %v12157_v51, %v15179_v41  ;;  %v5474_v43 = vadd.f32 %v12113_v30, %v5379_v29  ;;  %v15245_v30 = vrot.slane %v15175_v46, %v16650_v17 }
0x2382   :  { %v5468_v23 = vpop.f32.mrf.mxu0 }
0x2383   :  { %12179 = vmatprep.subr.mxu1 %v15187_v45  ;;  %v5469_v10 = vadd.f32 %v5468_v23, %v5379_v29 }
0x2388   :  { %v12132_v28 = vpop.f32.mrf.mxu0 }
0x2389   :  { %v5562_v34 = vadd.f32 %v12132_v28, %v5489_v55 }
0x238a   :  { %v5556_v26 = vpop.f32.mrf.mxu0 }
0x238b   :  { %v5557_v24 = vadd.f32 %v5556_v26, %v5489_v55  ;;  %12158 = vmatprep.subr.msk.mxu0 %vm16676_vm11, %v5562_v34  ;;  %vm16688_vm11 = vmmov %vm16687_vm10 }
0x238c   :  { %v12135_v48 = vpop.f32.mrf.mxu0  ;;  %12159 = vmatpush3.xpose.msk.msra.mxu0 %vm16677_vm12, %v5562_v34  ;;  %vm16689_vm12 = vmmov %vm16687_vm10 }
0x238d   :  { %12160 = vmatprep.subr.msk.mxu0 %vm16678_vm13, %v5557_v24  ;;  %v5572_v47 = vadd.f32 %v12135_v48, %v5489_v55  ;;  %vm16690_vm13 = vmmov %vm16687_vm10 }
0x238e   :  { %v5566_v8 = vpop.f32.mrf.mxu0 }
0x238f   :  { %v5567_v32 = vadd.f32 %v5566_v8, %v5489_v55 }
0x2390   :  { %12161 = vmatpush3.xpose.msk.msra.mxu0 %vm16679_vm14, %v5557_v24  ;;  %vm16692_vm14 = vmmov %vm16681_vm0 }
0x2391   :  { %12172 = vmatprep.subr.msk.mxu0 %vm16680_vm15, %v5572_v47  ;;  %vm16693_vm15 = vmmov %vm16681_vm0 }
0x2393   :  { %12163 = vmatmul.mubr.msk.f32.vlgmr.msra.gmra.mxu0 %vm16681_vm0, %v5464_v15 }
0x2394   :  { %12173 = vmatpush3.xpose.msk.msra.mxu0 %vm16682_vm1, %v5572_v47  ;;  %12176 = vmatprep.mubr.msk.f32.mxu0 %vm16683_vm6, %v5469_v10  ;;  %vm16695_vm1 = vmmov %vm16681_vm0 }
0x2395   :  { %12174 = vmatprep.subr.msk.mxu0 %vm16684_vm7, %v5567_v32  ;;  %vm16696_vm6 = vmmov %vm16681_vm0 }
0x2396   :  { %vm16697_vm7 = vmmov %vm16681_vm0 }
0x2398   :  { %12175 = vmatpush3.xpose.msk.msra.mxu0 %vm16685_vm8, %v5567_v32  ;;  %vm16698_vm8 = vmmov %vm16681_vm0 }
0x2399   :  { %12208 = vmatprep.subr.mxu0 %v10588_v63 }
0x239b   :  { %12177 = vmatmul.mubr.msk.f32.vlgmr.msra.gmra.mxu0 %vm16686_vm9, %v5474_v43  ;;  %vm16699_vm9 = vmmov %vm16681_vm0 }
0x239c   :  { %12209 = vmatpush3.msra.mxu0 %v10588_v63  ;;  %12224 = vmatprep.mubr.msk.f32.mxu0 %vm16687_vm10, %v15116_v13  ;;  %vm16700_vm10 = vmmov %vm16681_vm0 }
0x239d   :  { %12210 = vmatprep.subr.mxu0 %v10587_v38 }
0x239e   :  { %12211 = vmatpush3.msra.mxu0 %v10587_v38 }
0x239f   :  { %12212 = vmatprep.subr.mxu0 %v10586_v11 }
0x23a0   :  { %12213 = vmatpush3.msra.mxu0 %v10586_v11 }
0x23a1   :  { %12214 = vmatprep.subr.mxu0 %v10585_v50 }
0x23a2   :  { %12215 = vmatpush3.msra.mxu0 %v10585_v50 }
0x23a3   :  { %12216 = vmatprep.subr.mxu0 %v10584_v14 }
0x23a4   :  { %12217 = vmatpush3.msra.mxu0 %v10584_v14 }
0x23a5   :  { %12218 = vmatprep.subr.mxu0 %v10583_v37 }
0x23a6   :  { %12219 = vmatpush3.msra.mxu0 %v10583_v37 }
0x23a7   :  { %12220 = vmatprep.subr.mxu0 %v10582_v61 }
0x23a8   :  { %12221 = vmatpush3.msra.mxu0 %v10582_v61 }
0x23a9   :  { %12222 = vmatprep.subr.mxu0 %v10581_v21 }
0x23aa   :  { %12223 = vmatpush3.msra.mxu0 %v10581_v21 }
0x23ab   :  { %12225 = vmatmul.mubr.msk.f32.vlgmr.msra.gmra.mxu0 %vm16688_vm11, %v15123_v12  ;;  %vm16701_vm11 = vmmov %vm16681_vm0 }
0x23ac   :  { %12227 = vmatprep.mubr.msk.f32.mxu0 %vm16689_vm12, %v15136_v27  ;;  %vm16702_vm12 = vmmov %vm16681_vm0 }
0x23af   :  { %12228 = vmatmul.mubr.msk.f32.gmra.mxu0 %vm16690_vm13, %v15149_v40  ;;  %vm16703_vm13 = vmmov %vm16681_vm0 }
0x2453   :  { %v12164_v39 = vpop.f32.mrf.mxu0 }
0x2454   :  { %v5757_v60 = vadd.f32 %v12164_v39, %v16691_v58 }
0x2455   :  { %v5751_v5 = vpop.f32.mrf.mxu0 }
0x2456   :  { %v5752_v0 = vadd.f32 %v5751_v5, %v16691_v58  ;;  %v5763_v20 = vsel %vm16692_vm14, %v5757_v60, -inf  ;;  %vm16704_vm14 = vmmov %vm16681_vm0 }
0x2457   :  { %5764 = vmax.xlane.f32.xlu1 %v5763_v20 }
0x2458   :  { %v5760_v1 = vsel %vm16693_vm15, %v5752_v0, -inf  ;;  %vm16705_vm15 = vmmov %vm16681_vm0 }
0x2459   :  { %5761 = vmax.xlane.f32.xlu0 %v5760_v1 }
0x245b   :  { %v12178_v29 = vpop.f32.mrf.mxu0 }
0x245c   :  { %v5947_v6 = vadd.f32 %v12178_v29, %v16694_v3 }
0x245d   :  { %v5941_v31 = vpop.f32.mrf.mxu0 }
0x245e   :  { %v5942_v62 = vadd.f32 %v5941_v31, %v16694_v3  ;;  %v5953_v54 = vsel %vm16681_vm0, %v5947_v6, -inf }
0x245f   :  { %5954 = vmax.xlane.f32.xlu1 %v5953_v54 }
0x2460   :  { %v5950_v51 = vsel %vm16695_vm1, %v5942_v62, -inf  ;;  %vm16706_vm1 = vmmov %vm16681_vm0 }
0x2461   :  { %5951 = vmax.xlane.f32.xlu0 %v5950_v51 }
0x246b   :  { %v12226_v55 = vpop.f32.mrf.mxu0 }
0x246c   :  { %v6236_v23 = vadd.f32 %v12226_v55, %v15245_v30 }
0x246d   :  { %v6230_v28 = vpop.f32.mrf.mxu0 }
0x246e   :  { %v6231_v34 = vadd.f32 %v6230_v28, %v15245_v30  ;;  %12252 = vmatprep.subr.msk.mxu0 %vm16696_vm6, %v6236_v23  ;;  %vm16707_vm6 = vcmask 523264  }
0x246f   :  { %12253 = vmatpush3.xpose.msk.msra.mxu0 %vm16697_vm7, %v6236_v23  ;;  %v10576_v23 = vld [vmem:[%s16541_s8 + $0x3f8] sm:$0xff]  ;;  %vm16708_vm7 = vmmov %vm16707_vm6 }
0x2470   :  { %12254 = vmatprep.subr.msk.mxu0 %vm16698_vm8, %v6231_v34  ;;  %vm16709_vm8 = vmmov %vm16707_vm6 }
0x2473   :  { %12255 = vmatpush3.xpose.msk.msra.mxu0 %vm16699_vm9, %v6231_v34  ;;  %vm16710_vm9 = vmmov %vm16707_vm6 }
0x24e0   :  { %v5765_v26 = vpop.xlane.xlu1 %5764 }
0x24e1   :  { %v5767_v24 = vsub.f32 %v5757_v60, %v5765_v26 }
0x24e2   :  { %v5762_v48 = vpop.xlane.xlu0 %5761 }
0x24e3   :  { %v5770_v47 = vmul.f32 1.442695, %v5767_v24  ;;  %v5766_v8 = vsub.f32 %v5752_v0, %v5762_v48  ;;  %v10573_v48 = vld [vmem:[%s16541_s8 + $0x3e0] sm:$0xff] }
0x24e5   :  { %12930 = vpow2.f32 %v5770_v47  ;;  %v5768_v15 = vmul.f32 1.442695, %v5766_v8  ;;  %v10572_v47 = vld [vmem:[%s16541_s8 + $0x3d8] sm:$0xff]  ;;  %v10571_v8 = vld [vmem:[%s16541_s8 + $0x3d0] sm:$0xff] }
0x24e7   :  { %12932 = vpow2.f32 %v5768_v15  ;;  %v10570_v15 = vld [vmem:[%s16541_s8 + $0x3c8] sm:$0xff] }
0x24e8   :  { %v5955_v10 = vpop.xlane.xlu1 %5954 }
0x24e9   :  { %v5957_v32 = vsub.f32 %v5947_v6, %v5955_v10  ;;  %v10569_v10 = vld [vmem:[%s16541_s8 + $0x3c0] sm:$0xff] }
0x24ea   :  { %v5952_v63 = vpop.xlane.xlu0 %5951 }
0x24eb   :  { %v5960_v43 = vmul.f32 1.442695, %v5957_v32  ;;  %v5956_v38 = vsub.f32 %v5942_v62, %v5952_v63  ;;  %v5664_v62 = vpop.f32.mrf.mxu1  ;;  %v10600_v32 = vld [vmem:[%s16541_s8 + $0x478] sm:$0xff]  ;;  %v10599_v63 = vld [vmem:[%s16541_s8 + $0x470] sm:$0xff] }
0x24ec   :  { %v5665_v55 = vadd.f32 %v5664_v62, %v15179_v41  ;;  %v10575_v41 = vld [vmem:[%s16541_s8 + $0x3f0] sm:$0xff] }
0x24ed   :  { %12934 = vpow2.f32 %v5960_v43  ;;  %v5958_v11 = vmul.f32 1.442695, %v5956_v38  ;;  %v10598_v43 = vld [vmem:[%s16541_s8 + $0x468] sm:$0xff]  ;;  %v10597_v38 = vld [vmem:[%s16541_s8 + $0x460] sm:$0xff] }
0x24ef   :  { %12936 = vpow2.f32 %v5958_v11  ;;  %v10596_v11 = vld [vmem:[%s16541_s8 + $0x458] sm:$0xff] }
0x24f2   :  { %v12931_v50 = vpop.eup %12930 }
0x24f3   :  { %v5775_v14 = vsel %vm16700_vm10, %v12931_v50, 0.0  ;;  %vm16711_vm10 = vmmov %vm16707_vm6 }
0x24f4   :  { %v12933_v37 = vpop.eup %12932  ;;  %5776 = vadd.xlane.f32.xlu1 %v5775_v14  ;;  %v10594_v14 = vld [vmem:[%s16541_s8 + $0x448] sm:$0xff] }
0x24f5   :  { %v5772_v61 = vsel %vm16701_vm11, %v12933_v37, 0.0  ;;  %vm16712_vm11 = vmmov %vm16707_vm6 }
0x24f6   :  { %5773 = vadd.xlane.f32.xlu0 %v5772_v61 }
0x24fa   :  { %v12935_v21 = vpop.eup %12934 }
0x24fb   :  { %v5965_v39 = vsel %vm16702_vm12, %v12935_v21, 0.0  ;;  %vm16713_vm12 = vmmov %vm16707_vm6 }
0x24fc   :  { %v12937_v60 = vpop.eup %12936  ;;  %5966 = vadd.xlane.f32.xlu1 %v5965_v39 }
0x24fd   :  { %v5962_v5 = vsel %vm16703_vm13, %v12937_v60, 0.0  ;;  %vm16714_vm13 = vmmov %vm16707_vm6 }
0x24fe   :  { %5963 = vadd.xlane.f32.xlu0 %v5962_v5  ;;  %v6065_v5 = vrot.slane %v15175_v46, %v13746_v16 }
0x257d   :  { %v5777_v0 = vpop.xlane.xlu1 %5776 }
0x257e   :  { %12938 = vrcp.f32 %v5777_v0 }
0x257f   :  { %v5774_v20 = vpop.xlane.xlu0 %5773 }
0x2580   :  { %12940 = vrcp.f32 %v5774_v20 }
0x2585   :  { %v5967_v1 = vpop.xlane.xlu1 %5966 }
0x2586   :  { %12942 = vrcp.f32 %v5967_v1 }
0x2587   :  { %v5964_v29 = vpop.xlane.xlu0 %5963 }
0x2588   :  { %12944 = vrcp.f32 %v5964_v29 }
0x258b   :  { %v12939_v6 = vpop.eup %12938 }
0x258c   :  { %v5781_v51 = vmul.f32 %v12939_v6, %v12931_v50  ;;  %v10595_v50 = vld [vmem:[%s16541_s8 + $0x450] sm:$0xff] }
0x258d   :  { %v12941_v31 = vpop.eup %12940 }
0x258e   :  { %v5780_v54 = vmul.f32 %v12941_v31, %v12933_v37  ;;  %v10593_v37 = vld [vmem:[%s16541_s8 + $0x440] sm:$0xff] }
0x2590   :  { %12169 = vmatprep.mubr.msk.f32.mxu1 %vm16704_vm14, %v5780_v54  ;;  %vm16715_vm14 = vmmov %vm16681_vm0 }
0x2591   :  { %12170 = vmatmul.mubr.msk.f32.vlgmr.msra.gmra.mxu1 %vm16705_vm15, %v5781_v51  ;;  %vm16716_vm15 = vmmov %vm16681_vm0  ;;  %v6261_v51 = vrot.slane %v15175_v46, %v16663_v44 }
0x2592   :  { %12180 = vmatpush3.msra.mxu1 %v15187_v45  ;;  %v10574_v45 = vld [vmem:[%s16541_s8 + $0x3e8] sm:$0xff] }
0x2593   :  { %12181 = vmatprep.subr.mxu1 %v5665_v55  ;;  %v12943_v28 = vpop.eup %12942 }
0x2594   :  { %12182 = vmatpush3.msra.mxu1 %v5665_v55  ;;  %v5971_v24 = vmul.f32 %v12943_v28, %v12935_v21  ;;  %v12229_v28 = vpop.f32.mrf.mxu0 }
0x2595   :  { %v12945_v34 = vpop.eup %12944  ;;  %12186 = vmatprep.subr.mxu1 %v10576_v23 }
0x2596   :  { %v5970_v26 = vmul.f32 %v12945_v34, %v12937_v60 }
0x2598   :  { %12183 = vmatprep.mubr.msk.f32.mxu1 %vm16681_vm0, %v5970_v26 }
0x2599   :  { %12184 = vmatmul.mubr.msk.f32.vlgmr.msra.gmra.mxu1 %vm16706_vm1, %v5971_v24  ;;  %vm16717_vm1 = vmmov %vm16681_vm0 }
0x259a   :  { %12187 = vmatpush3.msra.mxu1 %v10576_v23  ;;  %12202 = vmatprep.mubr.msk.f32.mxu1 %vm16707_vm6, %v15116_v13  ;;  %vm16718_vm6 = vmmov %vm16681_vm0 }
0x259b   :  { %12188 = vmatprep.subr.mxu1 %v10575_v41 }
0x259c   :  { %12189 = vmatpush3.msra.mxu1 %v10575_v41  ;;  %v6246_v41 = vadd.f32 %v12229_v28, %v15245_v30 }
0x259d   :  { %12190 = vmatprep.subr.mxu1 %v10574_v45 }
0x259e   :  { %12191 = vmatpush3.msra.mxu1 %v10574_v45 }
0x259f   :  { %12192 = vmatprep.subr.mxu1 %v10573_v48 }
0x25a0   :  { %12193 = vmatpush3.msra.mxu1 %v10573_v48 }
0x25a1   :  { %12194 = vmatprep.subr.mxu1 %v10572_v47 }
0x25a2   :  { %12195 = vmatpush3.msra.mxu1 %v10572_v47 }
0x25a3   :  { %12196 = vmatprep.subr.mxu1 %v10571_v8 }
0x25a4   :  { %12197 = vmatpush3.msra.mxu1 %v10571_v8  ;;  %v6240_v8 = vpop.f32.mrf.mxu0 }
0x25a5   :  { %12198 = vmatprep.subr.mxu1 %v10570_v15 }
0x25a6   :  { %12199 = vmatpush3.msra.mxu1 %v10570_v15 }
0x25a7   :  { %12200 = vmatprep.subr.mxu1 %v10569_v10 }
0x25a8   :  { %12201 = vmatpush3.msra.mxu1 %v10569_v10 }
0x25a9   :  { %12203 = vmatmul.mubr.msk.f32.vlgmr.msra.gmra.mxu1 %vm16708_vm7, %v15123_v12  ;;  %12230 = vmatprep.subr.mxu1 %v10600_v32  ;;  %vm16719_vm7 = vmmov %vm16681_vm0 }
0x25aa   :  { %12205 = vmatprep.mubr.msk.f32.mxu1 %vm16709_vm8, %v15136_v27  ;;  %12231 = vmatpush3.msra.mxu1 %v10600_v32  ;;  %vm16720_vm8 = vmmov %vm16681_vm0 }
0x25ab   :  { %12232 = vmatprep.subr.mxu1 %v10599_v63 }
0x25ac   :  { %12233 = vmatpush3.msra.mxu1 %v10599_v63 }
0x25ad   :  { %12206 = vmatmul.mubr.msk.f32.gmra.mxu1 %vm16710_vm9, %v15149_v40  ;;  %12234 = vmatprep.subr.mxu1 %v10598_v43  ;;  %vm16721_vm9 = vmmov %vm16681_vm0 }
0x25ae   :  { %12235 = vmatpush3.msra.mxu1 %v10598_v43  ;;  %12246 = vmatprep.mubr.msk.f32.mxu1 %vm16711_vm10, %v15116_v13  ;;  %vm16722_vm10 = vmmov %vm16681_vm0 }
0x25af   :  { %12236 = vmatprep.subr.mxu1 %v10597_v38 }
0x25b0   :  { %12237 = vmatpush3.msra.mxu1 %v10597_v38 }
0x25b1   :  { %12238 = vmatprep.subr.mxu1 %v10596_v11 }
0x25b2   :  { %12239 = vmatpush3.msra.mxu1 %v10596_v11 }
0x25b3   :  { %12240 = vmatprep.subr.mxu1 %v10595_v50 }
0x25b4   :  { %12241 = vmatpush3.msra.mxu1 %v10595_v50 }
0x25b5   :  { %12242 = vmatprep.subr.mxu1 %v10594_v14 }
0x25b6   :  { %12243 = vmatpush3.msra.mxu1 %v10594_v14 }
0x25b7   :  { %12244 = vmatprep.subr.mxu1 %v10593_v37 }
0x25b8   :  { %12245 = vmatpush3.msra.mxu1 %v10593_v37 }
0x25b9   :  { %12247 = vmatmul.mubr.msk.f32.vlgmr.msra.gmra.mxu1 %vm16712_vm11, %v15123_v12  ;;  %vm16723_vm11 = vmmov %vm16681_vm0 }
0x25ba   :  { %12249 = vmatprep.mubr.msk.f32.mxu1 %vm16713_vm12, %v15136_v27  ;;  %vm16724_vm12 = vmmov %vm16681_vm0 }
0x25bd   :  { %12250 = vmatmul.mubr.msk.f32.gmra.mxu1 %vm16714_vm13, %v15149_v40  ;;  %vm16725_vm13 = vmmov %vm16681_vm0 }
0x2651   :  { %v15327_v61 = vpop.f32.mrf.mxu1 }
0x2653   :  { %v15329_v21 = vpop.f32.mrf.mxu1 }
0x2659   :  { %v15331_v39 = vpop.f32.mrf.mxu1 }
0x265b   :  { %v15333_v60 = vpop.f32.mrf.mxu1 }
0x2669   :  { %v12204_v0 = vpop.f32.mrf.mxu1 }
0x266a   :  { %v6138_v29 = vadd.f32 %v12204_v0, %v6065_v5 }
0x266b   :  { %v6132_v20 = vpop.f32.mrf.mxu1 }
0x266c   :  { %v6133_v1 = vadd.f32 %v6132_v20, %v6065_v5 }
0x266d   :  { %v12207_v6 = vpop.f32.mrf.mxu1 }
0x266e   :  { %v15337_v31 = vadd.f32 %v12207_v6, %v6065_v5  ;;  %12256 = vmatprep.mubr.msk.f32.mxu0 %vm16715_vm14, %v6133_v1  ;;  %vm16726_vm14 = vmmov %vm16681_vm0 }
0x266f   :  { %v6142_v62 = vpop.f32.mrf.mxu1  ;;  %12257 = vmatmul.mubr.msk.f32.vlgmr.msra.gmra.mxu0 %vm16716_vm15, %v6138_v29  ;;  %vm16727_vm15 = vmmov %vm16681_vm0 }
0x2670   :  { %v6143_v54 = vadd.f32 %v6142_v62, %v6065_v5 }
0x2679   :  { %v12248_v55 = vpop.f32.mrf.mxu1 }
0x267a   :  { %v6334_v23 = vadd.f32 %v12248_v55, %v6261_v51 }
0x267b   :  { %v6328_v34 = vpop.f32.mrf.mxu1 }
0x267c   :  { %v6329_v26 = vadd.f32 %v6328_v34, %v6261_v51  ;;  %12259 = vmatprep.subr.mxu0 %v6334_v23 }
0x267d   :  { %v12251_v24 = vpop.f32.mrf.mxu1  ;;  %12260 = vmatpush3.msra.mxu0 %v6334_v23 }
0x267e   :  { %v6344_v45 = vadd.f32 %v12251_v24, %v6261_v51  ;;  %12261 = vmatprep.subr.mxu0 %v6329_v26  ;;  %v10516_v24 = vld [vmem:[%s16544_s9 + $0x118] sm:$0xff] }
0x267f   :  { %v6338_v48 = vpop.f32.mrf.mxu1  ;;  %12262 = vmatpush3.msra.mxu0 %v6329_v26  ;;  %v6241_v26 = vadd.f32 %v6240_v8, %v15245_v30  ;;  %v10515_v30 = vld [vmem:[%s16544_s9 + $0x110] sm:$0xff] }
0x2680   :  { %v6339_v47 = vadd.f32 %v6338_v48, %v6261_v51  ;;  %12266 = vmatprep.subr.msk.mxu0 %vm16681_vm0, %v6246_v41  ;;  %12273 = vmatprep.subr.mxu1 %v6344_v45 }
0x2681   :  { %12274 = vmatpush3.msra.mxu1 %v6344_v45 }
0x2682   :  { %12275 = vmatprep.subr.mxu1 %v6339_v47 }
0x2683   :  { %12276 = vmatpush3.msra.mxu1 %v6339_v47 }
0x272f   :  { %v12258_v15 = vpop.f32.mrf.mxu0 }
0x2730   :  { %v6431_v10 = vadd.f32 %v12258_v15, %v16691_v58 }
0x2731   :  { %v6425_v32 = vpop.f32.mrf.mxu0 }
0x2732   :  { %v6426_v63 = vadd.f32 %v6425_v32, %v16691_v58  ;;  %v6437_v43 = vsel %vm16717_vm1, %v6431_v10, -inf  ;;  %vm16728_vm1 = vmmov %vm16681_vm0 }
0x2733   :  { %6438 = vmax.xlane.f32.xlu1 %v6437_v43 }
0x2734   :  { %v6434_v38 = vsel %vm16718_vm6, %v6426_v63, -inf  ;;  %vm16729_vm6 = vmmov %vm16681_vm0 }
0x2735   :  { %6435 = vmax.xlane.f32.xlu0 %v6434_v38 }
0x27bc   :  { %v6439_v11 = vpop.xlane.xlu1 %6438 }
0x27bd   :  { %v6441_v50 = vsub.f32 %v6431_v10, %v6439_v11 }
0x27be   :  { %v6436_v14 = vpop.xlane.xlu0 %6435 }
0x27bf   :  { %v6444_v37 = vmul.f32 1.442695, %v6441_v50  ;;  %v6440_v5 = vsub.f32 %v6426_v63, %v6436_v14 }
0x27c1   :  { %12946 = vpow2.f32 %v6444_v37  ;;  %v6442_v0 = vmul.f32 1.442695, %v6440_v5 }
0x27c3   :  { %12948 = vpow2.f32 %v6442_v0  ;;  %v10514_v0 = vld [vmem:[%s16544_s9 + $0x108] sm:$0xff] }
0x27c4   :  { %12290 = vmatprep.subr.mxu1 %v10514_v0 }
0x27ce   :  { %v12947_v20 = vpop.eup %12946 }
0x27cf   :  { %v6449_v1 = vsel %vm16719_vm7, %v12947_v20, 0.0  ;;  %vm16730_vm7 = vmmov %vm16681_vm0 }
0x27d0   :  { %v12949_v29 = vpop.eup %12948  ;;  %6450 = vadd.xlane.f32.xlu1 %v6449_v1  ;;  %v10631_v1 = vld [vmem:[%s16541_s8 + $0x4b0] sm:$0xff] }
0x27d1   :  { %v6446_v6 = vsel %vm16720_vm8, %v12949_v29, 0.0  ;;  %vm16731_vm8 = vmmov %vm16681_vm0 }
0x27d2   :  { %6447 = vadd.xlane.f32.xlu0 %v6446_v6  ;;  %v10629_v6 = vld [vmem:[%s16541_s8 + $0x4a0] sm:$0xff] }
0x2859   :  { %v6451_v62 = vpop.xlane.xlu1 %6450 }
0x285a   :  { %12950 = vrcp.f32 %v6451_v62  ;;  %v10628_v62 = vld [vmem:[%s16541_s8 + $0x498] sm:$0xff] }
0x285b   :  { %v6448_v51 = vpop.xlane.xlu0 %6447 }
0x285c   :  { %12952 = vrcp.f32 %v6448_v51 }
0x2867   :  { %v12951_v55 = vpop.eup %12950 }
0x2868   :  { %v6455_v34 = vmul.f32 %v12951_v55, %v12947_v20  ;;  %v10632_v20 = vld [vmem:[%s16541_s8 + $0x4b8] sm:$0xff] }
0x2869   :  { %v12953_v23 = vpop.eup %12952 }
0x286a   :  { %v6454_v28 = vmul.f32 %v12953_v23, %v12949_v29  ;;  %v10630_v29 = vld [vmem:[%s16541_s8 + $0x4a8] sm:$0xff] }
0x286c   :  { %12263 = vmatprep.mubr.msk.f32.mxu0 %vm16721_vm9, %v6454_v28  ;;  %vm16732_vm9 = vmmov %vm16681_vm0 }
0x286d   :  { %12264 = vmatmul.mubr.msk.f32.vlgmr.msra.gmra.mxu0 %vm16722_vm10, %v6455_v34  ;;  %vm16733_vm10 = vmmov %vm16681_vm0 }
0x286e   :  { %12267 = vmatpush3.xpose.msk.msra.mxu0 %vm16723_vm11, %v6246_v41  ;;  %12270 = vmatprep.mubr.msk.f32.mxu0 %vm16724_vm12, %v6143_v54  ;;  %vm16734_vm11 = vmmov %vm16681_vm0 }
0x286f   :  { %12268 = vmatprep.subr.msk.mxu0 %vm16725_vm13, %v6241_v26  ;;  %vm16735_vm12 = vmmov %vm16681_vm0 }
0x2870   :  { %vm16736_vm13 = vmmov %vm16681_vm0 }
0x2872   :  { %12269 = vmatpush3.xpose.msk.msra.mxu0 %vm16726_vm14, %v6241_v26  ;;  %vm16737_vm14 = vmmov %vm16681_vm0 }
0x2873   :  { %12280 = vmatprep.subr.mxu0 %v10516_v24 }
0x2875   :  { %12271 = vmatmul.mubr.msk.f32.vlgmr.msra.gmra.mxu0 %vm16727_vm15, %v15337_v31  ;;  %vm16738_vm15 = vmmov %vm16681_vm0 }
0x2876   :  { %12281 = vmatpush3.msra.mxu0 %v10516_v24  ;;  %v10513_v24 = vld [vmem:[%s16544_s9 + $0x100] sm:$0xff] }
0x2877   :  { %12282 = vmatprep.subr.mxu0 %v10515_v30 }
0x2878   :  { %12283 = vmatpush3.msra.mxu0 %v10515_v30  ;;  %v10644_v30 = vld [vmem:[%s16541_s8 + $0x4f8] sm:$0xff] }
0x2879   :  { %12300 = vmatprep.subr.mxu0 %v10632_v20 }
0x292d   :  { %v12265_v54 = vpop.f32.mrf.mxu0 }
0x292f   :  { %v6528_v41 = vpop.f32.mrf.mxu0 }
0x2930   :  { %12284 = vmatprep.mubr.msk.f32.mxu0 %vm16681_vm0, %v6528_v41  ;;  %v10641_v41 = vld [vmem:[%s16541_s8 + $0x4e0] sm:$0xff]  ;;  %vm16739_vm0 = vcmask 523264  }
0x2931   :  { %12285 = vmatmul.mubr.msk.f32.vlgmr.msra.gmra.mxu0 %vm16728_vm1, %v12265_v54  ;;  %v10643_v54 = vld [vmem:[%s16541_s8 + $0x4f0] sm:$0xff]  ;;  %vm16740_vm1 = vmmov %vm16739_vm0 }
0x2932   :  { %12301 = vmatpush3.msra.mxu0 %v10632_v20 }
0x2933   :  { %12302 = vmatprep.subr.mxu0 %v10631_v1 }
0x2934   :  { %12303 = vmatpush3.msra.mxu0 %v10631_v1  ;;  %v10649_v1 = vld [vmem:[%s16541_s8 + $0x500] sm:$0xff] }
0x2935   :  { %v12272_v45 = vpop.f32.mrf.mxu0  ;;  %12304 = vmatprep.subr.mxu0 %v10630_v29 }
0x2936   :  { %v6621_v31 = vadd.f32 %v12272_v45, %v16694_v3  ;;  %12305 = vmatpush3.msra.mxu0 %v10630_v29  ;;  %v10637_v45 = vld [vmem:[%s16541_s8 + $0x4c0] sm:$0xff] }
0x2937   :  { %v6615_v48 = vpop.f32.mrf.mxu0  ;;  %12306 = vmatprep.subr.mxu0 %v10629_v6 }
0x2938   :  { %v6616_v47 = vadd.f32 %v6615_v48, %v16694_v3  ;;  %v6627_v8 = vsel %vm16729_vm6, %v6621_v31, -inf  ;;  %12307 = vmatpush3.msra.mxu0 %v10629_v6  ;;  %vm16741_vm6 = vmmov %vm16739_vm0  ;;  %v10626_v48 = vld [vmem:[%s16541_s8 + $0x488] sm:$0xff] }
0x2939   :  { %6628 = vmax.xlane.f32.xlu1 %v6627_v8  ;;  %12308 = vmatprep.subr.mxu0 %v10628_v62  ;;  %v10656_v8 = vld [vmem:[%s16541_s8 + $0x538] sm:$0xff] }
0x293a   :  { %v6624_v15 = vsel %vm16730_vm7, %v6616_v47, -inf  ;;  %12309 = vmatpush3.msra.mxu0 %v10628_v62  ;;  %vm16742_vm7 = vmmov %vm16739_vm0 }
0x293b   :  { %6625 = vmax.xlane.f32.xlu0 %v6624_v15 }
0x29c2   :  { %v6629_v10 = vpop.xlane.xlu1 %6628 }
0x29c3   :  { %v6631_v32 = vsub.f32 %v6621_v31, %v6629_v10  ;;  %v10627_v31 = vld [vmem:[%s16541_s8 + $0x490] sm:$0xff] }
0x29c4   :  { %v6626_v63 = vpop.xlane.xlu0 %6625  ;;  %12310 = vmatprep.subr.mxu0 %v10627_v31 }
0x29c5   :  { %v6634_v43 = vmul.f32 1.442695, %v6631_v32  ;;  %v6630_v38 = vsub.f32 %v6616_v47, %v6626_v63  ;;  %12311 = vmatpush3.msra.mxu0 %v10627_v31  ;;  %v10625_v47 = vld [vmem:[%s16541_s8 + $0x480] sm:$0xff]  ;;  %v10655_v63 = vld [vmem:[%s16541_s8 + $0x530] sm:$0xff]  ;;  %v15523_v31 = vld [vmem:[%s16542_s5 + $0x18] sm:$0xf] }
0x29c6   :  { %12312 = vmatprep.subr.mxu0 %v10626_v48 }
0x29c7   :  { %12954 = vpow2.f32 %v6634_v43  ;;  %v6632_v11 = vmul.f32 1.442695, %v6630_v38  ;;  %12313 = vmatpush3.msra.mxu0 %v10626_v48  ;;  %v10654_v43 = vld [vmem:[%s16541_s8 + $0x528] sm:$0xff] }
0x29c8   :  { %12314 = vmatprep.subr.mxu0 %v10625_v47 }
0x29c9   :  { %12956 = vpow2.f32 %v6632_v11  ;;  %12315 = vmatpush3.msra.mxu0 %v10625_v47  ;;  %v10653_v11 = vld [vmem:[%s16541_s8 + $0x520] sm:$0xff] }
0x29ca   :  { %12344 = vmatprep.subr.mxu0 %v10656_v8 }
0x29d4   :  { %v12955_v50 = vpop.eup %12954 }
0x29d5   :  { %v6639_v14 = vsel %vm16731_vm8, %v12955_v50, 0.0 }
0x29d6   :  { %v12957_v37 = vpop.eup %12956  ;;  %6640 = vadd.xlane.f32.xlu1 %v6639_v14 }
0x29d7   :  { %v6636_v5 = vsel %vm16732_vm9, %v12957_v37, 0.0  ;;  %vm16743_vm9 = vmmov %vm16731_vm8 }
0x29d8   :  { %6637 = vadd.xlane.f32.xlu0 %v6636_v5  ;;  %v15484_v5 = vrot.slane %v15175_v46, %v16636_v22 }
0x2a5f   :  { %v6641_v51 = vpop.xlane.xlu1 %6640 }
0x2a60   :  { %12958 = vrcp.f32 %v6641_v51 }
0x2a61   :  { %v6638_v55 = vpop.xlane.xlu0 %6637 }
0x2a62   :  { %12960 = vrcp.f32 %v6638_v55  ;;  %v15506_v55 = vpop.f32.mrf.mxu0 }
0x2a6d   :  { %v12959_v23 = vpop.eup %12958 }
0x2a6e   :  { %v6645_v26 = vmul.f32 %v12959_v23, %v12955_v50  ;;  %v10652_v50 = vld [vmem:[%s16541_s8 + $0x518] sm:$0xff]  ;;  %v15508_v23 = vpop.f32.mrf.mxu0 }
0x2a6f   :  { %v12961_v28 = vpop.eup %12960 }
0x2a70   :  { %v6644_v34 = vmul.f32 %v12961_v28, %v12957_v37  ;;  %v10651_v37 = vld [vmem:[%s16541_s8 + $0x510] sm:$0xff] }
0x2a72   :  { %12277 = vmatprep.mubr.msk.f32.mxu1 %vm16733_vm10, %v6644_v34  ;;  %vm16744_vm10 = vmmov %vm16739_vm0 }
0x2a73   :  { %12278 = vmatmul.mubr.msk.f32.vlgmr.msra.gmra.mxu1 %vm16734_vm11, %v6645_v26  ;;  %vm16745_vm11 = vmmov %vm16739_vm0  ;;  %v16755_v26 = vld [vmem:[#allocation9_spill] sm:$0xff] }
0x2a74   :  { %12291 = vmatpush3.msra.mxu1 %v10514_v0  ;;  %12294 = vmatprep.mubr.msk.f32.mxu1 %vm16735_vm12, %v15329_v21  ;;  %v10642_v21 = vld [vmem:[%s16541_s8 + $0x4e8] sm:$0xff]  ;;  %vm16746_vm12 = vmmov %vm16739_vm0 }
0x2a75   :  { %12292 = vmatprep.subr.mxu1 %v10513_v24  ;;  %v10650_v0 = vld [vmem:[%s16541_s8 + $0x508] sm:$0xff] }
0x2a76   :  { %12293 = vmatpush3.msra.mxu1 %v10513_v24  ;;  %v6933_v24 = vrot.slane %v15175_v46, %v16755_v26  ;;  %v7129_v46 = vrot.slane %v15523_v31, %v13278_v59 }
0x2a77   :  { %12322 = vmatprep.subr.mxu1 %v10644_v30  ;;  %12295 = vmatmul.mubr.msk.f32.vlgmr.msra.gmra.mxu1 %vm16736_vm13, %v15327_v61  ;;  %v10640_v61 = vld [vmem:[%s16541_s8 + $0x4d8] sm:$0xff]  ;;  %vm16747_vm13 = vmmov %vm16739_vm0 }
0x2a78   :  { %12323 = vmatpush3.msra.mxu1 %v10644_v30  ;;  %12297 = vmatprep.mubr.msk.f32.mxu1 %vm16737_vm14, %v15333_v60  ;;  %v10639_v60 = vld [vmem:[%s16541_s8 + $0x4d0] sm:$0xff]  ;;  %vm16748_vm14 = vmmov %vm16739_vm0 }
0x2a79   :  { %12324 = vmatprep.subr.mxu1 %v10643_v54 }
0x2a7a   :  { %12325 = vmatpush3.msra.mxu1 %v10643_v54 }
0x2a7b   :  { %12326 = vmatprep.subr.mxu1 %v10642_v21  ;;  %12298 = vmatmul.mubr.msk.f32.gmra.mxu1 %vm16738_vm15, %v15331_v39  ;;  %v10638_v39 = vld [vmem:[%s16541_s8 + $0x4c8] sm:$0xff]  ;;  %vm16749_vm15 = vmmov %vm16731_vm8 }
0x2a7c   :  { %12327 = vmatpush3.msra.mxu1 %v10642_v21  ;;  %12338 = vmatprep.mubr.msk.f32.mxu1 %vm16739_vm0, %v15116_v13 }
0x2a7d   :  { %12328 = vmatprep.subr.mxu1 %v10641_v41 }
0x2a7e   :  { %12329 = vmatpush3.msra.mxu1 %v10641_v41 }
0x2a7f   :  { %12330 = vmatprep.subr.mxu1 %v10640_v61 }
0x2a80   :  { %12331 = vmatpush3.msra.mxu1 %v10640_v61 }
0x2a81   :  { %12332 = vmatprep.subr.mxu1 %v10639_v60 }
0x2a82   :  { %12333 = vmatpush3.msra.mxu1 %v10639_v60 }
0x2a83   :  { %12334 = vmatprep.subr.mxu1 %v10638_v39 }
0x2a84   :  { %12335 = vmatpush3.msra.mxu1 %v10638_v39 }
0x2a85   :  { %12336 = vmatprep.subr.mxu1 %v10637_v45 }
0x2a86   :  { %12337 = vmatpush3.msra.mxu1 %v10637_v45 }
0x2a87   :  { %12339 = vmatmul.mubr.msk.f32.vlgmr.msra.gmra.mxu1 %vm16740_vm1, %v15123_v12  ;;  %vm16750_vm1 = vmmov %vm16731_vm8 }
0x2a88   :  { %12341 = vmatprep.mubr.msk.f32.mxu1 %vm16741_vm6, %v15136_v27  ;;  %vm16751_vm6 = vmmov %vm16739_vm0 }
0x2a8b   :  { %12342 = vmatmul.mubr.msk.f32.gmra.mxu1 %vm16742_vm7, %v15149_v40  ;;  %vm16752_vm7 = vmmov %vm16750_vm1 }
0x2b33   :  { %v12279_v15 = vpop.f32.mrf.mxu1 }
0x2b35   :  { %v6718_v10 = vpop.f32.mrf.mxu1 }
0x2b36   :  { %12287 = vmatprep.mubr.msk.f32.mxu0 %vm16731_vm8, %v6718_v10  ;;  %vm16753_vm8 = vmmov %vm16739_vm0 }
0x2b37   :  { %12288 = vmatmul.mubr.msk.f32.gmra.mxu0 %vm16743_vm9, %v12279_v15  ;;  %v15453_v32 = vpop.f32.mrf.mxu1  ;;  %vm16754_vm9 = vmmov %vm16750_vm1 }
0x2b38   :  { %12316 = vmatprep.mubr.msk.f32.mxu0 %vm16744_vm10, %v15116_v13  ;;  %vm16756_vm10 = vmmov %vm16750_vm1 }
0x2b39   :  { %v15465_v38 = vpop.f32.mrf.mxu1 }
0x2b3b   :  { %12317 = vmatmul.mubr.msk.f32.vlgmr.msra.gmra.mxu0 %vm16745_vm11, %v15123_v12  ;;  %v15477_v14 = vpop.f32.mrf.mxu1  ;;  %vm16757_vm11 = vmmov %vm16750_vm1 }
0x2b3c   :  { %12345 = vmatpush3.msra.mxu0 %v10656_v8  ;;  %12319 = vmatprep.mubr.msk.f32.mxu0 %vm16746_vm12, %v15136_v27  ;;  %vm16758_vm12 = vmmov %vm16750_vm1 }
0x2b3d   :  { %12346 = vmatprep.subr.mxu0 %v10655_v63  ;;  %v15489_v20 = vpop.f32.mrf.mxu1 }
0x2b3e   :  { %12347 = vmatpush3.msra.mxu0 %v10655_v63 }
0x2b3f   :  { %12348 = vmatprep.subr.mxu0 %v10654_v43  ;;  %12320 = vmatmul.mubr.msk.f32.gmra.mxu0 %vm16747_vm13, %v15149_v40  ;;  %vm16759_vm13 = vmmov %vm16750_vm1 }
0x2b40   :  { %12349 = vmatpush3.msra.mxu0 %v10654_v43  ;;  %12360 = vmatprep.mubr.msk.f32.mxu0 %vm16748_vm14, %v15116_v13  ;;  %vm16760_vm14 = vmmov %vm16750_vm1 }
0x2b41   :  { %12350 = vmatprep.subr.mxu0 %v10653_v11 }
0x2b42   :  { %12351 = vmatpush3.msra.mxu0 %v10653_v11 }
0x2b43   :  { %12352 = vmatprep.subr.mxu0 %v10652_v50 }
0x2b44   :  { %12353 = vmatpush3.msra.mxu0 %v10652_v50 }
0x2b45   :  { %12354 = vmatprep.subr.mxu0 %v10651_v37 }
0x2b46   :  { %12355 = vmatpush3.msra.mxu0 %v10651_v37 }
0x2b47   :  { %v12340_v29 = vpop.f32.mrf.mxu1  ;;  %12356 = vmatprep.subr.mxu0 %v10650_v0 }
0x2b48   :  { %v7104_v6 = vadd.f32 %v12340_v29, %v15484_v5  ;;  %12357 = vmatpush3.msra.mxu0 %v10650_v0 }
0x2b49   :  { %v7098_v62 = vpop.f32.mrf.mxu1  ;;  %12358 = vmatprep.subr.mxu0 %v10649_v1 }
0x2b4a   :  { %v7099_v51 = vadd.f32 %v7098_v62, %v15484_v5  ;;  %12359 = vmatpush3.msra.mxu0 %v10649_v1  ;;  %12366 = vmatprep.subr.msk.mxu1 %vm16749_vm15, %v7104_v6  ;;  %vm16761_vm15 = vmmov %vm16750_vm1 }
0x2b4b   :  { %12361 = vmatmul.mubr.msk.f32.vlgmr.msra.gmra.mxu0 %vm16739_vm0, %v15123_v12  ;;  %12367 = vmatpush3.xpose.msk.msra.mxu1 %vm16750_vm1, %v7104_v6  ;;  %v12343_v8 = vpop.f32.mrf.mxu1  ;;  %vm16762_vm0 = vmmov %vm16750_vm1 }
0x2b4c   :  { %12363 = vmatprep.mubr.msk.f32.mxu0 %vm16751_vm6, %v15136_v27  ;;  %12368 = vmatprep.subr.msk.mxu1 %vm16752_vm7, %v7099_v51  ;;  %v7114_v43 = vadd.f32 %v12343_v8, %v15484_v5  ;;  %vm16763_vm1 = vmmov %vm16762_vm0 }
0x2b4d   :  { %v7108_v0 = vpop.f32.mrf.mxu1  ;;  %vm16764_vm6 = vmmov %vm16762_vm0 }
0x2b4e   :  { %vm16765_vm7 = vmmov %vm16762_vm0 }
0x2b4f   :  { %12364 = vmatmul.mubr.msk.f32.gmra.mxu0 %vm16753_vm8, %v15149_v40  ;;  %12369 = vmatpush3.xpose.msk.msra.mxu1 %vm16754_vm9, %v7099_v51  ;;  %vm16766_vm8 = vmmov %vm16762_vm0 }
0x2b50   :  { %vm16767_vm9 = vmmov %vm16762_vm0 }
0x2bf7   :  { %v15510_v28 = vpop.f32.mrf.mxu0 }
0x2bf9   :  { %v15512_v34 = vpop.f32.mrf.mxu0 }
0x2bfb   :  { %v12318_v30 = vpop.f32.mrf.mxu0 }
0x2bfc   :  { %v7006_v41 = vadd.f32 %v12318_v30, %v6933_v24 }
0x2bfd   :  { %v7000_v54 = vpop.f32.mrf.mxu0 }
0x2bfe   :  { %v7001_v21 = vadd.f32 %v7000_v54, %v6933_v24 }
0x2bff   :  { %v12321_v61 = vpop.f32.mrf.mxu0 }
0x2c00   :  { %v15516_v60 = vadd.f32 %v12321_v61, %v6933_v24  ;;  %12370 = vmatprep.mubr.msk.f32.mxu1 %vm16756_vm10, %v7001_v21  ;;  %vm16768_vm10 = vmmov %vm16762_vm0 }
0x2c01   :  { %v7010_v39 = vpop.f32.mrf.mxu0  ;;  %12371 = vmatmul.mubr.msk.f32.vlgmr.msra.gmra.mxu1 %vm16757_vm11, %v7006_v41  ;;  %vm16769_vm11 = vmmov %vm16762_vm0 }
0x2c02   :  { %v7011_v45 = vadd.f32 %v7010_v39, %v6933_v24 }
0x2c0b   :  { %v12362_v48 = vpop.f32.mrf.mxu0 }
0x2c0c   :  { %v7202_v47 = vadd.f32 %v12362_v48, %v7129_v46 }
0x2c0d   :  { %v7196_v15 = vpop.f32.mrf.mxu0 }
0x2c0e   :  { %v7197_v10 = vadd.f32 %v7196_v15, %v7129_v46  ;;  %12373 = vmatprep.subr.mxu1 %v7202_v47 }
0x2c0f   :  { %v12365_v63 = vpop.f32.mrf.mxu0  ;;  %12374 = vmatpush3.msra.mxu1 %v7202_v47 }
0x2c10   :  { %v7212_v11 = vadd.f32 %v12365_v63, %v7129_v46  ;;  %12375 = vmatprep.subr.mxu1 %v7197_v10 }
0x2c11   :  { %v7206_v50 = vpop.f32.mrf.mxu0  ;;  %12376 = vmatpush3.msra.mxu1 %v7197_v10 }
0x2c12   :  { %v7207_v37 = vadd.f32 %v7206_v50, %v7129_v46  ;;  %12380 = vmatprep.subr.msk.mxu1 %vm16758_vm12, %v7114_v43  ;;  %12387 = vmatprep.subr.mxu0 %v7212_v11  ;;  %vm16770_vm12 = vmmov %vm16762_vm0 }
0x2c13   :  { %12388 = vmatpush3.msra.mxu0 %v7212_v11 }
0x2c14   :  { %12389 = vmatprep.subr.mxu0 %v7207_v37 }
0x2c15   :  { %12390 = vmatpush3.msra.mxu0 %v7207_v37 }
0x2cc1   :  { %v12372_v1 = vpop.f32.mrf.mxu1 }
0x2cc2   :  { %v7299_v29 = vadd.f32 %v12372_v1, %v16691_v58  ;;  %v7109_v1 = vadd.f32 %v7108_v0, %v15484_v5  ;;  %v10517_v5 = vld [vmem:[%s16544_s9 + $0x120] sm:$0xff] }
0x2cc3   :  { %v7293_v6 = vpop.f32.mrf.mxu1 }
0x2cc4   :  { %v7294_v62 = vadd.f32 %v7293_v6, %v16691_v58  ;;  %v7305_v51 = vsel %vm16759_vm13, %v7299_v29, -inf  ;;  %vm16771_vm13 = vmmov %vm16762_vm0 }
0x2cc5   :  { %7306 = vmax.xlane.f32.xlu1 %v7305_v51 }
0x2cc6   :  { %v7302_v24 = vsel %vm16760_vm14, %v7294_v62, -inf  ;;  %vm16772_vm14 = vmmov %vm16762_vm0 }
0x2cc7   :  { %7303 = vmax.xlane.f32.xlu0 %v7302_v24 }
0x2d4e   :  { %v7307_v30 = vpop.xlane.xlu1 %7306 }
0x2d4f   :  { %v7309_v54 = vsub.f32 %v7299_v29, %v7307_v30  ;;  %v10518_v29 = vld [vmem:[%s16544_s9 + $0x128] sm:$0xff] }
0x2d50   :  { %v7304_v21 = vpop.xlane.xlu0 %7303 }
0x2d51   :  { %v7312_v41 = vmul.f32 1.442695, %v7309_v54  ;;  %v7308_v61 = vsub.f32 %v7294_v62, %v7304_v21 }
0x2d53   :  { %12962 = vpow2.f32 %v7312_v41  ;;  %v7310_v39 = vmul.f32 1.442695, %v7308_v61 }
0x2d55   :  { %12964 = vpow2.f32 %v7310_v39 }
0x2d60   :  { %v12963_v46 = vpop.eup %12962 }
0x2d61   :  { %v7317_v48 = vsel %vm16761_vm15, %v12963_v46, 0.0  ;;  %vm16773_vm15 = vmmov %vm16762_vm0 }
0x2d62   :  { %v12965_v47 = vpop.eup %12964  ;;  %7318 = vadd.xlane.f32.xlu1 %v7317_v48 }
0x2d63   :  { %v7314_v8 = vsel %vm16762_vm0, %v12965_v47, 0.0 }
0x2d64   :  { %7315 = vadd.xlane.f32.xlu0 %v7314_v8 }
0x2deb   :  { %v7319_v15 = vpop.xlane.xlu1 %7318 }
0x2dec   :  { %12966 = vrcp.f32 %v7319_v15  ;;  %v6908_v15 = vadd.f32 %v15453_v32, %v15506_v55  ;;  %v10694_v32 = vld [vmem:[%s16541_s8 + $0x5a8] sm:$0xff]  ;;  %v10693_v55 = vld [vmem:[%s16541_s8 + $0x5a0] sm:$0xff] }
0x2ded   :  { %v7316_v10 = vpop.xlane.xlu0 %7315 }
0x2dee   :  { %12968 = vrcp.f32 %v7316_v10 }
0x2df9   :  { %v12967_v63 = vpop.eup %12966 }
0x2dfa   :  { %v7323_v37 = vmul.f32 %v12967_v63, %v12963_v46 }
0x2dfb   :  { %v12969_v11 = vpop.eup %12968 }
0x2dfc   :  { %v7322_v50 = vmul.f32 %v12969_v11, %v12965_v47  ;;  %v10684_v11 = vld [vmem:[%s16541_s8 + $0x578] sm:$0xff] }
0x2dfd   :  { %12404 = vmatprep.subr.mxu0 %v10684_v11 }
0x2dfe   :  { %12377 = vmatprep.mubr.msk.f32.mxu1 %vm16763_vm1, %v7322_v50  ;;  %vm16774_vm1 = vmmov %vm16762_vm0  ;;  %v10696_v50 = vld [vmem:[%s16541_s8 + $0x5b8] sm:$0xff] }
0x2dff   :  { %12378 = vmatmul.mubr.msk.f32.vlgmr.msra.gmra.mxu1 %vm16764_vm6, %v7323_v37  ;;  %v10695_v37 = vld [vmem:[%s16541_s8 + $0x5b0] sm:$0xff]  ;;  %vm16775_vm6 = vmmov %vm16762_vm0 }
0x2e00   :  { %12381 = vmatpush3.xpose.msk.msra.mxu1 %vm16765_vm7, %v7114_v43  ;;  %12384 = vmatprep.mubr.msk.f32.mxu1 %vm16766_vm8, %v7011_v45  ;;  %vm16776_vm7 = vmmov %vm16762_vm0  ;;  %vm16777_vm8 = vcmask 523264  }
0x2e01   :  { %12382 = vmatprep.subr.msk.mxu1 %vm16767_vm9, %v7109_v1  ;;  %vm16778_vm9 = vmmov %vm16777_vm8 }
0x2e04   :  { %12383 = vmatpush3.xpose.msk.msra.mxu1 %vm16768_vm10, %v7109_v1  ;;  %vm16779_vm10 = vmmov %vm16777_vm8 }
0x2e05   :  { %12394 = vmatprep.subr.mxu1 %v10518_v29 }
0x2e07   :  { %12385 = vmatmul.mubr.msk.f32.vlgmr.msra.gmra.mxu1 %vm16769_vm11, %v15516_v60  ;;  %vm16780_vm11 = vmmov %vm16777_vm8 }
0x2e08   :  { %12395 = vmatpush3.msra.mxu1 %v10518_v29 }
0x2e09   :  { %12396 = vmatprep.subr.mxu1 %v10517_v5 }
0x2e0a   :  { %12397 = vmatpush3.msra.mxu1 %v10517_v5 }
0x2e0b   :  { %12426 = vmatprep.subr.mxu1 %v10696_v50 }
0x2ebf   :  { %v12379_v45 = vpop.f32.mrf.mxu1 }
0x2ec1   :  { %v7396_v43 = vpop.f32.mrf.mxu1 }
0x2ec2   :  { %12398 = vmatprep.mubr.msk.f32.mxu1 %vm16770_vm12, %v7396_v43  ;;  %vm16781_vm12 = vmmov %vm16777_vm8 }
0x2ec3   :  { %12399 = vmatmul.mubr.msk.f32.vlgmr.msra.gmra.mxu1 %vm16771_vm13, %v12379_v45  ;;  %vm16782_vm13 = vmmov %vm16777_vm8 }
0x2ec4   :  { %12427 = vmatpush3.msra.mxu1 %v10696_v50  ;;  %v10689_v50 = vld [vmem:[%s16541_s8 + $0x580] sm:$0xff] }
0x2ec5   :  { %12428 = vmatprep.subr.mxu1 %v10695_v37 }
0x2ec6   :  { %12429 = vmatpush3.msra.mxu1 %v10695_v37 }
0x2ec7   :  { %v12386_v0 = vpop.f32.mrf.mxu1  ;;  %12430 = vmatprep.subr.mxu1 %v10694_v32 }
0x2ec8   :  { %v7489_v60 = vadd.f32 %v12386_v0, %v16694_v3  ;;  %12431 = vmatpush3.msra.mxu1 %v10694_v32 }
0x2ec9   :  { %v7483_v6 = vpop.f32.mrf.mxu1  ;;  %12432 = vmatprep.subr.mxu1 %v10693_v55 }
0x2eca   :  { %v7484_v62 = vadd.f32 %v7483_v6, %v16694_v3  ;;  %v7495_v51 = vsel %vm16772_vm14, %v7489_v60, -inf  ;;  %12433 = vmatpush3.msra.mxu1 %v10693_v55  ;;  %v10682_v6 = vld [vmem:[%s16541_s8 + $0x568] sm:$0xff]  ;;  %vm16783_vm14 = vmmov %vm16777_vm8  ;;  %v7708_v55 = vrot.slane %v15523_v31, %v16642_v53 }
0x2ecb   :  { %7496 = vmax.xlane.f32.xlu1 %v7495_v51  ;;  %v10680_v51 = vld [vmem:[%s16541_s8 + $0x558] sm:$0xff] }
0x2ecc   :  { %v7492_v24 = vsel %vm16773_vm15, %v7484_v62, -inf  ;;  %vm16784_vm15 = vmmov %vm16777_vm8 }
0x2ecd   :  { %7493 = vmax.xlane.f32.xlu0 %v7492_v24  ;;  %v10679_v24 = vld [vmem:[%s16541_s8 + $0x550] sm:$0xff] }
0x2f54   :  { %v7497_v30 = vpop.xlane.xlu1 %7496 }
0x2f55   :  { %v7499_v54 = vsub.f32 %v7489_v60, %v7497_v30  ;;  %v10683_v60 = vld [vmem:[%s16541_s8 + $0x570] sm:$0xff]  ;;  %v10678_v30 = vld [vmem:[%s16541_s8 + $0x548] sm:$0xff] }
0x2f56   :  { %v7494_v21 = vpop.xlane.xlu0 %7493 }
0x2f57   :  { %v7502_v41 = vmul.f32 1.442695, %v7499_v54  ;;  %v7498_v61 = vsub.f32 %v7484_v62, %v7494_v21  ;;  %v10681_v62 = vld [vmem:[%s16541_s8 + $0x560] sm:$0xff]  ;;  %v10708_v21 = vld [vmem:[%s16541_s8 + $0x5f8] sm:$0xff] }
0x2f58   :  { %v10677_v54 = vld [vmem:[%s16541_s8 + $0x540] sm:$0xff] }
0x2f59   :  { %12970 = vpow2.f32 %v7502_v41  ;;  %v7500_v39 = vmul.f32 1.442695, %v7498_v61  ;;  %v10707_v41 = vld [vmem:[%s16541_s8 + $0x5f0] sm:$0xff]  ;;  %v10706_v61 = vld [vmem:[%s16541_s8 + $0x5e8] sm:$0xff] }
0x2f5b   :  { %12972 = vpow2.f32 %v7500_v39  ;;  %v10705_v39 = vld [vmem:[%s16541_s8 + $0x5e0] sm:$0xff] }
0x2f66   :  { %v12971_v46 = vpop.eup %12970 }
0x2f67   :  { %v7507_v48 = vsel %vm16762_vm0, %v12971_v46, 0.0 }
0x2f68   :  { %v12973_v47 = vpop.eup %12972  ;;  %7508 = vadd.xlane.f32.xlu1 %v7507_v48  ;;  %v10703_v48 = vld [vmem:[%s16541_s8 + $0x5d0] sm:$0xff] }
0x2f69   :  { %v7504_v8 = vsel %vm16774_vm1, %v12973_v47, 0.0  ;;  %vm16785_vm1 = vmmov %vm16762_vm0 }
0x2f6a   :  { %7505 = vadd.xlane.f32.xlu0 %v7504_v8  ;;  %v10701_v8 = vld [vmem:[%s16541_s8 + $0x5c0] sm:$0xff] }
0x2f83   :  { %v12400_v10 = vpop.f32.mrf.mxu1 }
0x2f84   :  { %v15560_v63 = vadd.f32 %v12400_v10, %v6908_v15  ;;  %v10692_v15 = vld [vmem:[%s16541_s8 + $0x598] sm:$0xff]  ;;  %v10691_v10 = vld [vmem:[%s16541_s8 + $0x590] sm:$0xff] }
0x2f85   :  { %12434 = vmatprep.subr.mxu1 %v10692_v15 }
0x2f86   :  { %12435 = vmatpush3.msra.mxu1 %v10692_v15 }
0x2f87   :  { %12436 = vmatprep.subr.mxu1 %v10691_v10 }
0x2f88   :  { %12437 = vmatpush3.msra.mxu1 %v10691_v10 }
0x2ff1   :  { %v7509_v1 = vpop.xlane.xlu1 %7508 }
0x2ff2   :  { %12974 = vrcp.f32 %v7509_v1 }
0x2ff3   :  { %v7506_v29 = vpop.xlane.xlu0 %7505 }
0x2ff4   :  { %12976 = vrcp.f32 %v7506_v29 }
0x2fff   :  { %v12975_v5 = vpop.eup %12974 }
0x3000   :  { %v7513_v0 = vmul.f32 %v12975_v5, %v12971_v46  ;;  %v10704_v46 = vld [vmem:[%s16541_s8 + $0x5d8] sm:$0xff] }
0x3001   :  { %v12977_v45 = vpop.eup %12976 }
0x3002   :  { %v7512_v43 = vmul.f32 %v12977_v45, %v12973_v47  ;;  %v10702_v47 = vld [vmem:[%s16541_s8 + $0x5c8] sm:$0xff] }
0x3004   :  { %12391 = vmatprep.mubr.msk.f32.mxu0 %vm16775_vm6, %v7512_v43  ;;  %vm16786_vm6 = vmmov %vm16777_vm8 }
0x3005   :  { %12392 = vmatmul.mubr.msk.f32.vlgmr.msra.gmra.mxu0 %vm16776_vm7, %v7513_v0  ;;  %vm16787_vm7 = vmmov %vm16786_vm6 }
0x3006   :  { %12405 = vmatpush3.msra.mxu0 %v10684_v11  ;;  %12420 = vmatprep.mubr.msk.f32.mxu0 %vm16777_vm8, %v15116_v13  ;;  %v10690_v11 = vld [vmem:[%s16541_s8 + $0x588] sm:$0xff]  ;;  %vm16788_vm8 = vmmov %vm16786_vm6 }
0x3007   :  { %12406 = vmatprep.subr.mxu0 %v10683_v60  ;;  %12438 = vmatprep.subr.mxu1 %v10690_v11 }
0x3008   :  { %12407 = vmatpush3.msra.mxu0 %v10683_v60  ;;  %12439 = vmatpush3.msra.mxu1 %v10690_v11 }
0x3009   :  { %12408 = vmatprep.subr.mxu0 %v10682_v6  ;;  %12440 = vmatprep.subr.mxu1 %v10689_v50 }
0x300a   :  { %12409 = vmatpush3.msra.mxu0 %v10682_v6  ;;  %12441 = vmatpush3.msra.mxu1 %v10689_v50 }
0x300b   :  { %12410 = vmatprep.subr.mxu0 %v10681_v62 }
0x300c   :  { %12411 = vmatpush3.msra.mxu0 %v10681_v62 }
0x300d   :  { %12412 = vmatprep.subr.mxu0 %v10680_v51 }
0x300e   :  { %12413 = vmatpush3.msra.mxu0 %v10680_v51 }
0x300f   :  { %12414 = vmatprep.subr.mxu0 %v10679_v24 }
0x3010   :  { %12415 = vmatpush3.msra.mxu0 %v10679_v24 }
0x3011   :  { %12416 = vmatprep.subr.mxu0 %v10678_v30 }
0x3012   :  { %12417 = vmatpush3.msra.mxu0 %v10678_v30 }
0x3013   :  { %12418 = vmatprep.subr.mxu0 %v10677_v54 }
0x3014   :  { %12419 = vmatpush3.msra.mxu0 %v10677_v54 }
0x3015   :  { %12421 = vmatmul.mubr.msk.f32.vlgmr.msra.gmra.mxu0 %vm16778_vm9, %v15123_v12  ;;  %12448 = vmatprep.subr.mxu0 %v10708_v21  ;;  %vm16789_vm9 = vmmov %vm16786_vm6 }
0x3016   :  { %12423 = vmatprep.mubr.msk.f32.mxu0 %vm16779_vm10, %v15136_v27  ;;  %12449 = vmatpush3.msra.mxu0 %v10708_v21  ;;  %vm16790_vm10 = vmmov %vm16762_vm0  ;;  %v15671_v21 = vpop.f32.mrf.mxu1 }
0x3017   :  { %12450 = vmatprep.subr.mxu0 %v10707_v41 }
0x3018   :  { %12451 = vmatpush3.msra.mxu0 %v10707_v41  ;;  %v6918_v41 = vadd.f32 %v15477_v14, %v15510_v28 }
0x3019   :  { %12424 = vmatmul.mubr.msk.f32.gmra.mxu0 %vm16780_vm11, %v15149_v40  ;;  %12452 = vmatprep.subr.mxu0 %v10706_v61  ;;  %vm16791_vm11 = vmmov %vm16762_vm0 }
0x301a   :  { %12453 = vmatpush3.msra.mxu0 %v10706_v61  ;;  %12464 = vmatprep.mubr.msk.f32.mxu0 %vm16781_vm12, %v15116_v13  ;;  %vm16792_vm12 = vmmov %vm16762_vm0 }
0x301b   :  { %12454 = vmatprep.subr.mxu0 %v10705_v39 }
0x301c   :  { %12455 = vmatpush3.msra.mxu0 %v10705_v39  ;;  %v6913_v39 = vadd.f32 %v15489_v20, %v15512_v34 }
0x301d   :  { %12456 = vmatprep.subr.mxu0 %v10704_v46 }
0x301e   :  { %12457 = vmatpush3.msra.mxu0 %v10704_v46 }
0x301f   :  { %12458 = vmatprep.subr.mxu0 %v10703_v48 }
0x3020   :  { %12459 = vmatpush3.msra.mxu0 %v10703_v48  ;;  %v7806_v48 = vrot.slane %v15523_v31, %v16655_v52 }
0x3021   :  { %12460 = vmatprep.subr.mxu0 %v10702_v47 }
0x3022   :  { %12461 = vmatpush3.msra.mxu0 %v10702_v47 }
0x3023   :  { %12462 = vmatprep.subr.mxu0 %v10701_v8 }
0x3024   :  { %12463 = vmatpush3.msra.mxu0 %v10701_v8 }
0x3025   :  { %12465 = vmatmul.mubr.msk.f32.vlgmr.msra.gmra.mxu0 %vm16782_vm13, %v15123_v12  ;;  %vm16793_vm13 = vmmov %vm16762_vm0 }
0x3026   :  { %12467 = vmatprep.mubr.msk.f32.mxu0 %vm16783_vm14, %v15136_v27  ;;  %vm16794_vm14 = vmmov %vm16762_vm0 }
0x3029   :  { %12468 = vmatmul.mubr.msk.f32.gmra.mxu0 %vm16784_vm15, %v15149_v40  ;;  %vm16795_vm15 = vmmov %vm16762_vm0 }
0x30c5   :  { %v12393_v37 = vpop.f32.mrf.mxu0 }
0x30c7   :  { %v7586_v32 = vpop.f32.mrf.mxu0 }
0x30c8   :  { %12401 = vmatprep.mubr.msk.f32.mxu1 %vm16762_vm0, %v7586_v32 }
0x30c9   :  { %12402 = vmatmul.mubr.msk.f32.gmra.mxu1 %vm16785_vm1, %v12393_v37  ;;  %vm16796_vm1 = vmmov %vm16762_vm0 }
0x30ca   :  { %12442 = vmatprep.mubr.msk.f32.mxu1 %vm16786_vm6, %v15116_v13  ;;  %vm16797_vm6 = vmmov %vm16762_vm0 }
0x30cd   :  { %12443 = vmatmul.mubr.msk.f32.vlgmr.msra.gmra.mxu1 %vm16787_vm7, %v15123_v12  ;;  %vm16798_vm7 = vmmov %vm16762_vm0 }
0x30ce   :  { %12445 = vmatprep.mubr.msk.f32.mxu1 %vm16788_vm8, %v15136_v27  ;;  %v7904_v27 = vrot.slane %v15523_v31, %v13746_v16  ;;  %vm16799_vm8 = vmmov %vm16762_vm0 }
0x30d1   :  { %12446 = vmatmul.mubr.msk.f32.gmra.mxu1 %vm16789_vm9, %v15149_v40  ;;  %vm16800_vm9 = vmmov %vm16762_vm0 }
0x30d5   :  { %v12422_v1 = vpop.f32.mrf.mxu0 }
0x30d6   :  { %v7781_v29 = vadd.f32 %v12422_v1, %v7708_v55 }
0x30d7   :  { %v7775_v5 = vpop.f32.mrf.mxu0 }
0x30d8   :  { %v7776_v45 = vadd.f32 %v7775_v5, %v7708_v55 }
0x30d9   :  { %v12425_v43 = vpop.f32.mrf.mxu0 }
0x30da   :  { %v15664_v0 = vadd.f32 %v12425_v43, %v7708_v55  ;;  %12474 = vmatprep.mubr.msk.f32.mxu1 %vm16790_vm10, %v7776_v45  ;;  %vm16801_vm10 = vmmov %vm16762_vm0 }
0x30db   :  { %v7785_v13 = vpop.f32.mrf.mxu0 }
0x30dc   :  { %v15667_v12 = vadd.f32 %v7785_v13, %v7708_v55 }
0x30e5   :  { %v12466_v60 = vpop.f32.mrf.mxu0 }
0x30e6   :  { %v7977_v40 = vadd.f32 %v12466_v60, %v7904_v27 }
0x30e7   :  { %v7971_v6 = vpop.f32.mrf.mxu0 }
0x30e8   :  { %v7972_v62 = vadd.f32 %v7971_v6, %v7904_v27 }
0x30e9   :  { %v12469_v51 = vpop.f32.mrf.mxu0 }
0x30ea   :  { %v7987_v24 = vadd.f32 %v12469_v51, %v7904_v27 }
0x30eb   :  { %v7981_v30 = vpop.f32.mrf.mxu0 }
0x30ec   :  { %v7982_v54 = vadd.f32 %v7981_v30, %v7904_v27  ;;  %12491 = vmatprep.subr.mxu0 %v7987_v24 }
0x30ed   :  { %12492 = vmatpush3.msra.mxu0 %v7987_v24 }
0x30ee   :  { %12493 = vmatprep.subr.mxu0 %v7982_v54 }
0x30ef   :  { %12494 = vmatpush3.msra.mxu0 %v7982_v54 }
0x3189   :  { %v12403_v61 = vpop.f32.mrf.mxu1 }
0x318a   :  { %v15677_v46 = vadd.f32 %v12403_v61, %v6918_v41 }
0x318b   :  { %v7683_v47 = vpop.f32.mrf.mxu1 }
0x318c   :  { %v15681_v8 = vadd.f32 %v7683_v47, %v6913_v39  ;;  %v10520_v39 = vld [vmem:[%s16544_s9 + $0x138] sm:$0xff] }
0x318d   :  { %v12444_v15 = vpop.f32.mrf.mxu1 }
0x318e   :  { %v7879_v10 = vadd.f32 %v12444_v15, %v7806_v48 }
0x318f   :  { %v7873_v11 = vpop.f32.mrf.mxu1 }
0x3190   :  { %v7874_v50 = vadd.f32 %v7873_v11, %v7806_v48  ;;  %12470 = vmatprep.subr.msk.mxu1 %vm16791_vm11, %v7879_v10  ;;  %vm16802_vm11 = vmmov %vm16762_vm0 }
0x3191   :  { %12471 = vmatpush3.xpose.msk.msra.mxu1 %vm16792_vm12, %v7879_v10  ;;  %v12447_v14 = vpop.f32.mrf.mxu1  ;;  %vm16803_vm12 = vmmov %vm16762_vm0 }
0x3192   :  { %12472 = vmatprep.subr.msk.mxu1 %vm16793_vm13, %v7874_v50  ;;  %v7889_v20 = vadd.f32 %v12447_v14, %v7806_v48  ;;  %vm16804_vm13 = vmmov %vm16762_vm0 }
0x3193   :  { %v7883_v28 = vpop.f32.mrf.mxu1 }
0x3194   :  { %v7884_v61 = vadd.f32 %v7883_v28, %v7806_v48  ;;  %v10519_v48 = vld [vmem:[%s16544_s9 + $0x130] sm:$0xff] }
0x3195   :  { %12473 = vmatpush3.xpose.msk.msra.mxu1 %vm16794_vm14, %v7874_v50  ;;  %vm16805_vm14 = vmmov %vm16762_vm0 }
0x3196   :  { %12477 = vmatprep.subr.mxu1 %v7977_v40 }
0x3198   :  { %12475 = vmatmul.mubr.msk.f32.vlgmr.msra.gmra.mxu1 %vm16795_vm15, %v7781_v29  ;;  %vm16806_vm15 = vmmov %vm16762_vm0 }
0x3199   :  { %12478 = vmatpush3.msra.mxu1 %v7977_v40 }
0x319a   :  { %12479 = vmatprep.subr.mxu1 %v7972_v62 }
0x319b   :  { %12480 = vmatpush3.msra.mxu1 %v7972_v62 }
0x319c   :  { %12484 = vmatprep.subr.msk.mxu1 %vm16762_vm0, %v7889_v20 }
0x3258   :  { %v12476_v34 = vpop.f32.mrf.mxu1 }
0x3259   :  { %v8074_v31 = vadd.f32 %v12476_v34, %v16691_v58 }
0x325a   :  { %v8068_v37 = vpop.f32.mrf.mxu1 }
0x325b   :  { %v8069_v32 = vadd.f32 %v8068_v37, %v16691_v58  ;;  %v8080_v55 = vsel %vm16796_vm1, %v8074_v31, -inf  ;;  %vm16807_vm1 = vmmov %vm16762_vm0 }
0x325c   :  { %8081 = vmax.xlane.f32.xlu1 %v8080_v55 }
0x325d   :  { %v8077_v1 = vsel %vm16797_vm6, %v8069_v32, -inf  ;;  %vm16808_vm6 = vmmov %vm16762_vm0 }
0x325e   :  { %8078 = vmax.xlane.f32.xlu0 %v8077_v1 }
0x32e5   :  { %v8082_v29 = vpop.xlane.xlu1 %8081 }
0x32e6   :  { %v8084_v5 = vsub.f32 %v8074_v31, %v8082_v29 }
0x32e7   :  { %v8079_v45 = vpop.xlane.xlu0 %8078 }
0x32e8   :  { %v8087_v43 = vmul.f32 1.442695, %v8084_v5  ;;  %v8083_v13 = vsub.f32 %v8069_v32, %v8079_v45  ;;  %v6903_v5 = vadd.f32 %v15465_v38, %v15508_v23 }
0x32ea   :  { %12978 = vpow2.f32 %v8087_v43  ;;  %v8085_v27 = vmul.f32 1.442695, %v8083_v13  ;;  %v7692_v43 = vadd.f32 %v15671_v21, %v6903_v5  ;;  %v10734_v5 = vld [vmem:[%s16544_s9 + $0x168] sm:$0xff] }
0x32ec   :  { %12980 = vpow2.f32 %v8085_v27  ;;  %v15725_v27 = vld [vmem:[%s16538_s3 + $0x20] sm:$0xff] }
0x32f7   :  { %v12979_v60 = vpop.eup %12978 }
0x32f8   :  { %v8092_v40 = vsel %vm16798_vm7, %v12979_v60, 0.0  ;;  %vm16809_vm7 = vmmov %vm16762_vm0 }
0x32f9   :  { %v12981_v6 = vpop.eup %12980  ;;  %8093 = vadd.xlane.f32.xlu1 %v8092_v40 }
0x32fa   :  { %v8089_v58 = vsel %vm16799_vm8, %v12981_v6, 0.0  ;;  %vm16810_vm8 = vmmov %vm16762_vm0 }
0x32fb   :  { %8090 = vadd.xlane.f32.xlu0 %v8089_v58 }
0x3382   :  { %v8094_v62 = vpop.xlane.xlu1 %8093 }
0x3383   :  { %12982 = vrcp.f32 %v8094_v62 }
0x3384   :  { %v8091_v51 = vpop.xlane.xlu0 %8090 }
0x3385   :  { %12984 = vrcp.f32 %v8091_v51 }
0x3390   :  { %v12983_v24 = vpop.eup %12982 }
0x3391   :  { %v8098_v41 = vmul.f32 %v12983_v24, %v12979_v60  ;;  %v8478_v60 = vrot.slane %v15725_v27, %v16655_v52 }
0x3392   :  { %v12985_v30 = vpop.eup %12984 }
0x3393   :  { %v8097_v54 = vmul.f32 %v12985_v30, %v12981_v6 }
0x3395   :  { %12481 = vmatprep.mubr.msk.f32.mxu1 %vm16800_vm9, %v8097_v54  ;;  %vm16811_vm9 = vmmov %vm16762_vm0 }
0x3396   :  { %12482 = vmatmul.mubr.msk.f32.vlgmr.msra.gmra.mxu1 %vm16801_vm10, %v8098_v41  ;;  %vm16812_vm10 = vcmask 523264  }
0x3397   :  { %12485 = vmatpush3.xpose.msk.msra.mxu1 %vm16802_vm11, %v7889_v20  ;;  %12488 = vmatprep.mubr.msk.f32.mxu1 %vm16803_vm12, %v15667_v12  ;;  %vm16813_vm11 = vmmov %vm16812_vm10 }
0x3398   :  { %12486 = vmatprep.subr.msk.mxu1 %vm16804_vm13, %v7884_v61  ;;  %vm16814_vm12 = vmmov %vm16762_vm0 }
0x3399   :  { %vm16815_vm13 = vmmov %vm16762_vm0 }
0x339b   :  { %12487 = vmatpush3.xpose.msk.msra.mxu1 %vm16805_vm14, %v7884_v61  ;;  %vm16816_vm14 = vmmov %vm16762_vm0 }
0x339c   :  { %12498 = vmatprep.subr.mxu1 %v10520_v39 }
0x339e   :  { %12489 = vmatmul.mubr.msk.f32.vlgmr.msra.gmra.mxu1 %vm16806_vm15, %v15664_v0  ;;  %vm16817_vm15 = vmmov %vm16762_vm0 }
0x339f   :  { %12499 = vmatpush3.msra.mxu1 %v10520_v39 }
0x33a0   :  { %12500 = vmatprep.subr.mxu1 %v10519_v48 }
0x33a1   :  { %12501 = vmatpush3.msra.mxu1 %v10519_v48 }
0x3456   :  { %v12483_v12 = vpop.f32.mrf.mxu1 }
0x3458   :  { %v8171_v47 = vpop.f32.mrf.mxu1 }
0x3459   :  { %12502 = vmatprep.mubr.msk.f32.mxu1 %vm16762_vm0, %v8171_v47  ;;  %vm16818_vm0 = vmmov %vm16812_vm10 }
0x345a   :  { %12503 = vmatmul.mubr.msk.f32.vlgmr.msra.gmra.mxu1 %vm16807_vm1, %v12483_v12  ;;  %vm16819_vm1 = vmmov %vm16818_vm0 }
0x345e   :  { %v12490_v15 = vpop.f32.mrf.mxu1 }
0x345f   :  { %v8264_v0 = vadd.f32 %v12490_v15, %v16694_v3 }
0x3460   :  { %v8258_v10 = vpop.f32.mrf.mxu1 }
0x3461   :  { %v8259_v11 = vadd.f32 %v8258_v10, %v16694_v3  ;;  %v8270_v50 = vsel %vm16808_vm6, %v8264_v0, -inf  ;;  %vm16820_vm6 = vmmov %vm16818_vm0 }
0x3462   :  { %8271 = vmax.xlane.f32.xlu1 %v8270_v50 }
0x3463   :  { %v8267_v14 = vsel %vm16809_vm7, %v8259_v11, -inf  ;;  %vm16821_vm7 = vmmov %vm16818_vm0 }
0x3464   :  { %8268 = vmax.xlane.f32.xlu0 %v8267_v14 }
0x34eb   :  { %v8272_v20 = vpop.xlane.xlu1 %8271 }
0x34ec   :  { %v8274_v28 = vsub.f32 %v8264_v0, %v8272_v20 }
0x34ed   :  { %v8269_v34 = vpop.xlane.xlu0 %8268 }
0x34ee   :  { %v8277_v31 = vmul.f32 1.442695, %v8274_v28  ;;  %v8273_v37 = vsub.f32 %v8259_v11, %v8269_v34 }
0x34f0   :  { %12986 = vpow2.f32 %v8277_v31  ;;  %v8275_v32 = vmul.f32 1.442695, %v8273_v37 }
0x34f2   :  { %12988 = vpow2.f32 %v8275_v32 }
0x34fd   :  { %v12987_v55 = vpop.eup %12986 }
0x34fe   :  { %v8282_v1 = vsel %vm16810_vm8, %v12987_v55, 0.0  ;;  %vm16822_vm8 = vmmov %vm16818_vm0 }
0x34ff   :  { %v12989_v29 = vpop.eup %12988  ;;  %8283 = vadd.xlane.f32.xlu1 %v8282_v1  ;;  %v10748_v1 = vld [vmem:[%s16544_s9 + $0x1b8] sm:$0xff] }
0x3500   :  { %v8279_v3 = vsel %vm16811_vm9, %v12989_v29, 0.0  ;;  %12530 = vmatprep.subr.mxu1 %v10748_v1  ;;  %vm16823_vm9 = vmmov %vm16818_vm0 }
0x3501   :  { %8280 = vadd.xlane.f32.xlu0 %v8279_v3  ;;  %v10747_v3 = vld [vmem:[%s16544_s9 + $0x1b0] sm:$0xff]  ;;  %12531 = vmatpush3.msra.mxu1 %v10748_v1 }
0x3502   :  { %12532 = vmatprep.subr.mxu1 %v10747_v3 }
0x3503   :  { %12533 = vmatpush3.msra.mxu1 %v10747_v3 }
0x351a   :  { %v12504_v45 = vpop.f32.mrf.mxu1 }
0x351b   :  { %v8468_v13 = vadd.f32 %v12504_v45, %v15560_v63  ;;  %v10746_v45 = vld [vmem:[%s16544_s9 + $0x1a8] sm:$0xff] }
0x351c   :  { %v8448_v40 = vpop.f32.mrf.mxu1  ;;  %12534 = vmatprep.subr.mxu1 %v10746_v45 }
0x351d   :  { %v8472_v6 = vadd.f32 %v8468_v13, %v15022_v49  ;;  %v8467_v58 = vadd.f32 %v8448_v40, %v7692_v43  ;;  %v10733_v43 = vld [vmem:[%s16544_s9 + $0x160] sm:$0xff]  ;;  %12535 = vmatpush3.msra.mxu1 %v10746_v45  ;;  %v10744_v40 = vld [vmem:[%s16544_s9 + $0x198] sm:$0xff] }
0x351e   :  { %v10745_v13 = vld [vmem:[%s16544_s9 + $0x1a0] sm:$0xff] }
0x351f   :  { %v15730_v62 = vadd.f32 %v8478_v60, %v8472_v6  ;;  %v8471_v38 = vadd.f32 %v8467_v58, %v15017_v35  ;;  %12536 = vmatprep.subr.mxu1 %v10745_v13  ;;  %v10731_v6 = vld [vmem:[%s16544_s9 + $0x150] sm:$0xff] }
0x3520   :  { %12537 = vmatpush3.msra.mxu1 %v10745_v13  ;;  %v10743_v58 = vld [vmem:[%s16544_s9 + $0x190] sm:$0xff] }
0x3521   :  { %v15733_v23 = vadd.f32 %v8478_v60, %v8471_v38  ;;  %v8486_v63 = vsel %vm16812_vm10, %v15730_v62, 0.0  ;;  %12538 = vmatprep.subr.mxu1 %v10744_v40  ;;  %v10730_v38 = vld [vmem:[%s16544_s9 + $0x148] sm:$0xff]  ;;  %vm16825_vm10 = vmmov %vm16818_vm0 }
0x3522   :  { %8487 = vadd.xlane.f32.xlu1 %v8486_v63  ;;  %12539 = vmatpush3.msra.mxu1 %v10744_v40  ;;  %v10742_v63 = vld [vmem:[%s16544_s9 + $0x188] sm:$0xff] }
0x3523   :  { %v8483_v21 = vsel %vm16813_vm11, %v15733_v23, 0.0  ;;  %12540 = vmatprep.subr.mxu1 %v10743_v58  ;;  %vm16826_vm11 = vmmov %vm16818_vm0 }
0x3524   :  { %8484 = vadd.xlane.f32.xlu0 %v8483_v21  ;;  %12541 = vmatpush3.msra.mxu1 %v10743_v58  ;;  %v10729_v21 = vld [vmem:[%s16544_s9 + $0x140] sm:$0xff] }
0x3525   :  { %12542 = vmatprep.subr.mxu1 %v10742_v63 }
0x3526   :  { %12543 = vmatpush3.msra.mxu1 %v10742_v63 }
0x3588   :  { %v8284_v51 = vpop.xlane.xlu1 %8283 }
0x3589   :  { %12990 = vrcp.f32 %v8284_v51  ;;  %v10741_v51 = vld [vmem:[%s16544_s9 + $0x180] sm:$0xff] }
0x358a   :  { %v8281_v24 = vpop.xlane.xlu0 %8280  ;;  %12544 = vmatprep.subr.mxu1 %v10741_v51 }
0x358b   :  { %12992 = vrcp.f32 %v8281_v24  ;;  %12545 = vmatpush3.msra.mxu1 %v10741_v51 }
0x3596   :  { %v12991_v49 = vpop.eup %12990 }
0x3597   :  { %v8288_v41 = vmul.f32 %v12991_v49, %v12987_v55  ;;  %v10736_v55 = vld [vmem:[%s16544_s9 + $0x178] sm:$0xff] }
0x3598   :  { %v12993_v30 = vpop.eup %12992  ;;  %12508 = vmatprep.subr.mxu0 %v10736_v55 }
0x3599   :  { %v8287_v54 = vmul.f32 %v12993_v30, %v12989_v29  ;;  %v10735_v29 = vld [vmem:[%s16544_s9 + $0x170] sm:$0xff] }
0x359b   :  { %12495 = vmatprep.mubr.msk.f32.mxu0 %vm16814_vm12, %v8287_v54  ;;  %vm16827_vm12 = vmmov %vm16818_vm0 }
0x359c   :  { %12496 = vmatmul.mubr.msk.f32.vlgmr.msra.gmra.mxu0 %vm16815_vm13, %v8288_v41  ;;  %vm16828_vm13 = vmmov %vm16818_vm0 }
0x359d   :  { %12509 = vmatpush3.msra.mxu0 %v10736_v55 }
0x359e   :  { %12510 = vmatprep.subr.mxu0 %v10735_v29 }
0x359f   :  { %12511 = vmatpush3.msra.mxu0 %v10735_v29 }
0x35a0   :  { %12512 = vmatprep.subr.mxu0 %v10734_v5 }
0x35a1   :  { %12513 = vmatpush3.msra.mxu0 %v10734_v5 }
0x35a2   :  { %12514 = vmatprep.subr.mxu0 %v10733_v43 }
0x35a3   :  { %12515 = vmatpush3.msra.mxu0 %v10733_v43 }
0x35ab   :  { %v8488_v39 = vpop.xlane.xlu1 %8487 }
0x35ac   :  { %v8496_v12 = vmul.f32 0.015625, %v8488_v39 }
0x35ad   :  { %v8485_v48 = vpop.xlane.xlu0 %8484 }
0x35ae   :  { %v8495_v15 = vmul.f32 0.015625, %v8485_v48  ;;  %v15745_v11 = vsub.f32 %v15730_v62, %v8496_v12 }
0x35b0   :  { %v15750_v20 = vsub.f32 %v15733_v23, %v8495_v15  ;;  %v8504_v37 = vmul.f32 %v15745_v11, %v15745_v11 }
0x35b2   :  { %v8510_v32 = vsel %vm16820_vm6, %v8504_v37, 0.0  ;;  %vm16832_vm6 = vcmp.lt.s32.totalorder %v13275_v57, 6 }
0x365c   :  { %v12497_v35 = vpop.f32.mrf.mxu0 }
0x365e   :  { %v8361_v61 = vpop.f32.mrf.mxu0 }
0x365f   :  { %12505 = vmatprep.mubr.msk.f32.mxu1 %vm16816_vm14, %v8361_v61  ;;  %vm16829_vm14 = vmmov %vm16818_vm0 }
0x3660   :  { %12506 = vmatmul.mubr.msk.f32.gmra.mxu1 %vm16817_vm15, %v12497_v35  ;;  %vm16830_vm15 = vmmov %vm16818_vm0 }
0x3720   :  { %v12507_v47 = vpop.f32.mrf.mxu1 }
0x3721   :  { %v8470_v0 = vadd.f32 %v12507_v47, %v15677_v46 }
0x3722   :  { %v8458_v10 = vpop.f32.mrf.mxu1 }
0x3723   :  { %v8474_v50 = vadd.f32 %v8470_v0, %v15032_v9  ;;  %v8469_v14 = vadd.f32 %v8458_v10, %v15681_v8  ;;  %v8503_v8 = vmul.f32 %v15750_v20, %v15750_v20 }
0x3725   :  { %v15752_v28 = vadd.f32 %v8478_v60, %v8474_v50  ;;  %v8473_v34 = vadd.f32 %v8469_v14, %v15027_v36  ;;  %v8507_v36 = vsel %vm16821_vm7, %v8503_v8, 0.0  ;;  %vm16833_vm7 = vcmp.lt.s32.totalorder %v13275_v57, 5 }
0x3727   :  { %v15755_v31 = vadd.f32 %v8478_v60, %v8473_v34  ;;  %v8492_v46 = vsel %vm16818_vm0, %v15752_v28, 0.0  ;;  %v10732_v60 = vld [vmem:[%s16544_s9 + $0x158] sm:$0xff] }
0x3728   :  { %8493 = vadd.xlane.f32.xlu1 %v8492_v46  ;;  %12516 = vmatprep.subr.mxu0 %v10732_v60  ;;  %v15822_v46 = vld [vmem:[%s16538_s3 + $0x18] sm:$0xff] }
0x3729   :  { %v8489_v9 = vsel %vm16819_vm1, %v15755_v31, 0.0  ;;  %12517 = vmatpush3.msra.mxu0 %v10732_v60  ;;  %16824 = vst [vmem:[#allocation10_spill] sm:$0xff] %v15822_v46  ;;  %v8538_v37 = vrot.slane %v15822_v46, %v16655_v52  ;;  %vm16831_vm1 = vmmov %vm16818_vm0 }
0x372a   :  { %8490 = vadd.xlane.f32.xlu0 %v8489_v9  ;;  %12518 = vmatprep.subr.mxu0 %v10731_v6 }
0x372b   :  { %12519 = vmatpush3.msra.mxu0 %v10731_v6 }
0x372c   :  { %8511 = vadd.xlane.f32.xlu1 %v8510_v32  ;;  %12520 = vmatprep.subr.mxu0 %v10730_v38 }
0x372d   :  { %12521 = vmatpush3.msra.mxu0 %v10730_v38 }
0x372e   :  { %8508 = vadd.xlane.f32.xlu0 %v8507_v36  ;;  %12522 = vmatprep.subr.mxu0 %v10729_v21  ;;  %v8546_v36 = vrot.slane %v15822_v46, %v16755_v26 }
0x372f   :  { %12523 = vmatpush3.msra.mxu0 %v10729_v21 }
0x37b1   :  { %v8494_v24 = vpop.xlane.xlu1 %8493 }
0x37b2   :  { %v8498_v49 = vmul.f32 0.015625, %v8494_v24  ;;  %v10768_v24 = vld [vmem:[%s16544_s9 + $0x1f8] sm:$0xff] }
0x37b3   :  { %v8491_v30 = vpop.xlane.xlu0 %8490  ;;  %12552 = vmatprep.subr.mxu0 %v10768_v24 }
0x37b4   :  { %v8502_v54 = vsub.f32 %v15752_v28, %v8498_v49  ;;  %v8497_v41 = vmul.f32 0.015625, %v8491_v30  ;;  %v10767_v49 = vld [vmem:[%s16544_s9 + $0x1f0] sm:$0xff]  ;;  %v10766_v30 = vld [vmem:[%s16544_s9 + $0x1e8] sm:$0xff] }
0x37b5   :  { %v8512_v35 = vpop.xlane.xlu1 %8511 }
0x37b6   :  { %v8501_v61 = vsub.f32 %v15755_v31, %v8497_v41  ;;  %v8520_v39 = vmul.f32 0.015625, %v8512_v35  ;;  %v8506_v48 = vmul.f32 %v8502_v54, %v8502_v54  ;;  %v10764_v41 = vld [vmem:[%s16544_s9 + $0x1d8] sm:$0xff]  ;;  %v10763_v35 = vld [vmem:[%s16544_s9 + $0x1d0] sm:$0xff] }
0x37b7   :  { %v8509_v12 = vpop.xlane.xlu0 %8508 }
0x37b8   :  { %v8524_v47 = vadd.f32 1e-05, %v8520_v39  ;;  %v8519_v15 = vmul.f32 0.015625, %v8509_v12  ;;  %v8516_v0 = vsel %vm16822_vm8, %v8506_v48, 0.0  ;;  %v8505_v10 = vmul.f32 %v8501_v61, %v8501_v61  ;;  %v10761_v39 = vld [vmem:[%s16544_s9 + $0x1c0] sm:$0xff]  ;;  %vm16838_vm8 = vmmov %vm16832_vm6 }
0x37b9   :  { %8517 = vadd.xlane.f32.xlu1 %v8516_v0 }
0x37ba   :  { %12994 = vrsqrt.f32 %v8524_v47  ;;  %v8523_v50 = vadd.f32 1e-05, %v8519_v15  ;;  %v8513_v14 = vsel %vm16823_vm9, %v8505_v10, 0.0  ;;  %v8673_v47 = vrot.slane %v15725_v27, %v16650_v17  ;;  %vm16839_vm9 = vmmov %vm16833_vm7 }
0x37bb   :  { %8514 = vadd.xlane.f32.xlu0 %v8513_v14 }
0x37bc   :  { %12996 = vrsqrt.f32 %v8523_v50 }
0x37c7   :  { %v12995_v34 = vpop.eup %12994 }
0x37c8   :  { %v8532_v9 = vmul.f32 %v12995_v34, %v15745_v11 }
0x37c9   :  { %v12997_v8 = vpop.eup %12996 }
0x37ca   :  { %v8531_v32 = vmul.f32 %v12997_v8, %v15750_v20  ;;  %v8540_v55 = vmul.f32 %v8538_v37, %v8532_v9 }
0x37cc   :  { %v8539_v1 = vmul.f32 %v8538_v37, %v8531_v32  ;;  %v8548_v3 = vadd.f32 %v8546_v36, %v8540_v55 }
0x37ce   :  { %v8547_v29 = vadd.f32 %v8546_v36, %v8539_v1 }
0x37d0   :  { %12524 = vmatprep.mubr.msk.f32.mxu0 %vm16825_vm10, %v8547_v29  ;;  %12546 = vmatprep.mubr.msk.f32.mxu1 %vm16826_vm11, %v8547_v29  ;;  %vm16843_vm10 = vmmov %vm16832_vm6 }
0x37d1   :  { %12525 = vmatmul.mubr.msk.f32.vlgmr.msra.gmra.mxu0 %vm16827_vm12, %v8548_v3  ;;  %12547 = vmatmul.mubr.msk.f32.vlgmr.msra.gmra.mxu1 %vm16828_vm13, %v8548_v3  ;;  %vm16844_vm11 = vmmov %vm16833_vm7 }
0x37d2   :  { %12553 = vmatpush3.msra.mxu0 %v10768_v24  ;;  %vm16852_vm12 = vmmov %vm16818_vm0 }
0x37d3   :  { %12554 = vmatprep.subr.mxu0 %v10767_v49  ;;  %vm16853_vm13 = vmmov %vm16818_vm0 }
0x37d4   :  { %12555 = vmatpush3.msra.mxu0 %v10767_v49 }
0x37d5   :  { %12556 = vmatprep.subr.mxu0 %v10766_v30 }
0x37d6   :  { %12557 = vmatpush3.msra.mxu0 %v10766_v30 }
0x3842   :  { %v8518_v5 = vpop.xlane.xlu1 %8517 }
0x3843   :  { %v8522_v11 = vmul.f32 0.015625, %v8518_v5 }
0x3844   :  { %v8515_v45 = vpop.xlane.xlu0 %8514 }
0x3845   :  { %v8526_v43 = vadd.f32 1e-05, %v8522_v11  ;;  %v8521_v20 = vmul.f32 0.015625, %v8515_v45  ;;  %v8563_v11 = vrot.slane %v15725_v27, %v13746_v16 }
0x3847   :  { %12998 = vrsqrt.f32 %v8526_v43  ;;  %v8525_v13 = vadd.f32 1e-05, %v8521_v20 }
0x3849   :  { %13000 = vrsqrt.f32 %v8525_v13 }
0x3854   :  { %v12999_v60 = vpop.eup %12998 }
0x3855   :  { %v8534_v40 = vmul.f32 %v12999_v60, %v8502_v54  ;;  %v10765_v54 = vld [vmem:[%s16544_s9 + $0x1e0] sm:$0xff] }
0x3856   :  { %v13001_v6 = vpop.eup %13000  ;;  %12558 = vmatprep.subr.mxu0 %v10765_v54 }
0x3857   :  { %v8533_v58 = vmul.f32 %v13001_v6, %v8501_v61  ;;  %v8542_v38 = vmul.f32 %v8538_v37, %v8534_v40  ;;  %12559 = vmatpush3.msra.mxu0 %v10765_v54  ;;  %v10762_v61 = vld [vmem:[%s16544_s9 + $0x1c8] sm:$0xff] }
0x3858   :  { %12560 = vmatprep.subr.mxu0 %v10764_v41 }
0x3859   :  { %v8541_v63 = vmul.f32 %v8538_v37, %v8533_v58  ;;  %v8550_v51 = vadd.f32 %v8546_v36, %v8542_v38  ;;  %12561 = vmatpush3.msra.mxu0 %v10764_v41 }
0x385a   :  { %12562 = vmatprep.subr.mxu0 %v10763_v35 }
0x385b   :  { %v8549_v21 = vadd.f32 %v8546_v36, %v8541_v63  ;;  %12563 = vmatpush3.msra.mxu0 %v10763_v35 }
0x385c   :  { %12564 = vmatprep.subr.mxu0 %v10762_v61 }
0x385d   :  { %12527 = vmatprep.mubr.msk.f32.mxu0 %vm16829_vm14, %v8549_v21  ;;  %12549 = vmatprep.mubr.msk.f32.mxu1 %vm16830_vm15, %v8549_v21  ;;  %v15876_v21 = vld [vmem:[%s16538_s3 + $0x28] sm:$0xff]  ;;  %vm16854_vm14 = vmmov %vm16818_vm0 }
0x385e   :  { %12528 = vmatmul.mubr.msk.f32.gmra.mxu0 %vm16818_vm0, %v8550_v51  ;;  %12550 = vmatmul.mubr.msk.f32.gmra.mxu1 %vm16831_vm1, %v8550_v51  ;;  %v15882_v30 = vrot.slane %v15876_v21, %v16642_v53  ;;  %v15886_v54 = vrot.slane %v15876_v21, %v16655_v52  ;;  %v16837_v53 = vld [vmem:[#allocation14_spill] sm:$0xff]  ;;  %vm16855_vm15 = vmmov %vm16818_vm0 }
0x385f   :  { %9292 = vmatprep.mubr.f32.mxu1 %v16638_v7  ;;  %12565 = vmatpush3.msra.mxu0 %v10762_v61  ;;  %vm16856_vm1 = vmmov %vm16818_vm0 }
0x3860   :  { %12566 = vmatprep.subr.mxu0 %v10761_v39 }
0x3861   :  { %12567 = vmatpush3.msra.mxu0 %v10761_v39 }
0x3891   :  { %v12548_v48 = vpop.f32.mrf.mxu1  ;;  %v12526_v29 = vpop.f32.mrf.mxu0 }
0x3892   :  { %v8746_v0 = vadd.f32 %v12548_v48, %v8673_v47  ;;  %v8648_v13 = vadd.f32 %v12526_v29, %v8563_v11  ;;  %v15921_v29 = vrot.slane %v15876_v21, %v16663_v44 }
0x3893   :  { %v8740_v12 = vpop.f32.mrf.mxu1  ;;  %v8642_v5 = vpop.f32.mrf.mxu0 }
0x3894   :  { %v8741_v15 = vadd.f32 %v8740_v12, %v8673_v47  ;;  %v10754_v50 = vmul.f32 -1.442695, %v8746_v0  ;;  %v8643_v43 = vadd.f32 %v8642_v5, %v8563_v11 }
0x3896   :  { %v10753_v10 = vmul.f32 -1.442695, %v8741_v15 }
0x3898   :  { %13002 = vpow2.f32 %v10753_v10 }
0x3899   :  { %13004 = vpow2.f32 %v10754_v50 }
0x38a5   :  { %v13003_v14 = vpop.eup %13002 }
0x38a6   :  { %v13005_v34 = vpop.eup %13004  ;;  %v8771_v37 = vadd.f32 1.0, %v13003_v14 }
0x38a7   :  { %v8772_v9 = vadd.f32 1.0, %v13005_v34 }
0x38a8   :  { %13006 = vrcp.f32 %v8771_v37 }
0x38a9   :  { %13008 = vrcp.f32 %v8772_v9  ;;  %v15914_v9 = vrot.slane %v15876_v21, %v16650_v17  ;;  %v15929_v17 = vrot.slane %v15876_v21, %v16636_v22 }
0x38b5   :  { %v13007_v45 = vpop.eup %13006 }
0x38b6   :  { %v13009_v20 = vpop.eup %13008  ;;  %v15867_v60 = vmul.f32 %v13007_v45, %v8643_v43 }
0x38b7   :  { %v15869_v40 = vmul.f32 %v13009_v20, %v8648_v13 }
0x38b8   :  { %v8787_v6 = vrot.slane %v15867_v60, 5  ;;  %v8811_v58 = vrot.slane %v15867_v60, 6  ;;  %v8835_v39 = vrot.slane %v15867_v60, 7  ;;  %v16587_v50 = vrot.slane %v15867_v60, 1 }
0x38b9   :  { %v16590_v51 = vrot.slane %v15869_v40, 5  ;;  %v16589_v24 = vrot.slane %v15869_v40, 6  ;;  %v16588_v12 = vrot.slane %v15869_v40, 7  ;;  %v16586_v14 = vrot.slane %v15867_v60, 2 }
0x38ba   :  { %v16585_v34 = vrot.slane %v15867_v60, 3 }
0x38bb   :  { %v8793_v35 = vsel %vm4172_vm2, %v8787_v6, %v16590_v51  ;;  %v8817_v61 = vsel %vm4197_vm3, %v8811_v58, %v16589_v24  ;;  %v8841_v15 = vsel %vm4222_vm4, %v8835_v39, %v16588_v12 }
0x38bc   :  { %v8804_v48 = vmul.f32 %v15882_v30, %v8793_v35  ;;  %v8828_v52 = vmul.f32 %v15886_v54, %v8817_v61 }
0x38be   :  { %v8832_v10 = vadd.f32 %v8828_v52, %v8804_v48 }
0x391e   :  { %v12551_v8 = vpop.f32.mrf.mxu1  ;;  %v12529_v0 = vpop.f32.mrf.mxu0 }
0x391f   :  { %v8756_v32 = vadd.f32 %v12551_v8, %v8673_v47  ;;  %v8876_v8 = vrot.slane %v15869_v40, 1  ;;  %v8658_v5 = vadd.f32 %v12529_v0, %v8563_v11 }
0x3920   :  { %v8750_v36 = vpop.f32.mrf.mxu1 }
0x3921   :  { %v10756_v55 = vmul.f32 -1.442695, %v8756_v32  ;;  %v8751_v1 = vadd.f32 %v8750_v36, %v8673_v47  ;;  %v15902_v47 = vrot.slane %v15876_v21, %v13746_v16  ;;  %v8900_v32 = vrot.slane %v15869_v40, 2 }
0x3922   :  { %v8924_v36 = vrot.slane %v15869_v40, 3  ;;  %v8881_v45 = vsel %vm4263_vm5, %v16587_v50, %v8876_v8 }
0x3923   :  { %13010 = vpow2.f32 %v10756_v55  ;;  %v10755_v3 = vmul.f32 -1.442695, %v8751_v1  ;;  %v8852_v37 = vmul.f32 %v15902_v47, %v8841_v15  ;;  %v8652_v55 = vpop.f32.mrf.mxu0  ;;  %v8905_v43 = vsel %vm16832_vm6, %v16586_v14, %v8900_v32 }
0x3924   :  { %v8929_v20 = vsel %vm16833_vm7, %v16585_v34, %v8924_v36  ;;  %v8891_v48 = vmul.f32 %v15921_v29, %v8881_v45  ;;  %v16836_v34 = vld [vmem:[#allocation13_spill] sm:$0xff] }
0x3925   :  { %13012 = vpow2.f32 %v10755_v3  ;;  %v8856_v1 = vadd.f32 %v8852_v37, %v8832_v10  ;;  %v15925_v3 = vrot.slane %v15876_v21, %v16755_v26  ;;  %v15954_v15 = vmul.f32 %v15929_v17, %v8929_v20 }
0x3927   :  { %v15951_v52 = vmul.f32 %v15925_v3, %v8905_v43 }
0x3930   :  { %v13011_v38 = vpop.eup %13010 }
0x3931   :  { %v8774_v63 = vadd.f32 1.0, %v13011_v38  ;;  %v8868_v38 = vmul.f32 %v15914_v9, %v15869_v40 }
0x3932   :  { %v13013_v49 = vpop.eup %13012 }
0x3933   :  { %13014 = vrcp.f32 %v8774_v63  ;;  %v8773_v41 = vadd.f32 1.0, %v13013_v49  ;;  %v8653_v49 = vadd.f32 %v8652_v55, %v8563_v11  ;;  %v8872_v61 = vadd.f32 %v8868_v38, %v8856_v1  ;;  %v16834_v38 = vld [vmem:[#allocation11_spill] sm:$0xff] }
0x3934   :  { %v15961_v55 = vrot.slane %v15725_v27, %v16663_v44  ;;  %v15965_v1 = vrot.slane %v15725_v27, %v16755_v26  ;;  %v16835_v26 = vld [vmem:[#allocation12_spill] sm:$0xff] }
0x3935   :  { %13016 = vrcp.f32 %v8773_v41  ;;  %v8867_v41 = vmul.f32 %v15914_v9, %v15867_v60 }
0x3940   :  { %v13015_v13 = vpop.eup %13014 }
0x3941   :  { %v15945_v63 = vmul.f32 %v13015_v13, %v8658_v5  ;;  %v15969_v5 = vrot.slane %v15725_v27, %v16636_v22 }
0x3942   :  { %v13017_v35 = vpop.eup %13016 }
0x3943   :  { %v8785_v0 = vmul.f32 %v13017_v35, %v8653_v49  ;;  %v8790_v10 = vrot.slane %v15945_v63, 5  ;;  %v8814_v37 = vrot.slane %v15945_v63, 6  ;;  %v8838_v11 = vrot.slane %v15945_v63, 7 }
0x3944   :  { %v8878_v45 = vrot.slane %v15945_v63, 1 }
0x3945   :  { %v8794_v43 = vsel %vm4172_vm2, %v8790_v10, %v8787_v6  ;;  %v8818_v20 = vsel %vm4197_vm3, %v8814_v37, %v8811_v58  ;;  %v8842_v44 = vsel %vm4222_vm4, %v8838_v11, %v8835_v39  ;;  %v8877_v13 = vrot.slane %v8785_v0, 1 }
0x3946   :  { %v8795_v49 = vmul.f32 %v16834_v38, %v8794_v43  ;;  %v8819_v35 = vmul.f32 %v16835_v26, %v8818_v20  ;;  %v8843_v14 = vmul.f32 %v16836_v34, %v8842_v44  ;;  %v8901_v27 = vrot.slane %v8785_v0, 2 }
0x3947   :  { %v8880_v50 = vsel %vm4263_vm5, %v8876_v8, %v8877_v13  ;;  %v8925_v12 = vrot.slane %v8785_v0, 3  ;;  %v8789_v24 = vrot.slane %v8785_v0, 5  ;;  %v8813_v6 = vrot.slane %v8785_v0, 6 }
0x3948   :  { %v8803_v51 = vmul.f32 %v15882_v30, %v8795_v49  ;;  %v8827_v58 = vmul.f32 %v15886_v54, %v8819_v35  ;;  %v8851_v39 = vmul.f32 %v15902_v47, %v8843_v14  ;;  %v8884_v7 = vmul.f32 %v16837_v53, %v8880_v50 }
0x3949   :  { %v8904_v43 = vsel %vm16838_vm8, %v8900_v32, %v8901_v27  ;;  %v8928_v34 = vsel %vm16839_vm9, %v8924_v36, %v8925_v12  ;;  %v16840_v20 = vrot.slane %v15869_v40, 5  ;;  %v16841_v44 = vrot.slane %v15869_v40, 6  ;;  %vm16859_vm8 = vmmov %vm16818_vm0 }
0x394a   :  { %v8831_v49 = vadd.f32 %v8827_v58, %v8803_v51  ;;  %v8892_v14 = vmul.f32 %v15921_v29, %v8884_v7  ;;  %v8908_v53 = vmul.f32 %v14422_v2, %v8904_v43  ;;  %v8932_v50 = vmul.f32 %v14425_v19, %v8928_v34  ;;  %vm16860_vm9 = vmmov %vm16818_vm0 }
0x394b   :  { %v8792_v8 = vsel %vm4172_vm2, %v16840_v20, %v8789_v24  ;;  %v8816_v38 = vsel %vm4197_vm3, %v16841_v44, %v8813_v6  ;;  %v8837_v26 = vrot.slane %v8785_v0, 7  ;;  %v8902_v35 = vrot.slane %v15945_v63, 2 }
0x394c   :  { %v8797_v32 = vmul.f32 %v14431_v4, %v8792_v8  ;;  %v8821_v36 = vmul.f32 %v14434_v18, %v8816_v38  ;;  %v8855_v20 = vadd.f32 %v8851_v39, %v8831_v49  ;;  %v8896_v22 = vadd.f32 %v8892_v14, %v8872_v61 }
0x394d   :  { %v8916_v46 = vmul.f32 %v15925_v3, %v8908_v53  ;;  %v8926_v44 = vrot.slane %v15945_v63, 3  ;;  %v16842_v2 = vrot.slane %v15869_v40, 7  ;;  %v8879_v4 = vsel %vm4263_vm5, %v8877_v13, %v8878_v45 }
0x394e   :  { %v8805_v51 = vmul.f32 %v15882_v30, %v8797_v32  ;;  %v8829_v7 = vmul.f32 %v15886_v54, %v8821_v36  ;;  %v8871_v18 = vadd.f32 %v8867_v41, %v8855_v20  ;;  %v8940_v61 = vmul.f32 %v15929_v17, %v8932_v50 }
0x394f   :  { %v8840_v19 = vsel %vm4222_vm4, %v16842_v2, %v8837_v26  ;;  %v8920_v58 = vadd.f32 %v8916_v46, %v8896_v22  ;;  %v8869_v34 = vmul.f32 %v15914_v9, %v8785_v0  ;;  %v8893_v8 = vmul.f32 %v15921_v29, %v8879_v4 }
0x3950   :  { %v8845_v39 = vmul.f32 %v14437_v56, %v8840_v19  ;;  %v8833_v43 = vadd.f32 %v8829_v7, %v8805_v51  ;;  %v8791_v40 = vsel %vm4172_vm2, %v8789_v24, %v8790_v10  ;;  %v8895_v38 = vadd.f32 %v8891_v48, %v8871_v18  ;;  %vm16847_vm2 = vmmov %vm16832_vm6 }
0x3951   :  { %v8944_v49 = vadd.f32 %v8940_v61, %v8920_v58  ;;  %v8903_v41 = vsel %vm16843_vm10, %v8901_v27, %v8902_v35  ;;  %v8927_v22 = vsel %vm16844_vm11, %v8925_v12, %v8926_v44  ;;  %v8806_v56 = vmul.f32 %v15882_v30, %v8791_v40  ;;  %vm16857_vm6 = vmmov %vm16818_vm0 }
0x3952   :  { %v8853_v14 = vmul.f32 %v15902_v47, %v8845_v39  ;;  %v8815_v46 = vsel %vm4197_vm3, %v8813_v6, %v8814_v37  ;;  %v8839_v0 = vsel %vm4222_vm4, %v8837_v26, %v8838_v11  ;;  %v8919_v24 = vadd.f32 %v15951_v52, %v8895_v38  ;;  %vm16849_vm3 = vmmov %vm16833_vm7 }
0x3953   :  { %v8952_v48 = vadd.f32 %v15961_v55, %v8944_v49  ;;  %v8830_v13 = vmul.f32 %v15886_v54, %v8815_v46  ;;  %v8854_v27 = vmul.f32 %v15902_v47, %v8839_v0  ;;  %v16845_v53 = vrot.slane %v15867_v60, 1  ;;  %vm16850_vm4 = vmmov %vm16818_vm0 }
0x3954   :  { %v8857_v10 = vadd.f32 %v8853_v14, %v8833_v43  ;;  %v16846_v12 = vrot.slane %v15867_v60, 2  ;;  %v16848_v11 = vrot.slane %v15867_v60, 3  ;;  %v8943_v6 = vadd.f32 %v15954_v15, %v8919_v24  ;;  %vm16858_vm7 = vmmov %vm16818_vm0 }
0x3955   :  { %v8882_v30 = vsel %vm4263_vm5, %v8878_v45, %v16845_v53  ;;  %v8960_v54 = vmul.f32 %v15965_v1, %v8952_v48  ;;  %v8834_v50 = vadd.f32 %v8830_v13, %v8806_v56  ;;  %v8917_v32 = vmul.f32 %v15925_v3, %v8903_v41  ;;  %vm16851_vm5 = vmmov %vm16818_vm0 }
0x3956   :  { %v8906_v37 = vsel %vm16847_vm2, %v8902_v35, %v16846_v12  ;;  %v8930_v52 = vsel %vm16849_vm3, %v8926_v44, %v16848_v11  ;;  %v8873_v47 = vadd.f32 %v8869_v34, %v8857_v10  ;;  %v8870_v45 = vmul.f32 %v15914_v9, %v15945_v63  ;;  %vm16863_vm10 = vmmov %vm16818_vm0 }
0x3957   :  { %v8886_v36 = vmul.f32 %v14440_v25, %v8882_v30  ;;  %v8910_v26 = vmul.f32 %v14443_v42, %v8906_v37  ;;  %v8951_v60 = vadd.f32 %v15961_v55, %v8943_v6  ;;  %v8968_v57 = vadd.f32 %v15969_v5, %v8960_v54  ;;  %vm16865_vm11 = vmmov %vm16818_vm0 }
0x3958   :  { %v8897_v35 = vadd.f32 %v8893_v8, %v8873_v47  ;;  %v8858_v20 = vadd.f32 %v8854_v27, %v8834_v50  ;;  %v8941_v15 = vmul.f32 %v15929_v17, %v8927_v22  ;;  %v8934_v51 = vmul.f32 %v14446_v33, %v8930_v52  ;;  %vm16866_vm2 = vmmov %vm16818_vm0 }
0x3959   :  { %v8894_v44 = vmul.f32 %v15921_v29, %v8886_v36  ;;  %v8959_v7 = vmul.f32 %v15965_v1, %v8951_v60  ;;  %v10758_v2 = vmul.f32 -1.442695, %v8968_v57  ;;  %v8918_v25 = vmul.f32 %v15925_v3, %v8910_v26  ;;  %vm16867_vm3 = vmmov %vm16818_vm0 }
0x395a   :  { %v8921_v9 = vadd.f32 %v8917_v32, %v8897_v35  ;;  %v8874_v63 = vadd.f32 %v8870_v45, %v8858_v20  ;;  %v8942_v29 = vmul.f32 %v15929_v17, %v8934_v51  ;;  %v9011_v53 = vrot.slane %v15876_v21, %v13278_v59 }
0x395b   :  { %v8967_v42 = vadd.f32 %v15969_v5, %v8959_v7  ;;  %13018 = vpow2.f32 %v10758_v2 }
0x395c   :  { %v8945_v19 = vadd.f32 %v8941_v15, %v8921_v9  ;;  %v8898_v4 = vadd.f32 %v8894_v44, %v8874_v63 }
0x395d   :  { %v10757_v18 = vmul.f32 -1.442695, %v8967_v42 }
0x395e   :  { %v8953_v58 = vadd.f32 %v15961_v55, %v8945_v19  ;;  %v8922_v61 = vadd.f32 %v8918_v25, %v8898_v4 }
0x395f   :  { %13020 = vpow2.f32 %v10757_v18 }
0x3960   :  { %v8961_v33 = vmul.f32 %v15965_v1, %v8953_v58  ;;  %v8946_v39 = vadd.f32 %v8942_v29, %v8922_v61  ;;  %v10788_v61 = vld [vmem:[%s16537_s6 + $0x1f8] sm:$0xff]  ;;  %v10787_v29 = vld [vmem:[%s16537_s6 + $0x1f0] sm:$0xff] }
0x3961   :  { %9244 = vmatprep.subr.mxu1 %v10788_v61  ;;  %v10827_v61 = vld [vmem:[%s16539_s7 + $0x3d0] sm:$0xff] }
0x3962   :  { %v8969_v43 = vadd.f32 %v15969_v5, %v8961_v33  ;;  %v8954_v34 = vadd.f32 %v15961_v55, %v8946_v39  ;;  %9245 = vmatpush1.msra.mxu1 %v10787_v29  ;;  %v10786_v33 = vld [vmem:[%s16537_s6 + $0x1e8] sm:$0xff]  ;;  %v10785_v39 = vld [vmem:[%s16537_s6 + $0x1e0] sm:$0xff]  ;;  %v10811_v29 = vld [vmem:[%s16539_s7 + $0x350] sm:$0xff] }
0x3963   :  { %9246 = vmatprep.subr.mxu1 %v10786_v33  ;;  %v10826_v33 = vld [vmem:[%s16539_s7 + $0x3c8] sm:$0xff] }
0x3964   :  { %v10759_v3 = vmul.f32 -1.442695, %v8969_v43  ;;  %v8962_v8 = vmul.f32 %v15965_v1, %v8954_v34  ;;  %9247 = vmatpush1.msra.mxu1 %v10785_v39  ;;  %v10783_v34 = vld [vmem:[%s16537_s6 + $0x1d0] sm:$0xff]  ;;  %v10810_v39 = vld [vmem:[%s16539_s7 + $0x348] sm:$0xff] }
0x3966   :  { %13022 = vpow2.f32 %v10759_v3  ;;  %v8970_v40 = vadd.f32 %v15969_v5, %v8962_v8  ;;  %v10782_v3 = vld [vmem:[%s16537_s6 + $0x1c8] sm:$0xff]  ;;  %v10781_v8 = vld [vmem:[%s16537_s6 + $0x1c0] sm:$0xff] }
0x3968   :  { %v10760_v38 = vmul.f32 -1.442695, %v8970_v40  ;;  %v13019_v49 = vpop.eup %13018 }
0x3969   :  { %v8984_v14 = vadd.f32 1.0, %v13019_v49  ;;  %v10778_v49 = vld [vmem:[%s16537_s6 + $0x1a8] sm:$0xff] }
0x396a   :  { %13024 = vpow2.f32 %v10760_v38  ;;  %v10779_v38 = vld [vmem:[%s16537_s6 + $0x1b0] sm:$0xff] }
0x396b   :  { %13026 = vrcp.f32 %v8984_v14  ;;  %v10777_v14 = vld [vmem:[%s16537_s6 + $0x1a0] sm:$0xff] }
0x396c   :  { %v13021_v41 = vpop.eup %13020 }
0x396d   :  { %v8983_v17 = vadd.f32 1.0, %v13021_v41  ;;  %v10776_v41 = vld [vmem:[%s16537_s6 + $0x198] sm:$0xff] }
0x396f   :  { %13028 = vrcp.f32 %v8983_v17  ;;  %v10775_v17 = vld [vmem:[%s16537_s6 + $0x190] sm:$0xff] }
0x3973   :  { %v13023_v22 = vpop.eup %13022 }
0x3974   :  { %v8985_v56 = vadd.f32 1.0, %v13023_v22  ;;  %v10774_v22 = vld [vmem:[%s16537_s6 + $0x188] sm:$0xff] }
0x3976   :  { %13030 = vrcp.f32 %v8985_v56  ;;  %v10773_v56 = vld [vmem:[%s16537_s6 + $0x180] sm:$0xff] }
0x3977   :  { %v13025_v46 = vpop.eup %13024 }
0x3978   :  { %v8986_v0 = vadd.f32 1.0, %v13025_v46  ;;  %v13027_v55 = vpop.eup %13026 }
0x3979   :  { %v8996_v48 = vmul.f32 %v13027_v55, %v8968_v57 }
0x397a   :  { %13032 = vrcp.f32 %v8986_v0 }
0x397c   :  { %v13029_v24 = vpop.eup %13028 }
0x397d   :  { %v8995_v1 = vmul.f32 %v13029_v24, %v8967_v42 }
0x397f   :  { %12568 = vmatprep.mubr.msk.f32.mxu0 %vm16850_vm4, %v8995_v1  ;;  %vm16869_vm4 = vmmov %vm16818_vm0 }
0x3980   :  { %12569 = vmatmul.mubr.msk.f32.vlgmr.msra.gmra.mxu0 %vm16851_vm5, %v8996_v48  ;;  %vm16870_vm5 = vmmov %vm16818_vm0 }
0x3983   :  { %v13031_v5 = vpop.eup %13030 }
0x3984   :  { %v8997_v10 = vmul.f32 %v13031_v5, %v8969_v43  ;;  %v10784_v43 = vld [vmem:[%s16537_s6 + $0x1d8] sm:$0xff] }
0x3985   :  { %9248 = vmatprep.subr.mxu1 %v10784_v43  ;;  %v10825_v43 = vld [vmem:[%s16539_s7 + $0x3c0] sm:$0xff] }
0x3986   :  { %12571 = vmatprep.mubr.msk.f32.mxu0 %vm16852_vm12, %v8997_v10  ;;  %9249 = vmatpush1.msra.mxu1 %v10783_v34  ;;  %v10809_v34 = vld [vmem:[%s16539_s7 + $0x340] sm:$0xff]  ;;  %vm16871_vm12 = vmmov %vm16818_vm0 }
0x3987   :  { %v13033_v13 = vpop.eup %13032  ;;  %9250 = vmatprep.subr.mxu1 %v10782_v3  ;;  %v10824_v3 = vld [vmem:[%s16539_s7 + $0x3b8] sm:$0xff] }
0x3988   :  { %v8998_v27 = vmul.f32 %v13033_v13, %v8970_v40  ;;  %v10780_v40 = vld [vmem:[%s16537_s6 + $0x1b8] sm:$0xff]  ;;  %9251 = vmatpush1.msra.mxu1 %v10781_v8 }
0x3989   :  { %9252 = vmatprep.subr.mxu1 %v10780_v40  ;;  %v10808_v8 = vld [vmem:[%s16539_s7 + $0x338] sm:$0xff]  ;;  %v10823_v40 = vld [vmem:[%s16539_s7 + $0x3b0] sm:$0xff] }
0x398a   :  { %12572 = vmatmul.mubr.msk.f32.gmra.mxu0 %vm16853_vm13, %v8998_v27  ;;  %9253 = vmatpush1.msra.mxu1 %v10779_v38  ;;  %v10807_v38 = vld [vmem:[%s16539_s7 + $0x330] sm:$0xff]  ;;  %vm16872_vm13 = vmmov %vm16818_vm0 }
0x398b   :  { %9254 = vmatprep.subr.mxu1 %v10778_v49  ;;  %v10822_v49 = vld [vmem:[%s16539_s7 + $0x3a8] sm:$0xff] }
0x398c   :  { %9255 = vmatpush1.msra.mxu1 %v10777_v14  ;;  %v10806_v14 = vld [vmem:[%s16539_s7 + $0x328] sm:$0xff] }
0x398d   :  { %9256 = vmatprep.subr.mxu1 %v10776_v41  ;;  %v10821_v41 = vld [vmem:[%s16539_s7 + $0x3a0] sm:$0xff] }
0x398e   :  { %9257 = vmatpush1.msra.mxu1 %v10775_v17  ;;  %v10805_v17 = vld [vmem:[%s16539_s7 + $0x320] sm:$0xff] }
0x398f   :  { %9258 = vmatprep.subr.mxu1 %v10774_v22  ;;  %v10820_v22 = vld [vmem:[%s16539_s7 + $0x398] sm:$0xff] }
0x3990   :  { %9259 = vmatpush1.msra.mxu1 %v10773_v56  ;;  %v10804_v56 = vld [vmem:[%s16539_s7 + $0x318] sm:$0xff] }
0x3a40   :  { %v12570_v30 = vpop.f32.mrf.mxu0 }
0x3a41   :  { %v9096_v12 = vadd.f32 %v12570_v30, %v9011_v53 }
0x3a42   :  { %v9090_v37 = vpop.f32.mrf.mxu0 }
0x3a43   :  { %v16076_v11 = vadd.f32 %v9096_v12, %v15730_v62  ;;  %v9091_v52 = vadd.f32 %v9090_v37, %v9011_v53 }
0x3a45   :  { %v16079_v6 = vadd.f32 %v9091_v52, %v15733_v23  ;;  %v9116_v54 = vsel %vm16854_vm14, %v16076_v11, 0.0  ;;  %vm9606_vm14 = vcmask 261120  }
0x3a46   :  { %9117 = vadd.xlane.f32.xlu1 %v9116_v54  ;;  %v16861_v54 = vld [vmem:[#allocation10_spill] sm:$0xff] }
0x3a47   :  { %v9113_v47 = vsel %vm16855_vm15, %v16079_v6, 0.0  ;;  %vm9615_vm15 = vcmask 7168  }
0x3a48   :  { %9114 = vadd.xlane.f32.xlu0 %v9113_v47  ;;  %v9168_v47 = vrot.slane %v16861_v54, %v13746_v16 }
0x3a4a   :  { %v12573_v50 = vpop.f32.mrf.mxu0 }
0x3a4b   :  { %v9106_v59 = vadd.f32 %v12573_v50, %v9011_v53 }
0x3a4c   :  { %v9100_v21 = vpop.f32.mrf.mxu0 }
0x3a4d   :  { %v16086_v32 = vadd.f32 %v9106_v59, %v15752_v28  ;;  %v9101_v62 = vadd.f32 %v9100_v21, %v9011_v53  ;;  %v16862_v59 = vld [vmem:[#allocation8_spill] sm:$0xff] }
0x3a4e   :  { %v9176_v21 = vrot.slane %v16861_v54, %v16862_v59 }
0x3a4f   :  { %v16089_v45 = vadd.f32 %v9101_v62, %v15755_v31  ;;  %v9122_v23 = vsel %vm16818_vm0, %v16086_v32, 0.0  ;;  %vm13108_vm0 = vmmov 0  }
0x3a50   :  { %9123 = vadd.xlane.f32.xlu1 %v9122_v23 }
0x3a51   :  { %v9119_v36 = vsel %vm16856_vm1, %v16089_v45, 0.0 }
0x3a52   :  { %9120 = vadd.xlane.f32.xlu0 %v9119_v36 }
0x3acf   :  { %v9118_v26 = vpop.xlane.xlu1 %9117 }
0x3ad0   :  { %v9126_v60 = vmul.f32 0.015625, %v9118_v26 }
0x3ad1   :  { %v9115_v57 = vpop.xlane.xlu0 %9114 }
0x3ad2   :  { %v16096_v35 = vsub.f32 %v16076_v11, %v9126_v60  ;;  %v9125_v28 = vmul.f32 0.015625, %v9115_v57  ;;  %v16864_v60 = vmov 0.0  }
0x3ad4   :  { %v16099_v20 = vsub.f32 %v16079_v6, %v9125_v28  ;;  %v9134_v31 = vmul.f32 %v16096_v35, %v16096_v35 }
0x3ad6   :  { %v9140_v15 = vsel %vm16857_vm6, %v9134_v31, 0.0  ;;  %v9133_v44 = vmul.f32 %v16099_v20, %v16099_v20  ;;  %vm16873_vm6 = vmmov %vm16856_vm1 }
0x3ad7   :  { %9141 = vadd.xlane.f32.xlu1 %v9140_v15 }
0x3ad8   :  { %v9137_v7 = vsel %vm16858_vm7, %v9133_v44, 0.0  ;;  %vm16874_vm7 = vmmov %vm16856_vm1 }
0x3ad9   :  { %v9124_v51 = vpop.xlane.xlu1 %9123  ;;  %9138 = vadd.xlane.f32.xlu0 %v9137_v7  ;;  %v10832_v7 = vld [vmem:[%s16539_s7 + $0x3f8] sm:$0xff] }
0x3ada   :  { %v9128_v2 = vmul.f32 0.015625, %v9124_v51  ;;  %11511 = vmatprep.subr.mxu0 %v10832_v7 }
0x3adb   :  { %v9121_v9 = vpop.xlane.xlu0 %9120 }
0x3adc   :  { %v16108_v63 = vsub.f32 %v16086_v32, %v9128_v2  ;;  %v9127_v25 = vmul.f32 0.015625, %v9121_v9  ;;  %v10816_v2 = vld [vmem:[%s16539_s7 + $0x378] sm:$0xff]  ;;  %v10831_v9 = vld [vmem:[%s16539_s7 + $0x3f0] sm:$0xff] }
0x3add   :  { %11512 = vmatpush3.msra.mxu0 %v10816_v2 }
0x3ade   :  { %v16111_v42 = vsub.f32 %v16089_v45, %v9127_v25  ;;  %v9136_v19 = vmul.f32 %v16108_v63, %v16108_v63  ;;  %11513 = vmatprep.subr.mxu0 %v10831_v9  ;;  %v10830_v25 = vld [vmem:[%s16539_s7 + $0x3e8] sm:$0xff] }
0x3ae0   :  { %v9146_v4 = vsel %vm16859_vm8, %v9136_v19, 0.0  ;;  %v9135_v18 = vmul.f32 %v16111_v42, %v16111_v42  ;;  %v10829_v19 = vld [vmem:[%s16539_s7 + $0x3e0] sm:$0xff]  ;;  %vm16875_vm8 = vmmov %vm16856_vm1 }
0x3ae1   :  { %9147 = vadd.xlane.f32.xlu1 %v9146_v4  ;;  %v10813_v4 = vld [vmem:[%s16539_s7 + $0x360] sm:$0xff] }
0x3ae2   :  { %v9143_v58 = vsel %vm16860_vm9, %v9135_v18, 0.0  ;;  %v10828_v18 = vld [vmem:[%s16539_s7 + $0x3d8] sm:$0xff]  ;;  %vm16876_vm9 = vmmov %vm16856_vm1 }
0x3ae3   :  { %9144 = vadd.xlane.f32.xlu0 %v9143_v58  ;;  %v10812_v58 = vld [vmem:[%s16539_s7 + $0x358] sm:$0xff] }
0x3b60   :  { %v9142_v46 = vpop.xlane.xlu1 %9141 }
0x3b61   :  { %v9150_v0 = vmul.f32 0.015625, %v9142_v46  ;;  %v10819_v46 = vld [vmem:[%s16539_s7 + $0x390] sm:$0xff] }
0x3b62   :  { %v9139_v55 = vpop.xlane.xlu0 %9138 }
0x3b63   :  { %v9154_v24 = vadd.f32 1e-05, %v9150_v0  ;;  %v9149_v1 = vmul.f32 0.015625, %v9139_v55  ;;  %v10803_v0 = vld [vmem:[%s16539_s7 + $0x310] sm:$0xff]  ;;  %v10818_v55 = vld [vmem:[%s16539_s7 + $0x388] sm:$0xff] }
0x3b65   :  { %13034 = vrsqrt.f32 %v9154_v24  ;;  %v9153_v48 = vadd.f32 1e-05, %v9149_v1  ;;  %v10802_v24 = vld [vmem:[%s16539_s7 + $0x308] sm:$0xff]  ;;  %v10817_v1 = vld [vmem:[%s16539_s7 + $0x380] sm:$0xff] }
0x3b67   :  { %13036 = vrsqrt.f32 %v9153_v48  ;;  %v10801_v48 = vld [vmem:[%s16539_s7 + $0x300] sm:$0xff] }
0x3b6a   :  { %v9148_v5 = vpop.xlane.xlu1 %9147 }
0x3b6b   :  { %v9152_v10 = vmul.f32 0.015625, %v9148_v5  ;;  %v16281_v5 = vld [vmem:[%s16545_s10 + $0x38] sm:$0xff] }
0x3b6c   :  { %v9145_v13 = vpop.xlane.xlu0 %9144  ;;  %12574 = vmatprep.subr.mxu1 %v16281_v5 }
0x3b6d   :  { %v9156_v27 = vadd.f32 1e-05, %v9152_v10  ;;  %v9151_v53 = vmul.f32 0.015625, %v9145_v13  ;;  %v13104_v10 = vld [vmem:[%s16540_s4 + $0x4] sm:$0xf]  ;;  %v16868_v13 = vld [vmem:[#allocation4_spill] sm:$0xff] }
0x3b6f   :  { %13038 = vrsqrt.f32 %v9156_v27  ;;  %v9155_v30 = vadd.f32 1e-05, %v9151_v53  ;;  %v9201_v27 = vrot.slane %v13104_v10, %v16868_v13  ;;  %v9205_v53 = vrot.slane %v13104_v10, %v13746_v16 }
0x3b71   :  { %13040 = vrsqrt.f32 %v9155_v30  ;;  %v9211_v30 = vrot.slane %v9201_v27, %v16868_v13 }
0x3b72   :  { %v13035_v12 = vpop.eup %13034 }
0x3b73   :  { %v9162_v52 = vmul.f32 %v13035_v12, %v16096_v35  ;;  %v9215_v12 = vrot.slane %v9205_v53, %v16868_v13 }
0x3b74   :  { %v13037_v37 = vpop.eup %13036 }
0x3b75   :  { %v9161_v50 = vmul.f32 %v13037_v37, %v16099_v20  ;;  %v9170_v36 = vmul.f32 %v9168_v47, %v9162_v52 }
0x3b77   :  { %v9169_v62 = vmul.f32 %v9168_v47, %v9161_v50  ;;  %v9178_v28 = vadd.f32 %v9176_v21, %v9170_v36 }
0x3b79   :  { %v9177_v23 = vadd.f32 %v9176_v21, %v9169_v62 }
0x3b7b   :  { %10789 = vmatmul.mubr.msk.f32.vlgmr.msra.gmra.mxu1 %vm16863_vm10, %v9177_v23  ;;  %vm16877_vm10 = vmmov %vm16856_vm1 }
0x3b7c   :  { %v13039_v26 = vpop.eup %13038  ;;  %9298 = vmatprep.mubr.f32.mxu1 %v16864_v60  ;;  %12575 = vmatpush3.msra.mxu1 %v16281_v5 }
0x3b7d   :  { %v9164_v35 = vmul.f32 %v13039_v26, %v16108_v63  ;;  %v10815_v63 = vld [vmem:[%s16539_s7 + $0x370] sm:$0xff] }
0x3b7e   :  { %v13041_v57 = vpop.eup %13040  ;;  %11514 = vmatpush3.msra.mxu0 %v10815_v63 }
0x3b7f   :  { %v9163_v31 = vmul.f32 %v13041_v57, %v16111_v42  ;;  %10790 = vmatmul.mubr.msk.f32.gmra.mxu1 %vm16865_vm11, %v9178_v28  ;;  %v9172_v44 = vmul.f32 %v9168_v47, %v9164_v35  ;;  %11515 = vmatprep.subr.mxu0 %v10830_v25  ;;  %v10814_v42 = vld [vmem:[%s16539_s7 + $0x368] sm:$0xff]  ;;  %vm16878_vm11 = vmmov %vm16856_vm1 }
0x3b80   :  { %9304 = vmatprep.mubr.f32.mxu1 %v16864_v60  ;;  %11516 = vmatpush3.msra.mxu0 %v10814_v42 }
0x3b81   :  { %v9171_v20 = vmul.f32 %v9168_v47, %v9163_v31  ;;  %v9180_v51 = vadd.f32 %v9176_v21, %v9172_v44  ;;  %11517 = vmatprep.subr.mxu0 %v10829_v19 }
0x3b82   :  { %11518 = vmatpush3.msra.mxu0 %v10813_v4 }
0x3b83   :  { %v9179_v15 = vadd.f32 %v9176_v21, %v9171_v20  ;;  %11519 = vmatprep.subr.mxu0 %v10828_v18 }
0x3b84   :  { %11520 = vmatpush3.msra.mxu0 %v10812_v58 }
0x3b85   :  { %10791 = vmatmul.mubr.msk.f32.gmra.mxu1 %vm16866_vm2, %v9179_v15  ;;  %11521 = vmatprep.subr.mxu0 %v10827_v61  ;;  %vm16879_vm2 = vmmov %vm16856_vm1 }
0x3b86   :  { %9310 = vmatprep.mubr.f32.mxu1 %v16864_v60  ;;  %11522 = vmatpush3.msra.mxu0 %v10811_v29 }
0x3b87   :  { %11523 = vmatprep.subr.mxu0 %v10826_v33 }
0x3b88   :  { %11524 = vmatpush3.msra.mxu0 %v10810_v39 }
0x3b89   :  { %10792 = vmatmul.mubr.msk.f32.gmra.mxu1 %vm16867_vm3, %v9180_v51  ;;  %11525 = vmatprep.subr.mxu0 %v10825_v43  ;;  %vm9851_vm3 = vcmask 1040384  }
0x3b8a   :  { %11526 = vmatpush3.msra.mxu0 %v10809_v34 }
0x3b8b   :  { %11527 = vmatprep.subr.mxu0 %v10824_v3 }
0x3b8c   :  { %11528 = vmatpush3.msra.mxu0 %v10808_v8 }
0x3b8d   :  { %11529 = vmatprep.subr.mxu0 %v10823_v40 }
0x3b8e   :  { %11530 = vmatpush3.msra.mxu0 %v10807_v38 }
0x3b8f   :  { %11531 = vmatprep.subr.mxu0 %v10822_v49 }
0x3b90   :  { %11532 = vmatpush3.msra.mxu0 %v10806_v14 }
0x3b91   :  { %11533 = vmatprep.subr.mxu0 %v10821_v41 }
0x3b92   :  { %11534 = vmatpush3.msra.mxu0 %v10805_v17 }
0x3b93   :  { %11535 = vmatprep.subr.mxu0 %v10820_v22 }
0x3b94   :  { %11536 = vmatpush3.msra.mxu0 %v10804_v56 }
0x3b95   :  { %11537 = vmatprep.subr.mxu0 %v10819_v46 }
0x3b96   :  { %11538 = vmatpush3.msra.mxu0 %v10803_v0 }
0x3b97   :  { %11539 = vmatprep.subr.mxu0 %v10818_v55 }
0x3b98   :  { %11540 = vmatpush3.msra.mxu0 %v10802_v24 }
0x3b99   :  { %11541 = vmatprep.subr.mxu0 %v10817_v1 }
0x3b9a   :  { %11542 = vmatpush3.msra.mxu0 %v10801_v48 }
0x3b9b   :  { %12612 = vmatprep.subr.mxu0 %v16864_v60 }
0x3c3b   :  { %v9294_v37 = vpop.f32.mrf.mxu1 }
0x3c3c   :  { %v9295_v52 = vadd.f32 %v9294_v37, %v9211_v30  ;;  %v9508_v37 = vld [vmem:[%s16545_s10 + $0x28] sm:$0xff] }
0x3c3d   :  { %v9296_v54 = vpop.f32.mrf.mxu1 }
0x3c3e   :  { %v10793_v47 = vmul.f32 -1.442695, %v9295_v52  ;;  %v9297_v50 = vadd.f32 %v9296_v54, %v9215_v12  ;;  %v9506_v54 = vld [vmem:[%s16545_s10 + $0x18] sm:$0xff] }
0x3c3f   :  { %v9300_v59 = vpop.f32.mrf.mxu1 }
0x3c40   :  { %13042 = vpow2.f32 %v10793_v47  ;;  %v10794_v21 = vmul.f32 -1.442695, %v9297_v50  ;;  %v9301_v62 = vadd.f32 %v9300_v59, %v9211_v30  ;;  %v9505_v47 = vld [vmem:[%s16545_s10 + $0x10] sm:$0xff]  ;;  %v9503_v59 = vld [vmem:[%s16545_s10] sm:$0xff] }
0x3c41   :  { %v9302_v23 = vpop.f32.mrf.mxu1 }
0x3c42   :  { %13044 = vpow2.f32 %v10794_v21  ;;  %v10795_v36 = vmul.f32 -1.442695, %v9301_v62  ;;  %v9303_v26 = vadd.f32 %v9302_v23, %v9215_v12 }
0x3c44   :  { %13046 = vpow2.f32 %v10795_v36  ;;  %v10796_v57 = vmul.f32 -1.442695, %v9303_v26 }
0x3c45   :  { %v9306_v16 = vpop.f32.mrf.mxu1 }
0x3c46   :  { %v9307_v28 = vadd.f32 %v9306_v16, %v9211_v30  ;;  %13048 = vpow2.f32 %v10796_v57 }
0x3c47   :  { %v9308_v35 = vpop.f32.mrf.mxu1 }
0x3c48   :  { %v10797_v31 = vmul.f32 -1.442695, %v9307_v28  ;;  %v9309_v20 = vadd.f32 %v9308_v35, %v9215_v12 }
0x3c49   :  { %v9312_v15 = vpop.f32.mrf.mxu1 }
0x3c4a   :  { %13050 = vpow2.f32 %v10797_v31  ;;  %v10798_v44 = vmul.f32 -1.442695, %v9309_v20  ;;  %v9313_v51 = vadd.f32 %v9312_v15, %v9211_v30 }
0x3c4b   :  { %v9314_v7 = vpop.f32.mrf.mxu1 }
0x3c4c   :  { %13052 = vpow2.f32 %v10798_v44  ;;  %v10799_v2 = vmul.f32 -1.442695, %v9313_v51  ;;  %v9315_v9 = vadd.f32 %v9314_v7, %v9215_v12  ;;  %v9509_v12 = vld [vmem:[%s16545_s10 + $0x30] sm:$0xff] }
0x3c4d   :  { %v13043_v63 = vpop.eup %13042  ;;  %12576 = vmatprep.subr.mxu1 %v9509_v12 }
0x3c4e   :  { %13054 = vpow2.f32 %v10799_v2  ;;  %v10800_v25 = vmul.f32 -1.442695, %v9315_v9  ;;  %v9341_v42 = vadd.f32 1.0, %v13043_v63  ;;  %12577 = vmatpush3.msra.mxu1 %v9509_v12 }
0x3c4f   :  { %v13045_v19 = vpop.eup %13044  ;;  %12578 = vmatprep.subr.mxu1 %v9508_v37 }
0x3c50   :  { %13056 = vpow2.f32 %v10800_v25  ;;  %v9342_v4 = vadd.f32 1.0, %v13045_v19  ;;  %12579 = vmatpush3.msra.mxu1 %v9508_v37 }
0x3c51   :  { %v13047_v18 = vpop.eup %13046  ;;  %13058 = vrcp.f32 %v9341_v42 }
0x3c52   :  { %13060 = vrcp.f32 %v9342_v4  ;;  %v9343_v58 = vadd.f32 1.0, %v13047_v18 }
0x3c53   :  { %v13049_v61 = vpop.eup %13048 }
0x3c54   :  { %v9344_v29 = vadd.f32 1.0, %v13049_v61  ;;  %13062 = vrcp.f32 %v9343_v58 }
0x3c56   :  { %13064 = vrcp.f32 %v9344_v29 }
0x3c57   :  { %v13051_v33 = vpop.eup %13050 }
0x3c58   :  { %v9345_v39 = vadd.f32 1.0, %v13051_v33 }
0x3c59   :  { %v13053_v43 = vpop.eup %13052 }
0x3c5a   :  { %v9346_v34 = vadd.f32 1.0, %v13053_v43  ;;  %13066 = vrcp.f32 %v9345_v39 }
0x3c5b   :  { %v13055_v3 = vpop.eup %13054 }
0x3c5c   :  { %13068 = vrcp.f32 %v9346_v34  ;;  %v9347_v8 = vadd.f32 1.0, %v13055_v3 }
0x3c5d   :  { %v13057_v40 = vpop.eup %13056 }
0x3c5e   :  { %v9348_v38 = vadd.f32 1.0, %v13057_v40  ;;  %v13059_v49 = vpop.eup %13058  ;;  %13070 = vrcp.f32 %v9347_v8 }
0x3c5f   :  { %v13061_v14 = vpop.eup %13060  ;;  %v9365_v17 = vmul.f32 %v13059_v49, %v9295_v52  ;;  %v9507_v52 = vld [vmem:[%s16545_s10 + $0x20] sm:$0xff] }
0x3c60   :  { %13072 = vrcp.f32 %v9348_v38  ;;  %v9366_v41 = vmul.f32 %v13061_v14, %v9297_v50  ;;  %12580 = vmatprep.subr.mxu1 %v9507_v52  ;;  %v9504_v50 = vld [vmem:[%s16545_s10 + $0x8] sm:$0xff] }
0x3c61   :  { %v13063_v22 = vpop.eup %13062  ;;  %12581 = vmatpush3.msra.mxu1 %v9507_v52 }
0x3c62   :  { %9474 = vmatprep.mubr.f32.mxu0 %v9366_v41  ;;  %v9367_v0 = vmul.f32 %v13063_v22, %v9301_v62  ;;  %12582 = vmatprep.subr.mxu1 %v9506_v54  ;;  %v13105_v62 = vld [vmem:[%s16538_s3 + $0x20] sm:$0xff] }
0x3c63   :  { %v13065_v56 = vpop.eup %13064  ;;  %9475 = vmatmul.mubr.f32.vlgmr.msra.gmra.mxu0 %v9365_v17  ;;  %12583 = vmatpush3.msra.mxu1 %v9506_v54  ;;  %v9409_v23 = vrot.slane %v13105_v62, %v16868_v13 }
0x3c64   :  { %v9368_v46 = vmul.f32 %v13065_v56, %v9303_v26  ;;  %12584 = vmatprep.subr.mxu1 %v9505_v47 }
0x3c65   :  { %12585 = vmatpush3.msra.mxu1 %v9505_v47 }
0x3c66   :  { %9479 = vmatprep.mubr.f32.mxu0 %v9368_v46  ;;  %12586 = vmatprep.subr.mxu1 %v9504_v50 }
0x3c67   :  { %v13067_v55 = vpop.eup %13066  ;;  %9480 = vmatmul.mubr.f32.gmra.mxu0 %v9367_v0  ;;  %12587 = vmatpush3.msra.mxu1 %v9504_v50 }
0x3c68   :  { %v9369_v48 = vmul.f32 %v13067_v55, %v9307_v28  ;;  %12588 = vmatprep.subr.mxu1 %v9503_v59  ;;  %v13107_v55 = vmov 0  }
0x3c69   :  { %v13069_v24 = vpop.eup %13068  ;;  %12589 = vmatpush3.msra.mxu1 %v9503_v59  ;;  %12689 = vset.pattern.permute.xlu1 %v13107_v55 }
0x3c6a   :  { %v9370_v1 = vmul.f32 %v13069_v24, %v9309_v20  ;;  %12593 = vmatprep.subr.mxu1 %v16281_v5  ;;  %12688 = vset.pattern.permute.xlu0 %v13107_v55  ;;  %v47_v24 = vld [vmem:[%s16546_s2 + $0x8] sm:$0xff] }
0x3c6b   :  { %v13071_v10 = vpop.eup %13070 }
0x3c6c   :  { %9484 = vmatprep.mubr.f32.mxu0 %v9370_v1  ;;  %v9371_v30 = vmul.f32 %v13071_v10, %v9313_v51 }
0x3c6d   :  { %v13073_v27 = vpop.eup %13072  ;;  %9485 = vmatmul.mubr.f32.gmra.mxu0 %v9369_v48  ;;  %v46_v48 = vld [vmem:[%s16546_s2] sm:$0xff] }
0x3c6e   :  { %v9372_v53 = vmul.f32 %v13073_v27, %v9315_v9 }
0x3c70   :  { %9489 = vmatprep.mubr.f32.mxu0 %v9372_v53 }
0x3c71   :  { %9490 = vmatmul.mubr.f32.gmra.mxu0 %v9371_v30 }
0x3c72   :  { %12628 = vmatprep.mubr.msk.f32.mxu0 %vm13108_vm0, %v16864_v60 }
0x3d23   :  { %v11543_v21 = vpop.f32.mrf.mxu0 }
0x3d25   :  { %v11544_v36 = vpop.f32.mrf.mxu0 }
0x3d26   :  { %v11545_v26 = vadd.f32 %v11544_v36, %v11543_v21 }
0x3d27   :  { %v11546_v57 = vpop.f32.mrf.mxu0 }
0x3d28   :  { %v9477_v16 = vadd.f32 %v11545_v26, %v9409_v23 }
0x3d29   :  { %v11547_v28 = vpop.f32.mrf.mxu0 }
0x3d2a   :  { %v9495_v35 = vmul.f32 0.5, %v9477_v16  ;;  %v11548_v31 = vadd.f32 %v11547_v28, %v11546_v57 }
0x3d2c   :  { %v16320_v20 = vadd.f32 %v9495_v35, %v16079_v6  ;;  %v9482_v15 = vadd.f32 %v11548_v31, %v9409_v23 }
0x3d2d   :  { %v11549_v44 = vpop.f32.mrf.mxu0 }
0x3d2e   :  { %v9496_v51 = vmul.f32 0.5, %v9482_v15  ;;  %12590 = vmatprep.mubr.msk.f32.mxu1 %vm16869_vm4, %v16320_v20  ;;  %vm16880_vm4 = vmmov %vm16856_vm1 }
0x3d2f   :  { %v11550_v7 = vpop.f32.mrf.mxu0 }
0x3d30   :  { %v11551_v2 = vadd.f32 %v11550_v7, %v11549_v44  ;;  %v16325_v13 = vadd.f32 %v9496_v51, %v16076_v11 }
0x3d31   :  { %v11552_v9 = vpop.f32.mrf.mxu0 }
0x3d32   :  { %v9487_v63 = vadd.f32 %v11551_v2, %v9409_v23  ;;  %12591 = vmatmul.mubr.msk.f32.vlgmr.msra.gmra.mxu1 %vm16870_vm5, %v16325_v13 }
0x3d33   :  { %v11553_v25 = vpop.f32.mrf.mxu0  ;;  %12594 = vmatpush3.msra.mxu1 %v16281_v5 }
0x3d34   :  { %v9497_v42 = vmul.f32 0.5, %v9487_v63  ;;  %v11554_v6 = vadd.f32 %v11553_v25, %v11552_v9  ;;  %12595 = vmatprep.subr.mxu1 %v9509_v12 }
0x3d35   :  { %12596 = vmatpush3.msra.mxu1 %v9509_v12 }
0x3d36   :  { %v16331_v19 = vadd.f32 %v9497_v42, %v16089_v45  ;;  %12597 = vmatprep.subr.mxu1 %v9508_v37  ;;  %v9492_v11 = vadd.f32 %v11554_v6, %v9409_v23  ;;  %v10833_v45 = vld [vmem:[%s16545_s10 + $0x40] ss:$0 sm:$0xff]  ;;  %v48_v23 = vld [vmem:[%s16546_s2 + $0x10] sm:$0xff] }
0x3d37   :  { %12598 = vmatpush3.msra.mxu1 %v9508_v37 }
0x3d38   :  { %12609 = vmatprep.mubr.msk.f32.mxu1 %vm16871_vm12, %v16331_v19  ;;  %12599 = vmatprep.subr.mxu1 %v9507_v52  ;;  %v9498_v4 = vmul.f32 0.5, %v9492_v11 }
0x3d39   :  { %12600 = vmatpush3.msra.mxu1 %v9507_v52 }
0x3d3a   :  { %12601 = vmatprep.subr.mxu1 %v9506_v54  ;;  %v16336_v5 = vadd.f32 %v9498_v4, %v16086_v32  ;;  %v10836_v32 = vld [vmem:[%s16545_s10 + $0x41] ss:$0 sm:$0xff] }
0x3d3b   :  { %12602 = vmatpush3.msra.mxu1 %v9506_v54 }
0x3d3c   :  { %12603 = vmatprep.subr.mxu1 %v9505_v47 }
0x3d3d   :  { %12604 = vmatpush3.msra.mxu1 %v9505_v47 }
0x3d3e   :  { %12605 = vmatprep.subr.mxu1 %v9504_v50 }
0x3d3f   :  { %12606 = vmatpush3.msra.mxu1 %v9504_v50 }
0x3d40   :  { %12607 = vmatprep.subr.mxu1 %v9503_v59 }
0x3d41   :  { %12608 = vmatpush3.msra.mxu1 %v9503_v59  ;;  %v49_v59 = vld [vmem:[%s16546_s2 + $0x18] sm:$0xff] }
0x3d42   :  { %12610 = vmatmul.mubr.msk.f32.vlgmr.msra.gmra.mxu1 %vm16872_vm13, %v16336_v5  ;;  %12631 = vmatprep.subr.mxu1 %v16864_v60 }
0x3d43   :  { %12647 = vmatprep.mubr.msk.f32.mxu1 %vm13108_vm0, %v16864_v60 }
0x3df2   :  { %v12592_v18 = vpop.f32.mrf.mxu1 }
0x3df3   :  { %v9595_v58 = vadd.f32 %v12592_v18, %v10833_v45 }
0x3df4   :  { %v9589_v61 = vpop.f32.mrf.mxu1 }
0x3df5   :  { %13074 = vtanh.f32 %v9595_v58  ;;  %v9590_v29 = vadd.f32 %v10833_v45, %v9589_v61 }
0x3df7   :  { %13076 = vtanh.f32 %v9590_v29 }
0x3e02   :  { %v13075_v33 = vpop.eup %13074  ;;  %v12611_v39 = vpop.f32.mrf.mxu1 }
0x3e03   :  { %v9765_v43 = vadd.f32 %v12611_v39, %v10833_v45  ;;  %v9605_v34 = vmul.f32 %v13075_v33, %v10836_v32 }
0x3e04   :  { %v13077_v3 = vpop.eup %13076  ;;  %v9759_v8 = vpop.f32.mrf.mxu1 }
0x3e05   :  { %13078 = vtanh.f32 %v9765_v43  ;;  %v9760_v40 = vadd.f32 %v10833_v45, %v9759_v8  ;;  %v9610_v38 = vsel %vm9606_vm14, %v9605_v34, 0.0  ;;  %v9604_v49 = vmul.f32 %v13077_v3, %v10836_v32 }
0x3e06   :  { %9611 = vadd.xlane.f32.xlu1 %v9610_v38 }
0x3e07   :  { %13080 = vtanh.f32 %v9760_v40  ;;  %v9607_v14 = vsel %vm9606_vm14, %v9604_v49, 0.0 }
0x3e08   :  { %9608 = vadd.xlane.f32.xlu0 %v9607_v14 }
0x3e12   :  { %v13079_v41 = vpop.eup %13078 }
0x3e13   :  { %v9771_v17 = vmul.f32 %v13079_v41, %v10836_v32 }
0x3e14   :  { %v13081_v22 = vpop.eup %13080 }
0x3e15   :  { %v9775_v56 = vsel %vm9606_vm14, %v9771_v17, 0.0  ;;  %v9770_v46 = vmul.f32 %v13081_v22, %v10836_v32 }
0x3e16   :  { %9776 = vadd.xlane.f32.xlu1 %v9775_v56 }
0x3e17   :  { %v9772_v0 = vsel %vm9606_vm14, %v9770_v46, 0.0 }
0x3e18   :  { %9773 = vadd.xlane.f32.xlu0 %v9772_v0 }
0x3e8f   :  { %v9612_v1 = vpop.xlane.xlu1 %9611 }
0x3e90   :  { %v9614_v10 = vadd.f32 %v9612_v1, %v47_v24 }
0x3e91   :  { %v9609_v27 = vpop.xlane.xlu0 %9608 }
0x3e92   :  { %v9613_v53 = vadd.f32 %v9609_v27, %v46_v48  ;;  %v9617_v30 = vsel %vm9615_vm15, %v9614_v10, -inf }
0x3e94   :  { %v9616_v12 = vsel %vm9615_vm15, %v9613_v53, -inf }
0x3e95   :  { %v9618_v37 = vmax.f32 %v9616_v12, %v9617_v30  ;;  %v9861_v12 = vld [vmem:[%s16547_s11 + $0x38] sm:$0xff] }
0x3e96   :  { %12632 = vmatpush3.msra.mxu1 %v9861_v12 }
0x3e97   :  { %v9619_v52 = vrot.slane %v9618_v37, 4  ;;  %12633 = vmatprep.subr.mxu1 %v16864_v60 }
0x3e99   :  { %v9620_v54 = vmax.f32 %v9618_v37, %v9619_v52  ;;  %v9860_v37 = vld [vmem:[%s16547_s11 + $0x30] sm:$0xff]  ;;  %v9859_v52 = vld [vmem:[%s16547_s11 + $0x28] sm:$0xff] }
0x3e9a   :  { %12634 = vmatpush3.msra.mxu1 %v9860_v37 }
0x3e9b   :  { %v9621_v47 = vrot.slane %v9620_v54, 2  ;;  %12635 = vmatprep.subr.mxu1 %v16864_v60 }
0x3e9c   :  { %12636 = vmatpush3.msra.mxu1 %v9859_v52 }
0x3e9d   :  { %v9622_v50 = vmax.f32 %v9620_v54, %v9621_v47  ;;  %12637 = vmatprep.subr.mxu1 %v16864_v60  ;;  %v9858_v54 = vld [vmem:[%s16547_s11 + $0x20] sm:$0xff]  ;;  %v9857_v47 = vld [vmem:[%s16547_s11 + $0x18] sm:$0xff] }
0x3e9e   :  { %12638 = vmatpush3.msra.mxu1 %v9858_v54 }
0x3e9f   :  { %v9623_v21 = vrot.slane %v9622_v50, 1  ;;  %v9777_v62 = vpop.xlane.xlu1 %9776  ;;  %12639 = vmatprep.subr.mxu1 %v16864_v60 }
0x3ea0   :  { %v9779_v36 = vadd.f32 %v9777_v62, %v49_v59  ;;  %12640 = vmatpush3.msra.mxu1 %v9857_v47  ;;  %v9869_v59 = vld [vmem:[%s16547_s11 + $0x78] sm:$0xff]  ;;  %v9855_v62 = vld [vmem:[%s16547_s11 + $0x8] sm:$0xff] }
0x3ea1   :  { %v9624_v26 = vmax.f32 %v9622_v50, %v9623_v21  ;;  %v9774_v57 = vpop.xlane.xlu0 %9773  ;;  %v9856_v50 = vld [vmem:[%s16547_s11 + $0x10] sm:$0xff]  ;;  %12641 = vmatprep.subr.mxu1 %v16864_v60  ;;  %12613 = vmatpush3.msra.mxu0 %v9869_v59 }
0x3ea2   :  { %v9778_v16 = vadd.f32 %v9774_v57, %v48_v23  ;;  %v9781_v31 = vsel %vm9615_vm15, %v9779_v36, -inf  ;;  %v9868_v21 = vld [vmem:[%s16547_s11 + $0x70] sm:$0xff]  ;;  %12642 = vmatpush3.msra.mxu1 %v9856_v50  ;;  %12614 = vmatprep.subr.mxu0 %v16864_v60  ;;  %v9867_v23 = vld [vmem:[%s16547_s11 + $0x68] sm:$0xff]  ;;  %v9865_v57 = vld [vmem:[%s16547_s11 + $0x58] sm:$0xff] }
0x3ea3   :  { %v9625_v28 = vsub.f32 %v9613_v53, %v9624_v26  ;;  %v9626_v35 = vsub.f32 %v9614_v10, %v9624_v26  ;;  %12643 = vmatprep.subr.mxu1 %v16864_v60  ;;  %12615 = vmatpush3.msra.mxu0 %v9868_v21  ;;  %v9866_v26 = vld [vmem:[%s16547_s11 + $0x60] sm:$0xff] }
0x3ea4   :  { %v9780_v15 = vsel %vm9615_vm15, %v9778_v16, -inf  ;;  %12644 = vmatpush3.msra.mxu1 %v9855_v62  ;;  %12616 = vmatprep.subr.mxu0 %v16864_v60 }
0x3ea5   :  { %v9627_v44 = vmul.f32 1.442695, %v9625_v28  ;;  %v9629_v51 = vmul.f32 1.442695, %v9626_v35  ;;  %v9782_v7 = vmax.f32 %v9780_v15, %v9781_v31  ;;  %12645 = vmatprep.subr.mxu1 %v16864_v60  ;;  %12617 = vmatpush3.msra.mxu0 %v9867_v23  ;;  %v9863_v28 = vld [vmem:[%s16547_s11 + $0x48] sm:$0xff]  ;;  %v9862_v35 = vld [vmem:[%s16547_s11 + $0x40] sm:$0xff]  ;;  %v9665_v31 = vmul.f32 %v16325_v13, %v16325_v13 }
0x3ea6   :  { %12618 = vmatprep.subr.mxu0 %v16864_v60  ;;  %v9664_v15 = vmul.f32 %v16320_v20, %v16320_v20 }
0x3ea7   :  { %13082 = vpow2.f32 %v9627_v44  ;;  %v9783_v2 = vrot.slane %v9782_v7, 4  ;;  %12619 = vmatpush3.msra.mxu0 %v9866_v26 }
0x3ea8   :  { %13084 = vpow2.f32 %v9629_v51  ;;  %12620 = vmatprep.subr.mxu0 %v16864_v60 }
0x3ea9   :  { %v9784_v9 = vmax.f32 %v9782_v7, %v9783_v2  ;;  %12621 = vmatpush3.msra.mxu0 %v9865_v57 }
0x3eaa   :  { %12622 = vmatprep.subr.mxu0 %v16864_v60 }
0x3eab   :  { %v9785_v63 = vrot.slane %v9784_v9, 2 }
0x3ead   :  { %v9786_v25 = vmax.f32 %v9784_v9, %v9785_v63 }
0x3eaf   :  { %v9787_v42 = vrot.slane %v9786_v25, 1 }
0x3eb1   :  { %v9788_v6 = vmax.f32 %v9786_v25, %v9787_v42 }
0x3eb3   :  { %v9789_v11 = vsub.f32 %v9778_v16, %v9788_v6  ;;  %v9790_v4 = vsub.f32 %v9779_v36, %v9788_v6  ;;  %v9854_v36 = vld [vmem:[%s16547_s11] sm:$0xff]  ;;  %v9864_v16 = vld [vmem:[%s16547_s11 + $0x50] sm:$0xff] }
0x3eb4   :  { %v13083_v45 = vpop.eup %13082  ;;  %12646 = vmatpush3.msra.mxu1 %v9854_v36  ;;  %12623 = vmatpush3.msra.mxu0 %v9864_v16 }
0x3eb5   :  { %v13085_v18 = vpop.eup %13084  ;;  %v9631_v58 = vsel %vm9615_vm15, %v13083_v45, 0.0  ;;  %v9791_v61 = vmul.f32 1.442695, %v9789_v11  ;;  %v9793_v29 = vmul.f32 1.442695, %v9790_v4  ;;  %12624 = vmatprep.subr.mxu0 %v16864_v60 }
0x3eb6   :  { %v9632_v32 = vsel %vm9615_vm15, %v13085_v18, 0.0  ;;  %12625 = vmatpush3.msra.mxu0 %v9863_v28 }
0x3eb7   :  { %v9633_v33 = vadd.f32 %v9632_v32, %v9631_v58  ;;  %13086 = vpow2.f32 %v9791_v61  ;;  %12626 = vmatprep.subr.mxu0 %v16864_v60 }
0x3eb8   :  { %13088 = vpow2.f32 %v9793_v29  ;;  %12627 = vmatpush3.msra.mxu0 %v9862_v35 }
0x3eb9   :  { %v9634_v39 = vrot.slane %v9633_v33, 4  ;;  %12650 = vmatprep.subr.mxu0 %v16864_v60 }
0x3ebb   :  { %v9635_v43 = vadd.f32 %v9634_v39, %v9633_v33 }
0x3ebd   :  { %v9636_v34 = vrot.slane %v9635_v43, 2 }
0x3ebf   :  { %v9637_v3 = vadd.f32 %v9636_v34, %v9635_v43 }
0x3ec1   :  { %v9638_v8 = vrot.slane %v9637_v3, 1 }
0x3ec3   :  { %v9639_v40 = vadd.f32 %v9638_v8, %v9637_v3  ;;  %v9829_v8 = vmul.f32 %v16336_v5, %v16336_v5 }
0x3ec4   :  { %v13087_v38 = vpop.eup %13086 }
0x3ec5   :  { %v13089_v49 = vpop.eup %13088  ;;  %v9795_v14 = vsel %vm9615_vm15, %v13087_v38, 0.0  ;;  %13090 = vrcp.f32 %v9639_v40 }
0x3ec6   :  { %v9796_v41 = vsel %vm9615_vm15, %v13089_v49, 0.0  ;;  %vm16881_vm15 = vmmov %vm16856_vm1 }
0x3ec7   :  { %v9797_v17 = vadd.f32 %v9796_v41, %v9795_v14 }
0x3ec9   :  { %v9798_v22 = vrot.slane %v9797_v17, 4 }
0x3ecb   :  { %v9799_v56 = vadd.f32 %v9798_v22, %v9797_v17 }
0x3ecd   :  { %v9800_v46 = vrot.slane %v9799_v56, 2 }
0x3ecf   :  { %v9801_v0 = vadd.f32 %v9800_v46, %v9799_v56 }
0x3ed1   :  { %v9802_v55 = vrot.slane %v9801_v0, 1 }
0x3ed2   :  { %v13091_v24 = vpop.eup %13090 }
0x3ed3   :  { %v9642_v1 = vmul.f32 %v13091_v24, %v13085_v18  ;;  %v9641_v48 = vmul.f32 %v13091_v24, %v13083_v45  ;;  %v9803_v10 = vadd.f32 %v9802_v55, %v9801_v0 }
0x3ed5   :  { %9650 = vperm.xlu1 %12689, %v9642_v1   ;;  %9645 = vperm.xlu0 %12688, %v9641_v48   ;;  %13092 = vrcp.f32 %v9803_v10 }
0x3ee2   :  { %v13093_v27 = vpop.eup %13092 }
0x3ee3   :  { %v9805_v53 = vmul.f32 %v13093_v27, %v13087_v38  ;;  %v9806_v30 = vmul.f32 %v13093_v27, %v13089_v49 }
0x3ee5   :  { %9809 = vperm.xlu1 %12689, %v9805_v53  }
0x3ee9   :  { %9814 = vperm.xlu1 %12689, %v9806_v30  }
0x3f50   :  { %v9651_v44 = vpop.permute.xlu1 %9650  ;;  %v9646_v51 = vpop.permute.xlu0 %9645 }
0x3f51   :  { %v9654_v7 = vmul.f32 %v9651_v44, %v16325_v13  ;;  %v9667_v2 = vmul.f32 %v9665_v31, %v9651_v44  ;;  %v9653_v9 = vmul.f32 %v9646_v51, %v16320_v20  ;;  %v9666_v63 = vmul.f32 %v9664_v15, %v9646_v51 }
0x3f52   :  { %v9828_v20 = vmul.f32 %v16331_v19, %v16331_v19 }
0x3f53   :  { %v9656_v25 = vsel %vm16856_vm1, %v9654_v7, 0.0  ;;  %v9669_v42 = vsel %vm16873_vm6, %v9667_v2, 0.0  ;;  %v9655_v6 = vsel %vm16874_vm7, %v9653_v9, 0.0  ;;  %v9668_v11 = vsel %vm16875_vm8, %v9666_v63, 0.0  ;;  %v9885_v63 = vld [vmem:[%s16547_s11 + $0xf8] sm:$0xff] }
0x3f54   :  { %v9657_v4 = vadd.f32 %v9656_v25, %v9655_v6  ;;  %v9670_v45 = vadd.f32 %v9669_v42, %v9668_v11  ;;  %v9884_v25 = vld [vmem:[%s16547_s11 + $0xf0] sm:$0xff]  ;;  %v9883_v42 = vld [vmem:[%s16547_s11 + $0xe8] sm:$0xff]  ;;  %v9882_v6 = vld [vmem:[%s16547_s11 + $0xe0] sm:$0xff] }
0x3f55   :  { %v9881_v11 = vld [vmem:[%s16547_s11 + $0xd8] sm:$0xff] }
0x3f56   :  { %v9658_v18 = vrot.slane %v9657_v4, 4  ;;  %v9671_v61 = vrot.slane %v9670_v45, 4 }
0x3f58   :  { %v9659_v58 = vadd.f32 %v9658_v18, %v9657_v4  ;;  %v9672_v32 = vadd.f32 %v9671_v61, %v9670_v45  ;;  %v9880_v4 = vld [vmem:[%s16547_s11 + $0xd0] sm:$0xff]  ;;  %v9879_v45 = vld [vmem:[%s16547_s11 + $0xc8] sm:$0xff]  ;;  %v9878_v18 = vld [vmem:[%s16547_s11 + $0xc0] sm:$0xff] }
0x3f59   :  { %v9876_v61 = vld [vmem:[%s16547_s11 + $0xb0] sm:$0xff] }
0x3f5a   :  { %v9660_v29 = vrot.slane %v9659_v58, 2  ;;  %v9673_v33 = vrot.slane %v9672_v32, 2 }
0x3f5c   :  { %v9661_v13 = vadd.f32 %v9660_v29, %v9659_v58  ;;  %v9674_v40 = vadd.f32 %v9673_v33, %v9672_v32  ;;  %v9877_v58 = vld [vmem:[%s16547_s11 + $0xb8] sm:$0xff]  ;;  %v9875_v29 = vld [vmem:[%s16547_s11 + $0xa8] sm:$0xff]  ;;  %v9874_v32 = vld [vmem:[%s16547_s11 + $0xa0] sm:$0xff] }
0x3f5d   :  { %v9872_v33 = vld [vmem:[%s16547_s11 + $0x90] sm:$0xff] }
0x3f5e   :  { %v9662_v43 = vrot.slane %v9661_v13, 1  ;;  %v9675_v0 = vrot.slane %v9674_v40, 1 }
0x3f60   :  { %v9810_v39 = vpop.permute.xlu1 %9809  ;;  %v9663_v41 = vadd.f32 %v9662_v43, %v9661_v13  ;;  %v9676_v10 = vadd.f32 %v9675_v0, %v9674_v40  ;;  %v9873_v13 = vld [vmem:[%s16547_s11 + $0x98] sm:$0xff] }
0x3f61   :  { %v9817_v34 = vmul.f32 %v9810_v39, %v16331_v19  ;;  %v9830_v3 = vmul.f32 %v9828_v20, %v9810_v39  ;;  %v9871_v39 = vld [vmem:[%s16547_s11 + $0x88] sm:$0xff]  ;;  %v9870_v20 = vld [vmem:[%s16547_s11 + $0x80] sm:$0xff] }
0x3f62   :  { %v9677_v24 = vmul.f32 %v9663_v41, %v9663_v41 }
0x3f63   :  { %v9819_v17 = vsel %vm16876_vm9, %v9817_v34, 0.0  ;;  %v9832_v22 = vsel %vm16877_vm10, %v9830_v3, 0.0  ;;  %v10841_v3 = vld [vmem:[%s16547_s11 + $0x100] ss:$0 sm:$0xff] }
0x3f64   :  { %v9815_v38 = vpop.permute.xlu1 %9814 }
0x3f65   :  { %v9818_v49 = vmul.f32 %v9815_v38, %v16336_v5  ;;  %v9831_v14 = vmul.f32 %v9829_v8, %v9815_v38  ;;  %v9678_v5 = vsub.f32 %v9676_v10, %v9677_v24 }
0x3f67   :  { %v9820_v56 = vsel %vm16878_vm11, %v9818_v49, 0.0  ;;  %v9833_v46 = vsel %vm16879_vm2, %v9831_v14, 0.0  ;;  %v9679_v54 = vmax.f32 %v9678_v5, 1e-09 }
0x3f68   :  { %v9821_v19 = vadd.f32 %v9820_v56, %v9819_v17  ;;  %v9834_v55 = vadd.f32 %v9833_v46, %v9832_v22 }
0x3f69   :  { %13094 = vrsqrt.f32 %v9679_v54  ;;  %vm9682_vm5 = vcmp.eq.f32.partialorder %v9679_v54, inf  ;;  %v9685_v15 = vand.u32 2147483648, %v9679_v54  ;;  %vm9684_vm13 = vcmp.eq.f32.partialorder %v9679_v54, 0.0 }
0x3f6a   :  { %v9822_v1 = vrot.slane %v9821_v19, 4  ;;  %v9835_v48 = vrot.slane %v9834_v55, 4 }
0x3f6c   :  { %v9823_v27 = vadd.f32 %v9822_v1, %v9821_v19  ;;  %v9836_v53 = vadd.f32 %v9835_v48, %v9834_v55 }
0x3f6e   :  { %v9824_v30 = vrot.slane %v9823_v27, 2  ;;  %v9837_v12 = vrot.slane %v9836_v53, 2 }
0x3f70   :  { %v9825_v37 = vadd.f32 %v9824_v30, %v9823_v27  ;;  %v9838_v52 = vadd.f32 %v9837_v12, %v9836_v53 }
0x3f72   :  { %v9826_v47 = vrot.slane %v9825_v37, 1  ;;  %v9839_v50 = vrot.slane %v9838_v52, 1 }
0x3f74   :  { %v9827_v59 = vadd.f32 %v9826_v47, %v9825_v37  ;;  %v9840_v21 = vadd.f32 %v9839_v50, %v9838_v52 }
0x3f76   :  { %v9841_v62 = vmul.f32 %v9827_v59, %v9827_v59  ;;  %v9852_v23 = vsel %vm9851_vm3, %v9663_v41, %v9827_v59  ;;  %v13095_v57 = vpop.eup %13094  ;;  %v10842_v41 = vld [vmem:[%s16547_s11 + $0x101] ss:$0 sm:$0xff] }
0x3f77   :  { %12648 = vmatmul.mubr.msk.f32.vlgmr.msra.gmra.mxu1 %vm16880_vm4, %v9852_v23  ;;  %v9681_v16 = vmul.f32 %v13095_v57, %v9679_v54 }
0x3f78   :  { %v9842_v36 = vsub.f32 %v9840_v21, %v9841_v62 }
0x3f79   :  { %v9683_v35 = vsel %vm9682_vm5, %v9679_v54, %v9681_v16 }
0x3f7a   :  { %v9843_v26 = vmax.f32 %v9842_v36, 1e-09  ;;  %v9686_v7 = vsel %vm9684_vm13, %v9685_v15, %v9683_v35 }
0x3f7c   :  { %13096 = vrsqrt.f32 %v9843_v26  ;;  %vm9846_vm12 = vcmp.eq.f32.partialorder %v9843_v26, inf  ;;  %v9849_v44 = vand.u32 2147483648, %v9843_v26  ;;  %vm9848_vm14 = vcmp.eq.f32.partialorder %v9843_v26, 0.0 }
0x3f89   :  { %v13097_v28 = vpop.eup %13096 }
0x3f8a   :  { %v9845_v31 = vmul.f32 %v13097_v28, %v9843_v26 }
0x3f8c   :  { %v9847_v51 = vsel %vm9846_vm12, %v9843_v26, %v9845_v31 }
0x3f8d   :  { %v9850_v2 = vsel %vm9848_vm14, %v9849_v44, %v9847_v51 }
0x3f8e   :  { %v9853_v9 = vsel %vm9851_vm3, %v9686_v7, %v9850_v2 }
0x3f8f   :  { %12629 = vmatmul.mubr.msk.f32.vlgmr.msra.gmra.mxu0 %vm16881_vm15, %v9853_v9 }
0x3f90   :  { %12682 = vmatprep.mubr.msk.f32.mxu0 %vm13108_vm0, %v16864_v60  ;;  %12651 = vmatpush3.msra.mxu0 %v9885_v63 }
0x3f91   :  { %12652 = vmatprep.subr.mxu0 %v16864_v60 }
0x3f92   :  { %12653 = vmatpush3.msra.mxu0 %v9884_v25 }
0x3f93   :  { %12654 = vmatprep.subr.mxu0 %v16864_v60 }
0x3f94   :  { %12655 = vmatpush3.msra.mxu0 %v9883_v42 }
0x3f95   :  { %12656 = vmatprep.subr.mxu0 %v16864_v60 }
0x3f96   :  { %12657 = vmatpush3.msra.mxu0 %v9882_v6 }
0x3f97   :  { %12658 = vmatprep.subr.mxu0 %v16864_v60 }
0x3f98   :  { %12659 = vmatpush3.msra.mxu0 %v9881_v11 }
0x3f99   :  { %12660 = vmatprep.subr.mxu0 %v16864_v60 }
0x3f9a   :  { %12661 = vmatpush3.msra.mxu0 %v9880_v4 }
0x3f9b   :  { %12662 = vmatprep.subr.mxu0 %v16864_v60 }
0x3f9c   :  { %12663 = vmatpush3.msra.mxu0 %v9879_v45 }
0x3f9d   :  { %12664 = vmatprep.subr.mxu0 %v16864_v60 }
0x3f9e   :  { %12665 = vmatpush3.msra.mxu0 %v9878_v18 }
0x3f9f   :  { %12666 = vmatprep.subr.mxu0 %v16864_v60 }
0x3fa0   :  { %12667 = vmatpush3.msra.mxu0 %v9877_v58 }
0x3fa1   :  { %12668 = vmatprep.subr.mxu0 %v16864_v60 }
0x3fa2   :  { %12669 = vmatpush3.msra.mxu0 %v9876_v61 }
0x3fa3   :  { %12670 = vmatprep.subr.mxu0 %v16864_v60 }
0x3fa4   :  { %12671 = vmatpush3.msra.mxu0 %v9875_v29 }
0x3fa5   :  { %12672 = vmatprep.subr.mxu0 %v16864_v60 }
0x3fa6   :  { %12673 = vmatpush3.msra.mxu0 %v9874_v32 }
0x3fa7   :  { %12674 = vmatprep.subr.mxu0 %v16864_v60 }
0x3fa8   :  { %12675 = vmatpush3.msra.mxu0 %v9873_v13 }
0x3fa9   :  { %12676 = vmatprep.subr.mxu0 %v16864_v60 }
0x3faa   :  { %12677 = vmatpush3.msra.mxu0 %v9872_v33 }
0x3fab   :  { %12678 = vmatprep.subr.mxu0 %v16864_v60 }
0x3fac   :  { %12679 = vmatpush3.msra.mxu0 %v9871_v39 }
0x3fad   :  { %12680 = vmatprep.subr.mxu0 %v16864_v60 }
0x3fae   :  { %12681 = vmatpush3.msra.mxu0 %v9870_v20 }
0x4037   :  { %v10030_v43 = vpop.f32.mrf.mxu1 }
0x4039   :  { %v12649_v34 = vpop.f32.mrf.mxu1 }
0x404f   :  { %v9957_v8 = vpop.f32.mrf.mxu0 }
0x4050   :  { %v10031_v40 = vadd.f32 %v10030_v43, %v9957_v8 }
0x4051   :  { %v12630_v38 = vpop.f32.mrf.mxu0 }
0x4052   :  { %v10038_v49 = vadd.f32 %v10841_v3, %v10031_v40 }
0x4054   :  { %v10039_v14 = vmax.f32 %v10038_v49, 0.0 }
0x4056   :  { %12683 = vmatmul.mubr.f32.vlgmr.msra.gmra.mxu0 %v10039_v14 }
0x4116   :  { %v10110_v17 = vpop.f32.mrf.mxu0 }
0x4117   :  { %v10111_v22 = vadd.f32 %v10842_v41, %v10110_v17 }
0x4118   :  { %v12684_v60 = vpop.f32.mrf.mxu0 }
0x4119   :  { %10114 = vst [vmem:[%s16548_s12] sm:$0x3] %v10111_v22 }

</bundles_post_ra>
